<compile_context>
chip_gen: v5e
topology: v5e:2x2
jax: 0.10.0
libtpu: 0.0.40
codegen_flags: <defaults>
</compile_context>

<pallas_src>
import math

import jax
import jax.numpy as jnp
from jax.experimental import pallas as pl
from jax.experimental.pallas import tpu as pltpu

# ----------------------------- model hyper-parameters (small, synthetic) -----------------
N_CLS = 14            # number of classnames in MultiModalPromptLearner
N_CTX = 2             # cfg.MAPLE.N_CTX
PROMPT_DEPTH = 2      # cfg.MAPLE.PROMPT_DEPTH  -> 1 compound prompt / projection
NUM_DEEP = PROMPT_DEPTH - 1
D_T = 32              # text transformer width (ctx_dim, stands in for 768)
D_V = 32              # vision width / in_planes (stands in for 768)
L_TXT = 8             # text sequence length: 1 prefix + N_CTX ctx + 5 suffix
HEADS = 4             # attention heads (both encoders)
TXT_LAYERS = 2        # text transformer depth
VIS_LAYERS = 2        # vision transformer depth
MLP_RATIO = 4
PATCH = 8
IMG_B, IMG_C, IMG_H, IMG_W = 2, 4, 16, 16
NUM_PATCHES = (IMG_H // PATCH) * (IMG_W // PATCH)     # 4
VIS_SEQ = 1 + NUM_PATCHES + N_CTX                     # CLS + patches + shared ctx tokens
CPP = IMG_C * PATCH * PATCH                           # flattened patch size (256)

CLS_G = 2                                             # class groups (parallel grid axis)
CLS_PER_G = N_CLS // CLS_G

assert N_CLS % CLS_G == 0
assert D_T % HEADS == 0 and D_V % HEADS == 0

_VMEM = pl.BlockSpec(memory_space=pltpu.MemorySpace.VMEM)


# ----------------------------- in-kernel helpers ------------------------------------------
def _ln(x, g, b, eps=1e-5):
    m = jnp.mean(x, axis=-1, keepdims=True)
    v = jnp.mean(jnp.square(x - m), axis=-1, keepdims=True)
    return (x - m) * jax.lax.rsqrt(v + eps) * g + b


def _fused_block(x, blk, *, n_heads, causal, act):
    """Pre-LN transformer block, fully in-kernel: LN1 -> QKV -> MHA -> out-proj (+res)
    -> LN2 -> FC1 -> act -> FC2 (+res).  Matmul operands bf16, accumulation f32."""
    (ln1g, ln1b, wqkv, bqkv, wo, bo, ln2g, ln2b, wfc1, bfc1, wfc2, bfc2) = blk
    Bx, S, D = x.shape
    dh = D // n_heads
    scale = 1.0 / math.sqrt(dh)

    # ---- attention ----
    h2 = _ln(x, ln1g, ln1b).reshape(Bx * S, D).astype(jnp.bfloat16)
    qkv = jnp.dot(h2, wqkv, preferred_element_type=jnp.float32) + bqkv        # (B*S, 3D) f32

    if causal:
        r = jax.lax.broadcasted_iota(jnp.int32, (S, S), 0)
        c = jax.lax.broadcasted_iota(jnp.int32, (S, S), 1)
        cmask = jnp.where(c <= r, 0.0, -1e9).astype(jnp.float32)[None]        # (1, S, S)

    heads = []
    for hd in range(n_heads):
        # single batch dim per einsum (Mosaic-safe batched matmul)
        q = qkv[:, hd * dh:(hd + 1) * dh].reshape(Bx, S, dh).astype(jnp.bfloat16)
        k = qkv[:, D + hd * dh:D + (hd + 1) * dh].reshape(Bx, S, dh).astype(jnp.bfloat16)
        v = qkv[:, 2 * D + hd * dh:2 * D + (hd + 1) * dh].reshape(Bx, S, dh).astype(jnp.bfloat16)
        s = jnp.einsum("bqd,bkd->bqk", q, k, preferred_element_type=jnp.float32) * scale
        if causal:
            s = s + cmask
        s = s - jnp.max(s, axis=-1, keepdims=True)
        p = jnp.exp(s)
        p = p * pl.reciprocal(jnp.sum(p, axis=-1, keepdims=True), approx=True)
        heads.append(jnp.einsum("bqk,bkd->bqd", p.astype(jnp.bfloat16), v,
                                preferred_element_type=jnp.float32))
    attn = jnp.concatenate(heads, axis=-1).reshape(Bx * S, D).astype(jnp.bfloat16)
    x = x + (jnp.dot(attn, wo, preferred_element_type=jnp.float32) + bo).reshape(Bx, S, D)

    # ---- MLP ----
    h2 = _ln(x, ln2g, ln2b).reshape(Bx * S, D).astype(jnp.bfloat16)
    ff = jnp.dot(h2, wfc1, preferred_element_type=jnp.float32) + bfc1
    if act == "quick_gelu":                     # CLIP QuickGELU
        ff = ff * jax.nn.sigmoid(1.702 * ff)
    else:                                       # ViT GELU (tanh approx)
        ff = jax.nn.gelu(ff, approximate=True)
    ff = jnp.dot(ff.astype(jnp.bfloat16), wfc2, preferred_element_type=jnp.float32) + bfc2
    return x + ff.reshape(Bx, S, D)


# ----------------------------- fused Pallas kernels ---------------------------------------
def _prompt_proj_kernel(src_ref, w_ref, b_ref, out_ref):
    """Batched Linear: [ctx -> shared_ctx] + [compound_text_i -> deep visual prompt_i]."""
    src = src_ref[...]
    w = w_ref[...]
    b = b_ref[...]
    for i in range(PROMPT_DEPTH):
        out_ref[i, :, :] = jnp.dot(src[i], w[i], preferred_element_type=jnp.float32) + b[i]


def _text_encoder_kernel(prompts_ref, pos_ref, deep_ref,
                         ln1g_ref, ln1b_ref, wqkv_ref, bqkv_ref, wo_ref, bo_ref,
                         ln2g_ref, ln2b_ref, wfc1_ref, bfc1_ref, wfc2_ref, bfc2_ref,
                         lnfg_ref, lnfb_ref, eot_ref, tproj_ref,
                         out_ref, x_sc):
    lid = pl.program_id(1)

    @pl.when(lid == 0)
    def _():                                    # prompts + positional embedding -> VMEM scratch
        x_sc[...] = prompts_ref[...] + pos_ref[...]

    @pl.when((lid >= 1) & (lid <= NUM_DEEP))
    def _():                                    # MaPLe deep text prompt replacement (rows 1..1+N_CTX)
        x = x_sc[...]
        cp = deep_ref[...]                      # (N_CTX, D_T)
        seq = jax.lax.broadcasted_iota(jnp.int32, (1, L_TXT, 1), 1)
        for j in range(N_CTX):
            x = jnp.where(seq == 1 + j, cp[j:j + 1, :][None], x)
        x_sc[...] = x

    blk = (ln1g_ref[...], ln1b_ref[...], wqkv_ref[...], bqkv_ref[...],
           wo_ref[...], bo_ref[...], ln2g_ref[...], ln2b_ref[...],
           wfc1_ref[...], bfc1_ref[...], wfc2_ref[...], bfc2_ref[...])
    x_sc[...] = _fused_block(x_sc[...], blk, n_heads=HEADS, causal=True, act="quick_gelu")

    @pl.when(lid == pl.num_programs(1) - 1)
    def _():                                    # ln_final -> EOT gather (one-hot) -> text projection
        xf = _ln(x_sc[...], lnfg_ref[...], lnfb_ref[...])
        eot = jnp.sum(eot_ref[...] * xf, axis=1)                              # (CG, D_T)
        tf = jnp.dot(eot.astype(jnp.bfloat16), tproj_ref[...],
                     preferred_element_type=jnp.float32)                       # (CG, D_V)
        out_ref[...] = tf[:, None, :]


def _vision_kernel(patches_ref, pw_ref, pb_ref, frame_ref, deep_ref,
                   ln1g_ref, ln1b_ref, wqkv_ref, bqkv_ref, wo_ref, bo_ref,
                   ln2g_ref, ln2b_ref, wfc1_ref, bfc1_ref, wfc2_ref, bfc2_ref,
                   lnfg_ref, lnfb_ref, bng_ref, bnb_ref, bnm_ref, bnv_ref,
                   feat_ref, gfeat_ref, x_sc):
    lid = pl.program_id(1)

    @pl.when(lid == 0)
    def _():                                    # patch embed + CLS/pos/shared-ctx token assembly
        pat = patches_ref[...].reshape(NUM_PATCHES, CPP)
        tok = jnp.dot(pat.astype(jnp.bfloat16), pw_ref[...],
                      preferred_element_type=jnp.float32) + pb_ref[...]        # (NP, D_V)
        x = frame_ref[...]                      # (1, VIS_SEQ, D_V): [cls+pos0 | pos1..NP | shared_ctx]
        seq = jax.lax.broadcasted_iota(jnp.int32, (1, VIS_SEQ, 1), 1)
        for j in range(NUM_PATCHES):
            x = jnp.where(seq == 1 + j, x + tok[j:j + 1, :][None], x)
        x_sc[...] = x

    @pl.when((lid >= 1) & (lid <= NUM_DEEP))
    def _():                                    # MaPLe deep visual prompt replacement (last N_CTX rows)
        x = x_sc[...]
        vpmt = deep_ref[...]                    # (N_CTX, D_V)
        seq = jax.lax.broadcasted_iota(jnp.int32, (1, VIS_SEQ, 1), 1)
        for j in range(N_CTX):
            x = jnp.where(seq == VIS_SEQ - N_CTX + j, vpmt[j:j + 1, :][None], x)
        x_sc[...] = x

    blk = (ln1g_ref[...], ln1b_ref[...], wqkv_ref[...], bqkv_ref[...],
           wo_ref[...], bo_ref[...], ln2g_ref[...], ln2b_ref[...],
           wfc1_ref[...], bfc1_ref[...], wfc2_ref[...], bfc2_ref[...])
    x_sc[...] = _fused_block(x_sc[...], blk, n_heads=HEADS, causal=False, act="gelu")

    @pl.when(lid == pl.num_programs(1) - 1)
    def _():                                    # final LN on CLS token + BatchNorm1d bottleneck (eval)
        cls_tok = x_sc[...][:, 0, :]                                           # (1, D_V)
        gf = _ln(cls_tok, lnfg_ref[...], lnfb_ref[...])
        gfeat_ref[...] = gf[:, None, :]
        feat = (gf - bnm_ref[...]) * jax.lax.rsqrt(bnv_ref[...] + 1e-5) * bng_ref[...] + bnb_ref[...]
        feat_ref[...] = feat[:, None, :]


# ----------------------------- pallas_call wrappers ---------------------------------------
def _text_encoder(tp, prompts, eot_onehot, deep_text):
    D = D_T
    Hd = MLP_RATIO * D
    per_layer = lambda a, b: pl.BlockSpec((None, a, b), lambda g, l: (l, 0, 0))
    grp = lambda a, b: pl.BlockSpec((CLS_PER_G, a, b), lambda g, l: (g, 0, 0))
    c3 = lambda s: pl.BlockSpec(s, lambda g, l: (0, 0, 0))
    c2 = lambda s: pl.BlockSpec(s, lambda g, l: (0, 0))
    in_specs = [
        grp(L_TXT, D),                        # prompts
        c3((1, L_TXT, D)),                    # positional embedding
        per_layer(N_CTX, D),                  # stacked deep text prompts
        per_layer(1, D), per_layer(1, D),     # ln1 g,b
        per_layer(D, 3 * D), per_layer(1, 3 * D),
        per_layer(D, D), per_layer(1, D),
        per_layer(1, D), per_layer(1, D),     # ln2 g,b
        per_layer(D, Hd), per_layer(1, Hd),
        per_layer(Hd, D), per_layer(1, D),
        c2((1, D)), c2((1, D)),               # ln_final g,b
        grp(L_TXT, 1),                        # EOT one-hot
        c2((D_T, D_V)),                       # text_projection
    ]
    out = pl.pallas_call(
        _text_encoder_kernel,
        out_shape=jax.ShapeDtypeStruct((N_CLS, 1, D_V), jnp.float32),
        grid_spec=pltpu.PrefetchScalarGridSpec(
            num_scalar_prefetch=0,
            grid=(CLS_G, TXT_LAYERS),
            in_specs=in_specs,
            out_specs=pl.BlockSpec((CLS_PER_G, 1, D_V), lambda g, l: (g, 0, 0)),
            scratch_shapes=[pltpu.VMEM((CLS_PER_G, L_TXT, D_T), jnp.float32)]),
        compiler_params=pltpu.CompilerParams(dimension_semantics=("parallel", "arbitrary")),
    )(prompts, tp["pos"], deep_text,
      tp["ln1_g"], tp["ln1_b"], tp["w_qkv"], tp["b_qkv"], tp["w_o"], tp["b_o"],
      tp["ln2_g"], tp["ln2_b"], tp["w_fc1"], tp["b_fc1"], tp["w_fc2"], tp["b_fc2"],
      tp["lnf_g"], tp["lnf_b"], eot_onehot, tp["text_projection"])
    return out[:, 0, :]


def _vision_encoder(vp, patches, frame, deep_vis):
    D = D_V
    Hd = MLP_RATIO * D
    per_layer = lambda a, b: pl.BlockSpec((None, a, b), lambda bi, l: (l, 0, 0))
    c3 = lambda s: pl.BlockSpec(s, lambda bi, l: (0, 0, 0))
    c2 = lambda s: pl.BlockSpec(s, lambda bi, l: (0, 0))
    in_specs = [
        pl.BlockSpec((1, NUM_PATCHES, CPP), lambda bi, l: (bi, 0, 0)),   # patches
        c2((CPP, D)), c2((1, D)),                                        # patch_w, patch_b
        c3((1, VIS_SEQ, D)),                                             # token "frame"
        per_layer(N_CTX, D),                                             # stacked deep visual prompts
        per_layer(1, D), per_layer(1, D),
        per_layer(D, 3 * D), per_layer(1, 3 * D),
        per_layer(D, D), per_layer(1, D),
        per_layer(1, D), per_layer(1, D),
        per_layer(D, Hd), per_layer(1, Hd),
        per_layer(Hd, D), per_layer(1, D),
        c2((1, D)), c2((1, D)),                                          # final LN g,b
        c2((1, D)), c2((1, D)), c2((1, D)), c2((1, D)),                  # bn g,b,mean,var
    ]
    out_specs = (pl.BlockSpec((1, 1, D), lambda bi, l: (bi, 0, 0)),
                 pl.BlockSpec((1, 1, D), lambda bi, l: (bi, 0, 0)))
    feat, gfeat = pl.pallas_call(
        _vision_kernel,
        out_shape=(jax.ShapeDtypeStruct((IMG_B, 1, D), jnp.float32),
                   jax.ShapeDtypeStruct((IMG_B, 1, D), jnp.float32)),
        grid_spec=pltpu.PrefetchScalarGridSpec(
            num_scalar_prefetch=0,
            grid=(IMG_B, VIS_LAYERS),
            in_specs=in_specs,
            out_specs=out_specs,
            scratch_shapes=[pltpu.VMEM((1, VIS_SEQ, D_V), jnp.float32)]),
        compiler_params=pltpu.CompilerParams(dimension_semantics=("parallel", "arbitrary")),
    )(patches, vp["patch_w"], vp["patch_b"], frame, deep_vis,
      vp["ln1_g"], vp["ln1_b"], vp["w_qkv"], vp["b_qkv"], vp["w_o"], vp["b_o"],
      vp["ln2_g"], vp["ln2_b"], vp["w_fc1"], vp["b_fc1"], vp["w_fc2"], vp["b_fc2"],
      vp["lnf_g"], vp["lnf_b"], vp["bn_g"], vp["bn_b"], vp["bn_m"], vp["bn_v"])
    return feat[:, 0, :], gfeat[:, 0, :]


# ----------------------------- JAX-level glue (one-time data prep only) -------------------
def _extract_patches(x_nchw, P):
    B, C, H, W = x_nchw.shape
    x = x_nchw.reshape(B, C, H // P, P, W // P, P)
    x = x.transpose(0, 2, 4, 1, 3, 5)                                   # B, Hn, Wn, C, ph, pw
    return x.reshape(B, (H // P) * (W // P), C * P * P)


def _pad_deep(deep, n_layers):
    """(k, N_CTX, D) deep prompts -> (n_layers, N_CTX, D); entry i is substituted before layer i."""
    zero = jnp.zeros((1,) + deep.shape[1:], jnp.float32)
    parts = [zero, deep.astype(jnp.float32)]
    pad = n_layers - (1 + deep.shape[0])
    if pad > 0:
        parts.append(jnp.zeros((pad,) + deep.shape[1:], jnp.float32))
    return jnp.concatenate(parts, axis=0)[:n_layers]


@jax.jit
def forward(params, x_nchw):
    """Inference forward of build_transformer_maple (neck_feat == 'after')."""
    # 1) MultiModalPromptLearner projections (one fused Pallas call)
    proj_src = jnp.stack([params["ctx"]] + params["compound_text"], axis=0)          # (P, N_CTX, D_T)
    proj_w = jnp.stack([params["proj_w"]] + params["compound_proj_w"], axis=0)
    proj_b = jnp.stack([params["proj_b"]] + params["compound_proj_b"], axis=0)[:, None, :]
    projected = pl.pallas_call(
        _prompt_proj_kernel,
        out_shape=jax.ShapeDtypeStruct((PROMPT_DEPTH, N_CTX, D_V), jnp.float32),
        in_specs=[_VMEM, _VMEM, _VMEM],
        out_specs=_VMEM,
    )(proj_src, proj_w, proj_b)
    shared_ctx = projected[0]                                                         # (N_CTX, D_V)
    deep_vision = projected[1:]                                                       # (NUM_DEEP, N_CTX, D_V)

    # prompts = cat(prefix, ctx, suffix)
    ctx_exp = jnp.broadcast_to(params["ctx"][None], (N_CLS, N_CTX, D_T))
    prompts = jnp.concatenate([params["token_prefix"], ctx_exp, params["token_suffix"]], axis=1)

    # EOT one-hot from tokenized prompts (argmax of token ids)
    eot_pos = jnp.argmax(params["tokenized_prompts"], axis=-1)
    eot_onehot = (jnp.arange(L_TXT)[None, :] == eot_pos[:, None]).astype(jnp.float32)[:, :, None]

    # 2) text encoder (single fused pallas_call)
    deep_text = _pad_deep(jnp.stack(params["compound_text"], axis=0), TXT_LAYERS)
    text_features = _text_encoder(params["txt"], prompts, eot_onehot, deep_text)

    # 3) vision backbone (single fused pallas_call)
    #    TODO(synk): cross_attn_text(global_feat, text_features) needs external text-feature
    #                files (cfg.CLIP.TEXT_FEAT paths); self.text is treated as False here.
    patches = _extract_patches(x_nchw.astype(jnp.float32), PATCH)                     # (B, NP, C*P*P)
    vp = params["vis"]
    frame = jnp.concatenate([vp["cls_token"] + vp["pos"][:, :1],
                             vp["pos"][:, 1:],
                             shared_ctx[None]], axis=1)                               # (1, VIS_SEQ, D_V)
    deep_vis = _pad_deep(deep_vision, VIS_LAYERS)
    feat, global_feat = _vision_encoder(vp, patches, frame, deep_vis)
    # AdaIN / whitening / classifier are training-only branches -> not executed in eval.
    return feat, global_feat, text_features


# ----------------------------- deterministic parameter init ------------------------------
def _init_block(keys, D, hidden):
    return dict(
        ln1_g=jnp.ones((D,), jnp.float32), ln1_b=jnp.zeros((D,), jnp.float32),
        w_qkv=0.02 * jax.random.normal(next(keys), (D, 3 * D), jnp.float32),
        b_qkv=jnp.zeros((3 * D,), jnp.float32),
        w_o=0.02 * jax.random.normal(next(keys), (D, D), jnp.float32),
        b_o=jnp.zeros((D,), jnp.float32),
        ln2_g=jnp.ones((D,), jnp.float32), ln2_b=jnp.zeros((D,), jnp.float32),
        w_fc1=0.02 * jax.random.normal(next(keys), (D, hidden), jnp.float32),
        b_fc1=jnp.zeros((hidden,), jnp.float32),
        w_fc2=0.02 * jax.random.normal(next(keys), (hidden, D), jnp.float32),
        b_fc2=jnp.zeros((D,), jnp.float32),
    )


def _stack_blocks(blocks):
    """Stack per-layer params into (L, ...) arrays; weights bf16, biases/LN f32."""
    st = lambda name: jnp.stack([b[name] for b in blocks], axis=0)
    return dict(
        ln1_g=st("ln1_g")[:, None, :], ln1_b=st("ln1_b")[:, None, :],
        w_qkv=st("w_qkv").astype(jnp.bfloat16), b_qkv=st("b_qkv")[:, None, :],
        w_o=st("w_o").astype(jnp.bfloat16), b_o=st("b_o")[:, None, :],
        ln2_g=st("ln2_g")[:, None, :], ln2_b=st("ln2_b")[:, None, :],
        w_fc1=st("w_fc1").astype(jnp.bfloat16), b_fc1=st("b_fc1")[:, None, :],
        w_fc2=st("w_fc2").astype(jnp.bfloat16), b_fc2=st("b_fc2")[:, None, :],
    )


def init_params(seed=0):
    keys = iter(jax.random.split(jax.random.PRNGKey(seed), 256))
    n = lambda shape, std=0.02: std * jax.random.normal(next(keys), shape, jnp.float32)

    suffix_len = L_TXT - 1 - N_CTX
    # deterministic EOT positions (stand-in for the CLIP tokenizer's EOT token argmax)
    name_lens = jnp.array([(i % 4) + 1 for i in range(N_CLS)], jnp.int32)
    eot_pos = jnp.minimum(1 + N_CTX + name_lens, L_TXT - 1)
    tokenized = jnp.zeros((N_CLS, L_TXT), jnp.int32)
    tokenized = tokenized.at[jnp.arange(N_CLS), eot_pos].set(49407)

    txt_blocks = [_init_block(keys, D_T, MLP_RATIO * D_T) for _ in range(TXT_LAYERS)]
    vis_blocks = [_init_block(keys, D_V, MLP_RATIO * D_V) for _ in range(VIS_LAYERS)]

    params = dict(
        # MultiModalPromptLearner
        ctx=n((N_CTX, D_T)),
        proj_w=n((D_T, D_V)), proj_b=jnp.zeros((D_V,), jnp.float32),
        compound_text=[n((N_CTX, D_T)) for _ in range(NUM_DEEP)],
        compound_proj_w=[n((D_T, D_V)) for _ in range(NUM_DEEP)],
        compound_proj_b=[jnp.zeros((D_V,), jnp.float32) for _ in range(NUM_DEEP)],
        token_prefix=n((N_CLS, 1, D_T)),                 # stand-in for CLIP SOS embeddings
        token_suffix=n((N_CLS, suffix_len, D_T)),        # stand-in for classname+EOS embeddings
        tokenized_prompts=tokenized,
        # TextEncoder_MaPLE (stacked per-layer weights for the fused kernel)
        txt=dict(
            pos=n((L_TXT, D_T))[None],                   # (1, L, D)
            lnf_g=jnp.ones((1, D_T), jnp.float32), lnf_b=jnp.zeros((1, D_T), jnp.float32),
            text_projection=n((D_T, D_V)).astype(jnp.bfloat16),
            **_stack_blocks(txt_blocks),
        ),
        # vision backbone (self.base, MaPLe-modified ViT) + bottleneck BN (eval stats)
        vis=dict(
            patch_w=n((CPP, D_V)).astype(jnp.bfloat16),
            patch_b=jnp.zeros((1, D_V), jnp.float32),
            cls_token=n((1, 1, D_V)),
            pos=n((1, 1 + NUM_PATCHES, D_V)),
            lnf_g=jnp.ones((1, D_V), jnp.float32), lnf_b=jnp.zeros((1, D_V), jnp.float32),
            bn_g=jnp.ones((1, D_V), jnp.float32), bn_b=jnp.zeros((1, D_V), jnp.float32),
            bn_m=jnp.zeros((1, D_V), jnp.float32), bn_v=jnp.ones((1, D_V), jnp.float32),
            **_stack_blocks(vis_blocks),
        ),
    )
    return params


# ----------------------------- main -------------------------------------------------------
if __name__ == "__main__":
    params = init_params(seed=0)
    x = jax.random.normal(jax.random.PRNGKey(0), (IMG_B, IMG_C, IMG_H, IMG_W), jnp.float32)

    feat, global_feat, text_features = forward(params, x)
    jax.block_until_ready((feat, global_feat, text_features))

    assert feat.shape == (IMG_B, D_V)
    assert global_feat.shape == (IMG_B, D_V)
    assert text_features.shape == (N_CLS, D_V)
    assert bool(jnp.all(jnp.isfinite(feat))) and bool(jnp.all(jnp.isfinite(text_features)))
    print("KERNEL_OK")
</pallas_src>

<mosaic_0001>
module attributes {stable_mosaic.version = 11 : i64} {
  func.func @_prompt_proj_kernel(%arg0: memref<2x2x32xf32, #tpu.memory_space<vmem>>, %arg1: memref<2x32x32xf32, #tpu.memory_space<vmem>>, %arg2: memref<2x1x32xf32, #tpu.memory_space<vmem>>, %arg3: memref<2x2x32xf32, #tpu.memory_space<vmem>>) attributes {dimension_semantics = [], scalar_prefetch = 0 : i64, scratch_operands = 0 : i64, tpu.core_type = #tpu.core_type<tc>} {
    %c0 = arith.constant 0 : index
    %c0_0 = arith.constant 0 : index
    %c0_1 = arith.constant 0 : index
    %0 = vector.load %arg0[%c0, %c0_0, %c0_1] : memref<2x2x32xf32, #tpu.memory_space<vmem>>, vector<2x2x32xf32>
    %c0_2 = arith.constant 0 : index
    %c0_3 = arith.constant 0 : index
    %c0_4 = arith.constant 0 : index
    %1 = vector.load %arg1[%c0_2, %c0_3, %c0_4] : memref<2x32x32xf32, #tpu.memory_space<vmem>>, vector<2x32x32xf32>
    %c0_5 = arith.constant 0 : index
    %c0_6 = arith.constant 0 : index
    %c0_7 = arith.constant 0 : index
    %2 = vector.load %arg2[%c0_5, %c0_6, %c0_7] : memref<2x1x32xf32, #tpu.memory_space<vmem>>, vector<2x1x32xf32>
    %3 = vector.extract_strided_slice %0 {offsets = [0, 0, 0], sizes = [1, 2, 32], strides = [1, 1, 1]} : vector<2x2x32xf32> to vector<1x2x32xf32>
    %4 = vector.shape_cast %3 : vector<1x2x32xf32> to vector<2x32xf32>
    %5 = vector.extract_strided_slice %1 {offsets = [0, 0, 0], sizes = [1, 32, 32], strides = [1, 1, 1]} : vector<2x32x32xf32> to vector<1x32x32xf32>
    %6 = vector.shape_cast %5 : vector<1x32x32xf32> to vector<32x32xf32>
    %cst = arith.constant dense<0.000000e+00> : vector<2x32xf32>
    %7 = tpu.matmul %4, %6, %cst {dimension_numbers = #tpu.dot_dimension_numbers<[1], [0], [0], [1], [0, 0, 1, 1], [], []>} : vector<2x32xf32>, vector<32x32xf32>, vector<2x32xf32> -> vector<2x32xf32>
    %8 = vector.extract_strided_slice %2 {offsets = [0, 0, 0], sizes = [1, 1, 32], strides = [1, 1, 1]} : vector<2x1x32xf32> to vector<1x1x32xf32>
    %9 = vector.shape_cast %8 : vector<1x1x32xf32> to vector<1x32xf32>
    %10 = vector.broadcast %9 : vector<1x32xf32> to vector<2x32xf32>
    %11 = arith.addf %7, %10 : vector<2x32xf32>
    %c0_8 = arith.constant 0 : index
    %c0_9 = arith.constant 0 : index
    %c0_10 = arith.constant 0 : index
    %12 = vector.load %arg3[%c0_8, %c0_9, %c0_10] : memref<2x2x32xf32, #tpu.memory_space<vmem>>, vector<1x2x32xf32>
    %13 = vector.shape_cast %12 : vector<1x2x32xf32> to vector<2x32xf32>
    %14 = vector.shape_cast %11 : vector<2x32xf32> to vector<1x2x32xf32>
    tpu.vector_store %arg3[%c0_8, %c0_9, %c0_10], %14 {strides = array<i32>} : memref<2x2x32xf32, #tpu.memory_space<vmem>>, vector<1x2x32xf32>,
    %15 = vector.extract_strided_slice %0 {offsets = [1, 0, 0], sizes = [1, 2, 32], strides = [1, 1, 1]} : vector<2x2x32xf32> to vector<1x2x32xf32>
    %16 = vector.shape_cast %15 : vector<1x2x32xf32> to vector<2x32xf32>
    %17 = vector.extract_strided_slice %1 {offsets = [1, 0, 0], sizes = [1, 32, 32], strides = [1, 1, 1]} : vector<2x32x32xf32> to vector<1x32x32xf32>
    %18 = vector.shape_cast %17 : vector<1x32x32xf32> to vector<32x32xf32>
    %cst_11 = arith.constant dense<0.000000e+00> : vector<2x32xf32>
    %19 = tpu.matmul %16, %18, %cst_11 {dimension_numbers = #tpu.dot_dimension_numbers<[1], [0], [0], [1], [0, 0, 1, 1], [], []>} : vector<2x32xf32>, vector<32x32xf32>, vector<2x32xf32> -> vector<2x32xf32>
    %20 = vector.extract_strided_slice %2 {offsets = [1, 0, 0], sizes = [1, 1, 32], strides = [1, 1, 1]} : vector<2x1x32xf32> to vector<1x1x32xf32>
    %21 = vector.shape_cast %20 : vector<1x1x32xf32> to vector<1x32xf32>
    %22 = vector.broadcast %21 : vector<1x32xf32> to vector<2x32xf32>
    %23 = arith.addf %19, %22 : vector<2x32xf32>
    %c1 = arith.constant 1 : index
    %c0_12 = arith.constant 0 : index
    %c0_13 = arith.constant 0 : index
    %24 = vector.load %arg3[%c1, %c0_12, %c0_13] : memref<2x2x32xf32, #tpu.memory_space<vmem>>, vector<1x2x32xf32>
    %25 = vector.shape_cast %24 : vector<1x2x32xf32> to vector<2x32xf32>
    %26 = vector.shape_cast %23 : vector<2x32xf32> to vector<1x2x32xf32>
    tpu.vector_store %arg3[%c1, %c0_12, %c0_13], %26 {strides = array<i32>} : memref<2x2x32xf32, #tpu.memory_space<vmem>>, vector<1x2x32xf32>,
    return
  }
}

module attributes {stable_mosaic.version = 11 : i64} {
  func.func @_vision_kernel(%arg0: i32, %arg1: i32, %arg2: memref<1x4x256xf32, #tpu.memory_space<vmem>>, %arg3: memref<256x32xbf16, #tpu.memory_space<vmem>>, %arg4: memref<1x32xf32, #tpu.memory_space<vmem>>, %arg5: memref<1x7x32xf32, #tpu.memory_space<vmem>>, %arg6: memref<1x2x32xf32, #tpu.memory_space<vmem>>, %arg7: memref<1x1x32xf32, #tpu.memory_space<vmem>>, %arg8: memref<1x1x32xf32, #tpu.memory_space<vmem>>, %arg9: memref<1x32x96xbf16, #tpu.memory_space<vmem>>, %arg10: memref<1x1x96xf32, #tpu.memory_space<vmem>>, %arg11: memref<1x32x32xbf16, #tpu.memory_space<vmem>>, %arg12: memref<1x1x32xf32, #tpu.memory_space<vmem>>, %arg13: memref<1x1x32xf32, #tpu.memory_space<vmem>>, %arg14: memref<1x1x32xf32, #tpu.memory_space<vmem>>, %arg15: memref<1x32x128xbf16, #tpu.memory_space<vmem>>, %arg16: memref<1x1x128xf32, #tpu.memory_space<vmem>>, %arg17: memref<1x128x32xbf16, #tpu.memory_space<vmem>>, %arg18: memref<1x1x32xf32, #tpu.memory_space<vmem>>, %arg19: memref<1x32xf32, #tpu.memory_space<vmem>>, %arg20: memref<1x32xf32, #tpu.memory_space<vmem>>, %arg21: memref<1x32xf32, #tpu.memory_space<vmem>>, %arg22: memref<1x32xf32, #tpu.memory_space<vmem>>, %arg23: memref<1x32xf32, #tpu.memory_space<vmem>>, %arg24: memref<1x32xf32, #tpu.memory_space<vmem>>, %arg25: memref<1x1x32xf32, #tpu.memory_space<vmem>>, %arg26: memref<1x1x32xf32, #tpu.memory_space<vmem>>, %arg27: memref<1x7x32xf32, #tpu.memory_space<vmem>>) attributes {dimension_semantics = [#tpu.dimension_semantics<parallel>, #tpu.dimension_semantics<arbitrary>], iteration_bounds = array<i64: 2, 2>, scalar_prefetch = 0 : i64, scratch_operands = 1 : i64, tpu.core_type = #tpu.core_type<tc>, window_params = [{transform_indices = @transform_0, window_bounds = array<i64: 1, 4, 256>}, {pipeline_mode = #tpu.pipeline_mode<synchronous>, transform_indices = @transform_1, window_bounds = array<i64: 256, 32>}, {pipeline_mode = #tpu.pipeline_mode<synchronous>, transform_indices = @transform_2, window_bounds = array<i64: 1, 32>}, {pipeline_mode = #tpu.pipeline_mode<synchronous>, transform_indices = @transform_3, window_bounds = array<i64: 1, 7, 32>}, {transform_indices = @transform_4, window_bounds = array<i64: 1, 2, 32>}, {transform_indices = @transform_5, window_bounds = array<i64: 1, 1, 32>}, {transform_indices = @transform_6, window_bounds = array<i64: 1, 1, 32>}, {transform_indices = @transform_7, window_bounds = array<i64: 1, 32, 96>}, {transform_indices = @transform_8, window_bounds = array<i64: 1, 1, 96>}, {transform_indices = @transform_9, window_bounds = array<i64: 1, 32, 32>}, {transform_indices = @transform_10, window_bounds = array<i64: 1, 1, 32>}, {transform_indices = @transform_11, window_bounds = array<i64: 1, 1, 32>}, {transform_indices = @transform_12, window_bounds = array<i64: 1, 1, 32>}, {transform_indices = @transform_13, window_bounds = array<i64: 1, 32, 128>}, {transform_indices = @transform_14, window_bounds = array<i64: 1, 1, 128>}, {transform_indices = @transform_15, window_bounds = array<i64: 1, 128, 32>}, {transform_indices = @transform_16, window_bounds = array<i64: 1, 1, 32>}, {pipeline_mode = #tpu.pipeline_mode<synchronous>, transform_indices = @transform_17, window_bounds = array<i64: 1, 32>}, {pipeline_mode = #tpu.pipeline_mode<synchronous>, transform_indices = @transform_18, window_bounds = array<i64: 1, 32>}, {pipeline_mode = #tpu.pipeline_mode<synchronous>, transform_indices = @transform_19, window_bounds = array<i64: 1, 32>}, {pipeline_mode = #tpu.pipeline_mode<synchronous>, transform_indices = @transform_20, window_bounds = array<i64: 1, 32>}, {pipeline_mode = #tpu.pipeline_mode<synchronous>, transform_indices = @transform_21, window_bounds = array<i64: 1, 32>}, {pipeline_mode = #tpu.pipeline_mode<synchronous>, transform_indices = @transform_22, window_bounds = array<i64: 1, 32>}, {transform_indices = @transform_23, window_bounds = array<i64: 1, 1, 32>}, {transform_indices = @transform_24, window_bounds = array<i64: 1, 1, 32>}]} {
    %c0_i32 = arith.constant 0 : i32
    %0 = arith.cmpi eq, %arg1, %c0_i32 : i32
    %1 = arith.extui %0 : i1 to i32
    %c0_i32_0 = arith.constant 0 : i32
    %2 = arith.cmpi ne, %1, %c0_i32_0 : i32
    scf.if %2 {
      %c0_83 = arith.constant 0 : index
      %c0_84 = arith.constant 0 : index
      %c0_85 = arith.constant 0 : index
      %218 = vector.load %arg2[%c0_83, %c0_84, %c0_85] : memref<1x4x256xf32, #tpu.memory_space<vmem>>, vector<1x4x256xf32>
      %219 = vector.shape_cast %218 : vector<1x4x256xf32> to vector<4x256xf32>
      %220 = arith.truncf %219 : vector<4x256xf32> to vector<4x256xbf16>
      %c0_86 = arith.constant 0 : index
      %c0_87 = arith.constant 0 : index
      %221 = vector.load %arg3[%c0_86, %c0_87] : memref<256x32xbf16, #tpu.memory_space<vmem>>, vector<256x32xbf16>
      %cst_88 = arith.constant dense<0.000000e+00> : vector<4x32xf32>
      %222 = tpu.matmul %220, %221, %cst_88 {dimension_numbers = #tpu.dot_dimension_numbers<[1], [0], [0], [1], [0, 0, 1, 1], [], []>} : vector<4x256xbf16>, vector<256x32xbf16>, vector<4x32xf32> -> vector<4x32xf32>
      %c0_89 = arith.constant 0 : index
      %c0_90 = arith.constant 0 : index
      %223 = vector.load %arg4[%c0_89, %c0_90] : memref<1x32xf32, #tpu.memory_space<vmem>>, vector<1x32xf32>
      %224 = vector.broadcast %223 : vector<1x32xf32> to vector<4x32xf32>
      %225 = arith.addf %222, %224 : vector<4x32xf32>
      %c0_91 = arith.constant 0 : index
      %c0_92 = arith.constant 0 : index
      %c0_93 = arith.constant 0 : index
      %226 = vector.load %arg5[%c0_91, %c0_92, %c0_93] : memref<1x7x32xf32, #tpu.memory_space<vmem>>, vector<1x7x32xf32>
      %227 = tpu.iota {dimensions = array<i32: 1>} : vector<1x7x1xi32>
      %c1_i32_94 = arith.constant 1 : i32
      %228 = vector.broadcast %c1_i32_94 : i32 to vector<1x7x1xi32>
      %229 = arith.cmpi eq, %227, %228 : vector<1x7x1xi32>
      %230 = vector.extract_strided_slice %225 {offsets = [0, 0], sizes = [1, 32], strides = [1, 1]} : vector<4x32xf32> to vector<1x32xf32>
      %231 = vector.shape_cast %230 : vector<1x32xf32> to vector<1x1x32xf32>
      %232 = vector.broadcast %231 : vector<1x1x32xf32> to vector<1x7x32xf32>
      %233 = arith.addf %226, %232 : vector<1x7x32xf32>
      %234 = vector.shape_cast %229 : vector<1x7x1xi1> to vector<1x7x1xi1>
      %235 = vector.broadcast %234 : vector<1x7x1xi1> to vector<1x7x32xi1>
      %236 = arith.select %235, %233, %226 : vector<1x7x32xi1>, vector<1x7x32xf32>
      %c2_i32 = arith.constant 2 : i32
      %237 = vector.broadcast %c2_i32 : i32 to vector<1x7x1xi32>
      %238 = arith.cmpi eq, %227, %237 : vector<1x7x1xi32>
      %239 = vector.extract_strided_slice %225 {offsets = [1, 0], sizes = [1, 32], strides = [1, 1]} : vector<4x32xf32> to vector<1x32xf32>
      %240 = vector.shape_cast %239 : vector<1x32xf32> to vector<1x1x32xf32>
      %241 = vector.broadcast %240 : vector<1x1x32xf32> to vector<1x7x32xf32>
      %242 = arith.addf %236, %241 : vector<1x7x32xf32>
      %243 = vector.shape_cast %238 : vector<1x7x1xi1> to vector<1x7x1xi1>
      %244 = vector.broadcast %243 : vector<1x7x1xi1> to vector<1x7x32xi1>
      %245 = arith.select %244, %242, %236 : vector<1x7x32xi1>, vector<1x7x32xf32>
      %c3_i32 = arith.constant 3 : i32
      %246 = vector.broadcast %c3_i32 : i32 to vector<1x7x1xi32>
      %247 = arith.cmpi eq, %227, %246 : vector<1x7x1xi32>
      %248 = vector.extract_strided_slice %225 {offsets = [2, 0], sizes = [1, 32], strides = [1, 1]} : vector<4x32xf32> to vector<1x32xf32>
      %249 = vector.shape_cast %248 : vector<1x32xf32> to vector<1x1x32xf32>
      %250 = vector.broadcast %249 : vector<1x1x32xf32> to vector<1x7x32xf32>
      %251 = arith.addf %245, %250 : vector<1x7x32xf32>
      %252 = vector.shape_cast %247 : vector<1x7x1xi1> to vector<1x7x1xi1>
      %253 = vector.broadcast %252 : vector<1x7x1xi1> to vector<1x7x32xi1>
      %254 = arith.select %253, %251, %245 : vector<1x7x32xi1>, vector<1x7x32xf32>
      %c4_i32 = arith.constant 4 : i32
      %255 = vector.broadcast %c4_i32 : i32 to vector<1x7x1xi32>
      %256 = arith.cmpi eq, %227, %255 : vector<1x7x1xi32>
      %257 = vector.extract_strided_slice %225 {offsets = [3, 0], sizes = [1, 32], strides = [1, 1]} : vector<4x32xf32> to vector<1x32xf32>
      %258 = vector.shape_cast %257 : vector<1x32xf32> to vector<1x1x32xf32>
      %259 = vector.broadcast %258 : vector<1x1x32xf32> to vector<1x7x32xf32>
      %260 = arith.addf %254, %259 : vector<1x7x32xf32>
      %261 = vector.shape_cast %256 : vector<1x7x1xi1> to vector<1x7x1xi1>
      %262 = vector.broadcast %261 : vector<1x7x1xi1> to vector<1x7x32xi1>
      %263 = arith.select %262, %260, %254 : vector<1x7x32xi1>, vector<1x7x32xf32>
      %c0_95 = arith.constant 0 : index
      %c0_96 = arith.constant 0 : index
      %c0_97 = arith.constant 0 : index
      %264 = vector.load %arg27[%c0_95, %c0_96, %c0_97] : memref<1x7x32xf32, #tpu.memory_space<vmem>>, vector<1x7x32xf32>
      tpu.vector_store %arg27[%c0_95, %c0_96, %c0_97], %263 {strides = array<i32>} : memref<1x7x32xf32, #tpu.memory_space<vmem>>, vector<1x7x32xf32>,
    } else {
    }
    %c1_i32 = arith.constant 1 : i32
    %3 = arith.cmpi sge, %arg1, %c1_i32 : i32
    %c1_i32_1 = arith.constant 1 : i32
    %4 = arith.cmpi sle, %arg1, %c1_i32_1 : i32
    %5 = arith.andi %3, %4 : i1
    %6 = arith.extui %5 : i1 to i32
    %c0_i32_2 = arith.constant 0 : i32
    %7 = arith.cmpi ne, %6, %c0_i32_2 : i32
    scf.if %7 {
      %c0_83 = arith.constant 0 : index
      %c0_84 = arith.constant 0 : index
      %c0_85 = arith.constant 0 : index
      %218 = vector.load %arg27[%c0_83, %c0_84, %c0_85] : memref<1x7x32xf32, #tpu.memory_space<vmem>>, vector<1x7x32xf32>
      %c0_86 = arith.constant 0 : index
      %c0_87 = arith.constant 0 : index
      %c0_88 = arith.constant 0 : index
      %219 = vector.load %arg6[%c0_86, %c0_87, %c0_88] : memref<1x2x32xf32, #tpu.memory_space<vmem>>, vector<1x2x32xf32>
      %220 = vector.shape_cast %219 : vector<1x2x32xf32> to vector<2x32xf32>
      %221 = tpu.iota {dimensions = array<i32: 1>} : vector<1x7x1xi32>
      %c5_i32 = arith.constant 5 : i32
      %222 = vector.broadcast %c5_i32 : i32 to vector<1x7x1xi32>
      %223 = arith.cmpi eq, %221, %222 : vector<1x7x1xi32>
      %224 = vector.extract_strided_slice %220 {offsets = [0, 0], sizes = [1, 32], strides = [1, 1]} : vector<2x32xf32> to vector<1x32xf32>
      %225 = vector.shape_cast %224 : vector<1x32xf32> to vector<1x1x32xf32>
      %226 = vector.shape_cast %223 : vector<1x7x1xi1> to vector<1x7x1xi1>
      %227 = vector.broadcast %226 : vector<1x7x1xi1> to vector<1x7x32xi1>
      %228 = vector.shape_cast %225 : vector<1x1x32xf32> to vector<1x1x32xf32>
      %229 = vector.broadcast %228 : vector<1x1x32xf32> to vector<1x7x32xf32>
      %230 = arith.select %227, %229, %218 : vector<1x7x32xi1>, vector<1x7x32xf32>
      %c6_i32 = arith.constant 6 : i32
      %231 = vector.broadcast %c6_i32 : i32 to vector<1x7x1xi32>
      %232 = arith.cmpi eq, %221, %231 : vector<1x7x1xi32>
      %233 = vector.extract_strided_slice %220 {offsets = [1, 0], sizes = [1, 32], strides = [1, 1]} : vector<2x32xf32> to vector<1x32xf32>
      %234 = vector.shape_cast %233 : vector<1x32xf32> to vector<1x1x32xf32>
      %235 = vector.shape_cast %232 : vector<1x7x1xi1> to vector<1x7x1xi1>
      %236 = vector.broadcast %235 : vector<1x7x1xi1> to vector<1x7x32xi1>
      %237 = vector.shape_cast %234 : vector<1x1x32xf32> to vector<1x1x32xf32>
      %238 = vector.broadcast %237 : vector<1x1x32xf32> to vector<1x7x32xf32>
      %239 = arith.select %236, %238, %230 : vector<1x7x32xi1>, vector<1x7x32xf32>
      %c0_89 = arith.constant 0 : index
      %c0_90 = arith.constant 0 : index
      %c0_91 = arith.constant 0 : index
      %240 = vector.load %arg27[%c0_89, %c0_90, %c0_91] : memref<1x7x32xf32, #tpu.memory_space<vmem>>, vector<1x7x32xf32>
      tpu.vector_store %arg27[%c0_89, %c0_90, %c0_91], %239 {strides = array<i32>} : memref<1x7x32xf32, #tpu.memory_space<vmem>>, vector<1x7x32xf32>,
    } else {
    }
    %c0 = arith.constant 0 : index
    %c0_3 = arith.constant 0 : index
    %c0_4 = arith.constant 0 : index
    %8 = vector.load %arg7[%c0, %c0_3, %c0_4] : memref<1x1x32xf32, #tpu.memory_space<vmem>>, vector<1x1x32xf32>
    %9 = vector.shape_cast %8 : vector<1x1x32xf32> to vector<1x32xf32>
    %c0_5 = arith.constant 0 : index
    %c0_6 = arith.constant 0 : index
    %c0_7 = arith.constant 0 : index
    %10 = vector.load %arg8[%c0_5, %c0_6, %c0_7] : memref<1x1x32xf32, #tpu.memory_space<vmem>>, vector<1x1x32xf32>
    %11 = vector.shape_cast %10 : vector<1x1x32xf32> to vector<1x32xf32>
    %c0_8 = arith.constant 0 : index
    %c0_9 = arith.constant 0 : index
    %c0_10 = arith.constant 0 : index
    %12 = vector.load %arg9[%c0_8, %c0_9, %c0_10] : memref<1x32x96xbf16, #tpu.memory_space<vmem>>, vector<1x32x96xbf16>
    %13 = vector.shape_cast %12 : vector<1x32x96xbf16> to vector<32x96xbf16>
    %c0_11 = arith.constant 0 : index
    %c0_12 = arith.constant 0 : index
    %c0_13 = arith.constant 0 : index
    %14 = vector.load %arg10[%c0_11, %c0_12, %c0_13] : memref<1x1x96xf32, #tpu.memory_space<vmem>>, vector<1x1x96xf32>
    %15 = vector.shape_cast %14 : vector<1x1x96xf32> to vector<1x96xf32>
    %c0_14 = arith.constant 0 : index
    %c0_15 = arith.constant 0 : index
    %c0_16 = arith.constant 0 : index
    %16 = vector.load %arg11[%c0_14, %c0_15, %c0_16] : memref<1x32x32xbf16, #tpu.memory_space<vmem>>, vector<1x32x32xbf16>
    %17 = vector.shape_cast %16 : vector<1x32x32xbf16> to vector<32x32xbf16>
    %c0_17 = arith.constant 0 : index
    %c0_18 = arith.constant 0 : index
    %c0_19 = arith.constant 0 : index
    %18 = vector.load %arg12[%c0_17, %c0_18, %c0_19] : memref<1x1x32xf32, #tpu.memory_space<vmem>>, vector<1x1x32xf32>
    %19 = vector.shape_cast %18 : vector<1x1x32xf32> to vector<1x32xf32>
    %c0_20 = arith.constant 0 : index
    %c0_21 = arith.constant 0 : index
    %c0_22 = arith.constant 0 : index
    %20 = vector.load %arg13[%c0_20, %c0_21, %c0_22] : memref<1x1x32xf32, #tpu.memory_space<vmem>>, vector<1x1x32xf32>
    %21 = vector.shape_cast %20 : vector<1x1x32xf32> to vector<1x32xf32>
    %c0_23 = arith.constant 0 : index
    %c0_24 = arith.constant 0 : index
    %c0_25 = arith.constant 0 : index
    %22 = vector.load %arg14[%c0_23, %c0_24, %c0_25] : memref<1x1x32xf32, #tpu.memory_space<vmem>>, vector<1x1x32xf32>
    %23 = vector.shape_cast %22 : vector<1x1x32xf32> to vector<1x32xf32>
    %c0_26 = arith.constant 0 : index
    %c0_27 = arith.constant 0 : index
    %c0_28 = arith.constant 0 : index
    %24 = vector.load %arg15[%c0_26, %c0_27, %c0_28] : memref<1x32x128xbf16, #tpu.memory_space<vmem>>, vector<1x32x128xbf16>
    %25 = vector.shape_cast %24 : vector<1x32x128xbf16> to vector<32x128xbf16>
    %c0_29 = arith.constant 0 : index
    %c0_30 = arith.constant 0 : index
    %c0_31 = arith.constant 0 : index
    %26 = vector.load %arg16[%c0_29, %c0_30, %c0_31] : memref<1x1x128xf32, #tpu.memory_space<vmem>>, vector<1x1x128xf32>
    %27 = vector.shape_cast %26 : vector<1x1x128xf32> to vector<1x128xf32>
    %c0_32 = arith.constant 0 : index
    %c0_33 = arith.constant 0 : index
    %c0_34 = arith.constant 0 : index
    %28 = vector.load %arg17[%c0_32, %c0_33, %c0_34] : memref<1x128x32xbf16, #tpu.memory_space<vmem>>, vector<1x128x32xbf16>
    %29 = vector.shape_cast %28 : vector<1x128x32xbf16> to vector<128x32xbf16>
    %c0_35 = arith.constant 0 : index
    %c0_36 = arith.constant 0 : index
    %c0_37 = arith.constant 0 : index
    %30 = vector.load %arg18[%c0_35, %c0_36, %c0_37] : memref<1x1x32xf32, #tpu.memory_space<vmem>>, vector<1x1x32xf32>
    %31 = vector.shape_cast %30 : vector<1x1x32xf32> to vector<1x32xf32>
    %c0_38 = arith.constant 0 : index
    %c0_39 = arith.constant 0 : index
    %c0_40 = arith.constant 0 : index
    %32 = vector.load %arg27[%c0_38, %c0_39, %c0_40] : memref<1x7x32xf32, #tpu.memory_space<vmem>>, vector<1x7x32xf32>
    %cst = arith.constant dense<0.000000e+00> : vector<1x7xf32>
    %33 = vector.multi_reduction <add>, %32, %cst [2] : vector<1x7x32xf32> to vector<1x7xf32>
    %34 = vector.shape_cast %33 : vector<1x7xf32> to vector<1x7x1xf32>
    %cst_41 = arith.constant 3.200000e+01 : f32
    %35 = vector.broadcast %cst_41 : f32 to vector<1x7x1xf32>
    %36 = arith.divf %34, %35 : vector<1x7x1xf32>
    %37 = vector.broadcast %36 : vector<1x7x1xf32> to vector<1x7x32xf32>
    %38 = arith.subf %32, %37 : vector<1x7x32xf32>
    %39 = arith.mulf %38, %38 : vector<1x7x32xf32>
    %cst_42 = arith.constant dense<0.000000e+00> : vector<1x7xf32>
    %40 = vector.multi_reduction <add>, %39, %cst_42 [2] : vector<1x7x32xf32> to vector<1x7xf32>
    %41 = vector.shape_cast %40 : vector<1x7xf32> to vector<1x7x1xf32>
    %cst_43 = arith.constant 3.200000e+01 : f32
    %42 = vector.broadcast %cst_43 : f32 to vector<1x7x1xf32>
    %43 = arith.divf %41, %42 : vector<1x7x1xf32>
    %44 = vector.broadcast %36 : vector<1x7x1xf32> to vector<1x7x32xf32>
    %45 = arith.subf %32, %44 : vector<1x7x32xf32>
    %cst_44 = arith.constant 9.99999974E-6 : f32
    %46 = vector.broadcast %cst_44 : f32 to vector<1x7x1xf32>
    %47 = arith.addf %43, %46 : vector<1x7x1xf32>
    %48 = math.rsqrt %47 : vector<1x7x1xf32>
    %49 = vector.broadcast %48 : vector<1x7x1xf32> to vector<1x7x32xf32>
    %50 = arith.mulf %45, %49 : vector<1x7x32xf32>
    %51 = vector.shape_cast %9 : vector<1x32xf32> to vector<1x1x32xf32>
    %52 = vector.broadcast %51 : vector<1x1x32xf32> to vector<1x7x32xf32>
    %53 = arith.mulf %50, %52 : vector<1x7x32xf32>
    %54 = vector.shape_cast %11 : vector<1x32xf32> to vector<1x1x32xf32>
    %55 = vector.broadcast %54 : vector<1x1x32xf32> to vector<1x7x32xf32>
    %56 = arith.addf %53, %55 : vector<1x7x32xf32>
    %57 = vector.shape_cast %56 : vector<1x7x32xf32> to vector<7x32xf32>
    %58 = arith.truncf %57 : vector<7x32xf32> to vector<7x32xbf16>
    %cst_45 = arith.constant dense<0.000000e+00> : vector<7x96xf32>
    %59 = tpu.matmul %58, %13, %cst_45 {dimension_numbers = #tpu.dot_dimension_numbers<[1], [0], [0], [1], [0, 0, 1, 1], [], []>} : vector<7x32xbf16>, vector<32x96xbf16>, vector<7x96xf32> -> vector<7x96xf32>
    %60 = vector.broadcast %15 : vector<1x96xf32> to vector<7x96xf32>
    %61 = arith.addf %59, %60 : vector<7x96xf32>
    %62 = vector.extract_strided_slice %61 {offsets = [0, 0], sizes = [7, 8], strides = [1, 1]} : vector<7x96xf32> to vector<7x8xf32>
    %63 = vector.shape_cast %62 : vector<7x8xf32> to vector<1x7x8xf32>
    %64 = arith.truncf %63 : vector<1x7x8xf32> to vector<1x7x8xbf16>
    %65 = vector.extract_strided_slice %61 {offsets = [0, 32], sizes = [7, 8], strides = [1, 1]} : vector<7x96xf32> to vector<7x8xf32>
    %66 = vector.shape_cast %65 : vector<7x8xf32> to vector<1x7x8xf32>
    %67 = arith.truncf %66 : vector<1x7x8xf32> to vector<1x7x8xbf16>
    %68 = vector.extract_strided_slice %61 {offsets = [0, 64], sizes = [7, 8], strides = [1, 1]} : vector<7x96xf32> to vector<7x8xf32>
    %69 = vector.shape_cast %68 : vector<7x8xf32> to vector<1x7x8xf32>
    %70 = arith.truncf %69 : vector<1x7x8xf32> to vector<1x7x8xbf16>
    "tpu.trace_start"() <{level = 10 : i32, message = "bqd,bkd->bqk"}> : () -> ()
    %cst_46 = arith.constant dense<0.000000e+00> : vector<1x7x7xf32>
    %71 = tpu.matmul %64, %67, %cst_46 {dimension_numbers = #tpu.dot_dimension_numbers<[2], [2], [1], [1], [0, 0, 0, 1, 1, 1], [0], [0]>} : vector<1x7x8xbf16>, vector<1x7x8xbf16>, vector<1x7x7xf32> -> vector<1x7x7xf32>
    "tpu.trace_stop"() : () -> ()
    %cst_47 = arith.constant 0.353553385 : f32
    %72 = vector.broadcast %cst_47 : f32 to vector<1x7x7xf32>
    %73 = arith.mulf %71, %72 : vector<1x7x7xf32>
    %cst_48 = arith.constant dense<0xFF800000> : vector<1x7xf32>
    %74 = vector.multi_reduction <maximumf>, %73, %cst_48 [2] : vector<1x7x7xf32> to vector<1x7xf32>
    %75 = vector.shape_cast %74 : vector<1x7xf32> to vector<1x7x1xf32>
    %76 = vector.broadcast %75 : vector<1x7x1xf32> to vector<1x7x7xf32>
    %77 = arith.subf %73, %76 : vector<1x7x7xf32>
    %78 = math.exp %77 : vector<1x7x7xf32>
    %cst_49 = arith.constant dense<0.000000e+00> : vector<1x7xf32>
    %79 = vector.multi_reduction <add>, %78, %cst_49 [2] : vector<1x7x7xf32> to vector<1x7xf32>
    %80 = vector.shape_cast %79 : vector<1x7xf32> to vector<1x7x1xf32>
    %81 = tpu.reciprocal %80 {approx = true} : vector<1x7x1xf32> -> vector<1x7x1xf32>
    %82 = vector.broadcast %81 : vector<1x7x1xf32> to vector<1x7x7xf32>
    %83 = arith.mulf %78, %82 : vector<1x7x7xf32>
    %84 = arith.truncf %83 : vector<1x7x7xf32> to vector<1x7x7xbf16>
    "tpu.trace_start"() <{level = 10 : i32, message = "bqk,bkd->bqd"}> : () -> ()
    %cst_50 = arith.constant dense<0.000000e+00> : vector<1x7x8xf32>
    %85 = tpu.matmul %84, %70, %cst_50 {dimension_numbers = #tpu.dot_dimension_numbers<[2], [1], [1], [2], [0, 0, 0, 1, 1, 2], [0], [0]>} : vector<1x7x7xbf16>, vector<1x7x8xbf16>, vector<1x7x8xf32> -> vector<1x7x8xf32>
    "tpu.trace_stop"() : () -> ()
    %86 = vector.extract_strided_slice %61 {offsets = [0, 8], sizes = [7, 8], strides = [1, 1]} : vector<7x96xf32> to vector<7x8xf32>
    %87 = vector.shape_cast %86 : vector<7x8xf32> to vector<1x7x8xf32>
    %88 = arith.truncf %87 : vector<1x7x8xf32> to vector<1x7x8xbf16>
    %89 = vector.extract_strided_slice %61 {offsets = [0, 40], sizes = [7, 8], strides = [1, 1]} : vector<7x96xf32> to vector<7x8xf32>
    %90 = vector.shape_cast %89 : vector<7x8xf32> to vector<1x7x8xf32>
    %91 = arith.truncf %90 : vector<1x7x8xf32> to vector<1x7x8xbf16>
    %92 = vector.extract_strided_slice %61 {offsets = [0, 72], sizes = [7, 8], strides = [1, 1]} : vector<7x96xf32> to vector<7x8xf32>
    %93 = vector.shape_cast %92 : vector<7x8xf32> to vector<1x7x8xf32>
    %94 = arith.truncf %93 : vector<1x7x8xf32> to vector<1x7x8xbf16>
    "tpu.trace_start"() <{level = 10 : i32, message = "bqd,bkd->bqk"}> : () -> ()
    %cst_51 = arith.constant dense<0.000000e+00> : vector<1x7x7xf32>
    %95 = tpu.matmul %88, %91, %cst_51 {dimension_numbers = #tpu.dot_dimension_numbers<[2], [2], [1], [1], [0, 0, 0, 1, 1, 1], [0], [0]>} : vector<1x7x8xbf16>, vector<1x7x8xbf16>, vector<1x7x7xf32> -> vector<1x7x7xf32>
    "tpu.trace_stop"() : () -> ()
    %cst_52 = arith.constant 0.353553385 : f32
    %96 = vector.broadcast %cst_52 : f32 to vector<1x7x7xf32>
    %97 = arith.mulf %95, %96 : vector<1x7x7xf32>
    %cst_53 = arith.constant dense<0xFF800000> : vector<1x7xf32>
    %98 = vector.multi_reduction <maximumf>, %97, %cst_53 [2] : vector<1x7x7xf32> to vector<1x7xf32>
    %99 = vector.shape_cast %98 : vector<1x7xf32> to vector<1x7x1xf32>
    %100 = vector.broadcast %99 : vector<1x7x1xf32> to vector<1x7x7xf32>
    %101 = arith.subf %97, %100 : vector<1x7x7xf32>
    %102 = math.exp %101 : vector<1x7x7xf32>
    %cst_54 = arith.constant dense<0.000000e+00> : vector<1x7xf32>
    %103 = vector.multi_reduction <add>, %102, %cst_54 [2] : vector<1x7x7xf32> to vector<1x7xf32>
    %104 = vector.shape_cast %103 : vector<1x7xf32> to vector<1x7x1xf32>
    %105 = tpu.reciprocal %104 {approx = true} : vector<1x7x1xf32> -> vector<1x7x1xf32>
    %106 = vector.broadcast %105 : vector<1x7x1xf32> to vector<1x7x7xf32>
    %107 = arith.mulf %102, %106 : vector<1x7x7xf32>
    %108 = arith.truncf %107 : vector<1x7x7xf32> to vector<1x7x7xbf16>
    "tpu.trace_start"() <{level = 10 : i32, message = "bqk,bkd->bqd"}> : () -> ()
    %cst_55 = arith.constant dense<0.000000e+00> : vector<1x7x8xf32>
    %109 = tpu.matmul %108, %94, %cst_55 {dimension_numbers = #tpu.dot_dimension_numbers<[2], [1], [1], [2], [0, 0, 0, 1, 1, 2], [0], [0]>} : vector<1x7x7xbf16>, vector<1x7x8xbf16>, vector<1x7x8xf32> -> vector<1x7x8xf32>
    "tpu.trace_stop"() : () -> ()
    %110 = vector.extract_strided_slice %61 {offsets = [0, 16], sizes = [7, 8], strides = [1, 1]} : vector<7x96xf32> to vector<7x8xf32>
    %111 = vector.shape_cast %110 : vector<7x8xf32> to vector<1x7x8xf32>
    %112 = arith.truncf %111 : vector<1x7x8xf32> to vector<1x7x8xbf16>
    %113 = vector.extract_strided_slice %61 {offsets = [0, 48], sizes = [7, 8], strides = [1, 1]} : vector<7x96xf32> to vector<7x8xf32>
    %114 = vector.shape_cast %113 : vector<7x8xf32> to vector<1x7x8xf32>
    %115 = arith.truncf %114 : vector<1x7x8xf32> to vector<1x7x8xbf16>
    %116 = vector.extract_strided_slice %61 {offsets = [0, 80], sizes = [7, 8], strides = [1, 1]} : vector<7x96xf32> to vector<7x8xf32>
    %117 = vector.shape_cast %116 : vector<7x8xf32> to vector<1x7x8xf32>
    %118 = arith.truncf %117 : vector<1x7x8xf32> to vector<1x7x8xbf16>
    "tpu.trace_start"() <{level = 10 : i32, message = "bqd,bkd->bqk"}> : () -> ()
    %cst_56 = arith.constant dense<0.000000e+00> : vector<1x7x7xf32>
    %119 = tpu.matmul %112, %115, %cst_56 {dimension_numbers = #tpu.dot_dimension_numbers<[2], [2], [1], [1], [0, 0, 0, 1, 1, 1], [0], [0]>} : vector<1x7x8xbf16>, vector<1x7x8xbf16>, vector<1x7x7xf32> -> vector<1x7x7xf32>
    "tpu.trace_stop"() : () -> ()
    %cst_57 = arith.constant 0.353553385 : f32
    %120 = vector.broadcast %cst_57 : f32 to vector<1x7x7xf32>
    %121 = arith.mulf %119, %120 : vector<1x7x7xf32>
    %cst_58 = arith.constant dense<0xFF800000> : vector<1x7xf32>
    %122 = vector.multi_reduction <maximumf>, %121, %cst_58 [2] : vector<1x7x7xf32> to vector<1x7xf32>
    %123 = vector.shape_cast %122 : vector<1x7xf32> to vector<1x7x1xf32>
    %124 = vector.broadcast %123 : vector<1x7x1xf32> to vector<1x7x7xf32>
    %125 = arith.subf %121, %124 : vector<1x7x7xf32>
    %126 = math.exp %125 : vector<1x7x7xf32>
    %cst_59 = arith.constant dense<0.000000e+00> : vector<1x7xf32>
    %127 = vector.multi_reduction <add>, %126, %cst_59 [2] : vector<1x7x7xf32> to vector<1x7xf32>
    %128 = vector.shape_cast %127 : vector<1x7xf32> to vector<1x7x1xf32>
    %129 = tpu.reciprocal %128 {approx = true} : vector<1x7x1xf32> -> vector<1x7x1xf32>
    %130 = vector.broadcast %129 : vector<1x7x1xf32> to vector<1x7x7xf32>
    %131 = arith.mulf %126, %130 : vector<1x7x7xf32>
    %132 = arith.truncf %131 : vector<1x7x7xf32> to vector<1x7x7xbf16>
    "tpu.trace_start"() <{level = 10 : i32, message = "bqk,bkd->bqd"}> : () -> ()
    %cst_60 = arith.constant dense<0.000000e+00> : vector<1x7x8xf32>
    %133 = tpu.matmul %132, %118, %cst_60 {dimension_numbers = #tpu.dot_dimension_numbers<[2], [1], [1], [2], [0, 0, 0, 1, 1, 2], [0], [0]>} : vector<1x7x7xbf16>, vector<1x7x8xbf16>, vector<1x7x8xf32> -> vector<1x7x8xf32>
    "tpu.trace_stop"() : () -> ()
    %134 = vector.extract_strided_slice %61 {offsets = [0, 24], sizes = [7, 8], strides = [1, 1]} : vector<7x96xf32> to vector<7x8xf32>
    %135 = vector.shape_cast %134 : vector<7x8xf32> to vector<1x7x8xf32>
    %136 = arith.truncf %135 : vector<1x7x8xf32> to vector<1x7x8xbf16>
    %137 = vector.extract_strided_slice %61 {offsets = [0, 56], sizes = [7, 8], strides = [1, 1]} : vector<7x96xf32> to vector<7x8xf32>
    %138 = vector.shape_cast %137 : vector<7x8xf32> to vector<1x7x8xf32>
    %139 = arith.truncf %138 : vector<1x7x8xf32> to vector<1x7x8xbf16>
    %140 = vector.extract_strided_slice %61 {offsets = [0, 88], sizes = [7, 8], strides = [1, 1]} : vector<7x96xf32> to vector<7x8xf32>
    %141 = vector.shape_cast %140 : vector<7x8xf32> to vector<1x7x8xf32>
    %142 = arith.truncf %141 : vector<1x7x8xf32> to vector<1x7x8xbf16>
    "tpu.trace_start"() <{level = 10 : i32, message = "bqd,bkd->bqk"}> : () -> ()
    %cst_61 = arith.constant dense<0.000000e+00> : vector<1x7x7xf32>
    %143 = tpu.matmul %136, %139, %cst_61 {dimension_numbers = #tpu.dot_dimension_numbers<[2], [2], [1], [1], [0, 0, 0, 1, 1, 1], [0], [0]>} : vector<1x7x8xbf16>, vector<1x7x8xbf16>, vector<1x7x7xf32> -> vector<1x7x7xf32>
    "tpu.trace_stop"() : () -> ()
    %cst_62 = arith.constant 0.353553385 : f32
    %144 = vector.broadcast %cst_62 : f32 to vector<1x7x7xf32>
    %145 = arith.mulf %143, %144 : vector<1x7x7xf32>
    %cst_63 = arith.constant dense<0xFF800000> : vector<1x7xf32>
    %146 = vector.multi_reduction <maximumf>, %145, %cst_63 [2] : vector<1x7x7xf32> to vector<1x7xf32>
    %147 = vector.shape_cast %146 : vector<1x7xf32> to vector<1x7x1xf32>
    %148 = vector.broadcast %147 : vector<1x7x1xf32> to vector<1x7x7xf32>
    %149 = arith.subf %145, %148 : vector<1x7x7xf32>
    %150 = math.exp %149 : vector<1x7x7xf32>
    %cst_64 = arith.constant dense<0.000000e+00> : vector<1x7xf32>
    %151 = vector.multi_reduction <add>, %150, %cst_64 [2] : vector<1x7x7xf32> to vector<1x7xf32>
    %152 = vector.shape_cast %151 : vector<1x7xf32> to vector<1x7x1xf32>
    %153 = tpu.reciprocal %152 {approx = true} : vector<1x7x1xf32> -> vector<1x7x1xf32>
    %154 = vector.broadcast %153 : vector<1x7x1xf32> to vector<1x7x7xf32>
    %155 = arith.mulf %150, %154 : vector<1x7x7xf32>
    %156 = arith.truncf %155 : vector<1x7x7xf32> to vector<1x7x7xbf16>
    "tpu.trace_start"() <{level = 10 : i32, message = "bqk,bkd->bqd"}> : () -> ()
    %cst_65 = arith.constant dense<0.000000e+00> : vector<1x7x8xf32>
    %157 = tpu.matmul %156, %142, %cst_65 {dimension_numbers = #tpu.dot_dimension_numbers<[2], [1], [1], [2], [0, 0, 0, 1, 1, 2], [0], [0]>} : vector<1x7x7xbf16>, vector<1x7x8xbf16>, vector<1x7x8xf32> -> vector<1x7x8xf32>
    "tpu.trace_stop"() : () -> ()
    %158 = tpu.concatenate %85, %109, %133, %157 in 2 : vector<1x7x8xf32>, vector<1x7x8xf32>, vector<1x7x8xf32>, vector<1x7x8xf32> -> vector<1x7x32xf32>
    %159 = vector.shape_cast %158 : vector<1x7x32xf32> to vector<7x32xf32>
    %160 = arith.truncf %159 : vector<7x32xf32> to vector<7x32xbf16>
    %cst_66 = arith.constant dense<0.000000e+00> : vector<7x32xf32>
    %161 = tpu.matmul %160, %17, %cst_66 {dimension_numbers = #tpu.dot_dimension_numbers<[1], [0], [0], [1], [0, 0, 1, 1], [], []>} : vector<7x32xbf16>, vector<32x32xbf16>, vector<7x32xf32> -> vector<7x32xf32>
    %162 = vector.broadcast %19 : vector<1x32xf32> to vector<7x32xf32>
    %163 = arith.addf %161, %162 : vector<7x32xf32>
    %164 = vector.shape_cast %163 : vector<7x32xf32> to vector<1x7x32xf32>
    %165 = arith.addf %32, %164 : vector<1x7x32xf32>
    %cst_67 = arith.constant dense<0.000000e+00> : vector<1x7xf32>
    %166 = vector.multi_reduction <add>, %165, %cst_67 [2] : vector<1x7x32xf32> to vector<1x7xf32>
    %167 = vector.shape_cast %166 : vector<1x7xf32> to vector<1x7x1xf32>
    %cst_68 = arith.constant 3.200000e+01 : f32
    %168 = vector.broadcast %cst_68 : f32 to vector<1x7x1xf32>
    %169 = arith.divf %167, %168 : vector<1x7x1xf32>
    %170 = vector.broadcast %169 : vector<1x7x1xf32> to vector<1x7x32xf32>
    %171 = arith.subf %165, %170 : vector<1x7x32xf32>
    %172 = arith.mulf %171, %171 : vector<1x7x32xf32>
    %cst_69 = arith.constant dense<0.000000e+00> : vector<1x7xf32>
    %173 = vector.multi_reduction <add>, %172, %cst_69 [2] : vector<1x7x32xf32> to vector<1x7xf32>
    %174 = vector.shape_cast %173 : vector<1x7xf32> to vector<1x7x1xf32>
    %cst_70 = arith.constant 3.200000e+01 : f32
    %175 = vector.broadcast %cst_70 : f32 to vector<1x7x1xf32>
    %176 = arith.divf %174, %175 : vector<1x7x1xf32>
    %177 = vector.broadcast %169 : vector<1x7x1xf32> to vector<1x7x32xf32>
    %178 = arith.subf %165, %177 : vector<1x7x32xf32>
    %cst_71 = arith.constant 9.99999974E-6 : f32
    %179 = vector.broadcast %cst_71 : f32 to vector<1x7x1xf32>
    %180 = arith.addf %176, %179 : vector<1x7x1xf32>
    %181 = math.rsqrt %180 : vector<1x7x1xf32>
    %182 = vector.broadcast %181 : vector<1x7x1xf32> to vector<1x7x32xf32>
    %183 = arith.mulf %178, %182 : vector<1x7x32xf32>
    %184 = vector.shape_cast %21 : vector<1x32xf32> to vector<1x1x32xf32>
    %185 = vector.broadcast %184 : vector<1x1x32xf32> to vector<1x7x32xf32>
    %186 = arith.mulf %183, %185 : vector<1x7x32xf32>
    %187 = vector.shape_cast %23 : vector<1x32xf32> to vector<1x1x32xf32>
    %188 = vector.broadcast %187 : vector<1x1x32xf32> to vector<1x7x32xf32>
    %189 = arith.addf %186, %188 : vector<1x7x32xf32>
    %190 = vector.shape_cast %189 : vector<1x7x32xf32> to vector<7x32xf32>
    %191 = arith.truncf %190 : vector<7x32xf32> to vector<7x32xbf16>
    %cst_72 = arith.constant dense<0.000000e+00> : vector<7x128xf32>
    %192 = tpu.matmul %191, %25, %cst_72 {dimension_numbers = #tpu.dot_dimension_numbers<[1], [0], [0], [1], [0, 0, 1, 1], [], []>} : vector<7x32xbf16>, vector<32x128xbf16>, vector<7x128xf32> -> vector<7x128xf32>
    %193 = vector.broadcast %27 : vector<1x128xf32> to vector<7x128xf32>
    %194 = arith.addf %192, %193 : vector<7x128xf32>
    %195 = arith.mulf %194, %194 : vector<7x128xf32>
    %196 = arith.mulf %194, %195 : vector<7x128xf32>
    %cst_73 = arith.constant 4.471500e-02 : f32
    %197 = vector.broadcast %cst_73 : f32 to vector<7x128xf32>
    %198 = arith.mulf %197, %196 : vector<7x128xf32>
    %199 = arith.addf %194, %198 : vector<7x128xf32>
    %cst_74 = arith.constant 0.797884583 : f32
    %200 = vector.broadcast %cst_74 : f32 to vector<7x128xf32>
    %201 = arith.mulf %200, %199 : vector<7x128xf32>
    %202 = math.tanh %201 : vector<7x128xf32>
    %cst_75 = arith.constant 1.000000e+00 : f32
    %203 = vector.broadcast %cst_75 : f32 to vector<7x128xf32>
    %204 = arith.addf %203, %202 : vector<7x128xf32>
    %cst_76 = arith.constant 5.000000e-01 : f32
    %205 = vector.broadcast %cst_76 : f32 to vector<7x128xf32>
    %206 = arith.mulf %205, %204 : vector<7x128xf32>
    %207 = arith.mulf %194, %206 : vector<7x128xf32>
    %208 = arith.truncf %207 : vector<7x128xf32> to vector<7x128xbf16>
    %cst_77 = arith.constant dense<0.000000e+00> : vector<7x32xf32>
    %209 = tpu.matmul %208, %29, %cst_77 {dimension_numbers = #tpu.dot_dimension_numbers<[1], [0], [0], [1], [0, 0, 1, 1], [], []>} : vector<7x128xbf16>, vector<128x32xbf16>, vector<7x32xf32> -> vector<7x32xf32>
    %210 = vector.broadcast %31 : vector<1x32xf32> to vector<7x32xf32>
    %211 = arith.addf %209, %210 : vector<7x32xf32>
    %212 = vector.shape_cast %211 : vector<7x32xf32> to vector<1x7x32xf32>
    %213 = arith.addf %165, %212 : vector<1x7x32xf32>
    %c0_78 = arith.constant 0 : index
    %c0_79 = arith.constant 0 : index
    %c0_80 = arith.constant 0 : index
    %214 = vector.load %arg27[%c0_78, %c0_79, %c0_80] : memref<1x7x32xf32, #tpu.memory_space<vmem>>, vector<1x7x32xf32>
    tpu.vector_store %arg27[%c0_78, %c0_79, %c0_80], %213 {strides = array<i32>} : memref<1x7x32xf32, #tpu.memory_space<vmem>>, vector<1x7x32xf32>,
    %c1_i32_81 = arith.constant 1 : i32
    %215 = arith.cmpi eq, %arg1, %c1_i32_81 : i32
    %216 = arith.extui %215 : i1 to i32
    %c0_i32_82 = arith.constant 0 : i32
    %217 = arith.cmpi ne, %216, %c0_i32_82 : i32
    scf.if %217 {
      %c0_83 = arith.constant 0 : index
      %c0_84 = arith.constant 0 : index
      %c0_85 = arith.constant 0 : index
      %218 = vector.load %arg27[%c0_83, %c0_84, %c0_85] : memref<1x7x32xf32, #tpu.memory_space<vmem>>, vector<1x7x32xf32>
      %219 = vector.extract_strided_slice %218 {offsets = [0, 0, 0], sizes = [1, 1, 32], strides = [1, 1, 1]} : vector<1x7x32xf32> to vector<1x1x32xf32>
      %220 = vector.shape_cast %219 : vector<1x1x32xf32> to vector<1x32xf32>
      %c0_86 = arith.constant 0 : index
      %c0_87 = arith.constant 0 : index
      %221 = vector.load %arg19[%c0_86, %c0_87] : memref<1x32xf32, #tpu.memory_space<vmem>>, vector<1x32xf32>
      %c0_88 = arith.constant 0 : index
      %c0_89 = arith.constant 0 : index
      %222 = vector.load %arg20[%c0_88, %c0_89] : memref<1x32xf32, #tpu.memory_space<vmem>>, vector<1x32xf32>
      %cst_90 = arith.constant dense<0.000000e+00> : vector<1xf32>
      %223 = vector.multi_reduction <add>, %220, %cst_90 [1] : vector<1x32xf32> to vector<1xf32>
      %224 = vector.shape_cast %223 : vector<1xf32> to vector<1x1xf32>
      %cst_91 = arith.constant 3.200000e+01 : f32
      %225 = vector.broadcast %cst_91 : f32 to vector<1x1xf32>
      %226 = arith.divf %224, %225 : vector<1x1xf32>
      %227 = vector.broadcast %226 : vector<1x1xf32> to vector<1x32xf32>
      %228 = arith.subf %220, %227 : vector<1x32xf32>
      %229 = arith.mulf %228, %228 : vector<1x32xf32>
      %cst_92 = arith.constant dense<0.000000e+00> : vector<1xf32>
      %230 = vector.multi_reduction <add>, %229, %cst_92 [1] : vector<1x32xf32> to vector<1xf32>
      %231 = vector.shape_cast %230 : vector<1xf32> to vector<1x1xf32>
      %cst_93 = arith.constant 3.200000e+01 : f32
      %232 = vector.broadcast %cst_93 : f32 to vector<1x1xf32>
      %233 = arith.divf %231, %232 : vector<1x1xf32>
      %234 = vector.broadcast %226 : vector<1x1xf32> to vector<1x32xf32>
      %235 = arith.subf %220, %234 : vector<1x32xf32>
      %cst_94 = arith.constant 9.99999974E-6 : f32
      %236 = vector.broadcast %cst_94 : f32 to vector<1x1xf32>
      %237 = arith.addf %233, %236 : vector<1x1xf32>
      %238 = math.rsqrt %237 : vector<1x1xf32>
      %239 = vector.broadcast %238 : vector<1x1xf32> to vector<1x32xf32>
      %240 = arith.mulf %235, %239 : vector<1x32xf32>
      %241 = arith.mulf %240, %221 : vector<1x32xf32>
      %242 = arith.addf %241, %222 : vector<1x32xf32>
      %243 = vector.shape_cast %242 : vector<1x32xf32> to vector<1x1x32xf32>
      %c0_95 = arith.constant 0 : index
      %c0_96 = arith.constant 0 : index
      %c0_97 = arith.constant 0 : index
      %244 = vector.load %arg26[%c0_95, %c0_96, %c0_97] : memref<1x1x32xf32, #tpu.memory_space<vmem>>, vector<1x1x32xf32>
      tpu.vector_store %arg26[%c0_95, %c0_96, %c0_97], %243 {strides = array<i32>} : memref<1x1x32xf32, #tpu.memory_space<vmem>>, vector<1x1x32xf32>,
      %c0_98 = arith.constant 0 : index
      %c0_99 = arith.constant 0 : index
      %245 = vector.load %arg23[%c0_98, %c0_99] : memref<1x32xf32, #tpu.memory_space<vmem>>, vector<1x32xf32>
      %246 = arith.subf %242, %245 : vector<1x32xf32>
      %c0_100 = arith.constant 0 : index
      %c0_101 = arith.constant 0 : index
      %247 = vector.load %arg24[%c0_100, %c0_101] : memref<1x32xf32, #tpu.memory_space<vmem>>, vector<1x32xf32>
      %cst_102 = arith.constant 9.99999974E-6 : f32
      %248 = vector.broadcast %cst_102 : f32 to vector<1x32xf32>
      %249 = arith.addf %247, %248 : vector<1x32xf32>
      %250 = math.rsqrt %249 : vector<1x32xf32>
      %251 = arith.mulf %246, %250 : vector<1x32xf32>
      %c0_103 = arith.constant 0 : index
      %c0_104 = arith.constant 0 : index
      %252 = vector.load %arg21[%c0_103, %c0_104] : memref<1x32xf32, #tpu.memory_space<vmem>>, vector<1x32xf32>
      %253 = arith.mulf %251, %252 : vector<1x32xf32>
      %c0_105 = arith.constant 0 : index
      %c0_106 = arith.constant 0 : index
      %254 = vector.load %arg22[%c0_105, %c0_106] : memref<1x32xf32, #tpu.memory_space<vmem>>, vector<1x32xf32>
      %255 = arith.addf %253, %254 : vector<1x32xf32>
      %256 = vector.shape_cast %255 : vector<1x32xf32> to vector<1x1x32xf32>
      %c0_107 = arith.constant 0 : index
      %c0_108 = arith.constant 0 : index
      %c0_109 = arith.constant 0 : index
      %257 = vector.load %arg25[%c0_107, %c0_108, %c0_109] : memref<1x1x32xf32, #tpu.memory_space<vmem>>, vector<1x1x32xf32>
      tpu.vector_store %arg25[%c0_107, %c0_108, %c0_109], %256 {strides = array<i32>} : memref<1x1x32xf32, #tpu.memory_space<vmem>>, vector<1x1x32xf32>,
    } else {
    }
    return
  }
  func.func @transform_0(%arg0: i32, %arg1: i32) -> (i32, i32, i32) {
    %c0_i32 = arith.constant 0 : i32
    %c0_i32_0 = arith.constant 0 : i32
    %c0_i32_1 = arith.constant 0 : i32
    return %arg0, %c0_i32, %c0_i32_0 : i32, i32, i32
  }
  func.func @transform_1(%arg0: i32, %arg1: i32) -> (i32, i32) {
    %c0_i32 = arith.constant 0 : i32
    %c0_i32_0 = arith.constant 0 : i32
    %c0_i32_1 = arith.constant 0 : i32
    return %c0_i32, %c0_i32_0 : i32, i32
  }
  func.func @transform_2(%arg0: i32, %arg1: i32) -> (i32, i32) {
    %c0_i32 = arith.constant 0 : i32
    %c0_i32_0 = arith.constant 0 : i32
    %c0_i32_1 = arith.constant 0 : i32
    return %c0_i32, %c0_i32_0 : i32, i32
  }
  func.func @transform_3(%arg0: i32, %arg1: i32) -> (i32, i32, i32) {
    %c0_i32 = arith.constant 0 : i32
    %c0_i32_0 = arith.constant 0 : i32
    %c0_i32_1 = arith.constant 0 : i32
    %c0_i32_2 = arith.constant 0 : i32
    return %c0_i32, %c0_i32_0, %c0_i32_1 : i32, i32, i32
  }
  func.func @transform_4(%arg0: i32, %arg1: i32) -> (i32, i32, i32) {
    %c0_i32 = arith.constant 0 : i32
    %c0_i32_0 = arith.constant 0 : i32
    %c0_i32_1 = arith.constant 0 : i32
    return %arg1, %c0_i32, %c0_i32_0 : i32, i32, i32
  }
  func.func @transform_5(%arg0: i32, %arg1: i32) -> (i32, i32, i32) {
    %c0_i32 = arith.constant 0 : i32
    %c0_i32_0 = arith.constant 0 : i32
    %c0_i32_1 = arith.constant 0 : i32
    return %arg1, %c0_i32, %c0_i32_0 : i32, i32, i32
  }
  func.func @transform_6(%arg0: i32, %arg1: i32) -> (i32, i32, i32) {
    %c0_i32 = arith.constant 0 : i32
    %c0_i32_0 = arith.constant 0 : i32
    %c0_i32_1 = arith.constant 0 : i32
    return %arg1, %c0_i32, %c0_i32_0 : i32, i32, i32
  }
  func.func @transform_7(%arg0: i32, %arg1: i32) -> (i32, i32, i32) {
    %c0_i32 = arith.constant 0 : i32
    %c0_i32_0 = arith.constant 0 : i32
    %c0_i32_1 = arith.constant 0 : i32
    return %arg1, %c0_i32, %c0_i32_0 : i32, i32, i32
  }
  func.func @transform_8(%arg0: i32, %arg1: i32) -> (i32, i32, i32) {
    %c0_i32 = arith.constant 0 : i32
    %c0_i32_0 = arith.constant 0 : i32
    %c0_i32_1 = arith.constant 0 : i32
    return %arg1, %c0_i32, %c0_i32_0 : i32, i32, i32
  }
  func.func @transform_9(%arg0: i32, %arg1: i32) -> (i32, i32, i32) {
    %c0_i32 = arith.constant 0 : i32
    %c0_i32_0 = arith.constant 0 : i32
    %c0_i32_1 = arith.constant 0 : i32
    return %arg1, %c0_i32, %c0_i32_0 : i32, i32, i32
  }
  func.func @transform_10(%arg0: i32, %arg1: i32) -> (i32, i32, i32) {
    %c0_i32 = arith.constant 0 : i32
    %c0_i32_0 = arith.constant 0 : i32
    %c0_i32_1 = arith.constant 0 : i32
    return %arg1, %c0_i32, %c0_i32_0 : i32, i32, i32
  }
  func.func @transform_11(%arg0: i32, %arg1: i32) -> (i32, i32, i32) {
    %c0_i32 = arith.constant 0 : i32
    %c0_i32_0 = arith.constant 0 : i32
    %c0_i32_1 = arith.constant 0 : i32
    return %arg1, %c0_i32, %c0_i32_0 : i32, i32, i32
  }
  func.func @transform_12(%arg0: i32, %arg1: i32) -> (i32, i32, i32) {
    %c0_i32 = arith.constant 0 : i32
    %c0_i32_0 = arith.constant 0 : i32
    %c0_i32_1 = arith.constant 0 : i32
    return %arg1, %c0_i32, %c0_i32_0 : i32, i32, i32
  }
  func.func @transform_13(%arg0: i32, %arg1: i32) -> (i32, i32, i32) {
    %c0_i32 = arith.constant 0 : i32
    %c0_i32_0 = arith.constant 0 : i32
    %c0_i32_1 = arith.constant 0 : i32
    return %arg1, %c0_i32, %c0_i32_0 : i32, i32, i32
  }
  func.func @transform_14(%arg0: i32, %arg1: i32) -> (i32, i32, i32) {
    %c0_i32 = arith.constant 0 : i32
    %c0_i32_0 = arith.constant 0 : i32
    %c0_i32_1 = arith.constant 0 : i32
    return %arg1, %c0_i32, %c0_i32_0 : i32, i32, i32
  }
  func.func @transform_15(%arg0: i32, %arg1: i32) -> (i32, i32, i32) {
    %c0_i32 = arith.constant 0 : i32
    %c0_i32_0 = arith.constant 0 : i32
    %c0_i32_1 = arith.constant 0 : i32
    return %arg1, %c0_i32, %c0_i32_0 : i32, i32, i32
  }
  func.func @transform_16(%arg0: i32, %arg1: i32) -> (i32, i32, i32) {
    %c0_i32 = arith.constant 0 : i32
    %c0_i32_0 = arith.constant 0 : i32
    %c0_i32_1 = arith.constant 0 : i32
    return %arg1, %c0_i32, %c0_i32_0 : i32, i32, i32
  }
  func.func @transform_17(%arg0: i32, %arg1: i32) -> (i32, i32) {
    %c0_i32 = arith.constant 0 : i32
    %c0_i32_0 = arith.constant 0 : i32
    %c0_i32_1 = arith.constant 0 : i32
    return %c0_i32, %c0_i32_0 : i32, i32
  }
  func.func @transform_18(%arg0: i32, %arg1: i32) -> (i32, i32) {
    %c0_i32 = arith.constant 0 : i32
    %c0_i32_0 = arith.constant 0 : i32
    %c0_i32_1 = arith.constant 0 : i32
    return %c0_i32, %c0_i32_0 : i32, i32
  }
  func.func @transform_19(%arg0: i32, %arg1: i32) -> (i32, i32) {
    %c0_i32 = arith.constant 0 : i32
    %c0_i32_0 = arith.constant 0 : i32
    %c0_i32_1 = arith.constant 0 : i32
    return %c0_i32, %c0_i32_0 : i32, i32
  }
  func.func @transform_20(%arg0: i32, %arg1: i32) -> (i32, i32) {
    %c0_i32 = arith.constant 0 : i32
    %c0_i32_0 = arith.constant 0 : i32
    %c0_i32_1 = arith.constant 0 : i32
    return %c0_i32, %c0_i32_0 : i32, i32
  }
  func.func @transform_21(%arg0: i32, %arg1: i32) -> (i32, i32) {
    %c0_i32 = arith.constant 0 : i32
    %c0_i32_0 = arith.constant 0 : i32
    %c0_i32_1 = arith.constant 0 : i32
    return %c0_i32, %c0_i32_0 : i32, i32
  }
  func.func @transform_22(%arg0: i32, %arg1: i32) -> (i32, i32) {
    %c0_i32 = arith.constant 0 : i32
    %c0_i32_0 = arith.constant 0 : i32
    %c0_i32_1 = arith.constant 0 : i32
    return %c0_i32, %c0_i32_0 : i32, i32
  }
  func.func @transform_23(%arg0: i32, %arg1: i32) -> (i32, i32, i32) {
    %c0_i32 = arith.constant 0 : i32
    %c0_i32_0 = arith.constant 0 : i32
    %c0_i32_1 = arith.constant 0 : i32
    return %arg0, %c0_i32, %c0_i32_0 : i32, i32, i32
  }
  func.func @transform_24(%arg0: i32, %arg1: i32) -> (i32, i32, i32) {
    %c0_i32 = arith.constant 0 : i32
    %c0_i32_0 = arith.constant 0 : i32
    %c0_i32_1 = arith.constant 0 : i32
    return %arg0, %c0_i32, %c0_i32_0 : i32, i32, i32
  }
}

module attributes {stable_mosaic.version = 11 : i64} {
  func.func @_text_encoder_kernel(%arg0: i32, %arg1: i32, %arg2: memref<7x8x32xf32, #tpu.memory_space<vmem>>, %arg3: memref<1x8x32xf32, #tpu.memory_space<vmem>>, %arg4: memref<1x2x32xf32, #tpu.memory_space<vmem>>, %arg5: memref<1x1x32xf32, #tpu.memory_space<vmem>>, %arg6: memref<1x1x32xf32, #tpu.memory_space<vmem>>, %arg7: memref<1x32x96xbf16, #tpu.memory_space<vmem>>, %arg8: memref<1x1x96xf32, #tpu.memory_space<vmem>>, %arg9: memref<1x32x32xbf16, #tpu.memory_space<vmem>>, %arg10: memref<1x1x32xf32, #tpu.memory_space<vmem>>, %arg11: memref<1x1x32xf32, #tpu.memory_space<vmem>>, %arg12: memref<1x1x32xf32, #tpu.memory_space<vmem>>, %arg13: memref<1x32x128xbf16, #tpu.memory_space<vmem>>, %arg14: memref<1x1x128xf32, #tpu.memory_space<vmem>>, %arg15: memref<1x128x32xbf16, #tpu.memory_space<vmem>>, %arg16: memref<1x1x32xf32, #tpu.memory_space<vmem>>, %arg17: memref<1x32xf32, #tpu.memory_space<vmem>>, %arg18: memref<1x32xf32, #tpu.memory_space<vmem>>, %arg19: memref<7x8x1xf32, #tpu.memory_space<vmem>>, %arg20: memref<32x32xbf16, #tpu.memory_space<vmem>>, %arg21: memref<7x1x32xf32, #tpu.memory_space<vmem>>, %arg22: memref<7x8x32xf32, #tpu.memory_space<vmem>>) attributes {dimension_semantics = [#tpu.dimension_semantics<parallel>, #tpu.dimension_semantics<arbitrary>], iteration_bounds = array<i64: 2, 2>, scalar_prefetch = 0 : i64, scratch_operands = 1 : i64, tpu.core_type = #tpu.core_type<tc>, window_params = [{transform_indices = @transform_0, window_bounds = array<i64: 7, 8, 32>}, {pipeline_mode = #tpu.pipeline_mode<synchronous>, transform_indices = @transform_1, window_bounds = array<i64: 1, 8, 32>}, {transform_indices = @transform_2, window_bounds = array<i64: 1, 2, 32>}, {transform_indices = @transform_3, window_bounds = array<i64: 1, 1, 32>}, {transform_indices = @transform_4, window_bounds = array<i64: 1, 1, 32>}, {transform_indices = @transform_5, window_bounds = array<i64: 1, 32, 96>}, {transform_indices = @transform_6, window_bounds = array<i64: 1, 1, 96>}, {transform_indices = @transform_7, window_bounds = array<i64: 1, 32, 32>}, {transform_indices = @transform_8, window_bounds = array<i64: 1, 1, 32>}, {transform_indices = @transform_9, window_bounds = array<i64: 1, 1, 32>}, {transform_indices = @transform_10, window_bounds = array<i64: 1, 1, 32>}, {transform_indices = @transform_11, window_bounds = array<i64: 1, 32, 128>}, {transform_indices = @transform_12, window_bounds = array<i64: 1, 1, 128>}, {transform_indices = @transform_13, window_bounds = array<i64: 1, 128, 32>}, {transform_indices = @transform_14, window_bounds = array<i64: 1, 1, 32>}, {pipeline_mode = #tpu.pipeline_mode<synchronous>, transform_indices = @transform_15, window_bounds = array<i64: 1, 32>}, {pipeline_mode = #tpu.pipeline_mode<synchronous>, transform_indices = @transform_16, window_bounds = array<i64: 1, 32>}, {transform_indices = @transform_17, window_bounds = array<i64: 7, 8, 1>}, {pipeline_mode = #tpu.pipeline_mode<synchronous>, transform_indices = @transform_18, window_bounds = array<i64: 32, 32>}, {transform_indices = @transform_19, window_bounds = array<i64: 7, 1, 32>}]} {
    %c0_i32 = arith.constant 0 : i32
    %0 = arith.cmpi eq, %arg1, %c0_i32 : i32
    %1 = arith.extui %0 : i1 to i32
    %c0_i32_0 = arith.constant 0 : i32
    %2 = arith.cmpi ne, %1, %c0_i32_0 : i32
    scf.if %2 {
      %c0_83 = arith.constant 0 : index
      %c0_84 = arith.constant 0 : index
      %c0_85 = arith.constant 0 : index
      %228 = vector.load %arg2[%c0_83, %c0_84, %c0_85] : memref<7x8x32xf32, #tpu.memory_space<vmem>>, vector<7x8x32xf32>
      %c0_86 = arith.constant 0 : index
      %c0_87 = arith.constant 0 : index
      %c0_88 = arith.constant 0 : index
      %229 = vector.load %arg3[%c0_86, %c0_87, %c0_88] : memref<1x8x32xf32, #tpu.memory_space<vmem>>, vector<1x8x32xf32>
      %230 = vector.broadcast %229 : vector<1x8x32xf32> to vector<7x8x32xf32>
      %231 = arith.addf %228, %230 : vector<7x8x32xf32>
      %c0_89 = arith.constant 0 : index
      %c0_90 = arith.constant 0 : index
      %c0_91 = arith.constant 0 : index
      %232 = vector.load %arg22[%c0_89, %c0_90, %c0_91] : memref<7x8x32xf32, #tpu.memory_space<vmem>>, vector<7x8x32xf32>
      tpu.vector_store %arg22[%c0_89, %c0_90, %c0_91], %231 {strides = array<i32>} : memref<7x8x32xf32, #tpu.memory_space<vmem>>, vector<7x8x32xf32>,
    } else {
    }
    %c1_i32 = arith.constant 1 : i32
    %3 = arith.cmpi sge, %arg1, %c1_i32 : i32
    %c1_i32_1 = arith.constant 1 : i32
    %4 = arith.cmpi sle, %arg1, %c1_i32_1 : i32
    %5 = arith.andi %3, %4 : i1
    %6 = arith.extui %5 : i1 to i32
    %c0_i32_2 = arith.constant 0 : i32
    %7 = arith.cmpi ne, %6, %c0_i32_2 : i32
    scf.if %7 {
      %c0_83 = arith.constant 0 : index
      %c0_84 = arith.constant 0 : index
      %c0_85 = arith.constant 0 : index
      %228 = vector.load %arg22[%c0_83, %c0_84, %c0_85] : memref<7x8x32xf32, #tpu.memory_space<vmem>>, vector<7x8x32xf32>
      %c0_86 = arith.constant 0 : index
      %c0_87 = arith.constant 0 : index
      %c0_88 = arith.constant 0 : index
      %229 = vector.load %arg4[%c0_86, %c0_87, %c0_88] : memref<1x2x32xf32, #tpu.memory_space<vmem>>, vector<1x2x32xf32>
      %230 = vector.shape_cast %229 : vector<1x2x32xf32> to vector<2x32xf32>
      %231 = tpu.iota {dimensions = array<i32: 1>} : vector<1x8x1xi32>
      %c1_i32_89 = arith.constant 1 : i32
      %232 = vector.broadcast %c1_i32_89 : i32 to vector<1x8x1xi32>
      %233 = arith.cmpi eq, %231, %232 : vector<1x8x1xi32>
      %234 = vector.extract_strided_slice %230 {offsets = [0, 0], sizes = [1, 32], strides = [1, 1]} : vector<2x32xf32> to vector<1x32xf32>
      %235 = vector.shape_cast %234 : vector<1x32xf32> to vector<1x1x32xf32>
      %236 = vector.shape_cast %233 : vector<1x8x1xi1> to vector<1x8x1xi1>
      %237 = vector.broadcast %236 : vector<1x8x1xi1> to vector<7x8x32xi1>
      %238 = vector.shape_cast %235 : vector<1x1x32xf32> to vector<1x1x32xf32>
      %239 = vector.broadcast %238 : vector<1x1x32xf32> to vector<7x8x32xf32>
      %240 = arith.select %237, %239, %228 : vector<7x8x32xi1>, vector<7x8x32xf32>
      %c2_i32 = arith.constant 2 : i32
      %241 = vector.broadcast %c2_i32 : i32 to vector<1x8x1xi32>
      %242 = arith.cmpi eq, %231, %241 : vector<1x8x1xi32>
      %243 = vector.extract_strided_slice %230 {offsets = [1, 0], sizes = [1, 32], strides = [1, 1]} : vector<2x32xf32> to vector<1x32xf32>
      %244 = vector.shape_cast %243 : vector<1x32xf32> to vector<1x1x32xf32>
      %245 = vector.shape_cast %242 : vector<1x8x1xi1> to vector<1x8x1xi1>
      %246 = vector.broadcast %245 : vector<1x8x1xi1> to vector<7x8x32xi1>
      %247 = vector.shape_cast %244 : vector<1x1x32xf32> to vector<1x1x32xf32>
      %248 = vector.broadcast %247 : vector<1x1x32xf32> to vector<7x8x32xf32>
      %249 = arith.select %246, %248, %240 : vector<7x8x32xi1>, vector<7x8x32xf32>
      %c0_90 = arith.constant 0 : index
      %c0_91 = arith.constant 0 : index
      %c0_92 = arith.constant 0 : index
      %250 = vector.load %arg22[%c0_90, %c0_91, %c0_92] : memref<7x8x32xf32, #tpu.memory_space<vmem>>, vector<7x8x32xf32>
      tpu.vector_store %arg22[%c0_90, %c0_91, %c0_92], %249 {strides = array<i32>} : memref<7x8x32xf32, #tpu.memory_space<vmem>>, vector<7x8x32xf32>,
    } else {
    }
    %c0 = arith.constant 0 : index
    %c0_3 = arith.constant 0 : index
    %c0_4 = arith.constant 0 : index
    %8 = vector.load %arg5[%c0, %c0_3, %c0_4] : memref<1x1x32xf32, #tpu.memory_space<vmem>>, vector<1x1x32xf32>
    %9 = vector.shape_cast %8 : vector<1x1x32xf32> to vector<1x32xf32>
    %c0_5 = arith.constant 0 : index
    %c0_6 = arith.constant 0 : index
    %c0_7 = arith.constant 0 : index
    %10 = vector.load %arg6[%c0_5, %c0_6, %c0_7] : memref<1x1x32xf32, #tpu.memory_space<vmem>>, vector<1x1x32xf32>
    %11 = vector.shape_cast %10 : vector<1x1x32xf32> to vector<1x32xf32>
    %c0_8 = arith.constant 0 : index
    %c0_9 = arith.constant 0 : index
    %c0_10 = arith.constant 0 : index
    %12 = vector.load %arg7[%c0_8, %c0_9, %c0_10] : memref<1x32x96xbf16, #tpu.memory_space<vmem>>, vector<1x32x96xbf16>
    %13 = vector.shape_cast %12 : vector<1x32x96xbf16> to vector<32x96xbf16>
    %c0_11 = arith.constant 0 : index
    %c0_12 = arith.constant 0 : index
    %c0_13 = arith.constant 0 : index
    %14 = vector.load %arg8[%c0_11, %c0_12, %c0_13] : memref<1x1x96xf32, #tpu.memory_space<vmem>>, vector<1x1x96xf32>
    %15 = vector.shape_cast %14 : vector<1x1x96xf32> to vector<1x96xf32>
    %c0_14 = arith.constant 0 : index
    %c0_15 = arith.constant 0 : index
    %c0_16 = arith.constant 0 : index
    %16 = vector.load %arg9[%c0_14, %c0_15, %c0_16] : memref<1x32x32xbf16, #tpu.memory_space<vmem>>, vector<1x32x32xbf16>
    %17 = vector.shape_cast %16 : vector<1x32x32xbf16> to vector<32x32xbf16>
    %c0_17 = arith.constant 0 : index
    %c0_18 = arith.constant 0 : index
    %c0_19 = arith.constant 0 : index
    %18 = vector.load %arg10[%c0_17, %c0_18, %c0_19] : memref<1x1x32xf32, #tpu.memory_space<vmem>>, vector<1x1x32xf32>
    %19 = vector.shape_cast %18 : vector<1x1x32xf32> to vector<1x32xf32>
    %c0_20 = arith.constant 0 : index
    %c0_21 = arith.constant 0 : index
    %c0_22 = arith.constant 0 : index
    %20 = vector.load %arg11[%c0_20, %c0_21, %c0_22] : memref<1x1x32xf32, #tpu.memory_space<vmem>>, vector<1x1x32xf32>
    %21 = vector.shape_cast %20 : vector<1x1x32xf32> to vector<1x32xf32>
    %c0_23 = arith.constant 0 : index
    %c0_24 = arith.constant 0 : index
    %c0_25 = arith.constant 0 : index
    %22 = vector.load %arg12[%c0_23, %c0_24, %c0_25] : memref<1x1x32xf32, #tpu.memory_space<vmem>>, vector<1x1x32xf32>
    %23 = vector.shape_cast %22 : vector<1x1x32xf32> to vector<1x32xf32>
    %c0_26 = arith.constant 0 : index
    %c0_27 = arith.constant 0 : index
    %c0_28 = arith.constant 0 : index
    %24 = vector.load %arg13[%c0_26, %c0_27, %c0_28] : memref<1x32x128xbf16, #tpu.memory_space<vmem>>, vector<1x32x128xbf16>
    %25 = vector.shape_cast %24 : vector<1x32x128xbf16> to vector<32x128xbf16>
    %c0_29 = arith.constant 0 : index
    %c0_30 = arith.constant 0 : index
    %c0_31 = arith.constant 0 : index
    %26 = vector.load %arg14[%c0_29, %c0_30, %c0_31] : memref<1x1x128xf32, #tpu.memory_space<vmem>>, vector<1x1x128xf32>
    %27 = vector.shape_cast %26 : vector<1x1x128xf32> to vector<1x128xf32>
    %c0_32 = arith.constant 0 : index
    %c0_33 = arith.constant 0 : index
    %c0_34 = arith.constant 0 : index
    %28 = vector.load %arg15[%c0_32, %c0_33, %c0_34] : memref<1x128x32xbf16, #tpu.memory_space<vmem>>, vector<1x128x32xbf16>
    %29 = vector.shape_cast %28 : vector<1x128x32xbf16> to vector<128x32xbf16>
    %c0_35 = arith.constant 0 : index
    %c0_36 = arith.constant 0 : index
    %c0_37 = arith.constant 0 : index
    %30 = vector.load %arg16[%c0_35, %c0_36, %c0_37] : memref<1x1x32xf32, #tpu.memory_space<vmem>>, vector<1x1x32xf32>
    %31 = vector.shape_cast %30 : vector<1x1x32xf32> to vector<1x32xf32>
    %c0_38 = arith.constant 0 : index
    %c0_39 = arith.constant 0 : index
    %c0_40 = arith.constant 0 : index
    %32 = vector.load %arg22[%c0_38, %c0_39, %c0_40] : memref<7x8x32xf32, #tpu.memory_space<vmem>>, vector<7x8x32xf32>
    %cst = arith.constant dense<0.000000e+00> : vector<7x8xf32>
    %33 = vector.multi_reduction <add>, %32, %cst [2] : vector<7x8x32xf32> to vector<7x8xf32>
    %34 = vector.shape_cast %33 : vector<7x8xf32> to vector<7x8x1xf32>
    %cst_41 = arith.constant 3.200000e+01 : f32
    %35 = vector.broadcast %cst_41 : f32 to vector<7x8x1xf32>
    %36 = arith.divf %34, %35 : vector<7x8x1xf32>
    %37 = vector.broadcast %36 : vector<7x8x1xf32> to vector<7x8x32xf32>
    %38 = arith.subf %32, %37 : vector<7x8x32xf32>
    %39 = arith.mulf %38, %38 : vector<7x8x32xf32>
    %cst_42 = arith.constant dense<0.000000e+00> : vector<7x8xf32>
    %40 = vector.multi_reduction <add>, %39, %cst_42 [2] : vector<7x8x32xf32> to vector<7x8xf32>
    %41 = vector.shape_cast %40 : vector<7x8xf32> to vector<7x8x1xf32>
    %cst_43 = arith.constant 3.200000e+01 : f32
    %42 = vector.broadcast %cst_43 : f32 to vector<7x8x1xf32>
    %43 = arith.divf %41, %42 : vector<7x8x1xf32>
    %44 = vector.broadcast %36 : vector<7x8x1xf32> to vector<7x8x32xf32>
    %45 = arith.subf %32, %44 : vector<7x8x32xf32>
    %cst_44 = arith.constant 9.99999974E-6 : f32
    %46 = vector.broadcast %cst_44 : f32 to vector<7x8x1xf32>
    %47 = arith.addf %43, %46 : vector<7x8x1xf32>
    %48 = math.rsqrt %47 : vector<7x8x1xf32>
    %49 = vector.broadcast %48 : vector<7x8x1xf32> to vector<7x8x32xf32>
    %50 = arith.mulf %45, %49 : vector<7x8x32xf32>
    %51 = vector.shape_cast %9 : vector<1x32xf32> to vector<1x1x32xf32>
    %52 = vector.broadcast %51 : vector<1x1x32xf32> to vector<7x8x32xf32>
    %53 = arith.mulf %50, %52 : vector<7x8x32xf32>
    %54 = vector.shape_cast %11 : vector<1x32xf32> to vector<1x1x32xf32>
    %55 = vector.broadcast %54 : vector<1x1x32xf32> to vector<7x8x32xf32>
    %56 = arith.addf %53, %55 : vector<7x8x32xf32>
    %57 = vector.shape_cast %56 : vector<7x8x32xf32> to vector<56x32xf32>
    %58 = arith.truncf %57 : vector<56x32xf32> to vector<56x32xbf16>
    %cst_45 = arith.constant dense<0.000000e+00> : vector<56x96xf32>
    %59 = tpu.matmul %58, %13, %cst_45 {dimension_numbers = #tpu.dot_dimension_numbers<[1], [0], [0], [1], [0, 0, 1, 1], [], []>} : vector<56x32xbf16>, vector<32x96xbf16>, vector<56x96xf32> -> vector<56x96xf32>
    %60 = vector.broadcast %15 : vector<1x96xf32> to vector<56x96xf32>
    %61 = arith.addf %59, %60 : vector<56x96xf32>
    %62 = tpu.iota {dimensions = array<i32: 0>} : vector<8x8xi32>
    %63 = tpu.iota {dimensions = array<i32: 1>} : vector<8x8xi32>
    %64 = arith.cmpi sle, %63, %62 : vector<8x8xi32>
    %cst_46 = arith.constant 0.000000e+00 : f32
    %cst_47 = arith.constant -1.000000e+09 : f32
    %65 = vector.broadcast %cst_46 : f32 to vector<8x8xf32>
    %66 = vector.broadcast %cst_47 : f32 to vector<8x8xf32>
    %67 = arith.select %64, %65, %66 : vector<8x8xi1>, vector<8x8xf32>
    %68 = vector.shape_cast %67 : vector<8x8xf32> to vector<1x8x8xf32>
    %69 = vector.extract_strided_slice %61 {offsets = [0, 0], sizes = [56, 8], strides = [1, 1]} : vector<56x96xf32> to vector<56x8xf32>
    %70 = vector.shape_cast %69 : vector<56x8xf32> to vector<7x8x8xf32>
    %71 = arith.truncf %70 : vector<7x8x8xf32> to vector<7x8x8xbf16>
    %72 = vector.extract_strided_slice %61 {offsets = [0, 32], sizes = [56, 8], strides = [1, 1]} : vector<56x96xf32> to vector<56x8xf32>
    %73 = vector.shape_cast %72 : vector<56x8xf32> to vector<7x8x8xf32>
    %74 = arith.truncf %73 : vector<7x8x8xf32> to vector<7x8x8xbf16>
    %75 = vector.extract_strided_slice %61 {offsets = [0, 64], sizes = [56, 8], strides = [1, 1]} : vector<56x96xf32> to vector<56x8xf32>
    %76 = vector.shape_cast %75 : vector<56x8xf32> to vector<7x8x8xf32>
    %77 = arith.truncf %76 : vector<7x8x8xf32> to vector<7x8x8xbf16>
    "tpu.trace_start"() <{level = 10 : i32, message = "bqd,bkd->bqk"}> : () -> ()
    %cst_48 = arith.constant dense<0.000000e+00> : vector<7x8x8xf32>
    %78 = tpu.matmul %71, %74, %cst_48 {dimension_numbers = #tpu.dot_dimension_numbers<[2], [2], [1], [1], [0, 0, 0, 1, 1, 1], [0], [0]>} : vector<7x8x8xbf16>, vector<7x8x8xbf16>, vector<7x8x8xf32> -> vector<7x8x8xf32>
    "tpu.trace_stop"() : () -> ()
    %cst_49 = arith.constant 0.353553385 : f32
    %79 = vector.broadcast %cst_49 : f32 to vector<7x8x8xf32>
    %80 = arith.mulf %78, %79 : vector<7x8x8xf32>
    %81 = vector.broadcast %68 : vector<1x8x8xf32> to vector<7x8x8xf32>
    %82 = arith.addf %80, %81 : vector<7x8x8xf32>
    %cst_50 = arith.constant dense<0xFF800000> : vector<7x8xf32>
    %83 = vector.multi_reduction <maximumf>, %82, %cst_50 [2] : vector<7x8x8xf32> to vector<7x8xf32>
    %84 = vector.shape_cast %83 : vector<7x8xf32> to vector<7x8x1xf32>
    %85 = vector.broadcast %84 : vector<7x8x1xf32> to vector<7x8x8xf32>
    %86 = arith.subf %82, %85 : vector<7x8x8xf32>
    %87 = math.exp %86 : vector<7x8x8xf32>
    %cst_51 = arith.constant dense<0.000000e+00> : vector<7x8xf32>
    %88 = vector.multi_reduction <add>, %87, %cst_51 [2] : vector<7x8x8xf32> to vector<7x8xf32>
    %89 = vector.shape_cast %88 : vector<7x8xf32> to vector<7x8x1xf32>
    %90 = tpu.reciprocal %89 {approx = true} : vector<7x8x1xf32> -> vector<7x8x1xf32>
    %91 = vector.broadcast %90 : vector<7x8x1xf32> to vector<7x8x8xf32>
    %92 = arith.mulf %87, %91 : vector<7x8x8xf32>
    %93 = arith.truncf %92 : vector<7x8x8xf32> to vector<7x8x8xbf16>
    "tpu.trace_start"() <{level = 10 : i32, message = "bqk,bkd->bqd"}> : () -> ()
    %cst_52 = arith.constant dense<0.000000e+00> : vector<7x8x8xf32>
    %94 = tpu.matmul %93, %77, %cst_52 {dimension_numbers = #tpu.dot_dimension_numbers<[2], [1], [1], [2], [0, 0, 0, 1, 1, 2], [0], [0]>} : vector<7x8x8xbf16>, vector<7x8x8xbf16>, vector<7x8x8xf32> -> vector<7x8x8xf32>
    "tpu.trace_stop"() : () -> ()
    %95 = vector.extract_strided_slice %61 {offsets = [0, 8], sizes = [56, 8], strides = [1, 1]} : vector<56x96xf32> to vector<56x8xf32>
    %96 = vector.shape_cast %95 : vector<56x8xf32> to vector<7x8x8xf32>
    %97 = arith.truncf %96 : vector<7x8x8xf32> to vector<7x8x8xbf16>
    %98 = vector.extract_strided_slice %61 {offsets = [0, 40], sizes = [56, 8], strides = [1, 1]} : vector<56x96xf32> to vector<56x8xf32>
    %99 = vector.shape_cast %98 : vector<56x8xf32> to vector<7x8x8xf32>
    %100 = arith.truncf %99 : vector<7x8x8xf32> to vector<7x8x8xbf16>
    %101 = vector.extract_strided_slice %61 {offsets = [0, 72], sizes = [56, 8], strides = [1, 1]} : vector<56x96xf32> to vector<56x8xf32>
    %102 = vector.shape_cast %101 : vector<56x8xf32> to vector<7x8x8xf32>
    %103 = arith.truncf %102 : vector<7x8x8xf32> to vector<7x8x8xbf16>
    "tpu.trace_start"() <{level = 10 : i32, message = "bqd,bkd->bqk"}> : () -> ()
    %cst_53 = arith.constant dense<0.000000e+00> : vector<7x8x8xf32>
    %104 = tpu.matmul %97, %100, %cst_53 {dimension_numbers = #tpu.dot_dimension_numbers<[2], [2], [1], [1], [0, 0, 0, 1, 1, 1], [0], [0]>} : vector<7x8x8xbf16>, vector<7x8x8xbf16>, vector<7x8x8xf32> -> vector<7x8x8xf32>
    "tpu.trace_stop"() : () -> ()
    %cst_54 = arith.constant 0.353553385 : f32
    %105 = vector.broadcast %cst_54 : f32 to vector<7x8x8xf32>
    %106 = arith.mulf %104, %105 : vector<7x8x8xf32>
    %107 = vector.broadcast %68 : vector<1x8x8xf32> to vector<7x8x8xf32>
    %108 = arith.addf %106, %107 : vector<7x8x8xf32>
    %cst_55 = arith.constant dense<0xFF800000> : vector<7x8xf32>
    %109 = vector.multi_reduction <maximumf>, %108, %cst_55 [2] : vector<7x8x8xf32> to vector<7x8xf32>
    %110 = vector.shape_cast %109 : vector<7x8xf32> to vector<7x8x1xf32>
    %111 = vector.broadcast %110 : vector<7x8x1xf32> to vector<7x8x8xf32>
    %112 = arith.subf %108, %111 : vector<7x8x8xf32>
    %113 = math.exp %112 : vector<7x8x8xf32>
    %cst_56 = arith.constant dense<0.000000e+00> : vector<7x8xf32>
    %114 = vector.multi_reduction <add>, %113, %cst_56 [2] : vector<7x8x8xf32> to vector<7x8xf32>
    %115 = vector.shape_cast %114 : vector<7x8xf32> to vector<7x8x1xf32>
    %116 = tpu.reciprocal %115 {approx = true} : vector<7x8x1xf32> -> vector<7x8x1xf32>
    %117 = vector.broadcast %116 : vector<7x8x1xf32> to vector<7x8x8xf32>
    %118 = arith.mulf %113, %117 : vector<7x8x8xf32>
    %119 = arith.truncf %118 : vector<7x8x8xf32> to vector<7x8x8xbf16>
    "tpu.trace_start"() <{level = 10 : i32, message = "bqk,bkd->bqd"}> : () -> ()
    %cst_57 = arith.constant dense<0.000000e+00> : vector<7x8x8xf32>
    %120 = tpu.matmul %119, %103, %cst_57 {dimension_numbers = #tpu.dot_dimension_numbers<[2], [1], [1], [2], [0, 0, 0, 1, 1, 2], [0], [0]>} : vector<7x8x8xbf16>, vector<7x8x8xbf16>, vector<7x8x8xf32> -> vector<7x8x8xf32>
    "tpu.trace_stop"() : () -> ()
    %121 = vector.extract_strided_slice %61 {offsets = [0, 16], sizes = [56, 8], strides = [1, 1]} : vector<56x96xf32> to vector<56x8xf32>
    %122 = vector.shape_cast %121 : vector<56x8xf32> to vector<7x8x8xf32>
    %123 = arith.truncf %122 : vector<7x8x8xf32> to vector<7x8x8xbf16>
    %124 = vector.extract_strided_slice %61 {offsets = [0, 48], sizes = [56, 8], strides = [1, 1]} : vector<56x96xf32> to vector<56x8xf32>
    %125 = vector.shape_cast %124 : vector<56x8xf32> to vector<7x8x8xf32>
    %126 = arith.truncf %125 : vector<7x8x8xf32> to vector<7x8x8xbf16>
    %127 = vector.extract_strided_slice %61 {offsets = [0, 80], sizes = [56, 8], strides = [1, 1]} : vector<56x96xf32> to vector<56x8xf32>
    %128 = vector.shape_cast %127 : vector<56x8xf32> to vector<7x8x8xf32>
    %129 = arith.truncf %128 : vector<7x8x8xf32> to vector<7x8x8xbf16>
    "tpu.trace_start"() <{level = 10 : i32, message = "bqd,bkd->bqk"}> : () -> ()
    %cst_58 = arith.constant dense<0.000000e+00> : vector<7x8x8xf32>
    %130 = tpu.matmul %123, %126, %cst_58 {dimension_numbers = #tpu.dot_dimension_numbers<[2], [2], [1], [1], [0, 0, 0, 1, 1, 1], [0], [0]>} : vector<7x8x8xbf16>, vector<7x8x8xbf16>, vector<7x8x8xf32> -> vector<7x8x8xf32>
    "tpu.trace_stop"() : () -> ()
    %cst_59 = arith.constant 0.353553385 : f32
    %131 = vector.broadcast %cst_59 : f32 to vector<7x8x8xf32>
    %132 = arith.mulf %130, %131 : vector<7x8x8xf32>
    %133 = vector.broadcast %68 : vector<1x8x8xf32> to vector<7x8x8xf32>
    %134 = arith.addf %132, %133 : vector<7x8x8xf32>
    %cst_60 = arith.constant dense<0xFF800000> : vector<7x8xf32>
    %135 = vector.multi_reduction <maximumf>, %134, %cst_60 [2] : vector<7x8x8xf32> to vector<7x8xf32>
    %136 = vector.shape_cast %135 : vector<7x8xf32> to vector<7x8x1xf32>
    %137 = vector.broadcast %136 : vector<7x8x1xf32> to vector<7x8x8xf32>
    %138 = arith.subf %134, %137 : vector<7x8x8xf32>
    %139 = math.exp %138 : vector<7x8x8xf32>
    %cst_61 = arith.constant dense<0.000000e+00> : vector<7x8xf32>
    %140 = vector.multi_reduction <add>, %139, %cst_61 [2] : vector<7x8x8xf32> to vector<7x8xf32>
    %141 = vector.shape_cast %140 : vector<7x8xf32> to vector<7x8x1xf32>
    %142 = tpu.reciprocal %141 {approx = true} : vector<7x8x1xf32> -> vector<7x8x1xf32>
    %143 = vector.broadcast %142 : vector<7x8x1xf32> to vector<7x8x8xf32>
    %144 = arith.mulf %139, %143 : vector<7x8x8xf32>
    %145 = arith.truncf %144 : vector<7x8x8xf32> to vector<7x8x8xbf16>
    "tpu.trace_start"() <{level = 10 : i32, message = "bqk,bkd->bqd"}> : () -> ()
    %cst_62 = arith.constant dense<0.000000e+00> : vector<7x8x8xf32>
    %146 = tpu.matmul %145, %129, %cst_62 {dimension_numbers = #tpu.dot_dimension_numbers<[2], [1], [1], [2], [0, 0, 0, 1, 1, 2], [0], [0]>} : vector<7x8x8xbf16>, vector<7x8x8xbf16>, vector<7x8x8xf32> -> vector<7x8x8xf32>
    "tpu.trace_stop"() : () -> ()
    %147 = vector.extract_strided_slice %61 {offsets = [0, 24], sizes = [56, 8], strides = [1, 1]} : vector<56x96xf32> to vector<56x8xf32>
    %148 = vector.shape_cast %147 : vector<56x8xf32> to vector<7x8x8xf32>
    %149 = arith.truncf %148 : vector<7x8x8xf32> to vector<7x8x8xbf16>
    %150 = vector.extract_strided_slice %61 {offsets = [0, 56], sizes = [56, 8], strides = [1, 1]} : vector<56x96xf32> to vector<56x8xf32>
    %151 = vector.shape_cast %150 : vector<56x8xf32> to vector<7x8x8xf32>
    %152 = arith.truncf %151 : vector<7x8x8xf32> to vector<7x8x8xbf16>
    %153 = vector.extract_strided_slice %61 {offsets = [0, 88], sizes = [56, 8], strides = [1, 1]} : vector<56x96xf32> to vector<56x8xf32>
    %154 = vector.shape_cast %153 : vector<56x8xf32> to vector<7x8x8xf32>
    %155 = arith.truncf %154 : vector<7x8x8xf32> to vector<7x8x8xbf16>
    "tpu.trace_start"() <{level = 10 : i32, message = "bqd,bkd->bqk"}> : () -> ()
    %cst_63 = arith.constant dense<0.000000e+00> : vector<7x8x8xf32>
    %156 = tpu.matmul %149, %152, %cst_63 {dimension_numbers = #tpu.dot_dimension_numbers<[2], [2], [1], [1], [0, 0, 0, 1, 1, 1], [0], [0]>} : vector<7x8x8xbf16>, vector<7x8x8xbf16>, vector<7x8x8xf32> -> vector<7x8x8xf32>
    "tpu.trace_stop"() : () -> ()
    %cst_64 = arith.constant 0.353553385 : f32
    %157 = vector.broadcast %cst_64 : f32 to vector<7x8x8xf32>
    %158 = arith.mulf %156, %157 : vector<7x8x8xf32>
    %159 = vector.broadcast %68 : vector<1x8x8xf32> to vector<7x8x8xf32>
    %160 = arith.addf %158, %159 : vector<7x8x8xf32>
    %cst_65 = arith.constant dense<0xFF800000> : vector<7x8xf32>
    %161 = vector.multi_reduction <maximumf>, %160, %cst_65 [2] : vector<7x8x8xf32> to vector<7x8xf32>
    %162 = vector.shape_cast %161 : vector<7x8xf32> to vector<7x8x1xf32>
    %163 = vector.broadcast %162 : vector<7x8x1xf32> to vector<7x8x8xf32>
    %164 = arith.subf %160, %163 : vector<7x8x8xf32>
    %165 = math.exp %164 : vector<7x8x8xf32>
    %cst_66 = arith.constant dense<0.000000e+00> : vector<7x8xf32>
    %166 = vector.multi_reduction <add>, %165, %cst_66 [2] : vector<7x8x8xf32> to vector<7x8xf32>
    %167 = vector.shape_cast %166 : vector<7x8xf32> to vector<7x8x1xf32>
    %168 = tpu.reciprocal %167 {approx = true} : vector<7x8x1xf32> -> vector<7x8x1xf32>
    %169 = vector.broadcast %168 : vector<7x8x1xf32> to vector<7x8x8xf32>
    %170 = arith.mulf %165, %169 : vector<7x8x8xf32>
    %171 = arith.truncf %170 : vector<7x8x8xf32> to vector<7x8x8xbf16>
    "tpu.trace_start"() <{level = 10 : i32, message = "bqk,bkd->bqd"}> : () -> ()
    %cst_67 = arith.constant dense<0.000000e+00> : vector<7x8x8xf32>
    %172 = tpu.matmul %171, %155, %cst_67 {dimension_numbers = #tpu.dot_dimension_numbers<[2], [1], [1], [2], [0, 0, 0, 1, 1, 2], [0], [0]>} : vector<7x8x8xbf16>, vector<7x8x8xbf16>, vector<7x8x8xf32> -> vector<7x8x8xf32>
    "tpu.trace_stop"() : () -> ()
    %173 = tpu.concatenate %94, %120, %146, %172 in 2 : vector<7x8x8xf32>, vector<7x8x8xf32>, vector<7x8x8xf32>, vector<7x8x8xf32> -> vector<7x8x32xf32>
    %174 = vector.shape_cast %173 : vector<7x8x32xf32> to vector<56x32xf32>
    %175 = arith.truncf %174 : vector<56x32xf32> to vector<56x32xbf16>
    %cst_68 = arith.constant dense<0.000000e+00> : vector<56x32xf32>
    %176 = tpu.matmul %175, %17, %cst_68 {dimension_numbers = #tpu.dot_dimension_numbers<[1], [0], [0], [1], [0, 0, 1, 1], [], []>} : vector<56x32xbf16>, vector<32x32xbf16>, vector<56x32xf32> -> vector<56x32xf32>
    %177 = vector.broadcast %19 : vector<1x32xf32> to vector<56x32xf32>
    %178 = arith.addf %176, %177 : vector<56x32xf32>
    %179 = vector.shape_cast %178 : vector<56x32xf32> to vector<7x8x32xf32>
    %180 = arith.addf %32, %179 : vector<7x8x32xf32>
    %cst_69 = arith.constant dense<0.000000e+00> : vector<7x8xf32>
    %181 = vector.multi_reduction <add>, %180, %cst_69 [2] : vector<7x8x32xf32> to vector<7x8xf32>
    %182 = vector.shape_cast %181 : vector<7x8xf32> to vector<7x8x1xf32>
    %cst_70 = arith.constant 3.200000e+01 : f32
    %183 = vector.broadcast %cst_70 : f32 to vector<7x8x1xf32>
    %184 = arith.divf %182, %183 : vector<7x8x1xf32>
    %185 = vector.broadcast %184 : vector<7x8x1xf32> to vector<7x8x32xf32>
    %186 = arith.subf %180, %185 : vector<7x8x32xf32>
    %187 = arith.mulf %186, %186 : vector<7x8x32xf32>
    %cst_71 = arith.constant dense<0.000000e+00> : vector<7x8xf32>
    %188 = vector.multi_reduction <add>, %187, %cst_71 [2] : vector<7x8x32xf32> to vector<7x8xf32>
    %189 = vector.shape_cast %188 : vector<7x8xf32> to vector<7x8x1xf32>
    %cst_72 = arith.constant 3.200000e+01 : f32
    %190 = vector.broadcast %cst_72 : f32 to vector<7x8x1xf32>
    %191 = arith.divf %189, %190 : vector<7x8x1xf32>
    %192 = vector.broadcast %184 : vector<7x8x1xf32> to vector<7x8x32xf32>
    %193 = arith.subf %180, %192 : vector<7x8x32xf32>
    %cst_73 = arith.constant 9.99999974E-6 : f32
    %194 = vector.broadcast %cst_73 : f32 to vector<7x8x1xf32>
    %195 = arith.addf %191, %194 : vector<7x8x1xf32>
    %196 = math.rsqrt %195 : vector<7x8x1xf32>
    %197 = vector.broadcast %196 : vector<7x8x1xf32> to vector<7x8x32xf32>
    %198 = arith.mulf %193, %197 : vector<7x8x32xf32>
    %199 = vector.shape_cast %21 : vector<1x32xf32> to vector<1x1x32xf32>
    %200 = vector.broadcast %199 : vector<1x1x32xf32> to vector<7x8x32xf32>
    %201 = arith.mulf %198, %200 : vector<7x8x32xf32>
    %202 = vector.shape_cast %23 : vector<1x32xf32> to vector<1x1x32xf32>
    %203 = vector.broadcast %202 : vector<1x1x32xf32> to vector<7x8x32xf32>
    %204 = arith.addf %201, %203 : vector<7x8x32xf32>
    %205 = vector.shape_cast %204 : vector<7x8x32xf32> to vector<56x32xf32>
    %206 = arith.truncf %205 : vector<56x32xf32> to vector<56x32xbf16>
    %cst_74 = arith.constant dense<0.000000e+00> : vector<56x128xf32>
    %207 = tpu.matmul %206, %25, %cst_74 {dimension_numbers = #tpu.dot_dimension_numbers<[1], [0], [0], [1], [0, 0, 1, 1], [], []>} : vector<56x32xbf16>, vector<32x128xbf16>, vector<56x128xf32> -> vector<56x128xf32>
    %208 = vector.broadcast %27 : vector<1x128xf32> to vector<56x128xf32>
    %209 = arith.addf %207, %208 : vector<56x128xf32>
    %cst_75 = arith.constant 1.702000e+00 : f32
    %210 = vector.broadcast %cst_75 : f32 to vector<56x128xf32>
    %211 = arith.mulf %210, %209 : vector<56x128xf32>
    %212 = arith.negf %211 : vector<56x128xf32>
    %213 = math.exp %212 : vector<56x128xf32>
    %cst_76 = arith.constant 1.000000e+00 : f32
    %214 = vector.broadcast %cst_76 : f32 to vector<56x128xf32>
    %215 = arith.addf %214, %213 : vector<56x128xf32>
    %216 = arith.divf %214, %215 : vector<56x128xf32>
    %217 = arith.mulf %209, %216 : vector<56x128xf32>
    %218 = arith.truncf %217 : vector<56x128xf32> to vector<56x128xbf16>
    %cst_77 = arith.constant dense<0.000000e+00> : vector<56x32xf32>
    %219 = tpu.matmul %218, %29, %cst_77 {dimension_numbers = #tpu.dot_dimension_numbers<[1], [0], [0], [1], [0, 0, 1, 1], [], []>} : vector<56x128xbf16>, vector<128x32xbf16>, vector<56x32xf32> -> vector<56x32xf32>
    %220 = vector.broadcast %31 : vector<1x32xf32> to vector<56x32xf32>
    %221 = arith.addf %219, %220 : vector<56x32xf32>
    %222 = vector.shape_cast %221 : vector<56x32xf32> to vector<7x8x32xf32>
    %223 = arith.addf %180, %222 : vector<7x8x32xf32>
    %c0_78 = arith.constant 0 : index
    %c0_79 = arith.constant 0 : index
    %c0_80 = arith.constant 0 : index
    %224 = vector.load %arg22[%c0_78, %c0_79, %c0_80] : memref<7x8x32xf32, #tpu.memory_space<vmem>>, vector<7x8x32xf32>
    tpu.vector_store %arg22[%c0_78, %c0_79, %c0_80], %223 {strides = array<i32>} : memref<7x8x32xf32, #tpu.memory_space<vmem>>, vector<7x8x32xf32>,
    %c1_i32_81 = arith.constant 1 : i32
    %225 = arith.cmpi eq, %arg1, %c1_i32_81 : i32
    %226 = arith.extui %225 : i1 to i32
    %c0_i32_82 = arith.constant 0 : i32
    %227 = arith.cmpi ne, %226, %c0_i32_82 : i32
    scf.if %227 {
      %c0_83 = arith.constant 0 : index
      %c0_84 = arith.constant 0 : index
      %c0_85 = arith.constant 0 : index
      %228 = vector.load %arg22[%c0_83, %c0_84, %c0_85] : memref<7x8x32xf32, #tpu.memory_space<vmem>>, vector<7x8x32xf32>
      %c0_86 = arith.constant 0 : index
      %c0_87 = arith.constant 0 : index
      %229 = vector.load %arg17[%c0_86, %c0_87] : memref<1x32xf32, #tpu.memory_space<vmem>>, vector<1x32xf32>
      %c0_88 = arith.constant 0 : index
      %c0_89 = arith.constant 0 : index
      %230 = vector.load %arg18[%c0_88, %c0_89] : memref<1x32xf32, #tpu.memory_space<vmem>>, vector<1x32xf32>
      %cst_90 = arith.constant dense<0.000000e+00> : vector<7x8xf32>
      %231 = vector.multi_reduction <add>, %228, %cst_90 [2] : vector<7x8x32xf32> to vector<7x8xf32>
      %232 = vector.shape_cast %231 : vector<7x8xf32> to vector<7x8x1xf32>
      %cst_91 = arith.constant 3.200000e+01 : f32
      %233 = vector.broadcast %cst_91 : f32 to vector<7x8x1xf32>
      %234 = arith.divf %232, %233 : vector<7x8x1xf32>
      %235 = vector.broadcast %234 : vector<7x8x1xf32> to vector<7x8x32xf32>
      %236 = arith.subf %228, %235 : vector<7x8x32xf32>
      %237 = arith.mulf %236, %236 : vector<7x8x32xf32>
      %cst_92 = arith.constant dense<0.000000e+00> : vector<7x8xf32>
      %238 = vector.multi_reduction <add>, %237, %cst_92 [2] : vector<7x8x32xf32> to vector<7x8xf32>
      %239 = vector.shape_cast %238 : vector<7x8xf32> to vector<7x8x1xf32>
      %cst_93 = arith.constant 3.200000e+01 : f32
      %240 = vector.broadcast %cst_93 : f32 to vector<7x8x1xf32>
      %241 = arith.divf %239, %240 : vector<7x8x1xf32>
      %242 = vector.broadcast %234 : vector<7x8x1xf32> to vector<7x8x32xf32>
      %243 = arith.subf %228, %242 : vector<7x8x32xf32>
      %cst_94 = arith.constant 9.99999974E-6 : f32
      %244 = vector.broadcast %cst_94 : f32 to vector<7x8x1xf32>
      %245 = arith.addf %241, %244 : vector<7x8x1xf32>
      %246 = math.rsqrt %245 : vector<7x8x1xf32>
      %247 = vector.broadcast %246 : vector<7x8x1xf32> to vector<7x8x32xf32>
      %248 = arith.mulf %243, %247 : vector<7x8x32xf32>
      %249 = vector.shape_cast %229 : vector<1x32xf32> to vector<1x1x32xf32>
      %250 = vector.broadcast %249 : vector<1x1x32xf32> to vector<7x8x32xf32>
      %251 = arith.mulf %248, %250 : vector<7x8x32xf32>
      %252 = vector.shape_cast %230 : vector<1x32xf32> to vector<1x1x32xf32>
      %253 = vector.broadcast %252 : vector<1x1x32xf32> to vector<7x8x32xf32>
      %254 = arith.addf %251, %253 : vector<7x8x32xf32>
      %c0_95 = arith.constant 0 : index
      %c0_96 = arith.constant 0 : index
      %c0_97 = arith.constant 0 : index
      %255 = vector.load %arg19[%c0_95, %c0_96, %c0_97] : memref<7x8x1xf32, #tpu.memory_space<vmem>>, vector<7x8x1xf32>
      %256 = vector.broadcast %255 : vector<7x8x1xf32> to vector<7x8x32xf32>
      %257 = arith.mulf %256, %254 : vector<7x8x32xf32>
      %cst_98 = arith.constant dense<0.000000e+00> : vector<7x32xf32>
      %258 = vector.multi_reduction <add>, %257, %cst_98 [1] : vector<7x8x32xf32> to vector<7x32xf32>
      %259 = arith.truncf %258 : vector<7x32xf32> to vector<7x32xbf16>
      %c0_99 = arith.constant 0 : index
      %c0_100 = arith.constant 0 : index
      %260 = vector.load %arg20[%c0_99, %c0_100] : memref<32x32xbf16, #tpu.memory_space<vmem>>, vector<32x32xbf16>
      %cst_101 = arith.constant dense<0.000000e+00> : vector<7x32xf32>
      %261 = tpu.matmul %259, %260, %cst_101 {dimension_numbers = #tpu.dot_dimension_numbers<[1], [0], [0], [1], [0, 0, 1, 1], [], []>} : vector<7x32xbf16>, vector<32x32xbf16>, vector<7x32xf32> -> vector<7x32xf32>
      %262 = vector.shape_cast %261 : vector<7x32xf32> to vector<7x1x32xf32>
      %c0_102 = arith.constant 0 : index
      %c0_103 = arith.constant 0 : index
      %c0_104 = arith.constant 0 : index
      %263 = vector.load %arg21[%c0_102, %c0_103, %c0_104] : memref<7x1x32xf32, #tpu.memory_space<vmem>>, vector<7x1x32xf32>
      tpu.vector_store %arg21[%c0_102, %c0_103, %c0_104], %262 {strides = array<i32>} : memref<7x1x32xf32, #tpu.memory_space<vmem>>, vector<7x1x32xf32>,
    } else {
    }
    return
  }
  func.func @transform_0(%arg0: i32, %arg1: i32) -> (i32, i32, i32) {
    %c0_i32 = arith.constant 0 : i32
    %c0_i32_0 = arith.constant 0 : i32
    %c0_i32_1 = arith.constant 0 : i32
    return %arg0, %c0_i32, %c0_i32_0 : i32, i32, i32
  }
  func.func @transform_1(%arg0: i32, %arg1: i32) -> (i32, i32, i32) {
    %c0_i32 = arith.constant 0 : i32
    %c0_i32_0 = arith.constant 0 : i32
    %c0_i32_1 = arith.constant 0 : i32
    %c0_i32_2 = arith.constant 0 : i32
    return %c0_i32, %c0_i32_0, %c0_i32_1 : i32, i32, i32
  }
  func.func @transform_2(%arg0: i32, %arg1: i32) -> (i32, i32, i32) {
    %c0_i32 = arith.constant 0 : i32
    %c0_i32_0 = arith.constant 0 : i32
    %c0_i32_1 = arith.constant 0 : i32
    return %arg1, %c0_i32, %c0_i32_0 : i32, i32, i32
  }
  func.func @transform_3(%arg0: i32, %arg1: i32) -> (i32, i32, i32) {
    %c0_i32 = arith.constant 0 : i32
    %c0_i32_0 = arith.constant 0 : i32
    %c0_i32_1 = arith.constant 0 : i32
    return %arg1, %c0_i32, %c0_i32_0 : i32, i32, i32
  }
  func.func @transform_4(%arg0: i32, %arg1: i32) -> (i32, i32, i32) {
    %c0_i32 = arith.constant 0 : i32
    %c0_i32_0 = arith.constant 0 : i32
    %c0_i32_1 = arith.constant 0 : i32
    return %arg1, %c0_i32, %c0_i32_0 : i32, i32, i32
  }
  func.func @transform_5(%arg0: i32, %arg1: i32) -> (i32, i32, i32) {
    %c0_i32 = arith.constant 0 : i32
    %c0_i32_0 = arith.constant 0 : i32
    %c0_i32_1 = arith.constant 0 : i32
    return %arg1, %c0_i32, %c0_i32_0 : i32, i32, i32
  }
  func.func @transform_6(%arg0: i32, %arg1: i32) -> (i32, i32, i32) {
    %c0_i32 = arith.constant 0 : i32
    %c0_i32_0 = arith.constant 0 : i32
    %c0_i32_1 = arith.constant 0 : i32
    return %arg1, %c0_i32, %c0_i32_0 : i32, i32, i32
  }
  func.func @transform_7(%arg0: i32, %arg1: i32) -> (i32, i32, i32) {
    %c0_i32 = arith.constant 0 : i32
    %c0_i32_0 = arith.constant 0 : i32
    %c0_i32_1 = arith.constant 0 : i32
    return %arg1, %c0_i32, %c0_i32_0 : i32, i32, i32
  }
  func.func @transform_8(%arg0: i32, %arg1: i32) -> (i32, i32, i32) {
    %c0_i32 = arith.constant 0 : i32
    %c0_i32_0 = arith.constant 0 : i32
    %c0_i32_1 = arith.constant 0 : i32
    return %arg1, %c0_i32, %c0_i32_0 : i32, i32, i32
  }
  func.func @transform_9(%arg0: i32, %arg1: i32) -> (i32, i32, i32) {
    %c0_i32 = arith.constant 0 : i32
    %c0_i32_0 = arith.constant 0 : i32
    %c0_i32_1 = arith.constant 0 : i32
    return %arg1, %c0_i32, %c0_i32_0 : i32, i32, i32
  }
  func.func @transform_10(%arg0: i32, %arg1: i32) -> (i32, i32, i32) {
    %c0_i32 = arith.constant 0 : i32
    %c0_i32_0 = arith.constant 0 : i32
    %c0_i32_1 = arith.constant 0 : i32
    return %arg1, %c0_i32, %c0_i32_0 : i32, i32, i32
  }
  func.func @transform_11(%arg0: i32, %arg1: i32) -> (i32, i32, i32) {
    %c0_i32 = arith.constant 0 : i32
    %c0_i32_0 = arith.constant 0 : i32
    %c0_i32_1 = arith.constant 0 : i32
    return %arg1, %c0_i32, %c0_i32_0 : i32, i32, i32
  }
  func.func @transform_12(%arg0: i32, %arg1: i32) -> (i32, i32, i32) {
    %c0_i32 = arith.constant 0 : i32
    %c0_i32_0 = arith.constant 0 : i32
    %c0_i32_1 = arith.constant 0 : i32
    return %arg1, %c0_i32, %c0_i32_0 : i32, i32, i32
  }
  func.func @transform_13(%arg0: i32, %arg1: i32) -> (i32, i32, i32) {
    %c0_i32 = arith.constant 0 : i32
    %c0_i32_0 = arith.constant 0 : i32
    %c0_i32_1 = arith.constant 0 : i32
    return %arg1, %c0_i32, %c0_i32_0 : i32, i32, i32
  }
  func.func @transform_14(%arg0: i32, %arg1: i32) -> (i32, i32, i32) {
    %c0_i32 = arith.constant 0 : i32
    %c0_i32_0 = arith.constant 0 : i32
    %c0_i32_1 = arith.constant 0 : i32
    return %arg1, %c0_i32, %c0_i32_0 : i32, i32, i32
  }
  func.func @transform_15(%arg0: i32, %arg1: i32) -> (i32, i32) {
    %c0_i32 = arith.constant 0 : i32
    %c0_i32_0 = arith.constant 0 : i32
    %c0_i32_1 = arith.constant 0 : i32
    return %c0_i32, %c0_i32_0 : i32, i32
  }
  func.func @transform_16(%arg0: i32, %arg1: i32) -> (i32, i32) {
    %c0_i32 = arith.constant 0 : i32
    %c0_i32_0 = arith.constant 0 : i32
    %c0_i32_1 = arith.constant 0 : i32
    return %c0_i32, %c0_i32_0 : i32, i32
  }
  func.func @transform_17(%arg0: i32, %arg1: i32) -> (i32, i32, i32) {
    %c0_i32 = arith.constant 0 : i32
    %c0_i32_0 = arith.constant 0 : i32
    %c0_i32_1 = arith.constant 0 : i32
    return %arg0, %c0_i32, %c0_i32_0 : i32, i32, i32
  }
  func.func @transform_18(%arg0: i32, %arg1: i32) -> (i32, i32) {
    %c0_i32 = arith.constant 0 : i32
    %c0_i32_0 = arith.constant 0 : i32
    %c0_i32_1 = arith.constant 0 : i32
    return %c0_i32, %c0_i32_0 : i32, i32
  }
  func.func @transform_19(%arg0: i32, %arg1: i32) -> (i32, i32, i32) {
    %c0_i32 = arith.constant 0 : i32
    %c0_i32_0 = arith.constant 0 : i32
    %c0_i32_1 = arith.constant 0 : i32
    return %arg0, %c0_i32, %c0_i32_0 : i32, i32, i32
  }
}

</mosaic_0001>

<bundles_post_ra>
// kernel: forward.3
= control target key start
LH: loop header
LB: loop body
LE: loop exit
PB: predicated region body
PF: predicated region fallthrough
CT: control target
= control target key end

     0   :  { %vm29_vm0 = vcmask 261120   ;;  %vm53_vm1 = vcmask 254976   ;;  %s154_s1 = inlined_call_operand.vmem [shape: f32[2,32,32], index: 1, kind: input, shape index: {}]   ;;  %s155_s0 = inlined_call_operand.vmem [shape: f32[2,2,32], index: 0, kind: input, shape index: {}]   ;;  %s156_s2 = inlined_call_operand.vmem [shape: f32[2,1,32], index: 2, kind: input, shape index: {}]   ;;  %s157_s3 = inlined_call_operand.vmem [shape: f32[2,2,32], index: 3, kind: output, shape index: {}]  }
   0x1   :  { %v19_v0 = vld [vmem:[%s154_s1 + $0x18] sm:$0xff]  ;;  %v18_v2 = vld [vmem:[%s154_s1 + $0x10] sm:$0xff]  ;;  %v17_v4 = vld [vmem:[%s154_s1 + $0x8] sm:$0xff] }
   0x2   :  { %v23_v1 = vld [vmem:[%s154_s1 + $0x38] sm:$0xff]  ;;  %45 = vmatpush.msra.mxu0 %v19_v0  ;;  %v22_v3 = vld [vmem:[%s154_s1 + $0x30] sm:$0xff]  ;;  %v21_v5 = vld [vmem:[%s154_s1 + $0x28] sm:$0xff] }
   0x3   :  { %73 = vmatpush.msra.mxu1 %v23_v1  ;;  %v16_v6 = vld [vmem:[%s154_s1] sm:$0xff] }
   0x4   :  { %46 = vmatpush.msra.mxu0 %v18_v2  ;;  %v20_v7 = vld [vmem:[%s154_s1 + $0x20] sm:$0xff] }
   0x5   :  { %74 = vmatpush.msra.mxu1 %v22_v3  ;;  %v14_v8 = vld [vmem:[%s155_s0] sm:$0x3]  ;;  %v15_v9 = vld [vmem:[%s155_s0 + $0x2] sm:$0x3] }
   0x6   :  { %47 = vmatpush.msra.mxu0 %v17_v4  ;;  %v90_v10 = vld [vmem:[%s156_s2] ss:$0 sm:$0xff]  ;;  %v91_v11 = vld [vmem:[%s156_s2 + $0x1] ss:$0 sm:$0xff] }
   0x7   :  { %75 = vmatpush.msra.mxu1 %v21_v5 }
   0x8   :  { %48 = vmatpush.msra.mxu0 %v16_v6 }
   0x9   :  { %76 = vmatpush.msra.mxu1 %v20_v7  ;;  %87 = vmatmul.msk.f32.vlgmr.msra.gmra.mxu0 %vm29_vm0, %v14_v8 }
   0xa   :  { %88 = vmatmul.msk.f32.vlgmr.msra.gmra.mxu1 %vm29_vm0, %v15_v9 }
  0x86   :  { %v50_v12 = vpop.f32.mrf.mxu0 }
  0x87   :  { %v78_v13 = vpop.f32.mrf.mxu1  ;;  %v51_v14 = vadd.f32 %v90_v10, %v50_v12 }
  0x88   :  { %v79_v15 = vadd.f32 %v91_v11, %v78_v13 }
  0x89   :  { %54 = vst.msk [vmem:[%s157_s3] sm:$0x3] %vm53_vm1, %v51_v14 }
  0x8a   :  { %89 = vst.msk [vmem:[%s157_s3 + $0x2] sm:$0x3] %vm53_vm1, %v79_v15 }

// kernel: forward.5
= control target key start
LH: loop header
LB: loop body
LE: loop exit
PB: predicated region body
PF: predicated region fallthrough
CT: control target
= control target key end

     0   :  { %s3028_s0 = inlined_call_operand.vmem [shape: f32[2,4,256], index: 0, kind: input, shape index: {}]   ;;  %s3029_s1 = inlined_call_operand.vmem [shape: bf16[256,32], index: 1, kind: input, shape index: {}]   ;;  %s3030_s2 = inlined_call_operand.vmem [shape: f32[1,32], index: 2, kind: input, shape index: {}]   ;;  %s3031_s3 = inlined_call_operand.vmem [shape: f32[1,7,32], index: 3, kind: input, shape index: {}]   ;;  %s3032_s4 = inlined_call_operand.vmem [shape: f32[2,2,32], index: 4, kind: input, shape index: {}]   ;;  %s3033_s5 = inlined_call_operand.vmem [shape: f32[2,1,32], index: 5, kind: input, shape index: {}]   ;;  %s3034_s6 = inlined_call_operand.vmem [shape: f32[2,1,32], index: 6, kind: input, shape index: {}]   ;;  %s3035_s7 = inlined_call_operand.vmem [shape: bf16[2,32,96], index: 7, kind: input, shape index: {}]   ;;  %s3036_s8 = inlined_call_operand.vmem [shape: f32[2,1,96], index: 8, kind: input, shape index: {}]   ;;  %s3037_s9 = inlined_call_operand.vmem [shape: bf16[2,32,32], index: 9, kind: input, shape index: {}]   ;;  %s3038_s10 = inlined_call_operand.vmem [shape: f32[2,1,32], index: 10, kind: input, shape index: {}]   ;;  %s3039_s11 = inlined_call_operand.vmem [shape: f32[2,1,32], index: 11, kind: input, shape index: {}]   ;;  %s3040_s12 = inlined_call_operand.vmem [shape: f32[2,1,32], index: 12, kind: input, shape index: {}]   ;;  %s3041_s13 = inlined_call_operand.vmem [shape: bf16[2,32,128], index: 13, kind: input, shape index: {}]   ;;  %s3042_s14 = inlined_call_operand.vmem [shape: f32[2,1,128], index: 14, kind: input, shape index: {}]   ;;  %s3043_s15 = inlined_call_operand.vmem [shape: bf16[2,128,32], index: 15, kind: input, shape index: {}]   ;;  %s3044_s16 = inlined_call_operand.vmem [shape: f32[2,1,32], index: 16, kind: input, shape index: {}]   ;;  %s3045_s17 = inlined_call_operand.vmem [shape: f32[1,32], index: 17, kind: input, shape index: {}]   ;;  %s3046_s18 = inlined_call_operand.vmem [shape: f32[1,32], index: 18, kind: input, shape index: {}]   ;;  %s3047_s19 = inlined_call_operand.vmem [shape: f32[1,32], index: 19, kind: input, shape index: {}]   ;;  %s3048_s20 = inlined_call_operand.vmem [shape: f32[1,32], index: 20, kind: input, shape index: {}]   ;;  %s3049_s21 = inlined_call_operand.vmem [shape: f32[1,32], index: 21, kind: input, shape index: {}]   ;;  %s3050_s22 = inlined_call_operand.vmem [shape: f32[1,32], index: 22, kind: input, shape index: {}]   ;;  %s3051_s23 = inlined_call_operand.hbm [shape: f32[2,1,32], index: 23, kind: output, shape index: {0}]   ;;  %s3052_s24 = inlined_call_operand.hbm [shape: f32[2,1,32], index: 24, kind: output, shape index: {1}]  }
   0x1   :  { %3071 = sst [smem:[#allocation22_spill]] %s3028_s0 }
   0x2   :  { %3072 = sst [smem:[#allocation23_spill]] %s3029_s1 }
   0x3   :  { %3073 = sst [smem:[#allocation24_spill]] %s3030_s2 }
   0x4   :  { %3074 = sst [smem:[#allocation25_spill]] %s3031_s3 }
   0x5   :  { %3075 = sst [smem:[#allocation26_spill]] %s3032_s4 }
   0x6   :  { %3076 = sst [smem:[#allocation27_spill]] %s3033_s5 }
   0x7   :  { %3077 = sst [smem:[#allocation28_spill]] %s3034_s6 }
   0x8   :  { %3078 = sst [smem:[#allocation29_spill]] %s3035_s7 }
   0x9   :  { %3079 = sst [smem:[#allocation30_spill]] %s3036_s8 }
   0xa   :  { %3080 = sst [smem:[#allocation31_spill]] %s3037_s9 }
   0xb   :  { %3081 = sst [smem:[#allocation32_spill]] %s3045_s17 }
   0xc   :  { %3082 = sst [smem:[#allocation33_spill]] %s3046_s18 }
   0xd   :  { %3083 = sst [smem:[#allocation34_spill]] %s3047_s19 }
   0xe   :  { %3084 = sst [smem:[#allocation35_spill]] %s3048_s20 }
   0xf   :  { %3085 = sst [smem:[#allocation36_spill]] %s3049_s21 }
  0x10   :  { %3086 = sst [smem:[#allocation37_spill]] %s3050_s22 }
  0x11   :  { %3087 = sst [smem:[#allocation38_spill]] %s3051_s23 }
  0x12   :  { %3088 = sst [smem:[#allocation39_spill]] %s3052_s24 }
  0x13   :  { %30 = vsyncpa [#allocation4], 0 }
  0x14   :  { %32 = vsyncpa [#allocation4 + $0x1], 0 }
  0x15   :  { %33 = vsyncpa [#allocation6], 0 }
  0x16   :  { %35 = vsyncpa [#allocation6 + $0x1], 0  ;;  %s2615_s5 = smov 0   ;;  %s2617_s26 = smov 0  }
  0x17   :  { %s2619_s27 = smov 0   ;;  %s2621_s28 = smov 0  }
  0x18   :  { %s2623_s6 = smov 0   ;;  %s2625_s2 = smov 0  }
  0x19   :  { %s2627_s29 = smov 0   ;;  %s2629_s0 = smov 0  }
  0x1a LB: > { %3089 = sst [smem:[#allocation9_spill]] %s2444_s5  ;;  %s2031_s7 = sadd.s32 4294967295, %s2472_s0   ;;  %s2472_s0 = sphi %s2629_s0, %s41_s0   ;;  %s2468_s29 = sphi %s2627_s29, %s3147_s29   ;;  %s2464_s2 = sphi %s2625_s2, %s3146_s2   ;;  %s2460_s6 = sphi %s2623_s6, %s3145_s6   ;;  %s2456_s28 = sphi %s2621_s28, %s3144_s28   ;;  %s2452_s27 = sphi %s2619_s27, %s3143_s27   ;;  %s2448_s26 = sphi %s2617_s26, %s3142_s26   ;;  %s2444_s5 = sphi %s2615_s5, %s3141_s5  }
  0x1b   : > { %3090 = sst [smem:[#allocation10_spill]] %s2448_s26  ;;  %s2032_s30 = sadd.s32 4294967294, %s2472_s0  }
  0x1c   : > { %3091 = sst [smem:[#allocation11_spill]] %s2452_s27  ;;  %s50_s3 = sadd.s32 1, %s2464_s2 }
  0x1d   : > { %3092 = sst [smem:[#allocation12_spill]] %s2456_s28  ;;  %p51_p0 = scmp.ge.s32.totalorder %s50_s3, 2 }
  0x1e   : > { %3093 = sst [smem:[#allocation13_spill]] %s2460_s6  ;;  %s53_s25 = sadd.s32 1, %s2468_s29 }
  0x1f   : > { %3094 = sst [smem:[#allocation14_spill]] %s2464_s2  ;;  %p623_p1 = scmp.ne.s32.totalorder %s2452_s27, %s2448_s26 }
  0x20   : > { %3095 = sst [smem:[#allocation15_spill]] %s2468_s29  ;;  %p624_p2 = scmp.eq.s32.totalorder %s2031_s7, 3 }
  0x21   : > { %3096 = sst [smem:[#allocation16_spill]] %s2472_s0  ;;  %s3149_s3 = smov (%p51_p0, %s50_s3), 0 }
  0x22   : > { %3097 = sst [smem:[#allocation17_spill]] %s3149_s3  ;;  %s3151_s25 = smov (!%p51_p0, %s53_s25), %s2468_s29 }
  0x23   : > { %p2664_p3 = por %p624_p2, %p623_p1  ;;  %p629_p4 = scmp.ne.s32.totalorder %s2448_s26, %s2444_s5 }
  0x24   : > { %p55_p5 = scmp.ge.s32.totalorder %s3151_s25, 2  ;;  %p630_p6 = scmp.eq.s32.totalorder %s2032_s30, 3 }
  0x25   : > { %s3098_s8 = scalar_select %p2664_p3, 1, 0 }
  0x26   : > { %p2035_p7 = scmp.ge.s32.totalorder %s2472_s0, 1  ;;  %p796_p8 = scmp.lt.s32.totalorder %s2472_s0, 5 }
  0x27   : > { %3099 = sst [smem:[#allocation18_spill]] %s3098_s8  ;;  %s3153_s25 = smov (%p55_p5, %s3151_s25), 0 }
  0x28   : > { %3100 = sst [smem:[#allocation19_spill]] %s3153_s25  ;;  %p2674_p9 = por %p630_p6, %p629_p4 }
  0x29   : > { %p797_p10 = pnand %p2035_p7, %p796_p8  ;;  %s610_s1 = ssub.s32 %s2468_s29, %s3153_s25 }
  0x2a   : > { %s3101_s4 = scalar_select %p2674_p9, 1, 0 }
  0x2b   : > { %s613_s7 = sadd.s32 1, %s2452_s27  ;;  %p611_p11 = scmp.eq.s32.totalorder %s610_s1, 0 }
  0x2c   : > { %3102 = sst [smem:[#allocation20_spill]] %s3101_s4  ;;  %800 = sbr.rel (%p797_p10) target bundleno = 2903 (0xb57), region = 112 }
  0x2d   : > { %s2682_s3 = scalar_select %p611_p11, %s2452_s27, %s613_s7  }
  0x2e   : > { %s2685_s30 = sand.u32 (!%p797_p10), 1, %s2448_s26   ;;  %p913_p12 = scmp.lt.s32.totalorder (!%p797_p10), %s2460_s6, 1 }
  0x2f   : > { %3103 = sst [smem:[#allocation21_spill]] %s2682_s3  ;;  %p918_p13 = scmp.lt.s32.totalorder (!%p797_p10), %s2456_s28, 1 }
  0x30   : > { %s3104_s24 = sld [smem:[#allocation22_spill]] (!%p797_p10)  ;;  %s906_s18 = scalar_lea.vmem (!%p797_p10), [#allocation3], %s2685_s30 }
  0x31   : > { %s914_s2 = scalar_select %p913_p12, %s2460_s6, 1 }
  0x32   : > { %s2694_s29 = scalar_select %p918_p13, %s2456_s28, 1 }
  0x33   : > { %s2182_s5 = sshll.u32 %s914_s2, 3  ;;  %s3106_s4 = sld [smem:[#allocation26_spill]] }
  0x34   : > { %s2038_s1 = sshll.u32 %s2694_s29, 1  ;;  %s2183_s20 = sshll.u32 %s2694_s29, 4 }
  0x35   : > { %s3109_s7 = sld [smem:[#allocation29_spill]]  ;;  %s957_s17 = scalar_lea.vmem %s3042_s14, %s2694_s29 }
  0x36   : > { %s917_s25 = scalar_lea.vmem %s3104_s24, %s2182_s5  ;;  %s3110_s9 = sld [smem:[#allocation31_spill]] }
  0x37   : > { %s2186_s6 = sshll.u32 %s2694_s29, 6  ;;  %s965_s19 = scalar_lea.vmem %s3044_s16, %s2694_s29 }
  0x38   : > { %s2750_s26 = scalar_lea.vmem %s3043_s15, %s2186_s6  ;;  %s912_s21 = scalar_lea.vmem [#allocation5], %s2685_s30 }
  0x39   : > { %s2704_s27 = scalar_lea.vmem %s3106_s4, %s2038_s1  ;;  %s3111_s4 = sld [smem:[#allocation12_spill]] }
  0x3b   : > { %s2718_s2 = scalar_lea.vmem %s3109_s7, %s2183_s20  ;;  %s2740_s7 = scalar_lea.vmem %s3041_s13, %s2183_s20 }
  0x3c   : > { %s2723_s24 = scalar_lea.vmem %s3110_s9, %s2183_s20 }
  0x3f   : > { %p2047_p0 = scmp.ne.s32.totalorder %s3111_s4, 0 }
  0x40   : > { %s3112_s28 = sld [smem:[#allocation23_spill]] (!%p2047_p0) }
  0x41   : > { %970 = sbr.rel (%p2047_p0) target bundleno = 247 (0xf7), region = 116  ;;  %s3114_s20 = sld [smem:[#allocation24_spill]] (!%p2047_p0) }
  0x42   : > { %s3115_s0 = sld [smem:[#allocation25_spill]] (!%p2047_p0) }
  0x46   : > { %s3113_s9 = smov %s3112_s28  ;;  %v2194_v0 = vld [vmem:[%s3112_s28 + $0x38] sm:$0xff]  ;;  %v971_v4 = vld [vmem:[%s917_s25] sm:$0xff]  ;;  %v1139_v22 = vlaneseq  ;;  %vm1165_vm4 = vcmask 260096  }
  0x47   : > { %v2202_v1 = vld [vmem:[%s3113_s9 + $0x78] sm:$0xff]  ;;  %1112 = vmatpush.bf16.msra.mxu0 %v2194_v0  ;;  %v2193_v2 = vld [vmem:[%s3113_s9 + $0x30] sm:$0xff]  ;;  %v2192_v5 = vld [vmem:[%s3113_s9 + $0x28] sm:$0xff]  ;;  %973 = vst [vmem:[#allocation1] ss:$2 sm:$0xff] %v971_v4 }
  0x48   : > { %1125 = vmatpush.bf16.msra.mxu1 %v2202_v1  ;;  %v2201_v3 = vld [vmem:[%s3113_s9 + $0x70] sm:$0xff]  ;;  %v2200_v6 = vld [vmem:[%s3113_s9 + $0x68] sm:$0xff]  ;;  %v2191_v7 = vld [vmem:[%s3113_s9 + $0x20] sm:$0xff]  ;;  %v1140_v26 = vshrl.u32 %v1139_v22, 7 }
  0x49   : > { %v2199_v8 = vld [vmem:[%s3113_s9 + $0x60] sm:$0xff]  ;;  %v2190_v9 = vld [vmem:[%s3113_s9 + $0x18] sm:$0xff]  ;;  %v2189_v11 = vld [vmem:[%s3113_s9 + $0x10] sm:$0xff] }
  0x4a   : > { %v2198_v10 = vld [vmem:[%s3113_s9 + $0x58] sm:$0xff]  ;;  %v2197_v12 = vld [vmem:[%s3113_s9 + $0x50] sm:$0xff]  ;;  %v2188_v13 = vld [vmem:[%s3113_s9 + $0x8] sm:$0xff]  ;;  %vm1141_vm0 = vcmp.eq.s32.totalorder %v1140_v26, 1  ;;  %vm1147_vm1 = vcmp.eq.s32.totalorder %v1140_v26, 2  ;;  %vm1153_vm2 = vcmp.eq.s32.totalorder %v1140_v26, 3 }
  0x4b   : > { %1113 = vmatpush.bf16.msra.mxu0 %v2193_v2  ;;  %v2196_v14 = vld [vmem:[%s3113_s9 + $0x48] sm:$0xff]  ;;  %v2187_v15 = vld [vmem:[%s3113_s9] sm:$0xff]  ;;  %vm1159_vm3 = vcmp.eq.s32.totalorder %v1140_v26, 4 }
  0x4c   : > { %1126 = vmatpush.bf16.msra.mxu1 %v2201_v3  ;;  %v2195_v16 = vld [vmem:[%s3113_s9 + $0x40] sm:$0xff] }
  0x4d   : > { %v2309_v21 = vld [vmem:[%s3114_s20] ss:$0 sm:$0xff] }
  0x4e   : > { %v974_v17 = vld.sshfl [vmem:[#allocation1] sm:$0xff pattern:$0x75316420]  ;;  %v975_v18 = vld.sshfl [vmem:[#allocation1 + $0x8] sm:$0xff pattern:$0x75316420] }
  0x4f   : > { %1114 = vmatpush.bf16.msra.mxu0 %v2192_v5  ;;  %v978_v19 = vpack.c.bf16 %v974_v17, %v974_v17  ;;  %v979_v20 = vpack.c.bf16 %v975_v18, %v975_v18  ;;  %v1138_v28 = vld [vmem:[%s3115_s0] sm:$0x7f] }
  0x50   : > { %1127 = vmatpush.bf16.msra.mxu1 %v2200_v6 }
  0x53   : > { %1115 = vmatpush.bf16.msra.mxu0 %v2191_v7 }
  0x54   : > { %1128 = vmatpush.bf16.msra.mxu1 %v2199_v8 }
  0x57   : > { %1116 = vmatpush.bf16.msra.mxu0 %v2190_v9 }
  0x58   : > { %1129 = vmatpush.bf16.msra.mxu1 %v2198_v10 }
  0x5b   : > { %1117 = vmatpush.bf16.msra.mxu0 %v2189_v11 }
  0x5c   : > { %1130 = vmatpush.bf16.msra.mxu1 %v2197_v12 }
  0x5f   : > { %1118 = vmatpush.bf16.msra.mxu0 %v2188_v13 }
  0x60   : > { %1131 = vmatpush.bf16.msra.mxu1 %v2196_v14 }
  0x63   : > { %1119 = vmatpush.bf16.msra.mxu0 %v2187_v15 }
  0x64   : > { %1132 = vmatpush.bf16.msra.mxu1 %v2195_v16 }
  0x66   : > { %1120 = vmatmul.bf16.vlgmr.msra.gmra.mxu0 %v978_v19 }
  0x67   : > { %1133 = vmatmul.bf16.vlgmr.msra.gmra.mxu1 %v979_v20 }
  0xe3   : > { %v1121_v23 = vpop.f32.mrf.mxu0 }
  0xe4   : > { %v1134_v24 = vpop.f32.mrf.mxu1  ;;  %v1122_v25 = vadd.f32 %v2309_v21, %v1121_v23 }
  0xe6   : > { %v1135_v27 = vadd.f32 %v1134_v24, %v1122_v25 }
  0xe8   : > { %v1142_v29 = vperm.slane %v1135_v27, 0  ;;  %v1148_v31 = vperm.slane %v1135_v27, 1  ;;  %v1154_v36 = vperm.slane %v1135_v27, 2  ;;  %v1160_v39 = vperm.slane %v1135_v27, 3 }
  0xea   : > { %v1143_v30 = vadd.f32 %v1142_v29, %v1138_v28 }
  0xeb   : > { %v1123_v32 = vpop.f32.mrf.mxu0 }
  0xec   : > { %v1136_v33 = vpop.f32.mrf.mxu1  ;;  %v1146_v34 = vsel %vm1141_vm0, %v1143_v30, %v1138_v28 }
  0xed   : > { %v1149_v35 = vadd.f32 %v1148_v31, %v1146_v34 }
  0xef   : > { %v1152_v37 = vsel %vm1147_vm1, %v1149_v35, %v1146_v34 }
  0xf0   : > { %v1155_v38 = vadd.f32 %v1154_v36, %v1152_v37 }
  0xf2   : > { %v1158_v40 = vsel %vm1153_vm2, %v1155_v38, %v1152_v37 }
  0xf3   : > { %v1161_v41 = vadd.f32 %v1160_v39, %v1158_v40 }
  0xf5   : > { %v1164_v42 = vsel %vm1159_vm3, %v1161_v41, %v1158_v40 }
  0xf6   : > { %1166 = vst.msk [vmem:[#allocation2] sm:$0x7f] %vm1165_vm4, %v1164_v42 }
  0xf7 PF: > { %s3116_s3 = sld [smem:[#allocation12_spill]] }
  0xfd   : > { %p1167_p1 = scmp.ge.s32.totalorder %s3116_s3, 1  ;;  %p1168_p2 = scmp.le.s32.totalorder %s3116_s3, 1 }
  0xff   : > { %p1169_p4 = pnand %p1168_p2, %p1167_p1 }
 0x101   : > { %1172 = sbr.rel (%p1169_p4) target bundleno = 270 (0x10e), region = 120 }
 0x106   : > { %v1174_v43 = vld [vmem:[%s2704_s27] sm:$0x3]  ;;  %v1175_v44 = vlaneseq  ;;  %v1173_v46 = vld [vmem:[#allocation2] sm:$0x7f]  ;;  %vm1187_vm7 = vcmask 260096  }
 0x107   : > { %v1180_v45 = vperm.slane %v1174_v43, 0  ;;  %v1185_v48 = vperm.slane %v1174_v43, 1 }
 0x108   : > { %v1176_v47 = vshrl.u32 %v1175_v44, 7 }
 0x10a   : > { %vm1177_vm5 = vcmp.eq.s32.totalorder %v1176_v47, 5  ;;  %vm1182_vm6 = vcmp.eq.s32.totalorder %v1176_v47, 6 }
 0x10b   : > { %v1181_v49 = vsel %vm1177_vm5, %v1180_v45, %v1173_v46 }
 0x10c   : > { %v1186_v50 = vsel %vm1182_vm6, %v1185_v48, %v1181_v49 }
 0x10d   : > { %1188 = vst.msk [vmem:[#allocation2] sm:$0x7f] %vm1187_vm7, %v1186_v50 }
 0x10e PF: > { %vm1226_vm8 = vcmask 260096   ;;  %v2474_v53 = vmov 32.0   ;;  %v2204_v1 = vld [vmem:[%s2718_s2 + $0x8] sm:$0xff]  ;;  %v2203_v2 = vld [vmem:[%s2718_s2] sm:$0xff]  ;;  %s3117_s2 = sld [smem:[#allocation27_spill]]  ;;  %vm1280_vm13 = vcmask 261120  }
 0x10f   : > { %2318 = vrcp.f32 %v2474_v53  ;;  %1290 = vmatpush.bf16.msra.mxu0 %v2204_v1  ;;  %s3119_s23 = sld [smem:[#allocation28_spill]]  ;;  %s2475_s0 = smov 88   ;;  %vm1343_vm14 = vcmask 1042432   ;;  %vm1344_vm15 = vcmask 1043456   ;;  %v2480_v26 = vmov 65535  }
 0x110   : > { %s3121_s22 = sld [smem:[#allocation30_spill]]  ;;  %s2476_s3 = smov 64   ;;  %v1345_v27 = vsel %vm1343_vm14, 4294967295, %v2480_v26  ;;  %vm1303_vm0 = vcmask 64512   ;;  %vm1324_vm1 = vcmask 55296   ;;  %vm1339_vm2 = vcmask 56320  }
 0x111   : > { %s2477_s27 = smov 96   ;;  %s2478_s6 = smov 72   ;;  %v2851_v28 = vsel %vm1344_vm15, %v1345_v27, 0  ;;  %vm1547_vm3 = vcmask 130048   ;;  %vm1549_vm4 = vcmask 195584  }
 0x112   : > { %s2482_s1 = smov 104   ;;  %s2483_s5 = smov 112  }
 0x113   : > { %1291 = vmatpush.bf16.msra.mxu0 %v2203_v2  ;;  %s2486_s8 = smov 56   ;;  %s2487_s20 = smov 16  }
 0x114   : > { %v2816_v51 = vld [vmem:[#allocation2] sm:$0x7f]  ;;  %s3118_s25 = scalar_lea.vmem %s3117_s2, %s2694_s29  ;;  %s2479_s2 = smov 80  }
 0x115   : > { %v1227_v52 = vsel %vm1226_vm8, %v2816_v51, 0.0  ;;  %v2319_v54 = vpop.eup %2318  ;;  %v2310_v12 = vld [vmem:[%s3118_s25] ss:$0 sm:$0xff]  ;;  %s3120_s4 = scalar_lea.vmem %s3119_s23, %s2694_s29  ;;  %s2481_s25 = smov 120  }
 0x116   : > { %1228 = vadd.xlane.f32.xlu0 %v1227_v52  ;;  %v1231_v55 = vmul.f32 32.0, %v2319_v54  ;;  %vm1235_vm9 = vweird.f32 %v2319_v54  ;;  %v2311_v15 = vld [vmem:[%s3120_s4] ss:$0 sm:$0xff]  ;;  %s3122_s28 = scalar_lea.vmem %s3121_s22, %s2694_s29  ;;  %s2484_s23 = smov 40  }
 0x117   : > { %v2312_v19 = vld [vmem:[%s3122_s28] ss:$0 sm:$0xff]  ;;  %s2485_s4 = smov 48   ;;  %s2488_s22 = smov 8  }
 0x118   : > { %v1232_v56 = vsub.f32 1.0, %v1231_v55  ;;  %s2489_s28 = smov 24  }
 0x11a   : > { %v1233_v57 = vmul.f32 %v2319_v54, %v1232_v56 }
 0x11c   : > { %v1234_v58 = vadd.f32 %v2319_v54, %v1233_v57 }
 0x11e   : > { %v2820_v59 = vsel %vm1235_vm9, %v2319_v54, %v1234_v58 }
 0x189   : > { %v1229_v60 = vpop.xlane.xlu0 %1228 }
 0x18a   : > { %v1237_v61 = vmul.f32 %v2820_v59, %v1229_v60 }
 0x18c   : > { %v1238_v62 = vsub.f32 %v2816_v51, %v1237_v61 }
 0x18e   : > { %v1239_v63 = vmul.f32 %v1238_v62, %v1238_v62 }
 0x190   : > { %v1240_v0 = vsel %vm1226_vm8, %v1239_v63, 0.0 }
 0x191   : > { %1241 = vadd.xlane.f32.xlu0 %v1240_v0 }
 0x204   : > { %v1242_v3 = vpop.xlane.xlu0 %1241 }
 0x205   : > { %v1243_v4 = vmul.f32 %v1242_v3, %v2820_v59 }
 0x207   : > { %v1244_v5 = vadd.f32 1e-05, %v1243_v4 }
 0x209   : > { %2320 = vrsqrt.f32 %v1244_v5  ;;  %vm1251_vm11 = vweird.f32 %v1244_v5 }
 0x20f   : > { %v2321_v6 = vpop.eup %2320 }
 0x210   : > { %v1246_v7 = vmul.f32 %v2321_v6, %v1244_v5  ;;  %vm1252_vm10 = vweird.f32 %v2321_v6 }
 0x211   : > { %vm1253_vm12 = vmor %vm1251_vm11, %vm1252_vm10 }
 0x212   : > { %v1247_v8 = vmul.f32 %v2321_v6, %v1246_v7 }
 0x214   : > { %v1248_v9 = vmul.f32 0.5, %v1247_v8 }
 0x216   : > { %v1249_v10 = vsub.f32 1.5, %v1248_v9 }
 0x218   : > { %v1250_v11 = vmul.f32 %v2321_v6, %v1249_v10 }
 0x21a   : > { %v1254_v13 = vsel %vm1253_vm12, %v2321_v6, %v1250_v11 }
 0x21b   : > { %v1255_v14 = vmul.f32 %v1254_v13, %v1238_v62 }
 0x21d   : > { %v1259_v16 = vmul.f32 %v2310_v12, %v1255_v14 }
 0x21f   : > { %v1263_v17 = vadd.f32 %v2311_v15, %v1259_v16 }
 0x221   : > { %v1264_v18 = vpack.c.bf16 %v1263_v17, %v1263_v17 }
 0x223   : > { %2120 = vmatmul.msk.bf16.vlgmr.msra.gmra.mxu0 %vm1280_vm13, %v1264_v18 }
 0x2a0   : > { %v1293_v20 = vpop.f32.mrf.mxu0 }
 0x2a1   : > { %v1294_v21 = vadd.f32 %v2312_v19, %v1293_v20 }
 0x2a3   : > { %v1297_v22 = vpack.c.bf16 %v1294_v21, %v1294_v21 }
 0x2a5   : > { %v1299_v23 = vunpack.c.l.b16 %v1297_v22 }
 0x2a7   : > { %v2844_v24 = vpack.c.b16 %v1299_v23, %v1299_v23 }
 0x2a8   : > { %v1295_v25 = vpop.f32.mrf.mxu0 }
 0x2a9   : > { %1365 = vrot.lane.b32.xlu0 %v2844_v24, %s2475_s0  ;;  %1337 = vrot.lane.b32.xlu2 %v2844_v24, %s2476_s3 }
 0x2aa   : > { %1301 = vrot.lane.b32.xlu1 %v2844_v24, %s2477_s27  ;;  %s3123_s27 = scalar_lea.vmem %s3038_s10, %s2694_s29 }
 0x2b1   : > { %1479 = vrot.lane.b32.xlu0 %v2844_v24, %s2478_s6  ;;  %s3124_s6 = scalar_lea.vmem %s3039_s11, %s2694_s29 }
 0x2b9   : > { %1422 = vrot.lane.b32.xlu0 %v2844_v24, %s2479_s2 }
 0x303   : > { %v1338_v29 = vpop.permute.xlu2 %1337 }
 0x304   : > { %v1348_v30 = vand.u32 %v2851_v28, %v1338_v29 }
 0x306   : > { %1357 = vmatpush.bf16.msra.mxu2 %v1348_v30 }
 0x31b   : > { %v1366_v31 = vpop.permute.xlu0 %1365 }
 0x31c   : > { %v1302_v32 = vpop.permute.xlu1 %1301  ;;  %v1371_v33 = vsel %vm1303_vm0, %v1366_v31, 0 }
 0x31d   : > { %v1308_v34 = vsel %vm1303_vm0, %v1302_v32, 0  ;;  %1380 = vmatpush.bf16.xpose.msrb.mxu2 %v1371_v33 }
 0x31e   : > { %1317 = vmatpush.bf16.xpose.msra.mxu1 %v1308_v34 }
 0x323   : > { %v1480_v35 = vpop.permute.xlu0 %1479 }
 0x324   : > { %v1485_v36 = vsel %vm1303_vm0, %v1480_v35, 0 }
 0x325   : > { %2121 = vmatmul.msk.bf16.vlgmr.msra.gmra.mxu1 %vm1303_vm0, %v1297_v22  ;;  %1494 = vmatpush.bf16.xpose.msra.mxu3 %v1485_v36 }
 0x32b   : > { %v1423_v37 = vpop.permute.xlu0 %1422 }
 0x32c   : > { %v1428_v38 = vsel %vm1303_vm0, %v1423_v37, 0 }
 0x32d   : > { %1437 = vmatpush.bf16.xpose.msrb.mxu0 %v1428_v38 }
 0x3a2   : > { %v1319_v39 = vpop.f32.mrf.mxu1 }
 0x3a3   : > { %v1323_v40 = vmul.f32 0.35355338, %v1319_v39 }
 0x3a5   : > { %v1325_v41 = vsel %vm1324_vm1, %v1323_v40, -inf }
 0x3a6   : > { %1326 = vmax.xlane.f32.xlu1 %v1325_v41 }
 0x3aa   : > { %v1321_v42 = vpop.f32.mrf.mxu1 }
 0x419   : > { %v1327_v43 = vpop.xlane.xlu1 %1326 }
 0x41a   : > { %v1328_v44 = vsub.f32 %v1323_v40, %v1327_v43 }
 0x41c   : > { %v1329_v45 = vmul.f32 1.442695, %v1328_v44 }
 0x41e   : > { %2322 = vpow2.f32 %v1329_v45 }
 0x424   : > { %v2323_v46 = vpop.eup %2322 }
 0x425   : > { %v1331_v47 = vsel %vm1324_vm1, %v2323_v46, 0.0 }
 0x426   : > { %1332 = vadd.xlane.f32.xlu2 %v1331_v47  ;;  %v2205_v47 = vld [vmem:[%s2723_s24] sm:$0xff] }
 0x43e   : > { %1363 = vrot.lane.b32.xlu2 %v2844_v24, %s2481_s25 }
 0x446   : > { %1477 = vrot.lane.b32.xlu2 %v2844_v24, %s2482_s1  ;;  %s3125_s1 = scalar_lea.vmem %s3040_s12, %s2694_s29 }
 0x44e   : > { %1420 = vrot.lane.b32.xlu2 %v2844_v24, %s2483_s5 }
 0x499   : > { %v1333_v48 = vpop.xlane.xlu2 %1332 }
 0x49a   : > { %2324 = vrcp.f32 %v1333_v48 }
 0x4a0   : > { %v2325_v49 = vpop.eup %2324 }
 0x4a1   : > { %v1364_v50 = vpop.permute.xlu2 %1363  ;;  %v1335_v52 = vmul.f32 %v2325_v49, %v2323_v46  ;;  %v2206_v46 = vld [vmem:[%s2723_s24 + $0x8] sm:$0xff] }
 0x4a2   : > { %1576 = vmatpush.bf16.msra.mxu0 %v2206_v46 }
 0x4a3   : > { %v1336_v53 = vpack.c.bf16 %v1335_v52, %v1335_v52 }
 0x4a5   : > { %2122 = vmatmul.msk.bf16.vlgmr.msra.gmra.mxu2 %vm1339_vm2, %v1336_v53 }
 0x4a6   : > { %1577 = vmatpush.bf16.msra.mxu0 %v2205_v47 }
 0x4a9   : > { %v1478_v54 = vpop.permute.xlu2 %1477 }
 0x4aa   : > { %2127 = vmatmul.msk.bf16.vlgmr.msra.gmra.mxu3 %vm1303_vm0, %v1478_v54 }
 0x4b1   : > { %v1421_v55 = vpop.permute.xlu2 %1420 }
 0x4b2   : > { %2125 = vmatmul.msk.bf16.vlgmr.msrb.gmra.mxu0 %vm1303_vm0, %v1421_v55 }
 0x4b5   : > { %2123 = vmatmul.msk.bf16.vlgmr.msrb.gmra.mxu2 %vm1303_vm0, %v1364_v50 }
 0x528   : > { %v2868_v56 = vpop.f32.mrf.mxu2 }
 0x52d   : > { %v1496_v57 = vpop.f32.mrf.mxu3 }
 0x52e   : > { %v1500_v58 = vmul.f32 0.35355338, %v1496_v57  ;;  %v2313_v57 = vld [vmem:[%s3123_s27] ss:$0 sm:$0xff] }
 0x52f   : > { %v1439_v60 = vpop.f32.mrf.mxu0 }
 0x530   : > { %v1443_v61 = vmul.f32 0.35355338, %v1439_v60  ;;  %v1361_v62 = vpop.f32.mrf.mxu2  ;;  %v1501_v63 = vsel %vm1324_vm1, %v1500_v58, -inf }
 0x531   : > { %1502 = vmax.xlane.f32.xlu0 %v1501_v63 }
 0x532   : > { %v1444_v0 = vsel %vm1324_vm1, %v1443_v61, -inf }
 0x533   : > { %1445 = vmax.xlane.f32.xlu2 %v1444_v0 }
 0x535   : > { %v1498_v1 = vpop.f32.mrf.mxu3 }
 0x537   : > { %v1441_v2 = vpop.f32.mrf.mxu0 }
 0x538   : > { %v1382_v3 = vpop.f32.mrf.mxu2 }
 0x539   : > { %v1386_v4 = vmul.f32 0.35355338, %v1382_v3 }
 0x53b   : > { %v1387_v5 = vsel %vm1324_vm1, %v1386_v4, -inf }
 0x53c   : > { %1388 = vmax.xlane.f32.xlu1 %v1387_v5  ;;  %v2207_v5 = vld [vmem:[%s2740_s7] sm:$0xff] }
 0x540   : > { %v1384_v6 = vpop.f32.mrf.mxu2 }
 0x54b   : > { %1513 = vrot.lane.b32.xlu2 %v2844_v24, %s2484_s23 }
 0x5a4   : > { %v1503_v17 = vpop.xlane.xlu0 %1502 }
 0x5a5   : > { %v1504_v18 = vsub.f32 %v1500_v58, %v1503_v17 }
 0x5a6   : > { %v1446_v7 = vpop.xlane.xlu2 %1445 }
 0x5a7   : > { %v1447_v8 = vsub.f32 %v1443_v61, %v1446_v7  ;;  %v1505_v19 = vmul.f32 1.442695, %v1504_v18  ;;  %v2315_v18 = vld [vmem:[%s3125_s1] ss:$0 sm:$0xff] }
 0x5a9   : > { %v1448_v9 = vmul.f32 1.442695, %v1447_v8 }
 0x5ab   : > { %2326 = vpow2.f32 %v1448_v9 }
 0x5ae   : > { %v1514_v31 = vpop.permute.xlu2 %1513 }
 0x5af   : > { %v1389_v10 = vpop.xlane.xlu1 %1388  ;;  %v1519_v35 = vand.u32 %v1514_v31, %v2851_v28 }
 0x5b0   : > { %v1390_v11 = vsub.f32 %v1386_v4, %v1389_v10  ;;  %v2208_v4 = vld [vmem:[%s2740_s7 + $0x8] sm:$0xff] }
 0x5b1   : > { %v2327_v12 = vpop.eup %2326 }
 0x5b2   : > { %v1391_v13 = vmul.f32 1.442695, %v1390_v11  ;;  %v1450_v14 = vsel %vm1324_vm1, %v2327_v12, 0.0 }
 0x5b3   : > { %1451 = vadd.xlane.f32.xlu0 %v1450_v14 }
 0x5b4   : > { %2328 = vpow2.f32 %v1391_v13 }
 0x5b5   : > { %2330 = vpow2.f32 %v1505_v19 }
 0x5ba   : > { %v2329_v15 = vpop.eup %2328 }
 0x5bb   : > { %v1393_v16 = vsel %vm1324_vm1, %v2329_v15, 0.0  ;;  %v2331_v20 = vpop.eup %2330 }
 0x5bc   : > { %1394 = vadd.xlane.f32.xlu1 %v1393_v16  ;;  %v1507_v21 = vsel %vm1324_vm1, %v2331_v20, 0.0 }
 0x5c7   : > { %1456 = vrot.lane.b32.xlu0 %v2844_v24, %s2485_s4 }
 0x5d5   : > { %1399 = vrot.lane.b32.xlu1 %v2844_v24, %s2486_s8 }
 0x5ff   : > { %1508 = vadd.xlane.f32.xlu1 %v1507_v21 }
 0x626   : > { %v1452_v22 = vpop.xlane.xlu0 %1451 }
 0x627   : > { %2332 = vrcp.f32 %v1452_v22  ;;  %v2215_v22 = vld [vmem:[%s2750_s26 + $0x30] sm:$0xff] }
 0x62d   : > { %v2333_v23 = vpop.eup %2332 }
 0x62e   : > { %v1454_v25 = vmul.f32 %v2333_v23, %v2327_v12  ;;  %v2214_v23 = vld [vmem:[%s2750_s26 + $0x28] sm:$0xff] }
 0x62f   : > { %v1395_v29 = vpop.xlane.xlu1 %1394 }
 0x630   : > { %v1455_v30 = vpack.c.bf16 %v1454_v25, %v1454_v25  ;;  %2334 = vrcp.f32 %v1395_v29  ;;  %v2213_v25 = vld [vmem:[%s2750_s26 + $0x20] sm:$0xff]  ;;  %v2210_v29 = vld [vmem:[%s2750_s26 + $0x8] sm:$0xff] }
 0x636   : > { %v2335_v24 = vpop.eup %2334 }
 0x637   : > { %v1397_v32 = vmul.f32 %v2335_v24, %v2329_v15  ;;  %v2314_v15 = vld [vmem:[%s3124_s6] ss:$0 sm:$0xff] }
 0x638   : > { %v2316_v24 = vld [vmem:[%s957_s17] ss:$0 sm:$0xff]  ;;  %s3126_s17 = sld [smem:[#allocation12_spill]] }
 0x639   : > { %v1457_v26 = vpop.permute.xlu0 %1456  ;;  %v1398_v36 = vpack.c.bf16 %v1397_v32, %v1397_v32 }
 0x63a   : > { %v1462_v27 = vand.u32 %v1457_v26, %v2851_v28  ;;  %v2212_v26 = vld [vmem:[%s2750_s26 + $0x18] sm:$0xff] }
 0x63c   : > { %1471 = vmatpush.bf16.msrb.mxu1 %v1462_v27  ;;  %v2211_v27 = vld [vmem:[%s2750_s26 + $0x10] sm:$0xff] }
 0x63e   : > { %p2179_p5 = scmp.ne.s32.totalorder %s3126_s17, 1 }
 0x63f   : > { %2126 = vmatmul.msk.bf16.vlgmr.msrb.gmra.mxu1 %vm1339_vm2, %v1455_v30  ;;  %v2209_v30 = vld [vmem:[%s2750_s26] sm:$0xff]  ;;  %s3127_s8 = sld [smem:[#allocation37_spill]] (!%p2179_p5) }
 0x640   : > { %1639 = vmatpush.bf16.msra.mxu1 %v2208_v4  ;;  %s3129_s27 = sld [smem:[#allocation33_spill]] (!%p2179_p5) }
 0x641   : > { %s3130_s6 = sld [smem:[#allocation36_spill]] (!%p2179_p5) }
 0x642   : > { %s3131_s1 = sld [smem:[#allocation34_spill]] (!%p2179_p5) }
 0x644   : > { %1640 = vmatpush.bf16.msra.mxu1 %v2207_v5 }
 0x647   : > { %v1400_v33 = vpop.permute.xlu1 %1399 }
 0x648   : > { %v1405_v34 = vand.u32 %v1400_v33, %v2851_v28 }
 0x64a   : > { %1414 = vmatpush.bf16.msra.mxu2 %v1405_v34 }
 0x64d   : > { %2124 = vmatmul.msk.bf16.vlgmr.msra.gmra.mxu2 %vm1339_vm2, %v1398_v36 }
 0x64e   : > { %1528 = vmatpush.bf16.msrb.mxu2 %v1519_v35 }
 0x672   : > { %v1509_v37 = vpop.xlane.xlu1 %1508 }
 0x673   : > { %2336 = vrcp.f32 %v1509_v37 }
 0x679   : > { %v2337_v38 = vpop.eup %2336 }
 0x67a   : > { %v1511_v39 = vmul.f32 %v2337_v38, %v2331_v20 }
 0x67c   : > { %v1512_v40 = vpack.c.bf16 %v1511_v39, %v1511_v39 }
 0x67e   : > { %2128 = vmatmul.msk.bf16.vlgmr.msrb.gmra.mxu2 %vm1339_vm2, %v1512_v40 }
 0x6bc   : > { %v1473_v41 = vpop.f32.mrf.mxu1 }
 0x6bd   : > { %1539 = vrot.lane.b32.xlu0 %v1473_v41, %s2487_s20 }
 0x6c4   : > { %v1475_v42 = vpop.f32.mrf.mxu1 }
 0x6d0   : > { %v1416_v43 = vpop.f32.mrf.mxu2 }
 0x6d1   : > { %1535 = vrot.lane.b32.xlu2 %v1416_v43, %s2488_s22 }
 0x6d8   : > { %v1418_v28 = vpop.f32.mrf.mxu2 }
 0x6d9   : > { %v2317_v28 = vld [vmem:[%s965_s19] ss:$0 sm:$0xff] }
 0x701   : > { %v1530_v44 = vpop.f32.mrf.mxu2 }
 0x702   : > { %1543 = vrot.lane.b32.xlu2 %v1530_v44, %s2489_s28  ;;  %s3128_s28 = sld [smem:[#allocation32_spill]] (!%p2179_p5) }
 0x709   : > { %v1532_v45 = vpop.f32.mrf.mxu2 }
 0x72b   : > { %v1536_v48 = vpop.permute.xlu2 %1535 }
 0x72c   : > { %v1546_v50 = vsel %vm1303_vm0, %v2868_v56, %v1536_v48 }
 0x72f   : > { %v1540_v49 = vpop.permute.xlu0 %1539 }
 0x730   : > { %v1548_v52 = vsel %vm1547_vm3, %v1546_v50, %v1540_v49 }
 0x75c   : > { %v1544_v53 = vpop.permute.xlu2 %1543 }
 0x75d   : > { %v1550_v54 = vsel %vm1549_vm4, %v1548_v52, %v1544_v53 }
 0x75e   : > { %v1551_v55 = vpack.c.bf16 %v1550_v54, %v1550_v54 }
 0x760   : > { %2137 = vmatmul.msk.bf16.vlgmr.msra.gmra.mxu0 %vm1280_vm13, %v1551_v55 }
 0x7dd   : > { %v1579_v58 = vpop.f32.mrf.mxu0 }
 0x7de   : > { %v1580_v60 = vadd.f32 %v2313_v57, %v1579_v58 }
 0x7e0   : > { %v2896_v61 = vadd.f32 %v1580_v60, %v2816_v51  ;;  %v2216_v51 = vld [vmem:[%s2750_s26 + $0x38] sm:$0xff]  ;;  %s3132_s26 = sld [smem:[#allocation35_spill]] (!%p2179_p5) }
 0x7e1   : > { %1707 = vmatpush.bf16.msrb.mxu3 %v2216_v51 }
 0x7e2   : > { %v1584_v56 = vsel %vm1226_vm8, %v2896_v61, 0.0 }
 0x7e3   : > { %1585 = vadd.xlane.f32.xlu0 %v1584_v56 }
 0x7e5   : > { %v1581_v62 = vpop.f32.mrf.mxu0  ;;  %1708 = vmatpush.bf16.msrb.mxu3 %v2215_v22 }
 0x7e9   : > { %1709 = vmatpush.bf16.msrb.mxu3 %v2214_v23 }
 0x7ed   : > { %1710 = vmatpush.bf16.msrb.mxu3 %v2213_v25 }
 0x7f1   : > { %1711 = vmatpush.bf16.msrb.mxu3 %v2212_v26 }
 0x7f5   : > { %1712 = vmatpush.bf16.msrb.mxu3 %v2211_v27 }
 0x7f9   : > { %1713 = vmatpush.bf16.msrb.mxu3 %v2210_v29 }
 0x7fd   : > { %1714 = vmatpush.bf16.msrb.mxu3 %v2209_v30 }
 0x856   : > { %v1586_v63 = vpop.xlane.xlu0 %1585 }
 0x857   : > { %v1587_v0 = vmul.f32 %v1586_v63, %v2820_v59 }
 0x859   : > { %v1588_v1 = vsub.f32 %v2896_v61, %v1587_v0 }
 0x85b   : > { %v1589_v2 = vmul.f32 %v1588_v1, %v1588_v1 }
 0x85d   : > { %v1590_v3 = vsel %vm1226_vm8, %v1589_v2, 0.0 }
 0x85e   : > { %1591 = vadd.xlane.f32.xlu1 %v1590_v3 }
 0x8d1   : > { %v1592_v6 = vpop.xlane.xlu1 %1591 }
 0x8d2   : > { %v1593_v7 = vmul.f32 %v1592_v6, %v2820_v59 }
 0x8d4   : > { %v1594_v8 = vadd.f32 1e-05, %v1593_v7 }
 0x8d6   : > { %2338 = vrsqrt.f32 %v1594_v8  ;;  %vm1601_vm6 = vweird.f32 %v1594_v8 }
 0x8dc   : > { %v2339_v9 = vpop.eup %2338 }
 0x8dd   : > { %v1596_v10 = vmul.f32 %v2339_v9, %v1594_v8  ;;  %vm1602_vm5 = vweird.f32 %v2339_v9 }
 0x8de   : > { %vm1603_vm7 = vmor %vm1601_vm6, %vm1602_vm5 }
 0x8df   : > { %v1597_v11 = vmul.f32 %v2339_v9, %v1596_v10 }
 0x8e1   : > { %v1598_v12 = vmul.f32 0.5, %v1597_v11 }
 0x8e3   : > { %v1599_v13 = vsub.f32 1.5, %v1598_v12 }
 0x8e5   : > { %v1600_v14 = vmul.f32 %v2339_v9, %v1599_v13 }
 0x8e7   : > { %v1604_v16 = vsel %vm1603_vm7, %v2339_v9, %v1600_v14 }
 0x8e8   : > { %v1605_v17 = vmul.f32 %v1604_v16, %v1588_v1 }
 0x8ea   : > { %v1609_v19 = vmul.f32 %v2314_v15, %v1605_v17 }
 0x8ec   : > { %v1613_v20 = vadd.f32 %v2315_v18, %v1609_v19 }
 0x8ee   : > { %v1614_v21 = vpack.c.bf16 %v1613_v20, %v1613_v20 }
 0x8f0   : > { %2146 = vmatmul.msk.bf16.vlgmr.msra.gmra.mxu1 %vm1280_vm13, %v1614_v21 }
 0x96d   : > { %v1642_v31 = vpop.f32.mrf.mxu1 }
 0x96e   : > { %v1643_v32 = vadd.f32 %v2316_v24, %v1642_v31 }
 0x970   : > { %v1646_v33 = vmul.f32 %v1643_v32, %v1643_v32 }
 0x972   : > { %v1647_v34 = vmul.f32 %v1646_v33, %v1643_v32 }
 0x974   : > { %v1648_v35 = vmul.f32 0.044715, %v1647_v34 }
 0x975   : > { %v1644_v36 = vpop.f32.mrf.mxu1 }
 0x976   : > { %v1649_v37 = vadd.f32 %v1648_v35, %v1643_v32 }
 0x978   : > { %v1650_v38 = vmul.f32 0.7978846, %v1649_v37 }
 0x97a   : > { %2340 = vtanh.f32 %v1650_v38 }
 0x980   : > { %v2341_v39 = vpop.eup %2340 }
 0x981   : > { %v1652_v40 = vadd.f32 1.0, %v2341_v39 }
 0x983   : > { %v1653_v41 = vmul.f32 0.5, %v1652_v40 }
 0x985   : > { %v1654_v42 = vmul.f32 %v1653_v41, %v1643_v32 }
 0x987   : > { %v1655_v43 = vpack.c.bf16 %v1654_v42, %v1654_v42 }
 0x989   : > { %1715 = vmatmul.bf16.vlgmr.msrb.gmra.mxu3 %v1655_v43 }
 0xa0c   : > { %v1716_v44 = vpop.f32.mrf.mxu3 }
 0xa0d   : > { %v1717_v45 = vadd.f32 %v2317_v28, %v1716_v44 }
 0xa0f   : > { %v1720_v46 = vadd.f32 %v1717_v45, %v2896_v61 }
 0xa10   : > { %1725 = sbr.rel (%p2179_p5) target bundleno = 2862 (0xb2e), region = 124 }
 0xa11   : > { %1721 = vst.msk [vmem:[#allocation2] sm:$0x7f] %vm1226_vm8, %v1720_v46 }
 0xa14   : > { %v1718_v47 = vpop.f32.mrf.mxu3 }
 0xa15   : > { %vm1729_vm9 = vcmask 253952   ;;  %v1757_v57 = vld [vmem:[%s3127_s8] sm:$0x1] }
 0xa16   : > { %v1758_v58 = vadd.f32 1e-05, %v1757_v57  ;;  %v1728_v10 = vld [vmem:[%s3129_s27] sm:$0x1] }
 0xa17   : > { %v1755_v13 = vld [vmem:[%s3130_s6] sm:$0x1] }
 0xa18   : > { %v1726_v48 = vld [vmem:[#allocation2] sm:$0x7f]  ;;  %2342 = vrsqrt.f32 %v1758_v58  ;;  %vm1765_vm12 = vweird.f32 %v1758_v58  ;;  %v1770_v17 = vld [vmem:[%s3131_s1] sm:$0x1] }
 0xa19   : > { %v1730_v49 = vsel %vm1729_vm9, %v1726_v48, 0.0  ;;  %v1772_v19 = vld [vmem:[%s3132_s26] sm:$0x1] }
 0xa1a   : > { %1731 = vadd.xlane.f32.xlu0 %v1730_v49 }
 0xa1e   : > { %v2343_v62 = vpop.eup %2342 }
 0xa1f   : > { %v1760_v63 = vmul.f32 %v2343_v62, %v1758_v58  ;;  %vm1766_vm13 = vweird.f32 %v2343_v62 }
 0xa20   : > { %vm1767_vm14 = vmor %vm1765_vm12, %vm1766_vm13 }
 0xa21   : > { %v1761_v1 = vmul.f32 %v2343_v62, %v1760_v63 }
 0xa23   : > { %v1762_v4 = vmul.f32 0.5, %v1761_v1 }
 0xa25   : > { %v1763_v6 = vsub.f32 1.5, %v1762_v4 }
 0xa27   : > { %v1764_v11 = vmul.f32 %v2343_v62, %v1763_v6 }
 0xa29   : > { %v1768_v15 = vsel %vm1767_vm14, %v2343_v62, %v1764_v11 }
 0xa8d   : > { %v1732_v50 = vpop.xlane.xlu0 %1731 }
 0xa8e   : > { %v1733_v52 = vmul.f32 %v1732_v50, %v2820_v59 }
 0xa90   : > { %v1734_v53 = vsub.f32 %v1726_v48, %v1733_v52 }
 0xa92   : > { %v1735_v54 = vmul.f32 %v1734_v53, %v1734_v53 }
 0xa94   : > { %v1736_v55 = vsel %vm1729_vm9, %v1735_v54, 0.0 }
 0xa95   : > { %1737 = vadd.xlane.f32.xlu0 %v1736_v55 }
 0xb08   : > { %v1738_v60 = vpop.xlane.xlu0 %1737 }
 0xb09   : > { %v1739_v61 = vmul.f32 %v1738_v60, %v2820_v59  ;;  %v1727_v59 = vld [vmem:[%s3128_s28] sm:$0x1] }
 0xb0b   : > { %v1740_v56 = vadd.f32 1e-05, %v1739_v61 }
 0xb0d   : > { %2344 = vrsqrt.f32 %v1740_v56  ;;  %vm1747_vm10 = vweird.f32 %v1740_v56 }
 0xb13   : > { %v2345_v0 = vpop.eup %2344 }
 0xb14   : > { %v1742_v2 = vmul.f32 %v2345_v0, %v1740_v56  ;;  %vm1748_vm8 = vweird.f32 %v2345_v0 }
 0xb15   : > { %vm1749_vm11 = vmor %vm1747_vm10, %vm1748_vm8 }
 0xb16   : > { %v1743_v3 = vmul.f32 %v2345_v0, %v1742_v2 }
 0xb18   : > { %v1744_v5 = vmul.f32 0.5, %v1743_v3 }
 0xb1a   : > { %v1745_v51 = vsub.f32 1.5, %v1744_v5 }
 0xb1c   : > { %v1746_v7 = vmul.f32 %v2345_v0, %v1745_v51 }
 0xb1e   : > { %v1750_v8 = vsel %vm1749_vm11, %v2345_v0, %v1746_v7 }
 0xb1f   : > { %v1751_v9 = vmul.f32 %v1750_v8, %v1734_v53 }
 0xb21   : > { %v1752_v12 = vmul.f32 %v1751_v9, %v1727_v59 }
 0xb23   : > { %v1753_v14 = vadd.f32 %v1752_v12, %v1728_v10 }
 0xb25   : > { %1754 = vst.msk [vmem:[%s912_s21] sm:$0x1] %vm1729_vm9, %v1753_v14  ;;  %v1756_v16 = vsub.f32 %v1753_v14, %v1755_v13 }
 0xb27   : > { %v1769_v18 = vmul.f32 %v1768_v15, %v1756_v16 }
 0xb29   : > { %v1771_v20 = vmul.f32 %v1770_v17, %v1769_v18 }
 0xb2b   : > { %v1773_v21 = vadd.f32 %v1772_v19, %v1771_v20 }
 0xb2d   : > { %1774 = vst.msk [vmem:[%s906_s18] sm:$0x1] %vm1729_vm9, %v1773_v21 }
 0xb2e PF: > { %s3133_s4 = sld [smem:[#allocation13_spill]]  ;;  %s1790_s22 = sshll.u32 %s906_s18, 4  ;;  %s1791_s22 = int_to_ptr.vmem [resolvable:$true] %s1790_s22 }
 0xb2f   : > { %s3134_s19 = sld [smem:[#allocation38_spill]]  ;;  %s1776_s0 = scalar_lea.sflag [#allocation4], %s2685_s30 }
 0xb35   : > { %s1788_s20 = scalar_lea.hbm %s3134_s19, %s3133_s4  ;;  %s2366_s6 = scalar_lea.hbm %s3134_s19, 2 }
 0xb36   : > { %s1792_s28 = sshll.u32 %s1788_s20, 4  ;;  %s1793_s28 = int_to_ptr.hbm [resolvable:$true] %s1792_s28 }
 0xb37   : > { %s2360_s3 = sshra.s32 %s1793_s28, 4  ;;  %s2361_s3 = int_to_ptr.hbm [resolvable:$true] %s2360_s3 }
 0xb38   : > { %s2362_s27 = scalar_lea.hbm %s2361_s3, 1  ;;  %p2367_p10 = scmp.lt.s32.totalorder %s2361_s3, %s3134_s19 }
 0xb39   : > { %p2363_p6 = scmp.ne.s32.totalorder %s2361_s3, %s2362_s27  ;;  %p2368_p11 = scmp.lt.s32.totalorder %s2366_s6, %s2362_s27 }
 0xb3b   : > { %p2364_p7 = pnand %p2363_p6, %p2664_p3  ;;  %p2369_p12 = por %p2368_p11, %p2367_p10 }
 0xb3d   : > { %p2365_p8 = pneg %p2364_p7 }
 0xb3f   : > { %p2370_p13 = pnand %p2369_p12, %p2365_p8 }
 0xb41   : > { %2373 = shalt.err (!%p2370_p13)
}
 0xb42   : > { %2217 = dma.vmem_to_hbm [thread:$0]  (%p2664_p3), %s1791_s22, 16, %s1793_s28, %s1776_s0  }
 0xb43   : > { %s3136_s5 = sld [smem:[#allocation39_spill]]  ;;  %s1803_s17 = sshll.u32 %s912_s21, 4  ;;  %s1804_s17 = int_to_ptr.vmem [resolvable:$true] %s1803_s17 }
 0xb44   : > { %s1780_s20 = scalar_lea.sflag [#allocation6], %s2685_s30 }
 0xb49   : > { %s3137_s23 = smov %s3136_s5  ;;  %s1801_s26 = scalar_lea.hbm %s3136_s5, %s3133_s4 }
 0xb4a   : > { %s1805_s29 = sshll.u32 %s1801_s26, 4  ;;  %s2394_s22 = scalar_lea.hbm %s3137_s23, 2  ;;  %s1806_s29 = int_to_ptr.hbm [resolvable:$true] %s1805_s29 }
 0xb4b   : > { %s2388_s3 = sshra.s32 %s1806_s29, 4  ;;  %s2389_s3 = int_to_ptr.hbm [resolvable:$true] %s2388_s3 }
 0xb4c   : > { %s2390_s27 = scalar_lea.hbm %s2389_s3, 1  ;;  %p2395_p4 = scmp.lt.s32.totalorder %s2389_s3, %s3137_s23 }
 0xb4d   : > { %p2391_p0 = scmp.ne.s32.totalorder %s2389_s3, %s2390_s27  ;;  %p2396_p5 = scmp.lt.s32.totalorder %s2394_s22, %s2390_s27 }
 0xb4f   : > { %p2392_p1 = pnand %p2391_p0, %p2664_p3  ;;  %p2397_p6 = por %p2396_p5, %p2395_p4 }
 0xb51   : > { %p2393_p2 = pneg %p2392_p1 }
 0xb53   : > { %p2398_p7 = pnand %p2397_p6, %p2393_p2 }
 0xb55   : > { %2401 = shalt.err (!%p2398_p7)
}
 0xb56   : > { %2218 = dma.vmem_to_hbm [thread:$0]  (%p2664_p3), %s1804_s17, 16, %s1806_s29, %s1780_s20  }
 0xb57 PF: > { %s3138_s30 = sld [smem:[#allocation16_spill]] }
 0xb58   : > { %s3139_s21 = sld [smem:[#allocation9_spill]] }
 0xb5d   : > { %p2228_p8 = scmp.ge.s32.totalorder %s3138_s30, 2 }
 0xb5e   : > { %s1817_s6 = sand.u32 1, %s3139_s21  }
 0xb5f   : > { %p2222_p10 = pnand %p2228_p8, %p2674_p9  ;;  %s1818_s2 = scalar_lea.sflag [#allocation4], %s1817_s6 }
 0xb61   : > { %p2223_p11 = pneg %p2222_p10 }
 0xb63   : > { %2435 = dma.done.wait (%p2223_p11), %s1818_s2, 16  }
 0xb64   : > { %2437 = vsyncadd (%p2223_p11), %s1818_s2, 4294967280  ;;  %s1827_s25 = scalar_lea.sflag [#allocation6], %s1817_s6 }
 0xb65   : > { %2439 = dma.done.wait (%p2223_p11), %s1827_s25, 16  }
 0xb66   : > { %2441 = vsyncadd (%p2223_p11), %s1827_s25, 4294967280  ;;  %s41_s0 = sadd.s32 1, %s3138_s30   ;;  %s3141_s5 = sld [smem:[#allocation10_spill]] }
 0xb67   : > { %p38_p12 = scmp.ge.s32.totalorder %s41_s0, 6   ;;  %s3142_s26 = sld [smem:[#allocation11_spill]] }
 0xb68   : > { %s3143_s27 = sld [smem:[#allocation21_spill]] }
 0xb69   : > { %s3144_s28 = sld [smem:[#allocation14_spill]]  ;;  %40 = sbr.rel (!%p38_p12) target bundleno = 26 (0x1a), region = 215 }
 0xb6a   : > { %s3145_s6 = sld [smem:[#allocation15_spill]] }
 0xb6b   : > { %s3146_s2 = sld [smem:[#allocation17_spill]] }
 0xb6c   : > { %s3147_s29 = sld [smem:[#allocation19_spill]] }
 0xb6e   :  { %1832 = vsyncpa [#allocation4], 1 }
 0xb6f   :  { %1834 = vsyncpa [#allocation4 + $0x1], 1 }
 0xb70   :  { %1835 = vsyncpa [#allocation6], 1 }
 0xb71   :  { %1837 = vsyncpa [#allocation6 + $0x1], 1 }

// kernel: forward.4
= control target key start
LH: loop header
LB: loop body
LE: loop exit
PB: predicated region body
PF: predicated region fallthrough
CT: control target
= control target key end

     0   :  { %s4724_s30 = smov 0   ;;  %s4726_s20 = smov 0   ;;  %s5905_s0 = inlined_call_operand.vmem [shape: f32[14,8,32], index: 0, kind: input, shape index: {}]   ;;  %s5906_s1 = inlined_call_operand.vmem [shape: f32[1,8,32], index: 1, kind: input, shape index: {}]   ;;  %s5907_s2 = inlined_call_operand.vmem [shape: f32[2,2,32], index: 2, kind: input, shape index: {}]   ;;  %s5908_s3 = inlined_call_operand.vmem [shape: f32[2,1,32], index: 3, kind: input, shape index: {}]   ;;  %s5909_s4 = inlined_call_operand.vmem [shape: f32[2,1,32], index: 4, kind: input, shape index: {}]   ;;  %s5910_s5 = inlined_call_operand.vmem [shape: bf16[2,32,96], index: 5, kind: input, shape index: {}]   ;;  %s5911_s6 = inlined_call_operand.vmem [shape: f32[2,1,96], index: 6, kind: input, shape index: {}]   ;;  %s5912_s7 = inlined_call_operand.vmem [shape: bf16[2,32,32], index: 7, kind: input, shape index: {}]   ;;  %s5913_s8 = inlined_call_operand.vmem [shape: f32[2,1,32], index: 8, kind: input, shape index: {}]   ;;  %s5914_s9 = inlined_call_operand.vmem [shape: f32[2,1,32], index: 9, kind: input, shape index: {}]   ;;  %s5915_s10 = inlined_call_operand.vmem [shape: f32[2,1,32], index: 10, kind: input, shape index: {}]   ;;  %s5916_s11 = inlined_call_operand.vmem [shape: bf16[2,32,128], index: 11, kind: input, shape index: {}]   ;;  %s5917_s12 = inlined_call_operand.vmem [shape: f32[2,1,128], index: 12, kind: input, shape index: {}]   ;;  %s5918_s13 = inlined_call_operand.vmem [shape: bf16[2,128,32], index: 13, kind: input, shape index: {}]   ;;  %s5919_s14 = inlined_call_operand.vmem [shape: f32[2,1,32], index: 14, kind: input, shape index: {}]   ;;  %s5920_s15 = inlined_call_operand.vmem [shape: f32[1,32], index: 15, kind: input, shape index: {}]   ;;  %s5921_s16 = inlined_call_operand.vmem [shape: f32[1,32], index: 16, kind: input, shape index: {}]   ;;  %s5922_s17 = inlined_call_operand.vmem [shape: f32[14,8,1], index: 17, kind: input, shape index: {}]   ;;  %s5923_s18 = inlined_call_operand.vmem [shape: bf16[32,32], index: 18, kind: input, shape index: {}]   ;;  %s5924_s19 = inlined_call_operand.vmem [shape: f32[14,1,32], index: 19, kind: output, shape index: {}]  }
   0x1   :  { %5931 = sst [smem:[#allocation9_spill]] %s5905_s0  ;;  %s4722_s0 = smov 0  }
   0x2   :  { %5932 = sst [smem:[#allocation10_spill]] %s5906_s1  ;;  %s4728_s21 = smov 0  }
   0x3   :  { %5933 = sst [smem:[#allocation11_spill]] %s5907_s2  ;;  %s4730_s1 = smov 0  }
   0x4   :  { %5934 = sst [smem:[#allocation12_spill]] %s5908_s3 }
   0x5   :  { %5935 = sst [smem:[#allocation13_spill]] %s5910_s5 }
   0x6   :  { %5936 = sst [smem:[#allocation14_spill]] %s5912_s7 }
   0x7   :  { %5937 = sst [smem:[#allocation15_spill]] %s5913_s8 }
   0x8   :  { %5938 = sst [smem:[#allocation16_spill]] %s5915_s10 }
   0x9   :  { %5939 = sst [smem:[#allocation17_spill]] %s5916_s11 }
   0xa   :  { %5940 = sst [smem:[#allocation18_spill]] %s5918_s13 }
   0xb   :  { %5941 = sst [smem:[#allocation19_spill]] %s5919_s14 }
   0xc   :  { %5942 = sst [smem:[#allocation20_spill]] %s5920_s15 }
   0xd   :  { %5943 = sst [smem:[#allocation21_spill]] %s5921_s16 }
   0xe   :  { %5944 = sst [smem:[#allocation22_spill]] %s5922_s17 }
   0xf   :  { %5945 = sst [smem:[#allocation23_spill]] %s5923_s18 }
  0x10   :  { %5946 = sst [smem:[#allocation24_spill]] %s5924_s19 }
  0x11 LB: > { %5947 = sst [smem:[#allocation3_spill]] %s4587_s0  ;;  %s38_s22 = sadd.s32 1, %s4595_s20  ;;  %s4603_s1 = sphi %s4730_s1, %s29_s1   ;;  %s4599_s21 = sphi %s4728_s21, %s5992_s21   ;;  %s4595_s20 = sphi %s4726_s20, %s5991_s20   ;;  %s4591_s30 = sphi %s4724_s30, %s5990_s30   ;;  %s4587_s0 = sphi %s4722_s0, %s5989_s0  }
  0x12   : > { %5948 = sst [smem:[#allocation4_spill]] %s4595_s20  ;;  %s41_s2 = sadd.s32 1, %s4599_s21 }
  0x13   : > { %5949 = sst [smem:[#allocation5_spill]] %s4599_s21  ;;  %p39_p0 = scmp.ge.s32.totalorder %s38_s22, 2 }
  0x14   : > { %5950 = sst [smem:[#allocation6_spill]] %s4603_s1  ;;  %p4083_p1 = scmp.ge.s32.totalorder %s4603_s1, 1 }
  0x15   : > { %p674_p2 = scmp.lt.s32.totalorder %s4603_s1, 5  ;;  %s5994_s22 = smov (%p39_p0, %s38_s22), 0 }
  0x16   : > { %5951 = sst [smem:[#allocation7_spill]] %s5994_s22  ;;  %s5996_s2 = smov (!%p39_p0, %s41_s2), %s4599_s21 }
  0x17   : > { %p675_p3 = pnand %p4083_p1, %p674_p2  ;;  %p43_p4 = scmp.ge.s32.totalorder %s5996_s2, 2 }
  0x18   : > { %s782_s23 = smul.u32 (!%p675_p3), 7, %s4591_s30  ;;  %p788_p5 = scmp.lt.s32.totalorder (!%p675_p3), %s4587_s0, 1 }
  0x19   : > { %s5998_s2 = smov (%p43_p4, %s5996_s2), 0  ;;  %678 = sbr.rel (%p675_p3) target bundleno = 4165 (0x1045), region = 96 }
  0x1a   : > { %5952 = sst [smem:[#allocation8_spill]] %s5998_s2  ;;  %p783_p6 = scmp.lt.s32.totalorder (!%p675_p3), %s782_s23, 13 }
  0x1b   : > { %s5954_s22 = sld [smem:[#allocation11_spill]] (!%p675_p3) }
  0x1c   : > { %s5955_s18 = sld [smem:[#allocation9_spill]] (!%p675_p3) }
  0x1d   : > { %s5956_s5 = sld [smem:[#allocation13_spill]] (!%p675_p3) }
  0x1e   : > { %s4756_s24 = scalar_select %p788_p5, %s4587_s0, 1 }
  0x1f   : > { %s6000_s23 = smov (!%p783_p6, %s782_s23), 13  ;;  %s5957_s7 = sld [smem:[#allocation14_spill]] }
  0x20   : > { %s4085_s25 = sshll.u32 %s4756_s24, 1  ;;  %s4084_s29 = sshll.u32 %s6000_s23, 3 }
  0x21   : > { %s4766_s21 = scalar_lea.vmem %s5954_s22, %s4085_s25  ;;  %s4239_s17 = sshll.u32 %s4756_s24, 4 }
  0x22   : > { %s786_s16 = scalar_lea.vmem %s5955_s18, %s4084_s29  ;;  %s5960_s11 = sld [smem:[#allocation17_spill]] }
  0x23   : > { %s4783_s28 = scalar_lea.vmem %s5956_s5, %s4239_s17  ;;  %s827_s5 = scalar_lea.vmem %s5917_s12, %s4756_s24 }
  0x24   : > { %s5961_s15 = sld [smem:[#allocation18_spill]] }
  0x25   : > { %s4788_s25 = scalar_lea.vmem %s5957_s7, %s4239_s17  ;;  %s4242_s7 = sshll.u32 %s4756_s24, 6 }
  0x26   : > { %s5962_s30 = sld [smem:[#allocation19_spill]] }
  0x27   : > { %s5963_s10 = sld [smem:[#allocation22_spill]] }
  0x28   : > { %s4805_s19 = scalar_lea.vmem %s5960_s11, %s4239_s17  ;;  %s5964_s11 = sld [smem:[#allocation24_spill]] }
  0x29   : > { %s5965_s2 = sld [smem:[#allocation3_spill]] }
  0x2a   : > { %s4815_s8 = scalar_lea.vmem %s5961_s15, %s4242_s7 }
  0x2c   : > { %s835_s13 = scalar_lea.vmem %s5962_s30, %s4756_s24 }
  0x2d   : > { %s4824_s26 = scalar_lea.vmem %s5963_s10, %s4084_s29 }
  0x2e   : > { %s4829_s22 = scalar_lea.vmem %s5964_s11, %s6000_s23 }
  0x2f   : > { %p4095_p7 = scmp.ne.s32.totalorder %s5965_s2, 0 }
  0x30   : > { %s5966_s18 = sld [smem:[#allocation10_spill]] (!%p4095_p7) }
  0x31   : > { %851 = sbr.rel (%p4095_p7) target bundleno = 65 (0x41), region = 100 }
  0x36   : > { %v852_v0 = vld [vmem:[%s786_s16] sm:$0xff]  ;;  %vm867_vm0 = vcmask 261120   ;;  %v853_v2 = vld [vmem:[%s786_s16 + $0x8] sm:$0xff]  ;;  %v854_v5 = vld [vmem:[%s786_s16 + $0x10] sm:$0xff] }
  0x37   : > { %v859_v1 = vld [vmem:[%s5966_s18] sm:$0xff]  ;;  %v855_v6 = vld [vmem:[%s786_s16 + $0x18] sm:$0xff]  ;;  %v857_v10 = vld [vmem:[%s786_s16 + $0x28] sm:$0xff] }
  0x38   : > { %v860_v3 = vadd.f32 %v859_v1, %v852_v0  ;;  %v861_v4 = vadd.f32 %v859_v1, %v853_v2  ;;  %v856_v7 = vld [vmem:[%s786_s16 + $0x20] sm:$0xff]  ;;  %v862_v8 = vadd.f32 %v859_v1, %v854_v5  ;;  %v863_v9 = vadd.f32 %v859_v1, %v855_v6  ;;  %v858_v11 = vld [vmem:[%s786_s16 + $0x30] sm:$0xff] }
  0x39   : > { %v864_v12 = vadd.f32 %v859_v1, %v856_v7  ;;  %v865_v13 = vadd.f32 %v859_v1, %v857_v10  ;;  %v866_v14 = vadd.f32 %v859_v1, %v858_v11 }
  0x3a   : > { %868 = vst.msk [vmem:[#allocation2] sm:$0xff] %vm867_vm0, %v860_v3 }
  0x3b   : > { %869 = vst.msk [vmem:[#allocation2 + $0x8] sm:$0xff] %vm867_vm0, %v861_v4 }
  0x3c   : > { %870 = vst.msk [vmem:[#allocation2 + $0x10] sm:$0xff] %vm867_vm0, %v862_v8 }
  0x3d   : > { %871 = vst.msk [vmem:[#allocation2 + $0x18] sm:$0xff] %vm867_vm0, %v863_v9 }
  0x3e   : > { %872 = vst.msk [vmem:[#allocation2 + $0x20] sm:$0xff] %vm867_vm0, %v864_v12 }
  0x3f   : > { %873 = vst.msk [vmem:[#allocation2 + $0x28] sm:$0xff] %vm867_vm0, %v865_v13 }
  0x40   : > { %874 = vst.msk [vmem:[#allocation2 + $0x30] sm:$0xff] %vm867_vm0, %v866_v14 }
  0x41 PF: > { %s5967_s10 = sld [smem:[#allocation3_spill]] }
  0x47   : > { %p875_p8 = scmp.ge.s32.totalorder %s5967_s10, 1  ;;  %p876_p9 = scmp.le.s32.totalorder %s5967_s10, 1 }
  0x49   : > { %p877_p10 = pnand %p876_p9, %p875_p8 }
  0x4b   : > { %880 = sbr.rel (%p877_p10) target bundleno = 94 (0x5e), region = 104 }
  0x50   : > { %v888_v15 = vld [vmem:[%s4766_s21] sm:$0x3]  ;;  %v889_v16 = vlaneseq  ;;  %v882_v21 = vld [vmem:[#allocation2 + $0x8] sm:$0xff]  ;;  %v883_v22 = vld [vmem:[#allocation2 + $0x10] sm:$0xff]  ;;  %vm913_vm3 = vcmask 261120  }
  0x51   : > { %v881_v17 = vld [vmem:[#allocation2] sm:$0xff]  ;;  %v894_v18 = vperm.slane %v888_v15, 0  ;;  %v905_v20 = vperm.slane %v888_v15, 1  ;;  %v884_v23 = vld [vmem:[#allocation2 + $0x18] sm:$0xff]  ;;  %v886_v25 = vld [vmem:[#allocation2 + $0x28] sm:$0xff] }
  0x52   : > { %v890_v19 = vshrl.u32 %v889_v16, 7  ;;  %v885_v24 = vld [vmem:[#allocation2 + $0x20] sm:$0xff]  ;;  %v887_v26 = vld [vmem:[#allocation2 + $0x30] sm:$0xff] }
  0x54   : > { %vm891_vm1 = vcmp.eq.s32.totalorder %v890_v19, 1  ;;  %vm902_vm2 = vcmp.eq.s32.totalorder %v890_v19, 2 }
  0x55   : > { %v895_v27 = vsel %vm891_vm1, %v894_v18, %v881_v17  ;;  %v896_v28 = vsel %vm891_vm1, %v894_v18, %v882_v21  ;;  %v897_v29 = vsel %vm891_vm1, %v894_v18, %v883_v22  ;;  %v898_v30 = vsel %vm891_vm1, %v894_v18, %v884_v23 }
  0x56   : > { %v906_v31 = vsel %vm902_vm2, %v905_v20, %v895_v27  ;;  %v907_v32 = vsel %vm902_vm2, %v905_v20, %v896_v28  ;;  %v908_v33 = vsel %vm902_vm2, %v905_v20, %v897_v29  ;;  %v909_v34 = vsel %vm902_vm2, %v905_v20, %v898_v30 }
  0x57   : > { %914 = vst.msk [vmem:[#allocation2] sm:$0xff] %vm913_vm3, %v906_v31  ;;  %v899_v35 = vsel %vm891_vm1, %v894_v18, %v885_v24  ;;  %v900_v36 = vsel %vm891_vm1, %v894_v18, %v886_v25  ;;  %v901_v37 = vsel %vm891_vm1, %v894_v18, %v887_v26 }
  0x58   : > { %915 = vst.msk [vmem:[#allocation2 + $0x8] sm:$0xff] %vm913_vm3, %v907_v32  ;;  %v910_v38 = vsel %vm902_vm2, %v905_v20, %v899_v35  ;;  %v911_v39 = vsel %vm902_vm2, %v905_v20, %v900_v36  ;;  %v912_v40 = vsel %vm902_vm2, %v905_v20, %v901_v37 }
  0x59   : > { %916 = vst.msk [vmem:[#allocation2 + $0x10] sm:$0xff] %vm913_vm3, %v908_v33 }
  0x5a   : > { %917 = vst.msk [vmem:[#allocation2 + $0x18] sm:$0xff] %vm913_vm3, %v909_v34 }
  0x5b   : > { %918 = vst.msk [vmem:[#allocation2 + $0x20] sm:$0xff] %vm913_vm3, %v910_v38 }
  0x5c   : > { %919 = vst.msk [vmem:[#allocation2 + $0x28] sm:$0xff] %vm913_vm3, %v911_v39 }
  0x5d   : > { %920 = vst.msk [vmem:[#allocation2 + $0x30] sm:$0xff] %vm913_vm3, %v912_v40 }
  0x5e PF: > { %vm964_vm4 = vcmask 261120   ;;  %v957_v42 = vld [vmem:[#allocation2] sm:$0xff]  ;;  %v4605_v55 = vmov 32.0   ;;  %v4244_v33 = vld [vmem:[%s4783_s28 + $0x8] sm:$0xff]  ;;  %s5968_s21 = sld [smem:[#allocation12_spill]]  ;;  %s5970_s3 = scalar_lea.vmem %s5909_s4, %s4756_s24 }
  0x5f   : > { %v965_v45 = vsel %vm964_vm4, %v957_v42, 0.0  ;;  %v958_v47 = vld [vmem:[#allocation2 + $0x8] sm:$0xff]  ;;  %4369 = vrcp.f32 %v4605_v55  ;;  %1183 = vmatpush.bf16.msra.mxu0 %v4244_v33  ;;  %v4243_v37 = vld [vmem:[%s4783_s28] sm:$0xff]  ;;  %s5971_s0 = scalar_lea.vmem %s5911_s6, %s4756_s24  ;;  %s4606_s1 = smov 96  }
  0x60   : > { %v959_v43 = vld [vmem:[#allocation2 + $0x10] sm:$0xff]  ;;  %966 = vadd.xlane.f32.xlu0 %v965_v45  ;;  %v968_v50 = vsel %vm964_vm4, %v958_v47, 0.0  ;;  %s4607_s14 = smov 64   ;;  %s4608_s17 = smov 88  }
  0x61   : > { %v971_v46 = vsel %vm964_vm4, %v959_v43, 0.0  ;;  %v960_v49 = vld [vmem:[#allocation2 + $0x18] sm:$0xff]  ;;  %s4609_s27 = smov 120   ;;  %s4611_s2 = smov 56  }
  0x62   : > { %v961_v41 = vld [vmem:[#allocation2 + $0x20] sm:$0xff]  ;;  %972 = vadd.xlane.f32.xlu1 %v971_v46  ;;  %v974_v52 = vsel %vm964_vm4, %v960_v49, 0.0  ;;  %s4612_s7 = smov 80   ;;  %s4613_s15 = smov 112  }
  0x63   : > { %v977_v44 = vsel %vm964_vm4, %v961_v41, 0.0  ;;  %v962_v48 = vld [vmem:[#allocation2 + $0x28] sm:$0xff]  ;;  %1184 = vmatpush.bf16.msra.mxu0 %v4243_v37  ;;  %s4614_s18 = smov 48   ;;  %s4615_s10 = smov 72  }
  0x64   : > { %978 = vadd.xlane.f32.xlu2 %v977_v44  ;;  %v980_v51 = vsel %vm964_vm4, %v962_v48, 0.0  ;;  %v963_v53 = vld [vmem:[#allocation2 + $0x30] sm:$0xff]  ;;  %s5969_s23 = scalar_lea.vmem %s5968_s21, %s4756_s24  ;;  %s4616_s11 = smov 104  }
  0x65   : > { %v983_v54 = vsel %vm964_vm4, %v963_v53, 0.0  ;;  %v4370_v56 = vpop.eup %4369  ;;  %s4617_s16 = smov 40   ;;  %s4618_s21 = smov 16  }
  0x66   : > { %v987_v57 = vmul.f32 32.0, %v4370_v56  ;;  %vm991_vm5 = vweird.f32 %v4370_v56  ;;  %s4620_s28 = smov 24  }
  0x68   : > { %969 = vadd.xlane.f32.xlu0 %v968_v50  ;;  %v988_v58 = vsub.f32 1.0, %v987_v57 }
  0x6a   : > { %975 = vadd.xlane.f32.xlu1 %v974_v52  ;;  %v989_v59 = vmul.f32 %v4370_v56, %v988_v58 }
  0x6c   : > { %981 = vadd.xlane.f32.xlu2 %v980_v51  ;;  %v990_v60 = vadd.f32 %v4370_v56, %v989_v59 }
  0x6e   : > { %v4873_v61 = vsel %vm991_vm5, %v4370_v56, %v990_v60 }
  0x74   : > { %984 = vadd.xlane.f32.xlu2 %v983_v54 }
  0xd3   : > { %v967_v63 = vpop.xlane.xlu0 %966 }
  0xd4   : > { %v993_v1 = vmul.f32 %v4873_v61, %v967_v63 }
  0xd5   : > { %v973_v2 = vpop.xlane.xlu1 %972 }
  0xd6   : > { %v995_v3 = vmul.f32 %v4873_v61, %v973_v2  ;;  %v4880_v5 = vsub.f32 %v957_v42, %v993_v1 }
  0xd7   : > { %v979_v62 = vpop.xlane.xlu2 %978 }
  0xd8   : > { %v997_v0 = vmul.f32 %v4873_v61, %v979_v62  ;;  %v4884_v7 = vsub.f32 %v959_v43, %v995_v3  ;;  %v1007_v8 = vmul.f32 %v4880_v5, %v4880_v5 }
  0xda   : > { %v4878_v4 = vsub.f32 %v961_v41, %v997_v0  ;;  %v1014_v10 = vsel %vm964_vm4, %v1007_v8, 0.0  ;;  %v1009_v16 = vmul.f32 %v4884_v7, %v4884_v7 }
  0xdb   : > { %1015 = vadd.xlane.f32.xlu0 %v1014_v10  ;;  %v970_v11 = vpop.xlane.xlu0 %969  ;;  %v4941_v10 = vld [vmem:[%s5969_s23] ss:$0 sm:$0xff]  ;;  %s4619_s23 = smov 8  }
  0xdc   : > { %v1011_v6 = vmul.f32 %v4878_v4, %v4878_v4  ;;  %v994_v13 = vmul.f32 %v4873_v61, %v970_v11  ;;  %v1020_v21 = vsel %vm964_vm4, %v1009_v16, 0.0 }
  0xdd   : > { %v976_v15 = vpop.xlane.xlu1 %975 }
  0xde   : > { %v1026_v9 = vsel %vm964_vm4, %v1011_v6, 0.0  ;;  %v996_v17 = vmul.f32 %v4873_v61, %v976_v15  ;;  %v4895_v18 = vsub.f32 %v958_v47, %v994_v13 }
  0xdf   : > { %1027 = vadd.xlane.f32.xlu2 %v1026_v9  ;;  %v982_v12 = vpop.xlane.xlu2 %981 }
  0xe0   : > { %v998_v14 = vmul.f32 %v4873_v61, %v982_v12  ;;  %v4899_v20 = vsub.f32 %v960_v49, %v996_v17  ;;  %v1008_v22 = vmul.f32 %v4895_v18, %v4895_v18 }
  0xe2   : > { %v4897_v19 = vsub.f32 %v962_v48, %v998_v14  ;;  %v1017_v23 = vsel %vm964_vm4, %v1008_v22, 0.0  ;;  %v1010_v27 = vmul.f32 %v4899_v20, %v4899_v20 }
  0xe3   : > { %1021 = vadd.xlane.f32.xlu0 %v1020_v21  ;;  %1018 = vadd.xlane.f32.xlu1 %v1017_v23 }
  0xe4   : > { %v1012_v26 = vmul.f32 %v4897_v19, %v4897_v19  ;;  %v1023_v30 = vsel %vm964_vm4, %v1010_v27, 0.0 }
  0xe6   : > { %v1029_v29 = vsel %vm964_vm4, %v1012_v26, 0.0 }
  0xe7   : > { %v985_v24 = vpop.xlane.xlu2 %984 }
  0xe8   : > { %v999_v25 = vmul.f32 %v4873_v61, %v985_v24 }
  0xea   : > { %v4910_v28 = vsub.f32 %v963_v53, %v999_v25 }
  0xeb   : > { %1030 = vadd.xlane.f32.xlu0 %v1029_v29  ;;  %1024 = vadd.xlane.f32.xlu1 %v1023_v30 }
  0xec   : > { %v1013_v31 = vmul.f32 %v4910_v28, %v4910_v28 }
  0xee   : > { %v1032_v32 = vsel %vm964_vm4, %v1013_v31, 0.0 }
  0xf3   : > { %1033 = vadd.xlane.f32.xlu1 %v1032_v32 }
 0x14e   : > { %v1016_v34 = vpop.xlane.xlu0 %1015 }
 0x14f   : > { %v1035_v35 = vmul.f32 %v1016_v34, %v4873_v61 }
 0x151   : > { %v1042_v36 = vadd.f32 1e-05, %v1035_v35 }
 0x152   : > { %v1028_v46 = vpop.xlane.xlu2 %1027 }
 0x153   : > { %4371 = vrsqrt.f32 %v1042_v36  ;;  %v1039_v54 = vmul.f32 %v1028_v46, %v4873_v61  ;;  %vm1055_vm7 = vweird.f32 %v1042_v36 }
 0x155   : > { %v4931_v0 = vadd.f32 1e-05, %v1039_v54 }
 0x156   : > { %v1019_v38 = vpop.xlane.xlu1 %1018  ;;  %v1022_v39 = vpop.xlane.xlu0 %1021 }
 0x157   : > { %v1036_v40 = vmul.f32 %v1019_v38, %v4873_v61  ;;  %v1037_v41 = vmul.f32 %v1022_v39, %v4873_v61  ;;  %vm1095_vm5 = vweird.f32 %v4931_v0 }
 0x159   : > { %v1043_v42 = vadd.f32 1e-05, %v1036_v40  ;;  %v4922_v43 = vadd.f32 1e-05, %v1037_v41  ;;  %v4372_v44 = vpop.eup %4371 }
 0x15a   : > { %v1050_v45 = vmul.f32 %v4372_v44, %v1042_v36  ;;  %vm1056_vm6 = vweird.f32 %v4372_v44 }
 0x15b   : > { %4373 = vrsqrt.f32 %v1043_v42  ;;  %vm1057_vm8 = vmor %vm1055_vm7, %vm1056_vm6  ;;  %vm1065_vm10 = vweird.f32 %v1043_v42  ;;  %vm1075_vm14 = vweird.f32 %v4922_v43 }
 0x15c   : > { %4375 = vrsqrt.f32 %v4922_v43  ;;  %v1051_v47 = vmul.f32 %v4372_v44, %v1050_v45 }
 0x15e   : > { %v1025_v48 = vpop.xlane.xlu1 %1024  ;;  %v1031_v49 = vpop.xlane.xlu0 %1030  ;;  %v1052_v50 = vmul.f32 0.5, %v1051_v47 }
 0x15f   : > { %v1038_v51 = vmul.f32 %v1025_v48, %v4873_v61  ;;  %v1040_v52 = vmul.f32 %v1031_v49, %v4873_v61 }
 0x160   : > { %v1053_v55 = vsub.f32 1.5, %v1052_v50 }
 0x161   : > { %v4374_v53 = vpop.eup %4373  ;;  %v1045_v56 = vadd.f32 1e-05, %v1038_v51  ;;  %v4929_v62 = vadd.f32 1e-05, %v1040_v52 }
 0x162   : > { %v4376_v57 = vpop.eup %4375  ;;  %v1060_v58 = vmul.f32 %v4374_v53, %v1043_v42  ;;  %v1054_v59 = vmul.f32 %v4372_v44, %v1053_v55  ;;  %vm1066_vm9 = vweird.f32 %v4374_v53 }
 0x163   : > { %v1070_v60 = vmul.f32 %v4376_v57, %v4922_v43  ;;  %4377 = vrsqrt.f32 %v1045_v56  ;;  %vm1067_vm11 = vmor %vm1065_vm10, %vm1066_vm9  ;;  %vm1085_vm12 = vweird.f32 %v1045_v56  ;;  %vm1076_vm15 = vweird.f32 %v4376_v57 }
 0x164   : > { %v1061_v63 = vmul.f32 %v4374_v53, %v1060_v58  ;;  %v1058_v1 = vsel %vm1057_vm8, %v4372_v44, %v1054_v59  ;;  %4379 = vrsqrt.f32 %v4929_v62  ;;  %vm1077_vm1 = vmor %vm1075_vm14, %vm1076_vm15  ;;  %vm1105_vm2 = vweird.f32 %v4929_v62 }
 0x165   : > { %v1071_v3 = vmul.f32 %v4376_v57, %v1070_v60  ;;  %4381 = vrsqrt.f32 %v4931_v0  ;;  %v1119_v9 = vmul.f32 %v1058_v1, %v4880_v5  ;;  %v4950_v5 = vld [vmem:[%s5970_s3] ss:$0 sm:$0xff]  ;;  %vm2942_vm15 = vcmask 130048   ;;  %s5972_s3 = sld [smem:[#allocation15_spill]] }
 0x166   : > { %v1062_v2 = vmul.f32 0.5, %v1061_v63  ;;  %v1034_v16 = vpop.xlane.xlu1 %1033 }
 0x167   : > { %v1072_v12 = vmul.f32 0.5, %v1071_v3  ;;  %v1129_v22 = vmul.f32 %v4941_v10, %v1119_v9  ;;  %v1041_v26 = vmul.f32 %v1034_v16, %v4873_v61 }
 0x168   : > { %v1063_v6 = vsub.f32 1.5, %v1062_v2 }
 0x169   : > { %v4378_v8 = vpop.eup %4377  ;;  %v1073_v23 = vsub.f32 1.5, %v1072_v12  ;;  %v1139_v30 = vadd.f32 %v4950_v5, %v1129_v22  ;;  %v1048_v35 = vadd.f32 1e-05, %v1041_v26 }
 0x16a   : > { %v1064_v11 = vmul.f32 %v4374_v53, %v1063_v6  ;;  %v1080_v13 = vmul.f32 %v4378_v8, %v1045_v56  ;;  %v4380_v17 = vpop.eup %4379  ;;  %vm1086_vm13 = vweird.f32 %v4378_v8 }
 0x16b   : > { %v4382_v25 = vpop.eup %4381  ;;  %v1100_v29 = vmul.f32 %v4380_v17, %v4929_v62  ;;  %vm1087_vm0 = vmor %vm1085_vm12, %vm1086_vm13  ;;  %v1074_v33 = vmul.f32 %v4376_v57, %v1073_v23  ;;  %4383 = vrsqrt.f32 %v1048_v35  ;;  %vm1106_vm3 = vweird.f32 %v4380_v17  ;;  %s5973_s30 = scalar_lea.vmem %s5972_s3, %s4756_s24 }
 0x16c   : > { %v1068_v14 = vsel %vm1067_vm11, %v4374_v53, %v1064_v11  ;;  %v1081_v15 = vmul.f32 %v4378_v8, %v1080_v13  ;;  %v1090_v32 = vmul.f32 %v4382_v25, %v4931_v0  ;;  %vm1096_vm6 = vweird.f32 %v4382_v25  ;;  %vm1107_vm7 = vmor %vm1105_vm2, %vm1106_vm3  ;;  %v4363_v11 = vld [vmem:[%s5971_s0] ss:$0 sm:$0xff]  ;;  %s5974_s0 = scalar_lea.vmem %s5914_s9, %s4756_s24 }
 0x16d   : > { %v1120_v21 = vmul.f32 %v1068_v14, %v4895_v18  ;;  %v1101_v38 = vmul.f32 %v4380_v17, %v1100_v29  ;;  %v1078_v40 = vsel %vm1077_vm1, %v4376_v57, %v1074_v33  ;;  %vm1097_vm8 = vmor %vm1095_vm5, %vm1096_vm6  ;;  %vm1115_vm9 = vweird.f32 %v1048_v35 }
 0x16e   : > { %v1082_v24 = vmul.f32 0.5, %v1081_v15  ;;  %v1091_v39 = vmul.f32 %v4382_v25, %v1090_v32  ;;  %v1121_v43 = vmul.f32 %v1078_v40, %v4884_v7  ;;  %vm1223_vm12 = vcmask 64512  }
 0x16f   : > { %v1130_v27 = vmul.f32 %v4941_v10, %v1120_v21  ;;  %v1102_v42 = vmul.f32 0.5, %v1101_v38  ;;  %vm1490_vm13 = vcmask 1043456  }
 0x170   : > { %v1083_v18 = vsub.f32 1.5, %v1082_v24  ;;  %v1092_v44 = vmul.f32 0.5, %v1091_v39  ;;  %v1131_v48 = vmul.f32 %v4941_v10, %v1121_v43 }
 0x171   : > { %v1140_v31 = vadd.f32 %v4950_v5, %v1130_v27  ;;  %v1103_v46 = vsub.f32 1.5, %v1102_v42  ;;  %v4384_v47 = vpop.eup %4383 }
 0x172   : > { %v1084_v34 = vmul.f32 %v4378_v8, %v1083_v18  ;;  %v1093_v49 = vsub.f32 1.5, %v1092_v44  ;;  %v1110_v51 = vmul.f32 %v4384_v47, %v1048_v35  ;;  %v1141_v7 = vadd.f32 %v4950_v5, %v1131_v48 }
 0x173   : > { %v1146_v36 = vpack.c.bf16 %v1140_v31, %v1139_v30  ;;  %vm1116_vm10 = vweird.f32 %v4384_v47 }
 0x174   : > { %v1088_v37 = vsel %vm1087_vm0, %v4378_v8, %v1084_v34  ;;  %v1094_v52 = vmul.f32 %v4382_v25, %v1093_v49  ;;  %v1111_v55 = vmul.f32 %v4384_v47, %v1110_v51  ;;  %vm1117_vm11 = vmor %vm1115_vm9, %vm1116_vm10  ;;  %vm2950_vm0 = vcmask 195584  }
 0x175   : > { %4104 = vmatmul.msk.bf16.vlgmr.msra.gmra.mxu0 %vm964_vm4, %v1146_v36  ;;  %v1122_v41 = vmul.f32 %v1088_v37, %v4899_v20  ;;  %v1104_v20 = vmul.f32 %v4380_v17, %v1103_v46 }
 0x176   : > { %v1098_v56 = vsel %vm1097_vm8, %v4382_v25, %v1094_v52  ;;  %v1112_v58 = vmul.f32 0.5, %v1111_v55 }
 0x177   : > { %v1132_v45 = vmul.f32 %v4941_v10, %v1122_v41  ;;  %v1108_v54 = vsel %vm1107_vm7, %v4380_v17, %v1104_v20  ;;  %v1123_v59 = vmul.f32 %v1098_v56, %v4878_v4 }
 0x178   : > { %v1124_v57 = vmul.f32 %v1108_v54, %v4897_v19  ;;  %v1113_v62 = vsub.f32 1.5, %v1112_v58 }
 0x179   : > { %v1142_v50 = vadd.f32 %v4950_v5, %v1132_v45  ;;  %v1133_v63 = vmul.f32 %v4941_v10, %v1123_v59 }
 0x17a   : > { %v1134_v60 = vmul.f32 %v4941_v10, %v1124_v57  ;;  %v1114_v1 = vmul.f32 %v4384_v47, %v1113_v62 }
 0x17b   : > { %v1147_v53 = vpack.c.bf16 %v1142_v50, %v1141_v7  ;;  %v1143_v2 = vadd.f32 %v4950_v5, %v1133_v63 }
 0x17c   : > { %v1144_v0 = vadd.f32 %v4950_v5, %v1134_v60  ;;  %v1118_v6 = vsel %vm1117_vm11, %v4384_v47, %v1114_v1 }
 0x17d   : > { %v1125_v4 = vmul.f32 %v1118_v6, %v4910_v28 }
 0x17e   : > { %v1148_v3 = vpack.c.bf16 %v1144_v0, %v1143_v2 }
 0x17f   : > { %v1135_v19 = vmul.f32 %v4941_v10, %v1125_v4 }
 0x181   : > { %v1145_v8 = vadd.f32 %v4950_v5, %v1135_v19 }
 0x183   : > { %v1149_v9 = vpack.c.bf16 %v1145_v8, %v1145_v8 }
 0x185   : > { %4105 = vmatmul.msk.bf16.gmra.mxu0 %vm964_vm4, %v1147_v53 }
 0x195   : > { %4106 = vmatmul.msk.bf16.gmra.mxu0 %vm964_vm4, %v1148_v3 }
 0x1a5   : > { %4107 = vmatmul.msk.bf16.gmra.mxu0 %vm964_vm4, %v1149_v9 }
 0x1f2   : > { %v1186_v12 = vpop.f32.mrf.mxu0 }
 0x1f3   : > { %v1187_v13 = vadd.f32 %v4363_v11, %v1186_v12 }
 0x1f5   : > { %v1211_v14 = vpack.c.bf16 %v1187_v13, %v1187_v13 }
 0x1f7   : > { %v1219_v15 = vunpack.c.l.b16 %v1211_v14 }
 0x1f9   : > { %v4985_v16 = vpack.c.b16 %v1219_v15, %v1219_v15 }
 0x1fa   : > { %v1188_v17 = vpop.f32.mrf.mxu0 }
 0x1fb   : > { %v1189_v28 = vadd.f32 %v4363_v11, %v1188_v17  ;;  %1221 = vrot.lane.b32.xlu2 %v4985_v16, %s4606_s1  ;;  %v1205_v17 = vlaneseq }
 0x1fd   : > { %v4989_v10 = vpack.c.bf16 %v1189_v28, %v1189_v28  ;;  %v1206_v28 = vshrl.u32 %v1205_v17, 7 }
 0x1ff   : > { %v1244_v21 = vunpack.c.l.b16 %v4989_v10 }
 0x201   : > { %v4992_v22 = vpack.c.b16 %v1244_v21, %v1244_v21 }
 0x202   : > { %v1191_v5 = vpop.f32.mrf.mxu0 }
 0x203   : > { %v1192_v23 = vadd.f32 %v4363_v11, %v1191_v5  ;;  %1246 = vrot.lane.b32.xlu0 %v4992_v22, %s4606_s1  ;;  %v4610_v5 = vmov -1e+09  }
 0x205   : > { %v4996_v24 = vpack.c.bf16 %v1192_v23, %v1192_v23 }
 0x207   : > { %v1268_v25 = vunpack.c.l.b16 %v4996_v24 }
 0x209   : > { %v4999_v26 = vpack.c.b16 %v1268_v25, %v1268_v25 }
 0x20a   : > { %v1193_v27 = vpop.f32.mrf.mxu0 }
 0x20b   : > { %v1194_v18 = vadd.f32 %v4363_v11, %v1193_v27  ;;  %1270 = vrot.lane.b32.xlu1 %v4999_v26, %s4606_s1 }
 0x20d   : > { %v5003_v29 = vpack.c.bf16 %v1194_v18, %v1194_v18 }
 0x20f   : > { %v1292_v30 = vunpack.c.l.b16 %v5003_v29 }
 0x211   : > { %v5006_v31 = vpack.c.b16 %v1292_v30, %v1292_v30 }
 0x212   : > { %v1196_v32 = vpop.f32.mrf.mxu0 }
 0x213   : > { %v1197_v33 = vadd.f32 %v4363_v11, %v1196_v32  ;;  %1294 = vrot.lane.b32.xlu0 %v5006_v31, %s4606_s1 }
 0x215   : > { %v1215_v34 = vpack.c.bf16 %v1197_v33, %v1197_v33 }
 0x217   : > { %v1316_v35 = vunpack.c.l.b16 %v1215_v34 }
 0x219   : > { %v5010_v36 = vpack.c.b16 %v1316_v35, %v1316_v35 }
 0x21a   : > { %v1198_v37 = vpop.f32.mrf.mxu0 }
 0x21b   : > { %v1199_v38 = vadd.f32 %v4363_v11, %v1198_v37  ;;  %1528 = vrot.lane.b32.xlu0 %v4999_v26, %s4607_s14  ;;  %1318 = vrot.lane.b32.xlu2 %v5010_v36, %s4606_s1 }
 0x21d   : > { %v1216_v39 = vpack.c.bf16 %v1199_v38, %v1199_v38 }
 0x21f   : > { %v1340_v40 = vunpack.c.l.b16 %v1216_v39 }
 0x221   : > { %v5015_v41 = vpack.c.b16 %v1340_v40, %v1340_v40 }
 0x222   : > { %v1201_v42 = vpop.f32.mrf.mxu0 }
 0x223   : > { %v1202_v43 = vadd.f32 %v4363_v11, %v1201_v42  ;;  %1658 = vrot.lane.b32.xlu0 %v4992_v22, %s4608_s17  ;;  %1342 = vrot.lane.b32.xlu2 %v5015_v41, %s4606_s1 }
 0x225   : > { %v1217_v44 = vpack.c.bf16 %v1202_v43, %v1202_v43 }
 0x227   : > { %v1364_v45 = vunpack.c.l.b16 %v1217_v44 }
 0x229   : > { %v5021_v46 = vpack.c.b16 %v1364_v45, %v1364_v45 }
 0x22a   : > { %v1203_v47 = vpop.f32.mrf.mxu0 }
 0x22b   : > { %1366 = vrot.lane.b32.xlu1 %v5021_v46, %s4606_s1  ;;  %1633 = vrot.lane.b32.xlu0 %v4985_v16, %s4609_s27 }
 0x22c   : > { %1485 = vrot.lane.b32.xlu2 %v4985_v16, %s4607_s14 }
 0x233   : > { %1507 = vrot.lane.b32.xlu1 %v4992_v22, %s4607_s14  ;;  %1612 = vrot.lane.b32.xlu0 %v5021_v46, %s4607_s14 }
 0x234   : > { %1591 = vrot.lane.b32.xlu2 %v5015_v41, %s4607_s14 }
 0x23b   : > { %1570 = vrot.lane.b32.xlu1 %v5010_v36, %s4607_s14 }
 0x23c   : > { %1681 = vrot.lane.b32.xlu2 %v4999_v26, %s4608_s17 }
 0x243   : > { %1549 = vrot.lane.b32.xlu1 %v5006_v31, %s4607_s14 }
 0x244   : > { %1656 = vrot.lane.b32.xlu2 %v4992_v22, %s4609_s27 }
 0x24b   : > { %1635 = vrot.lane.b32.xlu1 %v4985_v16, %s4608_s17 }
 0x253   : > { %1704 = vrot.lane.b32.xlu1 %v5006_v31, %s4608_s17 }
 0x255   : > { %v1222_v48 = vpop.permute.xlu2 %1221 }
 0x256   : > { %v1228_v49 = vsel %vm1223_vm12, %v1222_v48, 0 }
 0x257   : > { %1237 = vmatpush.bf16.xpose.msra.mxu3 %v1228_v49 }
 0x25e   : > { %4108 = vmatmul.msk.bf16.vlgmr.msra.gmra.mxu3 %vm1223_vm12, %v1211_v14 }
 0x275   : > { %v1247_v50 = vpop.permute.xlu0 %1246  ;;  %v1319_v20 = vpop.permute.xlu2 %1318 }
 0x276   : > { %v1252_v51 = vsel %vm1223_vm12, %v1247_v50, 0  ;;  %v1324_v7 = vsel %vm1223_vm12, %v1319_v20, 0 }
 0x277   : > { %1261 = vmatpush.bf16.xpose.msrb.mxu3 %v1252_v51  ;;  %1333 = vmatpush.bf16.xpose.msra.mxu2 %v1324_v7 }
 0x27d   : > { %v1271_v52 = vpop.permute.xlu1 %1270  ;;  %v1343_v53 = vpop.permute.xlu2 %1342 }
 0x27e   : > { %v1276_v54 = vsel %vm1223_vm12, %v1271_v52, 0  ;;  %v1348_v55 = vsel %vm1223_vm12, %v1343_v53, 0  ;;  %4109 = vmatmul.msk.bf16.vlgmr.msrb.gmra.mxu3 %vm1223_vm12, %v4989_v10  ;;  %4112 = vmatmul.msk.bf16.vlgmr.msra.gmra.mxu2 %vm1223_vm12, %v1215_v34  ;;  %v1208_v10 = vand.u32 127, %v1205_v17 }
 0x27f   : > { %1285 = vmatpush.bf16.xpose.msra.mxu3 %v1276_v54 }
 0x280   : > { %vm1209_vm14 = vcmp.le.s32.totalorder %v1208_v10, %v1206_v28 }
 0x281   : > { %v5071_v23 = vsel %vm1209_vm14, 0.0, %v4610_v5 }
 0x285   : > { %v1295_v56 = vpop.permute.xlu0 %1294 }
 0x286   : > { %v1486_v57 = vpop.permute.xlu2 %1485  ;;  %v1300_v58 = vsel %vm1223_vm12, %v1295_v56, 0 }
 0x287   : > { %1357 = vmatpush.bf16.xpose.msrb.mxu3 %v1348_v55  ;;  %1309 = vmatpush.bf16.xpose.msra.mxu1 %v1300_v58  ;;  %v1492_v59 = vsel %vm1490_vm13, %v1486_v57, 0 }
 0x288   : > { %1501 = vmatpush.bf16.msrb.mxu2 %v1492_v59 }
 0x28d   : > { %v1529_v60 = vpop.permute.xlu0 %1528 }
 0x28e   : > { %v5052_v62 = vpop.permute.xlu2 %1591  ;;  %4110 = vmatmul.msk.bf16.vlgmr.msra.gmra.mxu3 %vm1223_vm12, %v4996_v24  ;;  %4111 = vmatmul.msk.bf16.vlgmr.msra.gmra.mxu1 %vm1223_vm12, %v5003_v29  ;;  %v1534_v4 = vsel %vm1490_vm13, %v1529_v60, 0 }
 0x295   : > { %v5058_v63 = vpop.permute.xlu0 %1658 }
 0x296   : > { %v1682_v0 = vpop.permute.xlu2 %1681 }
 0x297   : > { %v1687_v1 = vsel %vm1223_vm12, %v1682_v0, 0 }
 0x298   : > { %1696 = vmatpush.bf16.xpose.msrb.mxu0 %v1687_v1 }
 0x29d   : > { %v1367_v2 = vpop.permute.xlu1 %1366  ;;  %v5061_v3 = vpop.permute.xlu0 %1633 }
 0x29e   : > { %4113 = vmatmul.msk.bf16.vlgmr.msrb.gmra.mxu3 %vm1223_vm12, %v1216_v39  ;;  %v1372_v6 = vsel %vm1223_vm12, %v1367_v2, 0  ;;  %v5089_v0 = vpop.permute.xlu2 %1656 }
 0x29f   : > { %1381 = vmatpush.bf16.xpose.msrb.mxu1 %v1372_v6 }
 0x2a5   : > { %v1508_v19 = vpop.permute.xlu1 %1507  ;;  %v1613_v8 = vpop.permute.xlu0 %1612 }
 0x2a6   : > { %v1513_v9 = vsel %vm1490_vm13, %v1508_v19, 0  ;;  %v1618_v11 = vsel %vm1490_vm13, %v1613_v8, 0  ;;  %4114 = vmatmul.msk.bf16.vlgmr.msrb.gmra.mxu1 %vm1223_vm12, %v1217_v44 }
 0x2a7   : > { %1543 = vmatpush.bf16.msra.mxu1 %v1534_v4  ;;  %1522 = vmatpush.bf16.msra.mxu3 %v1513_v9 }
 0x2ab   : > { %1627 = vmatpush.bf16.msrb.mxu1 %v1618_v11 }
 0x2ad   : > { %v1571_v12 = vpop.permute.xlu1 %1570 }
 0x2ae   : > { %v1576_v13 = vsel %vm1490_vm13, %v1571_v12, 0 }
 0x2af   : > { %1585 = vmatpush.bf16.msrb.mxu3 %v1576_v13 }
 0x2b5   : > { %v1550_v14 = vpop.permute.xlu1 %1549 }
 0x2b6   : > { %v1555_v15 = vsel %vm1490_vm13, %v1550_v14, 0 }
 0x2b7   : > { %1564 = vmatpush.bf16.msra.mxu2 %v1555_v15 }
 0x2bd   : > { %v1636_v8 = vpop.permute.xlu1 %1635 }
 0x2c5   : > { %v5092_v13 = vpop.permute.xlu1 %1704 }
 0x2e1   : > { %v1239_v21 = vpop.f32.mrf.mxu3 }
 0x2e2   : > { %v1387_v24 = vmul.f32 0.35355338, %v1239_v21 }
 0x2e4   : > { %v1394_v25 = vadd.f32 %v1387_v24, %v5071_v23 }
 0x2e6   : > { %v1401_v27 = vsel %vm1223_vm12, %v1394_v25, -inf }
 0x2e7   : > { %1402 = vmax.xlane.f32.xlu2 %v1401_v27 }
 0x2e9   : > { %v1241_v18 = vpop.f32.mrf.mxu3 }
 0x301   : > { %v1263_v29 = vpop.f32.mrf.mxu3  ;;  %v1335_v30 = vpop.f32.mrf.mxu2 }
 0x302   : > { %v1388_v32 = vmul.f32 0.35355338, %v1263_v29  ;;  %v1391_v34 = vmul.f32 0.35355338, %v1335_v30 }
 0x304   : > { %v1395_v33 = vadd.f32 %v1388_v32, %v5071_v23  ;;  %v1398_v39 = vadd.f32 %v1391_v34, %v5071_v23 }
 0x306   : > { %v1404_v35 = vsel %vm1223_vm12, %v1395_v33, -inf  ;;  %v1413_v43 = vsel %vm1223_vm12, %v1398_v39, -inf }
 0x307   : > { %1405 = vmax.xlane.f32.xlu0 %v1404_v35 }
 0x309   : > { %v1265_v37 = vpop.f32.mrf.mxu3  ;;  %v1337_v38 = vpop.f32.mrf.mxu2 }
 0x30b   : > { %v1311_v40 = vpop.f32.mrf.mxu1 }
 0x30c   : > { %v1390_v42 = vmul.f32 0.35355338, %v1311_v40 }
 0x30e   : > { %v1397_v44 = vadd.f32 %v1390_v42, %v5071_v23 }
 0x30f   : > { %1414 = vmax.xlane.f32.xlu0 %v1413_v43 }
 0x310   : > { %v1410_v45 = vsel %vm1223_vm12, %v1397_v44, -inf }
 0x311   : > { %1411 = vmax.xlane.f32.xlu2 %v1410_v45  ;;  %v1287_v47 = vpop.f32.mrf.mxu3 }
 0x312   : > { %v1389_v48 = vmul.f32 0.35355338, %v1287_v47 }
 0x313   : > { %v1313_v49 = vpop.f32.mrf.mxu1 }
 0x314   : > { %v1396_v50 = vadd.f32 %v1389_v48, %v5071_v23 }
 0x316   : > { %v1407_v20 = vsel %vm1223_vm12, %v1396_v50, -inf }
 0x317   : > { %1408 = vmax.xlane.f32.xlu1 %v1407_v20 }
 0x319   : > { %v1289_v51 = vpop.f32.mrf.mxu3 }
 0x321   : > { %v1359_v7 = vpop.f32.mrf.mxu3 }
 0x322   : > { %v1392_v52 = vmul.f32 0.35355338, %v1359_v7 }
 0x323   : > { %v1383_v53 = vpop.f32.mrf.mxu1 }
 0x324   : > { %v1393_v54 = vmul.f32 0.35355338, %v1383_v53  ;;  %v1399_v55 = vadd.f32 %v1392_v52, %v5071_v23  ;;  %v1641_v52 = vsel %vm1223_vm12, %v1636_v8, 0 }
 0x326   : > { %v1416_v56 = vsel %vm1223_vm12, %v1399_v55, -inf  ;;  %v1400_v57 = vadd.f32 %v1393_v54, %v5071_v23 }
 0x327   : > { %1417 = vmax.xlane.f32.xlu1 %v1416_v56 }
 0x328   : > { %v1419_v58 = vsel %vm1223_vm12, %v1400_v57, -inf }
 0x329   : > { %1420 = vmax.xlane.f32.xlu0 %v1419_v58  ;;  %v1361_v59 = vpop.f32.mrf.mxu3 }
 0x32a   : > { %v1597_v59 = vsel %vm1490_vm13, %v5052_v62, 0 }
 0x32b   : > { %v1385_v60 = vpop.f32.mrf.mxu1 }
 0x340   : > { %1679 = vrot.lane.b32.xlu1 %v4999_v26, %s4609_s27 }
 0x35a   : > { %v1403_v1 = vpop.xlane.xlu2 %1402 }
 0x35b   : > { %v1422_v2 = vsub.f32 %v1394_v25, %v1403_v1 }
 0x35d   : > { %v1429_v6 = vmul.f32 1.442695, %v1422_v2 }
 0x35f   : > { %4385 = vpow2.f32 %v1429_v6 }
 0x365   : > { %v4386_v4 = vpop.eup %4385 }
 0x366   : > { %v1443_v19 = vsel %vm1223_vm12, %v4386_v4, 0.0 }
 0x367   : > { %1444 = vadd.xlane.f32.xlu0 %v1443_v19 }
 0x37a   : > { %v1406_v9 = vpop.xlane.xlu0 %1405 }
 0x37b   : > { %v1423_v11 = vsub.f32 %v1395_v33, %v1406_v9 }
 0x37d   : > { %v1431_v12 = vmul.f32 1.442695, %v1423_v11 }
 0x37f   : > { %4387 = vpow2.f32 %v1431_v12 }
 0x382   : > { %v1415_v14 = vpop.xlane.xlu0 %1414 }
 0x383   : > { %v1426_v15 = vsub.f32 %v1398_v39, %v1415_v14 }
 0x384   : > { %v1412_v17 = vpop.xlane.xlu2 %1411 }
 0x385   : > { %v4388_v28 = vpop.eup %4387  ;;  %v1437_v10 = vmul.f32 1.442695, %v1426_v15  ;;  %v1425_v21 = vsub.f32 %v1397_v44, %v1412_v17  ;;  %v1664_v15 = vsel %vm1223_vm12, %v5058_v63, 0  ;;  %v1710_v17 = vsel %vm1223_vm12, %v5092_v13, 0 }
 0x386   : > { %v1446_v5 = vsel %vm1223_vm12, %v4388_v28, 0.0 }
 0x387   : > { %4389 = vpow2.f32 %v1437_v10  ;;  %v1435_v24 = vmul.f32 1.442695, %v1425_v21  ;;  %1447 = vadd.xlane.f32.xlu2 %v1446_v5 }
 0x389   : > { %4391 = vpow2.f32 %v1435_v24 }
 0x38a   : > { %v1409_v25 = vpop.xlane.xlu1 %1408 }
 0x38b   : > { %v1424_v27 = vsub.f32 %v1396_v50, %v1409_v25 }
 0x38d   : > { %v5095_v18 = vpop.eup %4389  ;;  %v1433_v29 = vmul.f32 1.442695, %v1424_v27 }
 0x38e   : > { %v1455_v30 = vsel %vm1223_vm12, %v5095_v18, 0.0 }
 0x38f   : > { %v4392_v32 = vpop.eup %4391  ;;  %4393 = vpow2.f32 %v1433_v29  ;;  %1456 = vadd.xlane.f32.xlu0 %v1455_v30 }
 0x390   : > { %v1452_v33 = vsel %vm1223_vm12, %v4392_v32, 0.0 }
 0x391   : > { %1453 = vadd.xlane.f32.xlu1 %v1452_v33 }
 0x395   : > { %v4394_v34 = vpop.eup %4393 }
 0x396   : > { %v1449_v35 = vsel %vm1223_vm12, %v4394_v34, 0.0 }
 0x397   : > { %1450 = vadd.xlane.f32.xlu2 %v1449_v35 }
 0x39a   : > { %v1418_v37 = vpop.xlane.xlu1 %1417 }
 0x39b   : > { %v1427_v43 = vsub.f32 %v1399_v55, %v1418_v37 }
 0x39c   : > { %v1421_v39 = vpop.xlane.xlu0 %1420 }
 0x39d   : > { %v1428_v40 = vsub.f32 %v1400_v57, %v1421_v39  ;;  %v1439_v45 = vmul.f32 1.442695, %v1427_v43 }
 0x39f   : > { %v1441_v42 = vmul.f32 1.442695, %v1428_v40 }
 0x3a1   : > { %4395 = vpow2.f32 %v1441_v42 }
 0x3a2   : > { %4397 = vpow2.f32 %v1439_v45 }
 0x3a3   : > { %1702 = vrot.lane.b32.xlu0 %v5006_v31, %s4609_s27 }
 0x3a7   : > { %v5110_v44 = vpop.eup %4395 }
 0x3a8   : > { %v1461_v47 = vsel %vm1223_vm12, %v5110_v44, 0.0  ;;  %v5114_v48 = vpop.eup %4397 }
 0x3a9   : > { %v1458_v49 = vsel %vm1223_vm12, %v5114_v48, 0.0 }
 0x3aa   : > { %1750 = vrot.lane.b32.xlu1 %v5015_v41, %s4608_s17 }
 0x3af   : > { %1727 = vrot.lane.b32.xlu2 %v5010_v36, %s4608_s17 }
 0x3b2   : > { %v1680_v38 = vpop.permute.xlu1 %1679  ;;  %1748 = vrot.lane.b32.xlu1 %v5015_v41, %s4609_s27 }
 0x3b3   : > { %4124 = vmatmul.msk.bf16.vlgmr.msrb.gmra.mxu0 %vm1223_vm12, %v1680_v38 }
 0x3cd   : > { %1462 = vadd.xlane.f32.xlu0 %v1461_v47 }
 0x3d8   : > { %1459 = vadd.xlane.f32.xlu2 %v1458_v49 }
 0x3da   : > { %v1445_v50 = vpop.xlane.xlu0 %1444 }
 0x3db   : > { %4399 = vrcp.f32 %v1445_v50 }
 0x3e1   : > { %v4400_v20 = vpop.eup %4399  ;;  %1773 = vrot.lane.b32.xlu0 %v5021_v46, %s4608_s17  ;;  %s5975_s17 = sld [smem:[#allocation16_spill]] }
 0x3e2   : > { %v1471_v51 = vmul.f32 %v4400_v20, %v4386_v4 }
 0x3e4   : > { %v1478_v7 = vpack.c.bf16 %v1471_v51, %v1471_v51 }
 0x3e6   : > { %4115 = vmatmul.msk.bf16.vlgmr.msrb.gmra.mxu2 %vm1223_vm12, %v1478_v7 }
 0x3e7   : > { %1650 = vmatpush.bf16.xpose.msrb.mxu2 %v1641_v52 }
 0x3e9   : > { %1771 = vrot.lane.b32.xlu0 %v5021_v46, %s4609_s27 }
 0x3f0   : > { %1725 = vrot.lane.b32.xlu2 %v5010_v36, %s4609_s27  ;;  %s5976_s27 = scalar_lea.vmem %s5975_s17, %s4756_s24  ;;  %s5978_s24 = sld [smem:[#allocation3_spill]] }
 0x3f1   : > { %1934 = vrot.lane.b32.xlu0 %v4999_v26, %s4611_s2 }
 0x3f6   : > { %p4227_p11 = scmp.ne.s32.totalorder %s5978_s24, 1 }
 0x3f9   : > { %1913 = vrot.lane.b32.xlu0 %v4992_v22, %s4611_s2 }
 0x3fa   : > { %v1448_v53 = vpop.xlane.xlu2 %1447 }
 0x3fb   : > { %4401 = vrcp.f32 %v1448_v53 }
 0x401   : > { %v4402_v54 = vpop.eup %4401  ;;  %2041 = vrot.lane.b32.xlu0 %v4985_v16, %s4612_s7 }
 0x402   : > { %v1472_v55 = vmul.f32 %v4402_v54, %v4388_v28  ;;  %v1457_v57 = vpop.xlane.xlu0 %1456 }
 0x404   : > { %v1479_v56 = vpack.c.bf16 %v1472_v55, %v1472_v55  ;;  %v1454_v58 = vpop.xlane.xlu1 %1453 }
 0x405   : > { %4403 = vrcp.f32 %v1454_v58 }
 0x406   : > { %4116 = vmatmul.msk.bf16.vlgmr.msra.gmra.mxu3 %vm1223_vm12, %v1479_v56  ;;  %4405 = vrcp.f32 %v1457_v57 }
 0x407   : > { %1606 = vmatpush.bf16.msra.mxu3 %v1597_v59 }
 0x409   : > { %1976 = vrot.lane.b32.xlu0 %v5010_v36, %s4611_s2 }
 0x40a   : > { %v1451_v60 = vpop.xlane.xlu2 %1450 }
 0x40b   : > { %v4404_v1 = vpop.eup %4403  ;;  %4407 = vrcp.f32 %v1451_v60 }
 0x40c   : > { %v1474_v2 = vmul.f32 %v4404_v1, %v4392_v32  ;;  %v4406_v6 = vpop.eup %4405 }
 0x40d   : > { %v1475_v19 = vmul.f32 %v4406_v6, %v5095_v18 }
 0x40e   : > { %v1481_v4 = vpack.c.bf16 %v1474_v2, %v1474_v2 }
 0x40f   : > { %v1482_v12 = vpack.c.bf16 %v1475_v19, %v1475_v19 }
 0x410   : > { %4118 = vmatmul.msk.bf16.vlgmr.msra.gmra.mxu2 %vm1223_vm12, %v1481_v4 }
 0x411   : > { %v4408_v8 = vpop.eup %4407  ;;  %2110 = vrot.lane.b32.xlu0 %v5006_v31, %s4612_s7 }
 0x412   : > { %v1473_v62 = vmul.f32 %v4408_v8, %v4394_v34  ;;  %v1728_v9 = vpop.permute.xlu2 %1727 }
 0x413   : > { %v1733_v11 = vsel %vm1223_vm12, %v1728_v9, 0 }
 0x414   : > { %v1480_v14 = vpack.c.bf16 %v1473_v62, %v1473_v62  ;;  %1742 = vmatpush.bf16.xpose.msra.mxu2 %v1733_v11 }
 0x415   : > { %v1703_v5 = vpop.permute.xlu0 %1702 }
 0x416   : > { %4117 = vmatmul.msk.bf16.vlgmr.msra.gmra.mxu1 %vm1223_vm12, %v1480_v14  ;;  %4119 = vmatmul.msk.bf16.vlgmr.msrb.gmra.mxu3 %vm1223_vm12, %v1482_v12 }
 0x417   : > { %1673 = vmatpush.bf16.xpose.msrb.mxu3 %v1664_v15  ;;  %1719 = vmatpush.bf16.xpose.msra.mxu1 %v1710_v17 }
 0x41c   : > { %v1751_v34 = vpop.permute.xlu1 %1750 }
 0x41d   : > { %v1756_v38 = vsel %vm1223_vm12, %v1751_v34, 0 }
 0x420   : > { %4122 = vmatmul.msk.bf16.vlgmr.msrb.gmra.mxu2 %vm1223_vm12, %v5061_v3 }
 0x430   : > { %v1698_v28 = vpop.f32.mrf.mxu0 }
 0x431   : > { %v1796_v10 = vmul.f32 0.35355338, %v1698_v28 }
 0x433   : > { %v5151_v21 = vadd.f32 %v1796_v10, %v5071_v23 }
 0x435   : > { %v1814_v63 = vsel %vm1223_vm12, %v5151_v21, -inf }
 0x436   : > { %1815 = vmax.xlane.f32.xlu2 %v1814_v63 }
 0x438   : > { %v1700_v13 = vpop.f32.mrf.mxu0 }
 0x440   : > { %v1463_v24 = vpop.xlane.xlu0 %1462 }
 0x441   : > { %4409 = vrcp.f32 %v1463_v24 }
 0x447   : > { %v4410_v25 = vpop.eup %4409 }
 0x448   : > { %v1477_v27 = vmul.f32 %v4410_v25, %v5110_v44 }
 0x44a   : > { %v1484_v18 = vpack.c.bf16 %v1477_v27, %v1477_v27 }
 0x44b   : > { %v1460_v29 = vpop.xlane.xlu2 %1459 }
 0x44c   : > { %4411 = vrcp.f32 %v1460_v29  ;;  %4121 = vmatmul.msk.bf16.vlgmr.msrb.gmra.mxu1 %vm1223_vm12, %v1484_v18 }
 0x44e   : > { %1955 = vrot.lane.b32.xlu2 %v5006_v31, %s4611_s2 }
 0x452   : > { %v4412_v3 = vpop.eup %4411 }
 0x453   : > { %v1476_v30 = vmul.f32 %v4412_v3, %v5114_v48  ;;  %v1774_v32 = vpop.permute.xlu0 %1773  ;;  %v1726_v33 = vpop.permute.xlu2 %1725 }
 0x454   : > { %v1779_v35 = vsel %vm1223_vm12, %v1774_v32, 0  ;;  %4126 = vmatmul.msk.bf16.vlgmr.msra.gmra.mxu2 %vm1223_vm12, %v1726_v33  ;;  %v1749_v48 = vpop.permute.xlu1 %1748 }
 0x455   : > { %v1483_v37 = vpack.c.bf16 %v1476_v30, %v1476_v30  ;;  %1788 = vmatpush.bf16.xpose.msra.mxu0 %v1779_v35 }
 0x457   : > { %4120 = vmatmul.msk.bf16.vlgmr.msra.gmra.mxu3 %vm1223_vm12, %v1483_v37 }
 0x458   : > { %1765 = vmatpush.bf16.xpose.msra.mxu3 %v1756_v38 }
 0x45b   : > { %v1772_v39 = vpop.permute.xlu0 %1771 }
 0x45c   : > { %4125 = vmatmul.msk.bf16.vlgmr.msra.gmra.mxu1 %vm1223_vm12, %v1703_v5  ;;  %4128 = vmatmul.msk.bf16.vlgmr.msra.gmra.mxu0 %vm1223_vm12, %v1772_v39 }
 0x463   : > { %v1935_v40 = vpop.permute.xlu0 %1934 }
 0x464   : > { %v1940_v42 = vsel %vm1490_vm13, %v1935_v40, 0 }
 0x467   : > { %4123 = vmatmul.msk.bf16.vlgmr.msrb.gmra.mxu3 %vm1223_vm12, %v5089_v0 }
 0x468   : > { %1949 = vmatpush.bf16.msrb.mxu3 %v1940_v42 }
 0x469   : > { %v5169_v43 = vpop.f32.mrf.mxu2 }
 0x46b   : > { %v1914_v44 = vpop.permute.xlu0 %1913 }
 0x46c   : > { %v1919_v45 = vsel %vm1490_vm13, %v1914_v44, 0 }
 0x46d   : > { %1928 = vmatpush.bf16.msrb.mxu2 %v1919_v45 }
 0x471   : > { %v1505_v47 = vpop.f32.mrf.mxu2 }
 0x473   : > { %v2042_v60 = vpop.permute.xlu0 %2041 }
 0x474   : > { %v2047_v6 = vsel %vm1223_vm12, %v2042_v60, 0 }
 0x477   : > { %4127 = vmatmul.msk.bf16.vlgmr.msra.gmra.mxu3 %vm1223_vm12, %v1749_v48 }
 0x47b   : > { %v1977_v37 = vpop.permute.xlu0 %1976 }
 0x47c   : > { %v1982_v60 = vsel %vm1490_vm13, %v1977_v37, 0 }
 0x483   : > { %v2111_v38 = vpop.permute.xlu0 %2110 }
 0x489   : > { %v5173_v49 = vpop.f32.mrf.mxu3 }
 0x491   : > { %v1526_v50 = vpop.f32.mrf.mxu3 }
 0x493   : > { %v5175_v20 = vpop.f32.mrf.mxu1  ;;  %v5177_v51 = vpop.f32.mrf.mxu2 }
 0x499   : > { %v5179_v7 = vpop.f32.mrf.mxu3 }
 0x49b   : > { %v1547_v0 = vpop.f32.mrf.mxu1  ;;  %v1568_v52 = vpop.f32.mrf.mxu2 }
 0x4a1   : > { %v1589_v53 = vpop.f32.mrf.mxu3 }
 0x4a3   : > { %v1652_v54 = vpop.f32.mrf.mxu2 }
 0x4a4   : > { %v1794_v55 = vmul.f32 0.35355338, %v1652_v54 }
 0x4a6   : > { %v5182_v56 = vadd.f32 %v1794_v55, %v5071_v23 }
 0x4a8   : > { %v1808_v57 = vsel %vm1223_vm12, %v5182_v56, -inf }
 0x4a9   : > { %1809 = vmax.xlane.f32.xlu0 %v1808_v57  ;;  %v1816_v58 = vpop.xlane.xlu2 %1815 }
 0x4aa   : > { %v1831_v8 = vsub.f32 %v5151_v21, %v1816_v58 }
 0x4ab   : > { %v1654_v59 = vpop.f32.mrf.mxu2 }
 0x4ac   : > { %v1840_v11 = vmul.f32 1.442695, %v1831_v8 }
 0x4ae   : > { %4413 = vpow2.f32 %v1840_v11 }
 0x4b1   : > { %v1956_v1 = vpop.permute.xlu2 %1955 }
 0x4b2   : > { %v1961_v2 = vsel %vm1490_vm13, %v1956_v1, 0 }
 0x4b3   : > { %1970 = vmatpush.bf16.msrb.mxu0 %v1961_v2 }
 0x4b4   : > { %v4414_v27 = vpop.eup %4413 }
 0x4b5   : > { %v1856_v18 = vsel %vm1223_vm12, %v4414_v27, 0.0 }
 0x4b7   : > { %2056 = vmatpush.bf16.xpose.msra.mxu0 %v2047_v6 }
 0x4c9   : > { %v5188_v4 = vpop.f32.mrf.mxu1 }
 0x4d1   : > { %v1631_v19 = vpop.f32.mrf.mxu1 }
 0x4d7   : > { %v1744_v62 = vpop.f32.mrf.mxu2 }
 0x4d8   : > { %v1798_v9 = vmul.f32 0.35355338, %v1744_v62 }
 0x4d9   : > { %v1721_v12 = vpop.f32.mrf.mxu1  ;;  %v1790_v14 = vpop.f32.mrf.mxu0 }
 0x4da   : > { %v1800_v15 = vmul.f32 0.35355338, %v1790_v14  ;;  %v5191_v17 = vpop.f32.mrf.mxu3  ;;  %v1805_v28 = vadd.f32 %v1798_v9, %v5071_v23  ;;  %v1797_v33 = vmul.f32 0.35355338, %v1721_v12 }
 0x4dc   : > { %v1820_v10 = vsel %vm1223_vm12, %v1805_v28, -inf  ;;  %v1807_v63 = vadd.f32 %v1800_v15, %v5071_v23  ;;  %v1804_v34 = vadd.f32 %v1797_v33, %v5071_v23 }
 0x4dd   : > { %1821 = vmax.xlane.f32.xlu0 %v1820_v10 }
 0x4de   : > { %v1826_v5 = vsel %vm1223_vm12, %v1807_v63, -inf  ;;  %v1817_v35 = vsel %vm1223_vm12, %v1804_v34, -inf }
 0x4df   : > { %1827 = vmax.xlane.f32.xlu1 %v1826_v5  ;;  %v1746_v21 = vpop.f32.mrf.mxu2 }
 0x4e1   : > { %v1723_v13 = vpop.f32.mrf.mxu1  ;;  %v1792_v24 = vpop.f32.mrf.mxu0 }
 0x4e2   : > { %v1610_v25 = vpop.f32.mrf.mxu3 }
 0x4e7   : > { %1857 = vadd.xlane.f32.xlu1 %v1856_v18 }
 0x4ea   : > { %v1675_v29 = vpop.f32.mrf.mxu3 }
 0x4eb   : > { %v1795_v62 = vmul.f32 0.35355338, %v1675_v29  ;;  %v2116_v29 = vsel %vm1223_vm12, %v2111_v38, 0 }
 0x4ed   : > { %v1802_v12 = vadd.f32 %v1795_v62, %v5071_v23 }
 0x4f1   : > { %2087 = vrot.lane.b32.xlu0 %v4999_v26, %s4612_s7 }
 0x4f2   : > { %v1677_v3 = vpop.f32.mrf.mxu3 }
 0x4fa   : > { %v1767_v30 = vpop.f32.mrf.mxu3 }
 0x4fb   : > { %v1799_v15 = vmul.f32 0.35355338, %v1767_v30 }
 0x500   : > { %1892 = vrot.lane.b32.xlu1 %v4985_v16, %s4611_s2 }
 0x502   : > { %v1769_v32 = vpop.f32.mrf.mxu3 }
 0x508   : > { %2039 = vrot.lane.b32.xlu1 %v4985_v16, %s4613_s15 }
 0x51c   : > { %v1810_v44 = vpop.xlane.xlu0 %1809 }
 0x51d   : > { %v1829_v14 = vsub.f32 %v5182_v56, %v1810_v44 }
 0x51f   : > { %v1836_v10 = vmul.f32 1.442695, %v1829_v14 }
 0x532   : > { %1818 = vmax.xlane.f32.xlu1 %v1817_v35 }
 0x54b   : > { %2064 = vrot.lane.b32.xlu1 %v4992_v22, %s4612_s7 }
 0x550   : > { %v1822_v50 = vpop.xlane.xlu0 %1821 }
 0x551   : > { %v1833_v53 = vsub.f32 %v1805_v28, %v1822_v50  ;;  %v1811_v28 = vsel %vm1223_vm12, %v1802_v12, -inf }
 0x552   : > { %v1828_v39 = vpop.xlane.xlu1 %1827 }
 0x553   : > { %v1835_v40 = vsub.f32 %v1807_v63, %v1828_v39  ;;  %v1844_v55 = vmul.f32 1.442695, %v1833_v53  ;;  %v1806_v63 = vadd.f32 %v1799_v15, %v5071_v23 }
 0x555   : > { %v1848_v42 = vmul.f32 1.442695, %v1835_v40  ;;  %v1823_v5 = vsel %vm1223_vm12, %v1806_v63, -inf }
 0x557   : > { %4415 = vpow2.f32 %v1848_v42 }
 0x55a   : > { %v1858_v45 = vpop.xlane.xlu1 %1857 }
 0x55b   : > { %4417 = vrcp.f32 %v1858_v45 }
 0x55c   : > { %4419 = vpow2.f32 %v1844_v55 }
 0x55d   : > { %v4416_v47 = vpop.eup %4415 }
 0x55e   : > { %v1868_v48 = vsel %vm1223_vm12, %v4416_v47, 0.0 }
 0x55f   : > { %1869 = vadd.xlane.f32.xlu2 %v1868_v48 }
 0x561   : > { %v4418_v0 = vpop.eup %4417 }
 0x562   : > { %v1880_v52 = vmul.f32 %v4418_v0, %v4414_v27  ;;  %v5210_v57 = vpop.eup %4419 }
 0x563   : > { %v1862_v1 = vsel %vm1223_vm12, %v5210_v57, 0.0  ;;  %v5246_v38 = vpop.permute.xlu0 %2087 }
 0x564   : > { %v1887_v54 = vpack.c.bf16 %v1880_v52, %v1880_v52 }
 0x566   : > { %4131 = vmatmul.msk.bf16.vlgmr.msrb.gmra.mxu3 %vm1223_vm12, %v1887_v54 }
 0x572   : > { %v1893_v58 = vpop.permute.xlu1 %1892 }
 0x573   : > { %v1898_v59 = vsel %vm1490_vm13, %v1893_v58, 0 }
 0x574   : > { %1907 = vmatpush.bf16.msrb.mxu1 %v1898_v59 }
 0x575   : > { %1863 = vadd.xlane.f32.xlu1 %v1862_v1 }
 0x577   : > { %2018 = vrot.lane.b32.xlu2 %v5021_v46, %s4611_s2 }
 0x578   : > { %1991 = vmatpush.bf16.msra.mxu1 %v1982_v60 }
 0x57a   : > { %v5224_v2 = vpop.permute.xlu1 %2039 }
 0x57f   : > { %1997 = vrot.lane.b32.xlu2 %v5015_v41, %s4611_s2 }
 0x587   : > { %2133 = vrot.lane.b32.xlu2 %v5010_v36, %s4612_s7 }
 0x58f   : > { %2108 = vrot.lane.b32.xlu2 %v5006_v31, %s4613_s15 }
 0x5a5   : > { %v1819_v6 = vpop.xlane.xlu1 %1818 }
 0x5a6   : > { %v1832_v19 = vsub.f32 %v1804_v34, %v1819_v6 }
 0x5a8   : > { %v1842_v8 = vmul.f32 1.442695, %v1832_v19 }
 0x5aa   : > { %4421 = vpow2.f32 %v1842_v8 }
 0x5ab   : > { %4423 = vpow2.f32 %v1836_v10 }
 0x5b0   : > { %v4422_v9 = vpop.eup %4421 }
 0x5b1   : > { %v1859_v11 = vsel %vm1223_vm12, %v4422_v9, 0.0  ;;  %v4424_v21 = vpop.eup %4423 }
 0x5b2   : > { %1860 = vadd.xlane.f32.xlu0 %v1859_v11  ;;  %v1850_v13 = vsel %vm1223_vm12, %v4424_v21, 0.0 }
 0x5b8   : > { %1812 = vmax.xlane.f32.xlu2 %v1811_v28 }
 0x5bd   : > { %v2065_v59 = vpop.permute.xlu1 %2064 }
 0x5c0   : > { %1824 = vmax.xlane.f32.xlu2 %v1823_v5 }
 0x5c6   : > { %2062 = vrot.lane.b32.xlu0 %v4992_v22, %s4613_s15 }
 0x5c8   : > { %1851 = vadd.xlane.f32.xlu2 %v1850_v13 }
 0x5d2   : > { %v1870_v24 = vpop.xlane.xlu2 %1869 }
 0x5d3   : > { %4425 = vrcp.f32 %v1870_v24 }
 0x5d9   : > { %v4426_v56 = vpop.eup %4425 }
 0x5da   : > { %v1884_v25 = vmul.f32 %v4426_v56, %v4416_v47  ;;  %v2019_v27 = vpop.permute.xlu2 %2018 }
 0x5db   : > { %v2024_v18 = vsel %vm1490_vm13, %v2019_v27, 0 }
 0x5dc   : > { %v1891_v3 = vpack.c.bf16 %v1884_v25, %v1884_v25  ;;  %2033 = vmatpush.bf16.msra.mxu3 %v2024_v18 }
 0x5df   : > { %4135 = vmatmul.msk.bf16.vlgmr.msra.gmra.mxu3 %vm1223_vm12, %v1891_v3  ;;  %v2093_v3 = vsel %vm1223_vm12, %v5246_v38, 0 }
 0x5e0   : > { %2125 = vmatpush.bf16.xpose.msrb.mxu3 %v2116_v29  ;;  %2085 = vrot.lane.b32.xlu2 %v4999_v26, %s4613_s15 }
 0x5e2   : > { %v1998_v30 = vpop.permute.xlu2 %1997 }
 0x5e3   : > { %v2003_v32 = vsel %vm1490_vm13, %v1998_v30, 0 }
 0x5e4   : > { %2012 = vmatpush.bf16.msra.mxu2 %v2003_v32 }
 0x5e8   : > { %2154 = vrot.lane.b32.xlu2 %v5015_v41, %s4613_s15  ;;  %v1864_v8 = vpop.xlane.xlu1 %1863 }
 0x5e9   : > { %v5243_v33 = vpop.f32.mrf.mxu3 }
 0x5ea   : > { %v2134_v34 = vpop.permute.xlu2 %2133 }
 0x5eb   : > { %v2139_v50 = vsel %vm1223_vm12, %v2134_v34, 0 }
 0x5f1   : > { %v1953_v35 = vpop.f32.mrf.mxu3 }
 0x5f2   : > { %v2109_v37 = vpop.permute.xlu2 %2108 }
 0x5f3   : > { %4139 = vmatmul.msk.bf16.vlgmr.msrb.gmra.mxu3 %vm1223_vm12, %v2109_v37 }
 0x625   : > { %v1861_v39 = vpop.xlane.xlu0 %1860 }
 0x626   : > { %4427 = vrcp.f32 %v1861_v39 }
 0x62b   : > { %v1813_v40 = vpop.xlane.xlu2 %1812 }
 0x62c   : > { %v4428_v42 = vpop.eup %4427  ;;  %v1830_v44 = vsub.f32 %v1802_v12, %v1813_v40 }
 0x62d   : > { %v1881_v45 = vmul.f32 %v4428_v42, %v4422_v9  ;;  %v2070_v9 = vsel %vm1223_vm12, %v2065_v59, 0 }
 0x62e   : > { %v1838_v47 = vmul.f32 1.442695, %v1830_v44 }
 0x62f   : > { %v1888_v48 = vpack.c.bf16 %v1881_v45, %v1881_v45 }
 0x630   : > { %4429 = vpow2.f32 %v1838_v47 }
 0x631   : > { %4132 = vmatmul.msk.bf16.vlgmr.msrb.gmra.mxu0 %vm1223_vm12, %v1888_v48 }
 0x632   : > { %2148 = vmatpush.bf16.xpose.msrb.mxu0 %v2139_v50 }
 0x633   : > { %v1825_v0 = vpop.xlane.xlu2 %1824 }
 0x634   : > { %v1834_v52 = vsub.f32 %v1806_v63, %v1825_v0 }
 0x636   : > { %v4430_v53 = vpop.eup %4429  ;;  %v1846_v54 = vmul.f32 1.442695, %v1834_v52 }
 0x637   : > { %v1853_v55 = vsel %vm1223_vm12, %v4430_v53, 0.0 }
 0x638   : > { %4431 = vpow2.f32 %v1846_v54  ;;  %1854 = vadd.xlane.f32.xlu1 %v1853_v55  ;;  %v2063_v14 = vpop.permute.xlu0 %2062 }
 0x63b   : > { %v1852_v58 = vpop.xlane.xlu2 %1851 }
 0x63c   : > { %4433 = vrcp.f32 %v1852_v58 }
 0x63d   : > { %4435 = vrcp.f32 %v1864_v8 }
 0x63e   : > { %v4432_v60 = vpop.eup %4431 }
 0x63f   : > { %v1865_v1 = vsel %vm1223_vm12, %v4432_v60, 0.0 }
 0x640   : > { %1866 = vadd.xlane.f32.xlu0 %v1865_v1 }
 0x641   : > { %4136 = vmatmul.msk.bf16.vlgmr.msra.gmra.mxu0 %vm1223_vm12, %v5224_v2 }
 0x642   : > { %v4434_v6 = vpop.eup %4433 }
 0x643   : > { %v1878_v19 = vmul.f32 %v4434_v6, %v4424_v21  ;;  %v4436_v11 = vpop.eup %4435  ;;  %v2086_v48 = vpop.permute.xlu2 %2085 }
 0x644   : > { %v1882_v12 = vmul.f32 %v4436_v11, %v5210_v57 }
 0x645   : > { %v1885_v62 = vpack.c.bf16 %v1878_v19, %v1878_v19 }
 0x646   : > { %v1889_v2 = vpack.c.bf16 %v1882_v12, %v1882_v12 }
 0x647   : > { %4129 = vmatmul.msk.bf16.vlgmr.msrb.gmra.mxu1 %vm1223_vm12, %v1885_v62 }
 0x648   : > { %2079 = vmatpush.bf16.xpose.msrb.mxu1 %v2070_v9 }
 0x651   : > { %2131 = vrot.lane.b32.xlu1 %v5010_v36, %s4613_s15 }
 0x654   : > { %2179 = vrot.lane.b32.xlu0 %v5021_v46, %s4612_s7 }
 0x657   : > { %4133 = vmatmul.msk.bf16.vlgmr.msra.gmra.mxu1 %vm1223_vm12, %v1889_v2 }
 0x659   : > { %2156 = vrot.lane.b32.xlu1 %v5015_v41, %s4612_s7 }
 0x65c   : > { %2382 = vrot.lane.b32.xlu0 %v5010_v36, %s4614_s18 }
 0x661   : > { %2177 = vrot.lane.b32.xlu1 %v5021_v46, %s4613_s15 }
 0x662   : > { %v5268_v57 = vpop.f32.mrf.mxu3 }
 0x664   : > { %2470 = vrot.lane.b32.xlu0 %v4992_v22, %s4615_s10 }
 0x667   : > { %4137 = vmatmul.msk.bf16.vlgmr.msrb.gmra.mxu1 %vm1223_vm12, %v2063_v14 }
 0x669   : > { %2298 = vrot.lane.b32.xlu1 %v4985_v16, %s4614_s18 }
 0x66a   : > { %v2037_v15 = vpop.f32.mrf.mxu3 }
 0x671   : > { %2319 = vrot.lane.b32.xlu1 %v4992_v22, %s4614_s18 }
 0x676   : > { %v2127_v28 = vpop.f32.mrf.mxu3 }
 0x677   : > { %v2203_v10 = vmul.f32 0.35355338, %v2127_v28 }
 0x679   : > { %2340 = vrot.lane.b32.xlu1 %v4999_v26, %s4614_s18  ;;  %v5280_v63 = vadd.f32 %v2203_v10, %v5071_v23 }
 0x67b   : > { %v2223_v5 = vsel %vm1223_vm12, %v5280_v63, -inf }
 0x67c   : > { %2224 = vmax.xlane.f32.xlu2 %v2223_v5 }
 0x67e   : > { %v2129_v21 = vpop.f32.mrf.mxu3 }
 0x694   : > { %2361 = vrot.lane.b32.xlu2 %v5006_v31, %s4614_s18 }
 0x6ab   : > { %v1855_v13 = vpop.xlane.xlu1 %1854 }
 0x6ac   : > { %4437 = vrcp.f32 %v1855_v13 }
 0x6ae   : > { %v5286_v24 = vpop.f32.mrf.mxu0 }
 0x6b2   : > { %v4438_v56 = vpop.eup %4437 }
 0x6b3   : > { %v1879_v25 = vmul.f32 %v4438_v56, %v4430_v53  ;;  %v1867_v18 = vpop.xlane.xlu0 %1866  ;;  %v2155_v53 = vpop.permute.xlu2 %2154 }
 0x6b4   : > { %4439 = vrcp.f32 %v1867_v18 }
 0x6b5   : > { %v1886_v27 = vpack.c.bf16 %v1879_v25, %v1879_v25 }
 0x6b6   : > { %v1974_v29 = vpop.f32.mrf.mxu0 }
 0x6b7   : > { %4130 = vmatmul.msk.bf16.vlgmr.msrb.gmra.mxu2 %vm1223_vm12, %v1886_v27 }
 0x6b8   : > { %2102 = vmatpush.bf16.xpose.msrb.mxu2 %v2093_v3 }
 0x6ba   : > { %v4440_v30 = vpop.eup %4439 }
 0x6bb   : > { %v1883_v35 = vmul.f32 %v4440_v30, %v4432_v60 }
 0x6bd   : > { %v1890_v38 = vpack.c.bf16 %v1883_v35, %v1883_v35 }
 0x6be   : > { %v2058_v32 = vpop.f32.mrf.mxu0 }
 0x6bf   : > { %v2200_v34 = vmul.f32 0.35355338, %v2058_v32 }
 0x6c1   : > { %v5292_v37 = vadd.f32 %v2200_v34, %v5071_v23 }
 0x6c3   : > { %v2132_v39 = vpop.permute.xlu1 %2131  ;;  %v2214_v40 = vsel %vm1223_vm12, %v5292_v37, -inf }
 0x6c4   : > { %4140 = vmatmul.msk.bf16.vlgmr.msrb.gmra.mxu0 %vm1223_vm12, %v2132_v39  ;;  %2215 = vmax.xlane.f32.xlu0 %v2214_v40  ;;  %v5297_v42 = vpop.f32.mrf.mxu1 }
 0x6c6   : > { %v2060_v44 = vpop.f32.mrf.mxu0  ;;  %v2180_v45 = vpop.permute.xlu0 %2179 }
 0x6c7   : > { %v2185_v47 = vsel %vm1223_vm12, %v2180_v45, 0  ;;  %4134 = vmatmul.msk.bf16.vlgmr.msra.gmra.mxu2 %vm1223_vm12, %v1890_v38 }
 0x6c8   : > { %2194 = vmatpush.bf16.xpose.msra.mxu2 %v2185_v47 }
 0x6cb   : > { %v2157_v50 = vpop.permute.xlu1 %2156 }
 0x6cc   : > { %v2162_v0 = vsel %vm1223_vm12, %v2157_v50, 0  ;;  %v1911_v52 = vpop.f32.mrf.mxu1 }
 0x6cd   : > { %2171 = vmatpush.bf16.xpose.msra.mxu1 %v2162_v0 }
 0x6ce   : > { %v2383_v58 = vpop.permute.xlu0 %2382 }
 0x6cf   : > { %v2388_v6 = vsel %vm1490_vm13, %v2383_v58, 0 }
 0x6d3   : > { %v2178_v54 = vpop.permute.xlu1 %2177 }
 0x6d4   : > { %v5302_v55 = vpop.f32.mrf.mxu1  ;;  %4141 = vmatmul.msk.bf16.vlgmr.msra.gmra.mxu1 %vm1223_vm12, %v2155_v53 }
 0x6d7   : > { %4138 = vmatmul.msk.bf16.vlgmr.msrb.gmra.mxu2 %vm1223_vm12, %v2086_v48 }
 0x6d8   : > { %2447 = vrot.lane.b32.xlu0 %v4985_v16, %s4615_s10 }
 0x6db   : > { %v2299_v59 = vpop.permute.xlu1 %2298 }
 0x6dc   : > { %v2304_v60 = vsel %vm1490_vm13, %v2299_v59, 0  ;;  %v1995_v1 = vpop.f32.mrf.mxu1 }
 0x6dd   : > { %2313 = vmatpush.bf16.msra.mxu3 %v2304_v60 }
 0x6e1   : > { %2397 = vmatpush.bf16.msrb.mxu3 %v2388_v6 }
 0x6e3   : > { %v2320_v19 = vpop.permute.xlu1 %2319 }
 0x6e4   : > { %v2325_v8 = vsel %vm1490_vm13, %v2320_v19, 0  ;;  %v2081_v62 = vpop.f32.mrf.mxu1 }
 0x6e5   : > { %v2201_v9 = vmul.f32 0.35355338, %v2081_v62  ;;  %2334 = vmatpush.bf16.msra.mxu0 %v2325_v8 }
 0x6e7   : > { %4142 = vmatmul.msk.bf16.vlgmr.msra.gmra.mxu2 %vm1223_vm12, %v2178_v54  ;;  %v2208_v11 = vadd.f32 %v2201_v9, %v5071_v23 }
 0x6e9   : > { %v2217_v12 = vsel %vm1223_vm12, %v2208_v11, -inf }
 0x6ea   : > { %2218 = vmax.xlane.f32.xlu1 %v2217_v12 }
 0x6eb   : > { %v2341_v2 = vpop.permute.xlu1 %2340 }
 0x6ec   : > { %v2346_v14 = vsel %vm1490_vm13, %v2341_v2, 0  ;;  %v2083_v15 = vpop.f32.mrf.mxu1 }
 0x6ed   : > { %2355 = vmatpush.bf16.msrb.mxu1 %v2346_v14 }
 0x6ef   : > { %v2225_v28 = vpop.xlane.xlu2 %2224 }
 0x6f0   : > { %v2238_v10 = vsub.f32 %v5280_v63, %v2225_v28  ;;  %v5328_v63 = vpop.permute.xlu0 %2470 }
 0x6f2   : > { %v2248_v5 = vmul.f32 1.442695, %v2238_v10 }
 0x6f4   : > { %4441 = vpow2.f32 %v2248_v5 }
 0x6f7   : > { %v2362_v21 = vpop.permute.xlu2 %2361 }
 0x6f8   : > { %v2367_v13 = vsel %vm1490_vm13, %v2362_v21, 0 }
 0x6f9   : > { %2376 = vmatpush.bf16.msrb.mxu2 %v2367_v13 }
 0x6fa   : > { %v4442_v56 = vpop.eup %4441 }
 0x6fb   : > { %v2265_v25 = vsel %vm1223_vm12, %v4442_v56, 0.0 }
 0x6fc   : > { %2266 = vadd.xlane.f32.xlu2 %v2265_v25 }
 0x714   : > { %2468 = vrot.lane.b32.xlu2 %v4992_v22, %s4616_s11 }
 0x71c   : > { %2403 = vrot.lane.b32.xlu2 %v5015_v41, %s4614_s18 }
 0x724   : > { %2445 = vrot.lane.b32.xlu2 %v4985_v16, %s4616_s11 }
 0x72c   : > { %2424 = vrot.lane.b32.xlu2 %v5021_v46, %s4614_s18  ;;  %s5983_s18 = sld [smem:[#allocation20_spill]] (!%p4227_p11) }
 0x734   : > { %2516 = vrot.lane.b32.xlu2 %v5006_v31, %s4615_s10 }
 0x737   : > { %v2216_v29 = vpop.xlane.xlu0 %2215 }
 0x738   : > { %v2235_v1 = vsub.f32 %v5292_v37, %v2216_v29 }
 0x73a   : > { %v5330_v27 = vpop.f32.mrf.mxu2  ;;  %v2242_v8 = vmul.f32 1.442695, %v2235_v1 }
 0x741   : > { %v2150_v18 = vpop.f32.mrf.mxu0 }
 0x742   : > { %v1932_v3 = vpop.f32.mrf.mxu2  ;;  %v2204_v44 = vmul.f32 0.35355338, %v2150_v18 }
 0x744   : > { %v2211_v48 = vadd.f32 %v2204_v44, %v5071_v23 }
 0x746   : > { %v2226_v53 = vsel %vm1223_vm12, %v2211_v48, -inf }
 0x749   : > { %v2152_v30 = vpop.f32.mrf.mxu0 }
 0x74a   : > { %v5332_v32 = vpop.f32.mrf.mxu2  ;;  %v2448_v34 = vpop.permute.xlu0 %2447 }
 0x74b   : > { %v2453_v35 = vsel %vm1223_vm12, %v2448_v34, 0 }
 0x74c   : > { %2462 = vmatpush.bf16.xpose.msra.mxu2 %v2453_v35 }
 0x751   : > { %v2173_v39 = vpop.f32.mrf.mxu1 }
 0x752   : > { %v2205_v40 = vmul.f32 0.35355338, %v2173_v39  ;;  %v2016_v38 = vpop.f32.mrf.mxu2 }
 0x754   : > { %v2212_v45 = vadd.f32 %v2205_v40, %v5071_v23 }
 0x756   : > { %v2229_v47 = vsel %vm1223_vm12, %v2212_v45, -inf }
 0x757   : > { %2230 = vmax.xlane.f32.xlu1 %v2229_v47 }
 0x759   : > { %v2175_v50 = vpop.f32.mrf.mxu1 }
 0x75a   : > { %v2104_v0 = vpop.f32.mrf.mxu2 }
 0x75b   : > { %v2202_v52 = vmul.f32 0.35355338, %v2104_v0 }
 0x75d   : > { %v2219_v54 = vpop.xlane.xlu1 %2218  ;;  %2227 = vmax.xlane.f32.xlu2 %v2226_v53  ;;  %v5340_v58 = vadd.f32 %v2202_v52, %v5071_v23 }
 0x75e   : > { %v2236_v59 = vsub.f32 %v2208_v11, %v2219_v54 }
 0x75f   : > { %v2220_v60 = vsel %vm1223_vm12, %v5340_v58, -inf }
 0x760   : > { %v2244_v6 = vmul.f32 1.442695, %v2236_v59  ;;  %2221 = vmax.xlane.f32.xlu0 %v2220_v60 }
 0x762   : > { %4443 = vpow2.f32 %v2244_v6  ;;  %v2106_v19 = vpop.f32.mrf.mxu2 }
 0x763   : > { %4445 = vpow2.f32 %v2242_v8 }
 0x768   : > { %v4444_v62 = vpop.eup %4443 }
 0x769   : > { %v2259_v9 = vsel %vm1223_vm12, %v4444_v62, 0.0  ;;  %v4446_v11 = vpop.eup %4445 }
 0x76a   : > { %2260 = vadd.xlane.f32.xlu0 %v2259_v9  ;;  %v2196_v12 = vpop.f32.mrf.mxu2  ;;  %v2256_v37 = vsel %vm1223_vm12, %v4446_v11, 0.0 }
 0x76b   : > { %v2206_v2 = vmul.f32 0.35355338, %v2196_v12 }
 0x76d   : > { %v2213_v14 = vadd.f32 %v2206_v2, %v5071_v23 }
 0x76f   : > { %v2267_v15 = vpop.xlane.xlu2 %2266  ;;  %v2232_v28 = vsel %vm1223_vm12, %v2213_v14, -inf }
 0x770   : > { %4447 = vrcp.f32 %v2267_v15  ;;  %2493 = vrot.lane.b32.xlu1 %v4999_v26, %s4615_s10  ;;  %2233 = vmax.xlane.f32.xlu2 %v2232_v28 }
 0x772   : > { %2257 = vadd.xlane.f32.xlu0 %v2256_v37  ;;  %v2198_v10 = vpop.f32.mrf.mxu2 }
 0x776   : > { %v4448_v5 = vpop.eup %4447 }
 0x777   : > { %v2287_v21 = vmul.f32 %v4448_v5, %v4442_v56  ;;  %v5351_v13 = vpop.permute.xlu2 %2468 }
 0x779   : > { %v2294_v25 = vpack.c.bf16 %v2287_v21, %v2287_v21 }
 0x77b   : > { %4146 = vmatmul.msk.bf16.vlgmr.msrb.gmra.mxu2 %vm1223_vm12, %v2294_v25 }
 0x77f   : > { %v2404_v18 = vpop.permute.xlu2 %2403 }
 0x780   : > { %v2409_v29 = vsel %vm1490_vm13, %v2404_v18, 0 }
 0x781   : > { %2418 = vmatpush.bf16.msrb.mxu0 %v2409_v29 }
 0x786   : > { %2491 = vrot.lane.b32.xlu0 %v4999_v26, %s4616_s11 }
 0x787   : > { %v2446_v3 = vpop.permute.xlu2 %2445 }
 0x78b   : > { %4150 = vmatmul.msk.bf16.vlgmr.msra.gmra.mxu2 %vm1223_vm12, %v2446_v3 }
 0x78f   : > { %v2425_v30 = vpop.permute.xlu2 %2424 }
 0x790   : > { %v2430_v34 = vsel %vm1490_vm13, %v2425_v30, 0 }
 0x791   : > { %2439 = vmatpush.bf16.msra.mxu1 %v2430_v34 }
 0x797   : > { %v5359_v56 = vpop.permute.xlu2 %2516 }
 0x7ca   : > { %v2231_v35 = vpop.xlane.xlu1 %2230 }
 0x7cb   : > { %v2240_v39 = vsub.f32 %v2212_v45, %v2231_v35 }
 0x7cd   : > { %v2252_v40 = vmul.f32 1.442695, %v2240_v39 }
 0x7cf   : > { %4449 = vpow2.f32 %v2252_v40 }
 0x7d0   : > { %v2228_v38 = vpop.xlane.xlu2 %2227 }
 0x7d1   : > { %v2239_v44 = vsub.f32 %v2211_v48, %v2228_v38 }
 0x7d3   : > { %v2250_v47 = vmul.f32 1.442695, %v2239_v44  ;;  %v2222_v0 = vpop.xlane.xlu0 %2221 }
 0x7d4   : > { %v2237_v5 = vsub.f32 %v5340_v58, %v2222_v0 }
 0x7d5   : > { %v4450_v50 = vpop.eup %4449  ;;  %4451 = vpow2.f32 %v2250_v47 }
 0x7d6   : > { %v2271_v52 = vsel %vm1223_vm12, %v4450_v50, 0.0  ;;  %v2246_v25 = vmul.f32 1.442695, %v2237_v5 }
 0x7d7   : > { %2272 = vadd.xlane.f32.xlu1 %v2271_v52 }
 0x7db   : > { %v4452_v53 = vpop.eup %4451 }
 0x7dc   : > { %v2268_v54 = vsel %vm1223_vm12, %v4452_v53, 0.0 }
 0x7dd   : > { %v2261_v59 = vpop.xlane.xlu0 %2260  ;;  %2269 = vadd.xlane.f32.xlu2 %v2268_v54 }
 0x7de   : > { %4453 = vrcp.f32 %v2261_v59 }
 0x7e2   : > { %v2494_v8 = vpop.permute.xlu1 %2493 }
 0x7e3   : > { %v2234_v60 = vpop.xlane.xlu2 %2233  ;;  %v2499_v12 = vsel %vm1223_vm12, %v2494_v8, 0 }
 0x7e4   : > { %v4454_v1 = vpop.eup %4453  ;;  %v2241_v45 = vsub.f32 %v2213_v14, %v2234_v60 }
 0x7e5   : > { %v2285_v6 = vmul.f32 %v4454_v1, %v4444_v62  ;;  %v2258_v19 = vpop.xlane.xlu0 %2257  ;;  %v2476_v62 = vsel %vm1223_vm12, %v5328_v63, 0 }
 0x7e6   : > { %v2254_v48 = vmul.f32 1.442695, %v2241_v45  ;;  %4455 = vrcp.f32 %v2258_v19 }
 0x7e7   : > { %v2292_v9 = vpack.c.bf16 %v2285_v6, %v2285_v6 }
 0x7e8   : > { %4457 = vpow2.f32 %v2254_v48 }
 0x7e9   : > { %4144 = vmatmul.msk.bf16.vlgmr.msra.gmra.mxu0 %vm1223_vm12, %v2292_v9  ;;  %4459 = vpow2.f32 %v2246_v25 }
 0x7ea   : > { %2508 = vmatpush.bf16.xpose.msra.mxu0 %v2499_v12 }
 0x7ec   : > { %v4456_v2 = vpop.eup %4455 }
 0x7ed   : > { %v2284_v15 = vmul.f32 %v4456_v2, %v4446_v11 }
 0x7ee   : > { %v5365_v28 = vpop.eup %4457 }
 0x7ef   : > { %v2291_v37 = vpack.c.bf16 %v2284_v15, %v2284_v15  ;;  %v2274_v14 = vsel %vm1223_vm12, %v5365_v28, 0.0  ;;  %v4460_v29 = vpop.eup %4459 }
 0x7f0   : > { %2539 = vrot.lane.b32.xlu1 %v5010_v36, %s4615_s10  ;;  %2275 = vadd.xlane.f32.xlu0 %v2274_v14  ;;  %v2262_v3 = vsel %vm1223_vm12, %v4460_v29, 0.0 }
 0x7f1   : > { %4143 = vmatmul.msk.bf16.vlgmr.msra.gmra.mxu3 %vm1223_vm12, %v2291_v37 }
 0x7f2   : > { %2485 = vmatpush.bf16.xpose.msra.mxu3 %v2476_v62 }
 0x7f5   : > { %2562 = vrot.lane.b32.xlu2 %v5015_v41, %s4615_s10 }
 0x7f8   : > { %2585 = vrot.lane.b32.xlu1 %v5021_v46, %s4615_s10  ;;  %v2492_v1 = vpop.permute.xlu0 %2491 }
 0x7fe   : > { %v5378_v11 = vpop.f32.mrf.mxu2 }
 0x804   : > { %2537 = vrot.lane.b32.xlu0 %v5010_v36, %s4616_s11 }
 0x806   : > { %v2380_v10 = vpop.f32.mrf.mxu2 }
 0x80e   : > { %v2464_v21 = vpop.f32.mrf.mxu2 }
 0x80f   : > { %v2606_v18 = vmul.f32 0.35355338, %v2464_v21  ;;  %v2522_v21 = vsel %vm1223_vm12, %v5359_v56, 0 }
 0x811   : > { %v2613_v30 = vadd.f32 %v2606_v18, %v5071_v23 }
 0x813   : > { %v2620_v34 = vsel %vm1223_vm12, %v2613_v30, -inf }
 0x816   : > { %v2466_v63 = vpop.f32.mrf.mxu2 }
 0x81e   : > { %2263 = vadd.xlane.f32.xlu2 %v2262_v3 }
 0x822   : > { %2621 = vmax.xlane.f32.xlu1 %v2620_v34 }
 0x836   : > { %2514 = vrot.lane.b32.xlu2 %v5006_v31, %s4616_s11 }
 0x83e   : > { %2560 = vrot.lane.b32.xlu2 %v5015_v41, %s4616_s11 }
 0x846   : > { %2583 = vrot.lane.b32.xlu2 %v5021_v46, %s4616_s11 }
 0x84a   : > { %v2273_v58 = vpop.xlane.xlu1 %2272 }
 0x84b   : > { %4461 = vrcp.f32 %v2273_v58 }
 0x850   : > { %v2270_v35 = vpop.xlane.xlu2 %2269 }
 0x851   : > { %v4462_v39 = vpop.eup %4461  ;;  %4463 = vrcp.f32 %v2270_v35 }
 0x852   : > { %v2289_v40 = vmul.f32 %v4462_v39, %v4450_v50 }
 0x854   : > { %v2296_v38 = vpack.c.bf16 %v2289_v40, %v2289_v40 }
 0x856   : > { %4148 = vmatmul.msk.bf16.vlgmr.msrb.gmra.mxu0 %vm1223_vm12, %v2296_v38 }
 0x857   : > { %v4464_v44 = vpop.eup %4463 }
 0x858   : > { %v2288_v47 = vmul.f32 %v4464_v44, %v4452_v53  ;;  %v2563_v0 = vpop.permute.xlu2 %2562 }
 0x859   : > { %v2568_v54 = vsel %vm1223_vm12, %v2563_v0, 0 }
 0x85a   : > { %v2295_v52 = vpack.c.bf16 %v2288_v47, %v2288_v47 }
 0x85c   : > { %4147 = vmatmul.msk.bf16.vlgmr.msrb.gmra.mxu3 %vm1223_vm12, %v2295_v52 }
 0x85d   : > { %2577 = vmatpush.bf16.xpose.msrb.mxu3 %v2568_v54 }
 0x862   : > { %v2540_v59 = vpop.permute.xlu1 %2539 }
 0x863   : > { %v2545_v60 = vsel %vm1223_vm12, %v2540_v59, 0  ;;  %v2276_v53 = vpop.xlane.xlu0 %2275 }
 0x864   : > { %2554 = vmatpush.bf16.xpose.msrb.mxu2 %v2545_v60 }
 0x866   : > { %v5396_v45 = vpop.f32.mrf.mxu0  ;;  %4152 = vmatmul.msk.bf16.vlgmr.msra.gmra.mxu0 %vm1223_vm12, %v2492_v1 }
 0x86a   : > { %v2586_v50 = vpop.permute.xlu1 %2585 }
 0x86b   : > { %v2591_v6 = vsel %vm1223_vm12, %v2586_v50, 0 }
 0x86c   : > { %4151 = vmatmul.msk.bf16.vlgmr.msra.gmra.mxu3 %vm1223_vm12, %v5351_v13  ;;  %2600 = vmatpush.bf16.xpose.msrb.mxu0 %v2591_v6 }
 0x86e   : > { %v2338_v19 = vpop.f32.mrf.mxu0 }
 0x874   : > { %v5402_v8 = vpop.f32.mrf.mxu3 }
 0x875   : > { %v4321_v48 = vpack.i.bf16 %v5396_v45, %v5402_v8  ;;  %v4346_v45 = vpack.i.bf16 %v5332_v32, %v5302_v55 }
 0x876   : > { %v2538_v9 = vpop.permute.xlu0 %2537 }
 0x877   : > { %4154 = vmatmul.msk.bf16.vlgmr.msrb.gmra.mxu2 %vm1223_vm12, %v2538_v9 }
 0x87c   : > { %v2317_v12 = vpop.f32.mrf.mxu3 }
 0x891   : > { %v2264_v2 = vpop.xlane.xlu2 %2263 }
 0x892   : > { %4465 = vrcp.f32 %v2264_v2 }
 0x895   : > { %v2622_v15 = vpop.xlane.xlu1 %2621 }
 0x896   : > { %v2641_v37 = vsub.f32 %v2613_v30, %v2622_v15 }
 0x898   : > { %v4466_v14 = vpop.eup %4465  ;;  %v2648_v62 = vmul.f32 1.442695, %v2641_v37 }
 0x899   : > { %v2286_v10 = vmul.f32 %v4466_v14, %v4460_v29  ;;  %v2515_v13 = vpop.permute.xlu2 %2514 }
 0x89a   : > { %4467 = vpow2.f32 %v2648_v62 }
 0x89b   : > { %v2293_v5 = vpack.c.bf16 %v2286_v10, %v2286_v10  ;;  %4469 = vrcp.f32 %v2276_v53 }
 0x89d   : > { %4145 = vmatmul.msk.bf16.vlgmr.msrb.gmra.mxu1 %vm1223_vm12, %v2293_v5 }
 0x89e   : > { %2531 = vmatpush.bf16.xpose.msrb.mxu1 %v2522_v21 }
 0x8a0   : > { %v5410_v25 = vpop.eup %4467 }
 0x8a1   : > { %v2561_v63 = vpop.permute.xlu2 %2560  ;;  %v2662_v18 = vsel %vm1223_vm12, %v5410_v25, 0.0  ;;  %v4470_v29 = vpop.eup %4469 }
 0x8a2   : > { %2663 = vadd.xlane.f32.xlu1 %v2662_v18  ;;  %4155 = vmatmul.msk.bf16.vlgmr.msrb.gmra.mxu3 %vm1223_vm12, %v2561_v63  ;;  %v2290_v3 = vmul.f32 %v4470_v29, %v5365_v28 }
 0x8a4   : > { %v2297_v56 = vpack.c.bf16 %v2290_v3, %v2290_v3 }
 0x8a9   : > { %v2584_v30 = vpop.permute.xlu2 %2583 }
 0x8aa   : > { %4156 = vmatmul.msk.bf16.vlgmr.msrb.gmra.mxu0 %vm1223_vm12, %v2584_v30 }
 0x8ad   : > { %4149 = vmatmul.msk.bf16.vlgmr.msra.gmra.mxu1 %vm1223_vm12, %v2297_v56 }
 0x8bd   : > { %4153 = vmatmul.msk.bf16.vlgmr.msrb.gmra.mxu1 %vm1223_vm12, %v2515_v13 }
 0x8d3   : > { %v5419_v34 = vpop.f32.mrf.mxu0 }
 0x8db   : > { %v2422_v58 = vpop.f32.mrf.mxu0 }
 0x8df   : > { %v5421_v35 = vpop.f32.mrf.mxu3 }
 0x8e0   : > { %v4351_v39 = vpack.i.bf16 %v5419_v34, %v5421_v35 }
 0x8e3   : > { %v2510_v40 = vpop.f32.mrf.mxu0 }
 0x8e4   : > { %v2608_v50 = vmul.f32 0.35355338, %v2510_v40 }
 0x8e6   : > { %v2615_v19 = vadd.f32 %v2608_v50, %v5071_v23 }
 0x8e7   : > { %v2401_v38 = vpop.f32.mrf.mxu3 }
 0x8e8   : > { %v2626_v9 = vsel %vm1223_vm12, %v2615_v19, -inf }
 0x8eb   : > { %v2512_v44 = vpop.f32.mrf.mxu0 }
 0x8ef   : > { %v2487_v28 = vpop.f32.mrf.mxu3 }
 0x8f0   : > { %v2607_v47 = vmul.f32 0.35355338, %v2487_v28 }
 0x8f2   : > { %v2614_v0 = vadd.f32 %v2607_v47, %v5071_v23 }
 0x8f4   : > { %v2623_v52 = vsel %vm1223_vm12, %v2614_v0, -inf }
 0x8f5   : > { %2624 = vmax.xlane.f32.xlu0 %v2623_v52 }
 0x8f7   : > { %v2489_v54 = vpop.f32.mrf.mxu3 }
 0x8fa   : > { %v2556_v59 = vpop.f32.mrf.mxu2 }
 0x8fb   : > { %v2610_v60 = vmul.f32 0.35355338, %v2556_v59 }
 0x8fd   : > { %v2617_v1 = vadd.f32 %v2610_v60, %v5071_v23 }
 0x8ff   : > { %v2632_v6 = vsel %vm1223_vm12, %v2617_v1, -inf }
 0x900   : > { %2633 = vmax.xlane.f32.xlu2 %v2632_v6 }
 0x902   : > { %v2558_v53 = vpop.f32.mrf.mxu2 }
 0x908   : > { %2627 = vmax.xlane.f32.xlu2 %v2626_v9 }
 0x91a   : > { %v5431_v12 = vpop.f32.mrf.mxu1 }
 0x920   : > { %2725 = vrot.lane.b32.xlu2 %v4992_v22, %s4617_s16 }
 0x922   : > { %v2359_v2 = vpop.f32.mrf.mxu1 }
 0x923   : > { %v2664_v2 = vpop.xlane.xlu1 %2663 }
 0x925   : > { %v2579_v15 = vpop.f32.mrf.mxu3 }
 0x926   : > { %v2611_v37 = vmul.f32 0.35355338, %v2579_v15 }
 0x927   : > { %v2602_v14 = vpop.f32.mrf.mxu0 }
 0x928   : > { %v2612_v62 = vmul.f32 0.35355338, %v2602_v14  ;;  %2746 = vrot.lane.b32.xlu2 %v4999_v26, %s4617_s16  ;;  %v2618_v10 = vadd.f32 %v2611_v37, %v5071_v23 }
 0x92a   : > { %v5438_v13 = vpop.f32.mrf.mxu1  ;;  %v2635_v5 = vsel %vm1223_vm12, %v2618_v10, -inf  ;;  %v5442_v21 = vadd.f32 %v2612_v62, %v5071_v23  ;;  %v4331_v62 = vpack.i.bf16 %v5286_v24, %v5243_v33 }
 0x92b   : > { %2636 = vmax.xlane.f32.xlu1 %v2635_v5 }
 0x92c   : > { %v2638_v22 = vsel %vm1223_vm12, %v5442_v21, -inf }
 0x92d   : > { %v2581_v63 = vpop.f32.mrf.mxu3  ;;  %2639 = vmax.xlane.f32.xlu0 %v2638_v22 }
 0x92f   : > { %v2604_v18 = vpop.f32.mrf.mxu0 }
 0x930   : > { %v4316_v18 = vpack.i.bf16 %v5330_v27, %v5297_v42 }
 0x932   : > { %v2443_v29 = vpop.f32.mrf.mxu1 }
 0x93a   : > { %v2533_v3 = vpop.f32.mrf.mxu1 }
 0x93b   : > { %v2609_v30 = vmul.f32 0.35355338, %v2533_v3 }
 0x93d   : > { %v5451_v56 = vadd.f32 %v2609_v30, %v5071_v23 }
 0x93f   : > { %v2629_v58 = vsel %vm1223_vm12, %v5451_v56, -inf }
 0x941   : > { %2767 = vrot.lane.b32.xlu0 %v5006_v31, %s4617_s16 }
 0x942   : > { %v2535_v26 = vpop.f32.mrf.mxu1 }
 0x944   : > { %2704 = vrot.lane.b32.xlu1 %v4985_v16, %s4617_s16 }
 0x968   : > { %v2625_v28 = vpop.xlane.xlu0 %2624 }
 0x969   : > { %v2642_v54 = vsub.f32 %v2614_v0, %v2625_v28 }
 0x96b   : > { %2630 = vmax.xlane.f32.xlu0 %v2629_v58  ;;  %v2650_v23 = vmul.f32 1.442695, %v2642_v54 }
 0x973   : > { %v2634_v40 = vpop.xlane.xlu2 %2633 }
 0x974   : > { %v2645_v38 = vsub.f32 %v2617_v1, %v2634_v40 }
 0x976   : > { %v2656_v44 = vmul.f32 1.442695, %v2645_v38 }
 0x978   : > { %4471 = vpow2.f32 %v2656_v44 }
 0x97b   : > { %v2628_v47 = vpop.xlane.xlu2 %2627 }
 0x97c   : > { %v2643_v52 = vsub.f32 %v2615_v19, %v2628_v47 }
 0x97e   : > { %v5455_v31 = vpop.eup %4471  ;;  %v2652_v59 = vmul.f32 1.442695, %v2643_v52 }
 0x97f   : > { %v2674_v16 = vsel %vm1223_vm12, %v5455_v31, 0.0 }
 0x980   : > { %4473 = vpow2.f32 %v2652_v59  ;;  %2675 = vadd.xlane.f32.xlu2 %v2674_v16 }
 0x981   : > { %4475 = vpow2.f32 %v2650_v23 }
 0x983   : > { %v2726_v60 = vpop.permute.xlu2 %2725 }
 0x984   : > { %v2731_v50 = vsel %vm1490_vm13, %v2726_v60, 0 }
 0x985   : > { %2740 = vmatpush.bf16.msra.mxu2 %v2731_v50 }
 0x986   : > { %v4474_v1 = vpop.eup %4473 }
 0x987   : > { %v2668_v6 = vsel %vm1223_vm12, %v4474_v1, 0.0  ;;  %v4476_v19 = vpop.eup %4475 }
 0x988   : > { %2669 = vadd.xlane.f32.xlu0 %v2668_v6  ;;  %v2665_v9 = vsel %vm1223_vm12, %v4476_v19, 0.0 }
 0x98b   : > { %v2747_v53 = vpop.permute.xlu2 %2746 }
 0x98c   : > { %v2752_v0 = vsel %vm1490_vm13, %v2747_v53, 0 }
 0x98d   : > { %2761 = vmatpush.bf16.msra.mxu3 %v2752_v0 }
 0x990   : > { %2666 = vadd.xlane.f32.xlu0 %v2665_v9 }
 0x998   : > { %2830 = vrot.lane.b32.xlu2 %v5021_v46, %s4617_s16 }
 0x99e   : > { %v2637_v15 = vpop.xlane.xlu1 %2636 }
 0x99f   : > { %v2646_v37 = vsub.f32 %v2618_v10, %v2637_v15 }
 0x9a0   : > { %4322 = vrot.lane.b32.xlu2 %v4321_v48, %s4618_s21  ;;  %v2640_v5 = vpop.xlane.xlu0 %2639 }
 0x9a1   : > { %v2658_v14 = vmul.f32 1.442695, %v2646_v37  ;;  %v2647_v52 = vsub.f32 %v5442_v21, %v2640_v5  ;;  %v4336_v21 = vpack.i.bf16 %v5378_v11, %v5431_v12 }
 0x9a3   : > { %4477 = vpow2.f32 %v2658_v14  ;;  %v2660_v16 = vmul.f32 1.442695, %v2647_v52 }
 0x9a4   : > { %2809 = vrot.lane.b32.xlu0 %v5015_v41, %s4617_s16  ;;  %4479 = vrcp.f32 %v2664_v2 }
 0x9a8   : > { %4332 = vrot.lane.b32.xlu2 %v4331_v62, %s4619_s23 }
 0x9a9   : > { %v4478_v46 = vpop.eup %4477 }
 0x9aa   : > { %v2677_v10 = vsel %vm1223_vm12, %v4478_v46, 0.0  ;;  %v4480_v8 = vpop.eup %4479 }
 0x9ab   : > { %2678 = vadd.xlane.f32.xlu1 %v2677_v10  ;;  %v2690_v33 = vmul.f32 %v4480_v8, %v5410_v25 }
 0x9ad   : > { %v2697_v63 = vpack.c.bf16 %v2690_v33, %v2690_v33 }
 0x9b0   : > { %4347 = vrot.lane.b32.xlu2 %v4346_v45, %s4619_s23 }
 0x9b3   : > { %v2768_v48 = vpop.permute.xlu0 %2767 }
 0x9b4   : > { %v2773_v41 = vsel %vm1490_vm13, %v2768_v48, 0 }
 0x9b5   : > { %2782 = vmatpush.bf16.msra.mxu0 %v2773_v41 }
 0x9b6   : > { %v2705_v24 = vpop.permute.xlu1 %2704 }
 0x9b7   : > { %v2710_v22 = vsel %vm1490_vm13, %v2705_v24, 0 }
 0x9b8   : > { %2719 = vmatpush.bf16.msra.mxu1 %v2710_v22  ;;  %v4246_v22 = vld [vmem:[%s4788_s25 + $0x8] sm:$0xff] }
 0x9b9   : > { %2995 = vmatpush.bf16.msrb.mxu0 %v4246_v22 }
 0x9bb   : > { %4157 = vmatmul.msk.bf16.vlgmr.msra.gmra.mxu1 %vm1223_vm12, %v2697_v63 }
 0x9c4   : > { %4317 = vrot.lane.b32.xlu1 %v4316_v18, %s4619_s23 }
 0x9de   : > { %v2631_v55 = vpop.xlane.xlu0 %2630 }
 0x9df   : > { %v2644_v32 = vsub.f32 %v5451_v56, %v2631_v55  ;;  %v4245_v55 = vld [vmem:[%s4788_s25] sm:$0xff] }
 0x9e0   : > { %2996 = vmatpush.bf16.msrb.mxu0 %v4245_v55 }
 0x9e1   : > { %v2654_v29 = vmul.f32 1.442695, %v2644_v32 }
 0x9e3   : > { %4481 = vpow2.f32 %v2654_v29 }
 0x9e9   : > { %v4482_v3 = vpop.eup %4481 }
 0x9ea   : > { %v2671_v25 = vsel %vm1223_vm12, %v4482_v3, 0.0 }
 0x9eb   : > { %2672 = vadd.xlane.f32.xlu0 %v2671_v25 }
 0x9f3   : > { %v2676_v26 = vpop.xlane.xlu2 %2675 }
 0x9fb   : > { %v2670_v30 = vpop.xlane.xlu0 %2669  ;;  %v2831_v58 = vpop.permute.xlu2 %2830 }
 0x9fc   : > { %4483 = vrcp.f32 %v2670_v30  ;;  %v2836_v40 = vsel %vm1490_vm13, %v2831_v58, 0 }
 0x9fd   : > { %2845 = vmatpush.bf16.msrb.mxu3 %v2836_v40 }
 0x9ff   : > { %2788 = vrot.lane.b32.xlu0 %v5010_v36, %s4617_s16  ;;  %s5984_s16 = sld [smem:[#allocation21_spill]] (!%p4227_p11) }
 0xa02   : > { %v4484_v42 = vpop.eup %4483 }
 0xa03   : > { %v2692_v27 = vmul.f32 %v4484_v42, %v4474_v1  ;;  %v2667_v38 = vpop.xlane.xlu0 %2666  ;;  %v4323_v40 = vpop.permute.xlu2 %4322 }
 0xa04   : > { %4485 = vrcp.f32 %v2667_v38  ;;  %v4325_v34 = vunpack.i.h.bf16 %v4323_v40  ;;  %v4324_v35 = vunpack.i.l.bf16 %v4323_v40 }
 0xa05   : > { %v2699_v56 = vpack.c.bf16 %v2692_v27, %v2692_v27  ;;  %4487 = vpow2.f32 %v2660_v16 }
 0xa07   : > { %4159 = vmatmul.msk.bf16.vlgmr.msra.gmra.mxu3 %vm1223_vm12, %v2699_v56 }
 0xa0a   : > { %v4486_v44 = vpop.eup %4485 }
 0xa0b   : > { %v2691_v28 = vmul.f32 %v4486_v44, %v4476_v19  ;;  %v4488_v23 = vpop.eup %4487 }
 0xa0c   : > { %v2680_v6 = vsel %vm1223_vm12, %v4488_v23, 0.0 }
 0xa0d   : > { %v2698_v47 = vpack.c.bf16 %v2691_v28, %v2691_v28 }
 0xa0f   : > { %4158 = vmatmul.msk.bf16.vlgmr.msra.gmra.mxu2 %vm1223_vm12, %v2698_v47 }
 0xa16   : > { %v2810_v54 = vpop.permute.xlu0 %2809 }
 0xa17   : > { %v2815_v59 = vsel %vm1490_vm13, %v2810_v54, 0  ;;  %v4333_v54 = vpop.permute.xlu2 %4332 }
 0xa18   : > { %2824 = vmatpush.bf16.msrb.mxu2 %v2815_v59  ;;  %v4335_v16 = vunpack.i.h.bf16 %v4333_v54 }
 0xa1e   : > { %v2679_v36 = vpop.xlane.xlu1 %2678 }
 0xa1f   : > { %4489 = vrcp.f32 %v2679_v36  ;;  %v4334_v36 = vunpack.i.l.bf16 %v4333_v54 }
 0xa25   : > { %v4490_v60 = vpop.eup %4489 }
 0xa26   : > { %v2695_v50 = vmul.f32 %v4490_v60, %v4478_v46 }
 0xa28   : > { %v2702_v1 = vpack.c.bf16 %v2695_v50, %v2695_v50 }
 0xa29   : > { %2681 = vadd.xlane.f32.xlu0 %v2680_v6  ;;  %v2937_v6 = vsel %vm1223_vm12, %v5175_v20, %v4334_v36 }
 0xa2a   : > { %4162 = vmatmul.msk.bf16.vlgmr.msrb.gmra.mxu2 %vm1223_vm12, %v2702_v1  ;;  %v2938_v1 = vsel %vm1223_vm12, %v5177_v51, %v4335_v16 }
 0xa38   : > { %v2721_v53 = vpop.f32.mrf.mxu1 }
 0xa3d   : > { %4337 = vrot.lane.b32.xlu0 %v4336_v21, %s4618_s21 }
 0xa40   : > { %v2723_v19 = vpop.f32.mrf.mxu1 }
 0xa45   : > { %2898 = vrot.lane.b32.xlu0 %v5438_v13, %s4618_s21 }
 0xa5e   : > { %v2673_v0 = vpop.xlane.xlu0 %2672 }
 0xa5f   : > { %4491 = vrcp.f32 %v2673_v0 }
 0xa60   : > { %4493 = vrcp.f32 %v2676_v26  ;;  %v4318_v26 = vpop.permute.xlu1 %4317 }
 0xa61   : > { %v4320_v30 = vunpack.i.h.bf16 %v4318_v26  ;;  %v4319_v58 = vunpack.i.l.bf16 %v4318_v26 }
 0xa63   : > { %v2936_v42 = vsel %vm1223_vm12, %v5173_v49, %v4320_v30  ;;  %v2935_v27 = vsel %vm1223_vm12, %v5169_v43, %v4319_v58  ;;  %v4540_v58 = vld [vmem:[#allocation2 + $0x8] sm:$0xff] }
 0xa64   : > { %v2944_v44 = vsel %vm2942_vm15, %v2936_v42, %v4325_v34 }
 0xa65   : > { %v4492_v9 = vpop.eup %4491 }
 0xa66   : > { %v2693_v2 = vmul.f32 %v4492_v9, %v4482_v3  ;;  %v4494_v37 = vpop.eup %4493 }
 0xa67   : > { %v2694_v14 = vmul.f32 %v4494_v37, %v5455_v31 }
 0xa68   : > { %v2700_v15 = vpack.c.bf16 %v2693_v2, %v2693_v2 }
 0xa69   : > { %v2701_v12 = vpack.c.bf16 %v2694_v14, %v2694_v14 }
 0xa6a   : > { %4160 = vmatmul.msk.bf16.vlgmr.msra.gmra.mxu0 %vm1223_vm12, %v2700_v15  ;;  %v4348_v15 = vpop.permute.xlu2 %4347 }
 0xa6b   : > { %v4349_v51 = vunpack.i.l.bf16 %v4348_v15 }
 0xa71   : > { %v2789_v62 = vpop.permute.xlu0 %2788 }
 0xa72   : > { %v2794_v11 = vsel %vm1490_vm13, %v2789_v62, 0  ;;  %v4350_v62 = vunpack.i.h.bf16 %v4348_v15 }
 0xa73   : > { %2803 = vmatpush.bf16.msrb.mxu1 %v2794_v11 }
 0xa76   : > { %4161 = vmatmul.msk.bf16.vlgmr.msrb.gmra.mxu1 %vm1223_vm12, %v2701_v12 }
 0xa8a   : > { %v2763_v13 = vpop.f32.mrf.mxu3 }
 0xa92   : > { %v2742_v46 = vpop.f32.mrf.mxu2  ;;  %v2765_v10 = vpop.f32.mrf.mxu3 }
 0xa93   : > { %v4326_v5 = vpack.i.bf16 %v2742_v46, %v2721_v53  ;;  %v2939_v46 = vsel %vm1223_vm12, %v5179_v7, %v4349_v51 }
 0xa95   : > { %4327 = vrot.lane.b32.xlu1 %v4326_v5, %s4620_s28 }
 0xa9a   : > { %v2744_v45 = vpop.f32.mrf.mxu2 }
 0xa9c   : > { %v2682_v8 = vpop.xlane.xlu0 %2681 }
 0xa9d   : > { %4495 = vrcp.f32 %v2682_v8 }
 0xaa3   : > { %v4496_v31 = vpop.eup %4495 }
 0xaa4   : > { %v2696_v48 = vmul.f32 %v4496_v31, %v4488_v23 }
 0xaa6   : > { %v2703_v41 = vpack.c.bf16 %v2696_v48, %v2696_v48 }
 0xaa8   : > { %4163 = vmatmul.msk.bf16.vlgmr.msrb.gmra.mxu3 %vm1223_vm12, %v2703_v41 }
 0xaad   : > { %v2826_v33 = vpop.f32.mrf.mxu2 }
 0xaaf   : > { %v4338_v59 = vpop.permute.xlu0 %4337 }
 0xab0   : > { %v4340_v23 = vunpack.i.h.bf16 %v4338_v59  ;;  %v4339_v60 = vunpack.i.l.bf16 %v4338_v59 }
 0xab2   : > { %v2945_v19 = vsel %vm2942_vm15, %v2937_v6, %v4339_v60  ;;  %v2946_v0 = vsel %vm2942_vm15, %v2938_v1, %v4340_v23  ;;  %v4544_v23 = vld [vmem:[#allocation2 + $0x28] sm:$0xff] }
 0xab5   : > { %v2828_v24 = vpop.f32.mrf.mxu2 }
 0xab7   : > { %v2899_v24 = vpop.permute.xlu0 %2898 }
 0xae7   : > { %v2784_v63 = vpop.f32.mrf.mxu0 }
 0xae8   : > { %v4341_v18 = vpack.i.bf16 %v2784_v63, %v2763_v13  ;;  %v2940_v13 = vsel %vm1223_vm12, %v5191_v17, %v4350_v62 }
 0xaea   : > { %4342 = vrot.lane.b32.xlu1 %v4341_v18, %s4620_s28  ;;  %v4364_v18 = vld [vmem:[%s5973_s30] ss:$0 sm:$0xff] }
 0xaef   : > { %v2786_v32 = vpop.f32.mrf.mxu0 }
 0xaf2   : > { %4352 = vrot.lane.b32.xlu1 %v4351_v39, %s4618_s21 }
 0xaf3   : > { %v2805_v29 = vpop.f32.mrf.mxu1 }
 0xaf4   : > { %v4356_v3 = vpack.i.bf16 %v2826_v33, %v2805_v29 }
 0xaf6   : > { %4357 = vrot.lane.b32.xlu2 %v4356_v3, %s4620_s28  ;;  %v4539_v3 = vld [vmem:[#allocation2] sm:$0xff] }
 0xafa   : > { %2870 = vrot.lane.b32.xlu1 %v5268_v57, %s4619_s23  ;;  %v2943_v57 = vsel %vm2942_vm15, %v2935_v27, %v4324_v35  ;;  %v4541_v35 = vld [vmem:[#allocation2 + $0x10] sm:$0xff] }
 0xafb   : > { %v2807_v25 = vpop.f32.mrf.mxu1 }
 0xb07   : > { %v4328_v39 = vpop.permute.xlu1 %4327 }
 0xb08   : > { %v4330_v38 = vunpack.i.h.bf16 %v4328_v39  ;;  %v4329_v56 = vunpack.i.l.bf16 %v4328_v39 }
 0xb0a   : > { %v2951_v28 = vsel %vm2950_vm0, %v2943_v57, %v4329_v56  ;;  %v2952_v47 = vsel %vm2950_vm0, %v2944_v44, %v4330_v38  ;;  %v4542_v44 = vld [vmem:[#allocation2 + $0x18] sm:$0xff] }
 0xb0b   : > { %v2958_v52 = vpack.c.bf16 %v2952_v47, %v2951_v28 }
 0xb0d   : > { %4172 = vmatmul.msk.bf16.vlgmr.msrb.gmra.mxu0 %vm964_vm4, %v2958_v52 }
 0xb2b   : > { %v2847_v49 = vpop.f32.mrf.mxu3 }
 0xb2c   : > { %2926 = vrot.lane.b32.xlu2 %v2847_v49, %s4620_s28  ;;  %s5987_s28 = sld [smem:[#allocation23_spill]] (!%p4227_p11) }
 0xb33   : > { %v2849_v43 = vpop.f32.mrf.mxu3 }
 0xb34   : > { %v4543_v43 = vld [vmem:[#allocation2 + $0x20] sm:$0xff] }
 0xb50   : > { %v4358_v20 = vpop.permute.xlu2 %4357 }
 0xb51   : > { %v4360_v45 = vunpack.i.h.bf16 %v4358_v20  ;;  %v4359_v8 = vunpack.i.l.bf16 %v4358_v20 }
 0xb5c   : > { %v4343_v50 = vpop.permute.xlu1 %4342 }
 0xb5d   : > { %v4345_v53 = vunpack.i.h.bf16 %v4343_v50  ;;  %v4344_v21 = vunpack.i.l.bf16 %v4343_v50 }
 0xb5f   : > { %v2953_v9 = vsel %vm2950_vm0, %v2945_v19, %v4344_v21  ;;  %v2954_v2 = vsel %vm2950_vm0, %v2946_v0, %v4345_v53 }
 0xb60   : > { %v2959_v37 = vpack.c.bf16 %v2954_v2, %v2953_v9  ;;  %v4545_v9 = vld [vmem:[#allocation2 + $0x30] sm:$0xff] }
 0xb62   : > { %4173 = vmatmul.msk.bf16.gmra.mxu0 %vm964_vm4, %v2959_v37 }
 0xb64   : > { %v4353_v14 = vpop.permute.xlu1 %4352 }
 0xb65   : > { %v4355_v11 = vunpack.i.h.bf16 %v4353_v14  ;;  %v4354_v12 = vunpack.i.l.bf16 %v4353_v14 }
 0xb67   : > { %v2947_v10 = vsel %vm2942_vm15, %v2939_v46, %v4354_v12  ;;  %v2948_v5 = vsel %vm2942_vm15, %v2940_v13, %v4355_v11 }
 0xb68   : > { %v2955_v31 = vsel %vm2950_vm0, %v2947_v10, %v4359_v8  ;;  %v2956_v48 = vsel %vm2950_vm0, %v2948_v5, %v4360_v45 }
 0xb69   : > { %v2960_v41 = vpack.c.bf16 %v2956_v48, %v2955_v31 }
 0xb6c   : > { %v2871_v33 = vpop.permute.xlu1 %2870 }
 0xb6d   : > { %v2941_v17 = vsel %vm1223_vm12, %v5188_v4, %v2871_v33 }
 0xb6e   : > { %v2949_v7 = vsel %vm2942_vm15, %v2941_v17, %v2899_v24 }
 0xb72   : > { %4174 = vmatmul.msk.bf16.gmra.mxu0 %vm964_vm4, %v2960_v41 }
 0xb86   : > { %v2927_v22 = vpop.permute.xlu2 %2926 }
 0xb87   : > { %v2957_v63 = vsel %vm2950_vm0, %v2949_v7, %v2927_v22 }
 0xb88   : > { %v2961_v55 = vpack.c.bf16 %v2957_v63, %v2957_v63 }
 0xb8a   : > { %v2998_v32 = vpop.f32.mrf.mxu0  ;;  %4175 = vmatmul.msk.bf16.gmra.mxu0 %vm964_vm4, %v2961_v55 }
 0xb8b   : > { %v2999_v29 = vadd.f32 %v4364_v18, %v2998_v32 }
 0xb8d   : > { %v5555_v25 = vadd.f32 %v4539_v3, %v2999_v29 }
 0xb8f   : > { %v3024_v4 = vsel %vm964_vm4, %v5555_v25, 0.0 }
 0xb90   : > { %3025 = vadd.xlane.f32.xlu1 %v3024_v4  ;;  %v4248_v4 = vld [vmem:[%s4805_s19 + $0x8] sm:$0xff] }
 0xb91   : > { %3235 = vmatpush.bf16.msra.mxu1 %v4248_v4 }
 0xb92   : > { %v3000_v26 = vpop.f32.mrf.mxu0 }
 0xb93   : > { %v3001_v30 = vadd.f32 %v4364_v18, %v3000_v26 }
 0xb95   : > { %v5559_v40 = vadd.f32 %v4540_v58, %v3001_v30 }
 0xb97   : > { %v3027_v42 = vsel %vm964_vm4, %v5559_v40, 0.0 }
 0xb98   : > { %3028 = vadd.xlane.f32.xlu0 %v3027_v42 }
 0xbdf   : > { %v3003_v27 = vpop.f32.mrf.mxu0 }
 0xbe0   : > { %v3004_v34 = vadd.f32 %v4364_v18, %v3003_v27 }
 0xbe2   : > { %v5563_v39 = vadd.f32 %v4541_v35, %v3004_v34  ;;  %v4247_v34 = vld [vmem:[%s4805_s19] sm:$0xff] }
 0xbe3   : > { %3236 = vmatpush.bf16.msra.mxu1 %v4247_v34 }
 0xbe4   : > { %v3030_v38 = vsel %vm964_vm4, %v5563_v39, 0.0 }
 0xbe5   : > { %3031 = vadd.xlane.f32.xlu2 %v3030_v38 }
 0xbe7   : > { %v3005_v56 = vpop.f32.mrf.mxu0 }
 0xbe8   : > { %v3006_v57 = vadd.f32 %v4364_v18, %v3005_v56 }
 0xbea   : > { %v5567_v28 = vadd.f32 %v4542_v44, %v3006_v57 }
 0xbec   : > { %v3033_v47 = vsel %vm964_vm4, %v5567_v28, 0.0 }
 0xbed   : > { %3034 = vadd.xlane.f32.xlu1 %v3033_v47 }
 0xbef   : > { %v3008_v52 = vpop.f32.mrf.mxu0 }
 0xbf0   : > { %v3009_v49 = vadd.f32 %v4364_v18, %v3008_v52 }
 0xbf2   : > { %v5571_v54 = vadd.f32 %v4543_v43, %v3009_v49 }
 0xbf4   : > { %v3036_v59 = vsel %vm964_vm4, %v5571_v54, 0.0 }
 0xbf5   : > { %3037 = vadd.xlane.f32.xlu0 %v3036_v59 }
 0xbf7   : > { %v3010_v16 = vpop.f32.mrf.mxu0 }
 0xbf8   : > { %v3011_v36 = vadd.f32 %v4364_v18, %v3010_v16 }
 0xbfa   : > { %v5575_v60 = vadd.f32 %v4544_v23, %v3011_v36 }
 0xbfc   : > { %v3039_v50 = vsel %vm964_vm4, %v5575_v60, 0.0 }
 0xbfd   : > { %3040 = vadd.xlane.f32.xlu2 %v3039_v50 }
 0xc03   : > { %v3026_v1 = vpop.xlane.xlu1 %3025 }
 0xc04   : > { %v3045_v6 = vmul.f32 %v3026_v1, %v4873_v61 }
 0xc06   : > { %v5581_v53 = vsub.f32 %v5555_v25, %v3045_v6 }
 0xc07   : > { %v3013_v21 = vpop.f32.mrf.mxu0 }
 0xc08   : > { %v3014_v19 = vadd.f32 %v4364_v18, %v3013_v21  ;;  %v3059_v0 = vmul.f32 %v5581_v53, %v5581_v53 }
 0xc0a   : > { %v5585_v2 = vadd.f32 %v4545_v9, %v3014_v19  ;;  %v3066_v15 = vsel %vm964_vm4, %v3059_v0, 0.0  ;;  %v5641_v0 = vld [vmem:[%s5974_s0] ss:$0 sm:$0xff] }
 0xc0b   : > { %v3029_v37 = vpop.xlane.xlu0 %3028  ;;  %3067 = vadd.xlane.f32.xlu1 %v3066_v15 }
 0xc0c   : > { %v3046_v14 = vmul.f32 %v3029_v37, %v4873_v61  ;;  %v3042_v62 = vsel %vm964_vm4, %v5585_v2, 0.0 }
 0xc0d   : > { %3043 = vadd.xlane.f32.xlu2 %v3042_v62 }
 0xc0e   : > { %v5592_v51 = vsub.f32 %v5559_v40, %v3046_v14  ;;  %v5649_v14 = vld [vmem:[%s5976_s27] ss:$0 sm:$0xff] }
 0xc0f   : > { %v3015_v11 = vpop.f32.mrf.mxu0 }
 0xc10   : > { %v3060_v12 = vmul.f32 %v5592_v51, %v5592_v51 }
 0xc12   : > { %v3069_v20 = vsel %vm964_vm4, %v3060_v12, 0.0 }
 0xc13   : > { %3070 = vadd.xlane.f32.xlu0 %v3069_v20 }
 0xc58   : > { %v3032_v13 = vpop.xlane.xlu2 %3031 }
 0xc59   : > { %v3047_v46 = vmul.f32 %v3032_v13, %v4873_v61 }
 0xc5b   : > { %v5599_v10 = vsub.f32 %v5563_v39, %v3047_v46 }
 0xc5d   : > { %v3061_v5 = vmul.f32 %v5599_v10, %v5599_v10 }
 0xc5f   : > { %v3072_v45 = vsel %vm964_vm4, %v3061_v5, 0.0 }
 0xc60   : > { %3073 = vadd.xlane.f32.xlu1 %v3072_v45  ;;  %v3035_v8 = vpop.xlane.xlu1 %3034 }
 0xc61   : > { %v3048_v31 = vmul.f32 %v3035_v8, %v4873_v61 }
 0xc63   : > { %v5606_v48 = vsub.f32 %v5567_v28, %v3048_v31 }
 0xc65   : > { %v3062_v41 = vmul.f32 %v5606_v48, %v5606_v48 }
 0xc67   : > { %v3075_v33 = vsel %vm964_vm4, %v3062_v41, 0.0 }
 0xc68   : > { %v3038_v17 = vpop.xlane.xlu0 %3037  ;;  %3076 = vadd.xlane.f32.xlu0 %v3075_v33 }
 0xc69   : > { %v3049_v24 = vmul.f32 %v3038_v17, %v4873_v61 }
 0xc6b   : > { %v5613_v7 = vsub.f32 %v5571_v54, %v3049_v24 }
 0xc6d   : > { %v3063_v22 = vmul.f32 %v5613_v7, %v5613_v7 }
 0xc6f   : > { %v3078_v63 = vsel %vm964_vm4, %v3063_v22, 0.0 }
 0xc70   : > { %v3041_v18 = vpop.xlane.xlu2 %3040  ;;  %3079 = vadd.xlane.f32.xlu2 %v3078_v63 }
 0xc71   : > { %v3050_v55 = vmul.f32 %v3041_v18, %v4873_v61 }
 0xc73   : > { %v5620_v32 = vsub.f32 %v5575_v60, %v3050_v55 }
 0xc75   : > { %v3064_v29 = vmul.f32 %v5620_v32, %v5620_v32 }
 0xc77   : > { %v3081_v3 = vsel %vm964_vm4, %v3064_v29, 0.0 }
 0xc78   : > { %3082 = vadd.xlane.f32.xlu1 %v3081_v3 }
 0xc7e   : > { %v3068_v26 = vpop.xlane.xlu1 %3067 }
 0xc7f   : > { %v3087_v30 = vmul.f32 %v3068_v26, %v4873_v61 }
 0xc80   : > { %v3044_v58 = vpop.xlane.xlu2 %3043 }
 0xc81   : > { %v3094_v42 = vadd.f32 1e-05, %v3087_v30  ;;  %v3051_v27 = vmul.f32 %v3044_v58, %v4873_v61 }
 0xc83   : > { %4497 = vrsqrt.f32 %v3094_v42  ;;  %v5630_v35 = vsub.f32 %v5585_v2, %v3051_v27  ;;  %vm3107_vm2 = vweird.f32 %v3094_v42 }
 0xc85   : > { %v3065_v38 = vmul.f32 %v5630_v35, %v5630_v35 }
 0xc86   : > { %v3071_v56 = vpop.xlane.xlu0 %3070 }
 0xc87   : > { %v3088_v57 = vmul.f32 %v3071_v56, %v4873_v61  ;;  %v3084_v44 = vsel %vm964_vm4, %v3065_v38, 0.0 }
 0xc88   : > { %3085 = vadd.xlane.f32.xlu0 %v3084_v44 }
 0xc89   : > { %v4498_v47 = vpop.eup %4497  ;;  %v3095_v52 = vadd.f32 1e-05, %v3088_v57 }
 0xc8a   : > { %v3102_v49 = vmul.f32 %v4498_v47, %v3094_v42  ;;  %vm3108_vm1 = vweird.f32 %v4498_v47 }
 0xc8b   : > { %4499 = vrsqrt.f32 %v3095_v52  ;;  %vm3109_vm3 = vmor %vm3107_vm2, %vm3108_vm1  ;;  %vm3117_vm6 = vweird.f32 %v3095_v52 }
 0xc8c   : > { %v3103_v43 = vmul.f32 %v4498_v47, %v3102_v49 }
 0xc8e   : > { %v3104_v59 = vmul.f32 0.5, %v3103_v43 }
 0xc90   : > { %v3105_v16 = vsub.f32 1.5, %v3104_v59 }
 0xc91   : > { %v4500_v36 = vpop.eup %4499 }
 0xc92   : > { %v3106_v23 = vmul.f32 %v4498_v47, %v3105_v16  ;;  %v3112_v50 = vmul.f32 %v4500_v36, %v3095_v52  ;;  %vm3118_vm5 = vweird.f32 %v4500_v36 }
 0xc93   : > { %vm3119_vm7 = vmor %vm3117_vm6, %vm3118_vm5 }
 0xc94   : > { %v3113_v1 = vmul.f32 %v4500_v36, %v3112_v50  ;;  %v3110_v6 = vsel %vm3109_vm3, %v4498_v47, %v3106_v23 }
 0xc95   : > { %v3171_v9 = vmul.f32 %v3110_v6, %v5581_v53 }
 0xc96   : > { %v3114_v21 = vmul.f32 0.5, %v3113_v1 }
 0xc97   : > { %v3181_v62 = vmul.f32 %v5641_v0, %v3171_v9 }
 0xc98   : > { %v3115_v19 = vsub.f32 1.5, %v3114_v21 }
 0xc99   : > { %v3191_v20 = vadd.f32 %v5649_v14, %v3181_v62 }
 0xc9a   : > { %v3116_v15 = vmul.f32 %v4500_v36, %v3115_v19 }
 0xc9c   : > { %v3120_v37 = vsel %vm3119_vm7, %v4500_v36, %v3116_v15 }
 0xc9d   : > { %v3172_v11 = vmul.f32 %v3120_v37, %v5592_v51 }
 0xc9f   : > { %v3182_v12 = vmul.f32 %v5641_v0, %v3172_v11 }
 0xca1   : > { %v3192_v53 = vadd.f32 %v5649_v14, %v3182_v12 }
 0xca3   : > { %v3198_v13 = vpack.c.bf16 %v3192_v53, %v3191_v20 }
 0xca5   : > { %4184 = vmatmul.msk.bf16.vlgmr.msra.gmra.mxu1 %vm964_vm4, %v3198_v13 }
 0xcd3   : > { %v3074_v46 = vpop.xlane.xlu1 %3073 }
 0xcd4   : > { %v3089_v5 = vmul.f32 %v3074_v46, %v4873_v61 }
 0xcd6   : > { %v3096_v45 = vadd.f32 1e-05, %v3089_v5 }
 0xcd8   : > { %4501 = vrsqrt.f32 %v3096_v45  ;;  %vm3127_vm9 = vweird.f32 %v3096_v45 }
 0xcdb   : > { %v3077_v8 = vpop.xlane.xlu0 %3076 }
 0xcdc   : > { %v3090_v31 = vmul.f32 %v3077_v8, %v4873_v61 }
 0xcde   : > { %v4502_v41 = vpop.eup %4501  ;;  %v3097_v33 = vadd.f32 1e-05, %v3090_v31 }
 0xcdf   : > { %v3122_v51 = vmul.f32 %v4502_v41, %v3096_v45  ;;  %vm3128_vm8 = vweird.f32 %v4502_v41 }
 0xce0   : > { %4503 = vrsqrt.f32 %v3097_v33  ;;  %vm3129_vm10 = vmor %vm3127_vm9, %vm3128_vm8  ;;  %vm3137_vm12 = vweird.f32 %v3097_v33 }
 0xce1   : > { %v3123_v17 = vmul.f32 %v4502_v41, %v3122_v51 }
 0xce3   : > { %v3124_v24 = vmul.f32 0.5, %v3123_v17  ;;  %v3080_v22 = vpop.xlane.xlu2 %3079 }
 0xce4   : > { %v3091_v63 = vmul.f32 %v3080_v22, %v4873_v61  ;;  %v4256_v22 = vld [vmem:[%s4815_s8 + $0x38] sm:$0xff] }
 0xce5   : > { %v3125_v18 = vsub.f32 1.5, %v3124_v24  ;;  %3459 = vmatpush.bf16.msra.mxu2 %v4256_v22 }
 0xce6   : > { %v4504_v55 = vpop.eup %4503  ;;  %v3098_v29 = vadd.f32 1e-05, %v3091_v63 }
 0xce7   : > { %v3126_v3 = vmul.f32 %v4502_v41, %v3125_v18  ;;  %v3132_v4 = vmul.f32 %v4504_v55, %v3097_v33  ;;  %vm3138_vm11 = vweird.f32 %v4504_v55 }
 0xce8   : > { %4505 = vrsqrt.f32 %v3098_v29  ;;  %vm3139_vm13 = vmor %vm3137_vm12, %vm3138_vm11  ;;  %vm3147_vm15 = vweird.f32 %v3098_v29 }
 0xce9   : > { %v3133_v26 = vmul.f32 %v4504_v55, %v3132_v4  ;;  %v3130_v30 = vsel %vm3129_vm10, %v4502_v41, %v3126_v3  ;;  %v4254_v4 = vld [vmem:[%s4815_s8 + $0x28] sm:$0xff] }
 0xcea   : > { %v3173_v56 = vmul.f32 %v3130_v30, %v5599_v10  ;;  %v4253_v30 = vld [vmem:[%s4815_s8 + $0x20] sm:$0xff] }
 0xceb   : > { %v3134_v58 = vmul.f32 0.5, %v3133_v26  ;;  %v3083_v42 = vpop.xlane.xlu1 %3082 }
 0xcec   : > { %v3092_v27 = vmul.f32 %v3083_v42, %v4873_v61  ;;  %v3183_v59 = vmul.f32 %v5641_v0, %v3173_v56  ;;  %v4251_v42 = vld [vmem:[%s4815_s8 + $0x10] sm:$0xff] }
 0xced   : > { %v3135_v34 = vsub.f32 1.5, %v3134_v58  ;;  %v4252_v58 = vld [vmem:[%s4815_s8 + $0x18] sm:$0xff] }
 0xcee   : > { %v4506_v38 = vpop.eup %4505  ;;  %v3099_v57 = vadd.f32 1e-05, %v3092_v27  ;;  %v3193_v1 = vadd.f32 %v5649_v14, %v3183_v59 }
 0xcef   : > { %v3136_v44 = vmul.f32 %v4504_v55, %v3135_v34  ;;  %v3142_v47 = vmul.f32 %v4506_v38, %v3098_v29  ;;  %vm3148_vm14 = vweird.f32 %v4506_v38 }
 0xcf0   : > { %4507 = vrsqrt.f32 %v3099_v57  ;;  %vm3149_vm0 = vmor %vm3147_vm15, %vm3148_vm14  ;;  %vm3157_vm2 = vweird.f32 %v3099_v57 }
 0xcf1   : > { %v3140_v52 = vsel %vm3139_vm13, %v4504_v55, %v3136_v44  ;;  %v3143_v49 = vmul.f32 %v4506_v38, %v3142_v47  ;;  %v4255_v55 = vld [vmem:[%s4815_s8 + $0x30] sm:$0xff]  ;;  %v4249_v44 = vld [vmem:[%s4815_s8] sm:$0xff] }
 0xcf2   : > { %v3174_v43 = vmul.f32 %v3140_v52, %v5606_v48  ;;  %3460 = vmatpush.bf16.msra.mxu2 %v4255_v55 }
 0xcf3   : > { %v3144_v16 = vmul.f32 0.5, %v3143_v49 }
 0xcf4   : > { %v3184_v36 = vmul.f32 %v5641_v0, %v3174_v43 }
 0xcf5   : > { %v3145_v23 = vsub.f32 1.5, %v3144_v16 }
 0xcf6   : > { %v4508_v50 = vpop.eup %4507  ;;  %v3194_v10 = vadd.f32 %v5649_v14, %v3184_v36  ;;  %3461 = vmatpush.bf16.msra.mxu2 %v4254_v4 }
 0xcf7   : > { %v3146_v6 = vmul.f32 %v4506_v38, %v3145_v23  ;;  %v3152_v21 = vmul.f32 %v4508_v50, %v3099_v57  ;;  %vm3158_vm1 = vweird.f32 %v4508_v50 }
 0xcf8   : > { %v3199_v19 = vpack.c.bf16 %v3194_v10, %v3193_v1  ;;  %vm3159_vm3 = vmor %vm3157_vm2, %vm3158_vm1 }
 0xcf9   : > { %v3153_v9 = vmul.f32 %v4508_v50, %v3152_v21  ;;  %v3150_v48 = vsel %vm3149_vm0, %v4506_v38, %v3146_v6  ;;  %v4250_v38 = vld [vmem:[%s4815_s8 + $0x8] sm:$0xff] }
 0xcfa   : > { %4185 = vmatmul.msk.bf16.gmra.mxu1 %vm964_vm4, %v3199_v19  ;;  %v3175_v12 = vmul.f32 %v3150_v48, %v5613_v7  ;;  %3462 = vmatpush.bf16.msra.mxu2 %v4253_v30 }
 0xcfb   : > { %v3154_v15 = vmul.f32 0.5, %v3153_v9  ;;  %v3086_v37 = vpop.xlane.xlu0 %3085 }
 0xcfc   : > { %v3093_v62 = vmul.f32 %v3086_v37, %v4873_v61  ;;  %v3185_v5 = vmul.f32 %v5641_v0, %v3175_v12 }
 0xcfd   : > { %v3155_v11 = vsub.f32 1.5, %v3154_v15 }
 0xcfe   : > { %v3100_v20 = vadd.f32 1e-05, %v3093_v62  ;;  %v3195_v31 = vadd.f32 %v5649_v14, %v3185_v5  ;;  %3463 = vmatpush.bf16.msra.mxu2 %v4252_v58 }
 0xcff   : > { %v3156_v53 = vmul.f32 %v4508_v50, %v3155_v11 }
 0xd00   : > { %4509 = vrsqrt.f32 %v3100_v20  ;;  %vm3167_vm6 = vweird.f32 %v3100_v20 }
 0xd01   : > { %v3160_v13 = vsel %vm3159_vm3, %v4508_v50, %v3156_v53 }
 0xd02   : > { %v3176_v46 = vmul.f32 %v3160_v13, %v5620_v32  ;;  %3464 = vmatpush.bf16.msra.mxu2 %v4251_v42 }
 0xd04   : > { %v3186_v45 = vmul.f32 %v5641_v0, %v3176_v46 }
 0xd06   : > { %v4510_v8 = vpop.eup %4509  ;;  %v3196_v41 = vadd.f32 %v5649_v14, %v3186_v45  ;;  %3465 = vmatpush.bf16.msra.mxu2 %v4250_v38 }
 0xd07   : > { %v3162_v7 = vmul.f32 %v4510_v8, %v3100_v20  ;;  %vm3168_vm5 = vweird.f32 %v4510_v8 }
 0xd08   : > { %v3200_v33 = vpack.c.bf16 %v3196_v41, %v3195_v31  ;;  %vm3169_vm7 = vmor %vm3167_vm6, %vm3168_vm5 }
 0xd09   : > { %v3163_v51 = vmul.f32 %v4510_v8, %v3162_v7 }
 0xd0a   : > { %4186 = vmatmul.msk.bf16.gmra.mxu1 %vm964_vm4, %v3200_v33  ;;  %3466 = vmatpush.bf16.msra.mxu2 %v4249_v44 }
 0xd0b   : > { %v3164_v17 = vmul.f32 0.5, %v3163_v51 }
 0xd0d   : > { %v3165_v24 = vsub.f32 1.5, %v3164_v17 }
 0xd0f   : > { %v3166_v32 = vmul.f32 %v4510_v8, %v3165_v24 }
 0xd11   : > { %v3170_v63 = vsel %vm3169_vm7, %v4510_v8, %v3166_v32 }
 0xd12   : > { %v3177_v18 = vmul.f32 %v3170_v63, %v5630_v35  ;;  %v5689_v35 = vld [vmem:[%s827_s5] ss:$0 sm:$0xff] }
 0xd14   : > { %v3187_v29 = vmul.f32 %v5641_v0, %v3177_v18 }
 0xd16   : > { %v3197_v3 = vadd.f32 %v5649_v14, %v3187_v29 }
 0xd18   : > { %v3201_v26 = vpack.c.bf16 %v3197_v3, %v3197_v3 }
 0xd1a   : > { %4187 = vmatmul.msk.bf16.gmra.mxu1 %vm964_vm4, %v3201_v26 }
 0xd22   : > { %v3238_v0 = vpop.f32.mrf.mxu1 }
 0xd23   : > { %v3239_v14 = vadd.f32 %v5689_v35, %v3238_v0 }
 0xd25   : > { %v4188_v27 = vmul.f32 -1.702, %v3239_v14 }
 0xd27   : > { %v3271_v34 = vmul.f32 1.442695, %v4188_v27 }
 0xd29   : > { %4511 = vpow2.f32 %v3271_v34 }
 0xd2a   : > { %v3240_v56 = vpop.f32.mrf.mxu1 }
 0xd2b   : > { %v3241_v57 = vadd.f32 %v5689_v35, %v3240_v56 }
 0xd2d   : > { %v4189_v47 = vmul.f32 -1.702, %v3241_v57 }
 0xd2f   : > { %v4512_v52 = vpop.eup %4511  ;;  %v3273_v49 = vmul.f32 1.442695, %v4189_v47 }
 0xd30   : > { %v3285_v43 = vadd.f32 1.0, %v4512_v52 }
 0xd31   : > { %4513 = vpow2.f32 %v3273_v49 }
 0xd32   : > { %4515 = vrcp.f32 %v3285_v43  ;;  %v3303_v19 = vand.u32 2147483648, %v3285_v43  ;;  %vm3297_vm9 = vweird.f32 %v3285_v43  ;;  %v3301_v9 = vand.u32 2147483647, %v3285_v43 }
 0xd34   : > { %v3304_v12 = vor.u32 1.1754944e-38, %v3303_v19  ;;  %vm3302_vm12 = vcmp.eq.f32.partialorder %v3301_v9, 8.507059e+37 }
 0xd37   : > { %v4514_v59 = vpop.eup %4513 }
 0xd38   : > { %v4516_v16 = vpop.eup %4515  ;;  %v3286_v36 = vadd.f32 1.0, %v4514_v59 }
 0xd39   : > { %v3293_v23 = vmul.f32 %v4516_v16, %v3285_v43  ;;  %vm3298_vm8 = vweird.f32 %v4516_v16 }
 0xd3a   : > { %4517 = vrcp.f32 %v3286_v36  ;;  %vm3299_vm10 = vmor %vm3297_vm9, %vm3298_vm8  ;;  %v3318_v15 = vand.u32 2147483648, %v3286_v36  ;;  %v3316_v11 = vand.u32 2147483647, %v3286_v36  ;;  %vm3312_vm13 = vweird.f32 %v3286_v36 }
 0xd3b   : > { %v3294_v50 = vsub.f32 1.0, %v3293_v23 }
 0xd3c   : > { %v3319_v13 = vor.u32 1.1754944e-38, %v3318_v15  ;;  %vm3317_vm15 = vcmp.eq.f32.partialorder %v3316_v11, 8.507059e+37 }
 0xd3d   : > { %v3295_v1 = vmul.f32 %v4516_v16, %v3294_v50 }
 0xd3f   : > { %v3296_v6 = vadd.f32 %v4516_v16, %v3295_v1 }
 0xd40   : > { %v4518_v10 = vpop.eup %4517 }
 0xd41   : > { %v3308_v21 = vmul.f32 %v4518_v10, %v3286_v36  ;;  %v3300_v37 = vsel %vm3299_vm10, %v4516_v16, %v3296_v6  ;;  %vm3313_vm11 = vweird.f32 %v4518_v10 }
 0xd42   : > { %v3305_v53 = vsel %vm3302_vm12, %v3304_v12, %v3300_v37  ;;  %vm3314_vm14 = vmor %vm3312_vm13, %vm3313_vm11 }
 0xd43   : > { %v3309_v48 = vsub.f32 1.0, %v3308_v21  ;;  %v3397_v45 = vmul.f32 %v3305_v53, %v3239_v14 }
 0xd45   : > { %v3310_v62 = vmul.f32 %v4518_v10, %v3309_v48 }
 0xd47   : > { %v3311_v20 = vadd.f32 %v4518_v10, %v3310_v62 }
 0xd49   : > { %v3315_v46 = vsel %vm3314_vm14, %v4518_v10, %v3311_v20 }
 0xd4a   : > { %v3320_v5 = vsel %vm3317_vm15, %v3319_v13, %v3315_v46 }
 0xd4b   : > { %v3398_v8 = vmul.f32 %v3320_v5, %v3241_v57 }
 0xd4d   : > { %v3404_v31 = vpack.c.bf16 %v3398_v8, %v3397_v45 }
 0xd4f   : > { %3467 = vmatmul.bf16.vlgmr.msra.gmra.mxu2 %v3404_v31 }
 0xd77   : > { %v3243_v41 = vpop.f32.mrf.mxu1 }
 0xd78   : > { %v5698_v7 = vadd.f32 %v5689_v35, %v3243_v41 }
 0xd7a   : > { %v4190_v33 = vmul.f32 -1.702, %v5698_v7 }
 0xd7c   : > { %v3275_v51 = vmul.f32 1.442695, %v4190_v33 }
 0xd7e   : > { %4519 = vpow2.f32 %v3275_v51 }
 0xd7f   : > { %v3245_v17 = vpop.f32.mrf.mxu1 }
 0xd80   : > { %v5702_v24 = vadd.f32 %v5689_v35, %v3245_v17 }
 0xd82   : > { %v4191_v32 = vmul.f32 -1.702, %v5702_v24 }
 0xd84   : > { %v4520_v22 = vpop.eup %4519  ;;  %v3277_v63 = vmul.f32 1.442695, %v4191_v32 }
 0xd85   : > { %v3287_v18 = vadd.f32 1.0, %v4520_v22 }
 0xd86   : > { %4521 = vpow2.f32 %v3277_v63 }
 0xd87   : > { %4523 = vrcp.f32 %v3287_v18  ;;  %v3248_v55 = vpop.f32.mrf.mxu1  ;;  %v3333_v43 = vand.u32 2147483648, %v3287_v18  ;;  %vm3327_vm1 = vweird.f32 %v3287_v18  ;;  %v3331_v16 = vand.u32 2147483647, %v3287_v18 }
 0xd88   : > { %v5706_v29 = vadd.f32 %v5689_v35, %v3248_v55 }
 0xd89   : > { %v3334_v19 = vor.u32 1.1754944e-38, %v3333_v43  ;;  %vm3332_vm5 = vcmp.eq.f32.partialorder %v3331_v16, 8.507059e+37 }
 0xd8a   : > { %v4192_v3 = vmul.f32 -1.702, %v5706_v29 }
 0xd8c   : > { %v4522_v4 = vpop.eup %4521  ;;  %v3279_v26 = vmul.f32 1.442695, %v4192_v3 }
 0xd8d   : > { %v4524_v30 = vpop.eup %4523  ;;  %v3288_v58 = vadd.f32 1.0, %v4522_v4 }
 0xd8e   : > { %v3323_v0 = vmul.f32 %v4524_v30, %v3287_v18  ;;  %4525 = vpow2.f32 %v3279_v26  ;;  %vm3328_vm0 = vweird.f32 %v4524_v30 }
 0xd8f   : > { %4527 = vrcp.f32 %v3288_v58  ;;  %v3250_v14 = vpop.f32.mrf.mxu1  ;;  %vm3329_vm2 = vmor %vm3327_vm1, %vm3328_vm0  ;;  %v3346_v50 = vand.u32 2147483647, %v3288_v58  ;;  %v3348_v1 = vand.u32 2147483648, %v3288_v58  ;;  %vm3342_vm6 = vweird.f32 %v3288_v58 }
 0xd90   : > { %v3324_v42 = vsub.f32 1.0, %v3323_v0  ;;  %v5710_v27 = vadd.f32 %v5689_v35, %v3250_v14 }
 0xd91   : > { %v3349_v11 = vor.u32 1.1754944e-38, %v3348_v1  ;;  %vm3347_vm8 = vcmp.eq.f32.partialorder %v3346_v50, 8.507059e+37 }
 0xd92   : > { %v3325_v34 = vmul.f32 %v4524_v30, %v3324_v42  ;;  %v4193_v38 = vmul.f32 -1.702, %v5710_v27 }
 0xd94   : > { %v4526_v56 = vpop.eup %4525  ;;  %v3281_v57 = vmul.f32 1.442695, %v4193_v38  ;;  %v3326_v52 = vadd.f32 %v4524_v30, %v3325_v34 }
 0xd95   : > { %v4528_v44 = vpop.eup %4527  ;;  %v3289_v47 = vadd.f32 1.0, %v4526_v56 }
 0xd96   : > { %v3338_v49 = vmul.f32 %v4528_v44, %v3288_v58  ;;  %4529 = vpow2.f32 %v3281_v57  ;;  %v3330_v10 = vsel %vm3329_vm2, %v4524_v30, %v3326_v52  ;;  %vm3343_vm3 = vweird.f32 %v4528_v44 }
 0xd97   : > { %4531 = vrcp.f32 %v3289_v47  ;;  %v3253_v59 = vpop.f32.mrf.mxu1  ;;  %v3335_v62 = vsel %vm3332_vm5, %v3334_v19, %v3330_v10  ;;  %vm3344_vm7 = vmor %vm3342_vm6, %vm3343_vm3  ;;  %v3363_v22 = vand.u32 2147483648, %v3289_v47  ;;  %vm3357_vm10 = vweird.f32 %v3289_v47 }
 0xd98   : > { %v3339_v36 = vsub.f32 1.0, %v3338_v49  ;;  %v5714_v23 = vadd.f32 %v5689_v35, %v3253_v59  ;;  %v3399_v46 = vmul.f32 %v3335_v62, %v5698_v7  ;;  %v3361_v63 = vand.u32 2147483647, %v3289_v47 }
 0xd99   : > { %v3364_v4 = vor.u32 1.1754944e-38, %v3363_v22 }
 0xd9a   : > { %v3340_v6 = vmul.f32 %v4528_v44, %v3339_v36  ;;  %v4194_v21 = vmul.f32 -1.702, %v5714_v23  ;;  %vm3362_vm13 = vcmp.eq.f32.partialorder %v3361_v63, 8.507059e+37 }
 0xd9c   : > { %v4530_v9 = vpop.eup %4529  ;;  %v3341_v48 = vadd.f32 %v4528_v44, %v3340_v6  ;;  %v3283_v15 = vmul.f32 1.442695, %v4194_v21 }
 0xd9d   : > { %v4532_v37 = vpop.eup %4531  ;;  %v3290_v35 = vadd.f32 1.0, %v4530_v9 }
 0xd9e   : > { %v3345_v12 = vsel %vm3344_vm7, %v4528_v44, %v3341_v48  ;;  %v3353_v20 = vmul.f32 %v4532_v37, %v3289_v47  ;;  %4533 = vpow2.f32 %v3283_v15  ;;  %vm3358_vm9 = vweird.f32 %v4532_v37 }
 0xd9f   : > { %v3350_v53 = vsel %vm3347_vm8, %v3349_v11, %v3345_v12  ;;  %4535 = vrcp.f32 %v3290_v35  ;;  %v3255_v13 = vpop.f32.mrf.mxu1  ;;  %vm3359_vm11 = vmor %vm3357_vm10, %vm3358_vm9  ;;  %v3378_v55 = vand.u32 2147483648, %v3290_v35  ;;  %vm3372_vm14 = vweird.f32 %v3290_v35 }
 0xda0   : > { %v3400_v5 = vmul.f32 %v3350_v53, %v5702_v24  ;;  %v3354_v45 = vsub.f32 1.0, %v3353_v20  ;;  %v3376_v24 = vand.u32 2147483647, %v3290_v35 }
 0xda1   : > { %v3379_v0 = vor.u32 1.1754944e-38, %v3378_v55 }
 0xda2   : > { %v3355_v8 = vmul.f32 %v4532_v37, %v3354_v45  ;;  %v3405_v31 = vpack.c.bf16 %v3400_v5, %v3399_v46  ;;  %vm3377_vm0 = vcmp.eq.f32.partialorder %v3376_v24, 8.507059e+37 }
 0xda4   : > { %v4534_v41 = vpop.eup %4533  ;;  %3472 = vmatmul.bf16.gmra.mxu2 %v3405_v31  ;;  %v3356_v17 = vadd.f32 %v4532_v37, %v3355_v8 }
 0xda5   : > { %v4536_v33 = vpop.eup %4535  ;;  %v3291_v51 = vadd.f32 1.0, %v4534_v41 }
 0xda6   : > { %v3368_v32 = vmul.f32 %v4536_v33, %v3290_v35  ;;  %v3360_v7 = vsel %vm3359_vm11, %v4532_v37, %v3356_v17  ;;  %vm3373_vm12 = vweird.f32 %v4536_v33 }
 0xda7   : > { %4537 = vrcp.f32 %v3291_v51  ;;  %v3365_v58 = vsel %vm3362_vm13, %v3364_v4, %v3360_v7  ;;  %vm3374_vm15 = vmor %vm3372_vm14, %vm3373_vm12  ;;  %v3393_v49 = vand.u32 2147483648, %v3291_v51  ;;  %vm3387_vm2 = vweird.f32 %v3291_v51 }
 0xda8   : > { %v3369_v18 = vsub.f32 1.0, %v3368_v32  ;;  %v3401_v38 = vmul.f32 %v3365_v58, %v5706_v29  ;;  %v3391_v43 = vand.u32 2147483647, %v3291_v51 }
 0xda9   : > { %v3394_v16 = vor.u32 1.1754944e-38, %v3393_v49 }
 0xdaa   : > { %v3370_v3 = vmul.f32 %v4536_v33, %v3369_v18  ;;  %vm3392_vm5 = vcmp.eq.f32.partialorder %v3391_v43, 8.507059e+37 }
 0xdac   : > { %v3371_v26 = vadd.f32 %v4536_v33, %v3370_v3 }
 0xdad   : > { %v4538_v30 = vpop.eup %4537 }
 0xdae   : > { %v3375_v14 = vsel %vm3374_vm15, %v4536_v33, %v3371_v26  ;;  %v3383_v42 = vmul.f32 %v4538_v30, %v3291_v51  ;;  %vm3388_vm1 = vweird.f32 %v4538_v30 }
 0xdaf   : > { %v3380_v34 = vsel %vm3377_vm0, %v3379_v0, %v3375_v14  ;;  %vm3389_vm3 = vmor %vm3387_vm2, %vm3388_vm1 }
 0xdb0   : > { %v3402_v56 = vmul.f32 %v3380_v34, %v5710_v27  ;;  %v3384_v57 = vsub.f32 1.0, %v3383_v42  ;;  %v4368_v27 = vld [vmem:[%s835_s13] ss:$0 sm:$0xff] }
 0xdb2   : > { %v3385_v44 = vmul.f32 %v4538_v30, %v3384_v57  ;;  %v3406_v47 = vpack.c.bf16 %v3402_v56, %v3401_v38 }
 0xdb4   : > { %v3386_v52 = vadd.f32 %v4538_v30, %v3385_v44  ;;  %3477 = vmatmul.bf16.gmra.mxu2 %v3406_v47 }
 0xdb6   : > { %v3390_v59 = vsel %vm3389_vm3, %v4538_v30, %v3386_v52 }
 0xdb7   : > { %v3395_v36 = vsel %vm3392_vm5, %v3394_v16, %v3390_v59 }
 0xdb8   : > { %v3403_v50 = vmul.f32 %v3395_v36, %v5714_v23 }
 0xdba   : > { %v3407_v29 = vpack.c.bf16 %v3403_v50, %v3403_v50 }
 0xdc4   : > { %3482 = vmatmul.bf16.gmra.mxu2 %v3407_v29 }
 0xdd2   : > { %v3468_v1 = vpop.f32.mrf.mxu2 }
 0xdd3   : > { %v3469_v10 = vadd.f32 %v4368_v27, %v3468_v1 }
 0xdd5   : > { %v3487_v6 = vadd.f32 %v3469_v10, %v5555_v25 }
 0xdd7   : > { %3494 = vst.msk [vmem:[#allocation2] sm:$0xff] %vm964_vm4, %v3487_v6 }
 0xdda   : > { %v3470_v21 = vpop.f32.mrf.mxu2 }
 0xddb   : > { %v3471_v19 = vadd.f32 %v4368_v27, %v3470_v21 }
 0xddd   : > { %v3488_v9 = vadd.f32 %v3471_v19, %v5559_v40 }
 0xddf   : > { %3495 = vst.msk [vmem:[#allocation2 + $0x8] sm:$0xff] %vm964_vm4, %v3488_v9 }
 0xe27   : > { %v3473_v23 = vpop.f32.mrf.mxu2 }
 0xe28   : > { %v3474_v48 = vadd.f32 %v4368_v27, %v3473_v23 }
 0xe2a   : > { %v3489_v15 = vadd.f32 %v3474_v48, %v5563_v39 }
 0xe2c   : > { %3496 = vst.msk [vmem:[#allocation2 + $0x10] sm:$0xff] %vm964_vm4, %v3489_v15 }
 0xe2f   : > { %v3475_v37 = vpop.f32.mrf.mxu2 }
 0xe30   : > { %v3476_v62 = vadd.f32 %v4368_v27, %v3475_v37 }
 0xe32   : > { %v3490_v11 = vadd.f32 %v3476_v62, %v5567_v28 }
 0xe34   : > { %3497 = vst.msk [vmem:[#allocation2 + $0x18] sm:$0xff] %vm964_vm4, %v3490_v11 }
 0xe37   : > { %v3478_v25 = vpop.f32.mrf.mxu2 }
 0xe38   : > { %v3479_v35 = vadd.f32 %v4368_v27, %v3478_v25 }
 0xe3a   : > { %v3491_v12 = vadd.f32 %v3479_v35, %v5571_v54 }
 0xe3c   : > { %3498 = vst.msk [vmem:[#allocation2 + $0x20] sm:$0xff] %vm964_vm4, %v3491_v12 }
 0xe3f   : > { %v3480_v40 = vpop.f32.mrf.mxu2 }
 0xe40   : > { %v3481_v20 = vadd.f32 %v4368_v27, %v3480_v40 }
 0xe42   : > { %v3492_v53 = vadd.f32 %v3481_v20, %v5575_v60 }
 0xe44   : > { %3499 = vst.msk [vmem:[#allocation2 + $0x28] sm:$0xff] %vm964_vm4, %v3492_v53 }
 0xe47   : > { %v3483_v39 = vpop.f32.mrf.mxu2 }
 0xe48   : > { %v3484_v13 = vadd.f32 %v4368_v27, %v3483_v39 }
 0xe4a   : > { %v3493_v46 = vadd.f32 %v3484_v13, %v5585_v2 }
 0xe4b   : > { %3504 = sbr.rel (%p4227_p11) target bundleno = 4165 (0x1045), region = 108 }
 0xe4c   : > { %3500 = vst.msk [vmem:[#allocation2 + $0x30] sm:$0xff] %vm964_vm4, %v3493_v46 }
 0xe4f   : > { %v3485_v28 = vpop.f32.mrf.mxu2 }
 0xe50   : > { %v3509_v5 = vld [vmem:[#allocation2 + $0x20] sm:$0xff]  ;;  %v3507_v54 = vld [vmem:[#allocation2 + $0x10] sm:$0xff]  ;;  %v4621_v41 = vmov 0   ;;  %v3510_v2 = vld [vmem:[#allocation2 + $0x28] sm:$0xff] }
 0xe51   : > { %v3505_v45 = vld [vmem:[#allocation2] sm:$0xff]  ;;  %v3526_v8 = vsel %vm964_vm4, %v3509_v5, 0.0  ;;  %v3520_v31 = vsel %vm964_vm4, %v3507_v54, 0.0  ;;  %4546 = vset.pattern.permute.xlu2 %v4621_v41  ;;  %4548 = vset.pattern.permute.xlu1 %v4621_v41  ;;  %v3508_v33 = vld [vmem:[#allocation2 + $0x18] sm:$0xff]  ;;  %v3506_v51 = vld [vmem:[#allocation2 + $0x8] sm:$0xff]  ;;  %v3529_v17 = vsel %vm964_vm4, %v3510_v2, 0.0 }
 0xe52   : > { %v3514_v60 = vsel %vm964_vm4, %v3505_v45, 0.0  ;;  %3527 = vadd.xlane.f32.xlu2 %v3526_v8  ;;  %3521 = vadd.xlane.f32.xlu1 %v3520_v31  ;;  %v3523_v32 = vsel %vm964_vm4, %v3508_v33, 0.0  ;;  %v3517_v22 = vsel %vm964_vm4, %v3506_v51, 0.0  ;;  %v3688_v55 = vld [vmem:[%s4824_s26] sm:$0xff]  ;;  %v3689_v9 = vld [vmem:[%s4824_s26 + $0x8] sm:$0xff]  ;;  %v3690_v23 = vld [vmem:[%s4824_s26 + $0x10] sm:$0xff] }
 0xe53   : > { %3515 = vadd.xlane.f32.xlu0 %v3514_v60  ;;  %v3511_v63 = vld [vmem:[#allocation2 + $0x30] sm:$0xff]  ;;  %v3691_v48 = vld [vmem:[%s4824_s26 + $0x18] sm:$0xff]  ;;  %v3692_v15 = vld [vmem:[%s4824_s26 + $0x20] sm:$0xff] }
 0xe54   : > { %4547 = vset.pattern.permute.xlu0 %v4621_v41  ;;  %v3532_v18 = vsel %vm964_vm4, %v3511_v63, 0.0  ;;  %v3694_v37 = vld [vmem:[%s4824_s26 + $0x30] sm:$0xff]  ;;  %v3693_v40 = vld [vmem:[%s4824_s26 + $0x28] sm:$0xff] }
 0xe5a   : > { %3530 = vadd.xlane.f32.xlu2 %v3529_v17  ;;  %3524 = vadd.xlane.f32.xlu1 %v3523_v32 }
 0xe5b   : > { %3518 = vadd.xlane.f32.xlu0 %v3517_v22 }
 0xe63   : > { %3533 = vadd.xlane.f32.xlu0 %v3532_v18 }
 0xe72   : > { %3697 = vperm.xlu2 %4546, %v3688_v55  }
 0xec5   : > { %v3528_v7 = vpop.xlane.xlu2 %3527  ;;  %v3522_v3 = vpop.xlane.xlu1 %3521 }
 0xec6   : > { %v3537_v24 = vmul.f32 %v3522_v3, %v4873_v61  ;;  %v3516_v4 = vpop.xlane.xlu0 %3515  ;;  %v3539_v52 = vmul.f32 %v3528_v7, %v4873_v61 }
 0xec7   : > { %v3535_v26 = vmul.f32 %v3516_v4, %v4873_v61 }
 0xec8   : > { %v5752_v30 = vsub.f32 %v3507_v54, %v3537_v24  ;;  %v5776_v29 = vsub.f32 %v3509_v5, %v3539_v52 }
 0xec9   : > { %v5754_v58 = vsub.f32 %v3505_v45, %v3535_v26 }
 0xeca   : > { %v3551_v0 = vmul.f32 %v5752_v30, %v5752_v30  ;;  %v3553_v21 = vmul.f32 %v5776_v29, %v5776_v29 }
 0xecb   : > { %v3549_v14 = vmul.f32 %v5754_v58, %v5754_v58 }
 0xecc   : > { %v3562_v42 = vsel %vm964_vm4, %v3551_v0, 0.0  ;;  %v3568_v19 = vsel %vm964_vm4, %v3553_v21, 0.0 }
 0xecd   : > { %v3531_v34 = vpop.xlane.xlu2 %3530  ;;  %v3525_v38 = vpop.xlane.xlu1 %3524  ;;  %3563 = vadd.xlane.f32.xlu0 %v3562_v42  ;;  %v3556_v56 = vsel %vm964_vm4, %v3549_v14, 0.0 }
 0xece   : > { %v3540_v57 = vmul.f32 %v3531_v34, %v4873_v61  ;;  %v3538_v44 = vmul.f32 %v3525_v38, %v4873_v61  ;;  %3557 = vadd.xlane.f32.xlu1 %v3556_v56  ;;  %v3519_v47 = vpop.xlane.xlu0 %3518 }
 0xecf   : > { %v3536_v49 = vmul.f32 %v3519_v47, %v4873_v61 }
 0xed0   : > { %v5766_v43 = vsub.f32 %v3510_v2, %v3540_v57  ;;  %v5768_v59 = vsub.f32 %v3508_v33, %v3538_v44 }
 0xed1   : > { %v5770_v16 = vsub.f32 %v3506_v51, %v3536_v49 }
 0xed2   : > { %v3554_v36 = vmul.f32 %v5766_v43, %v5766_v43  ;;  %v3552_v50 = vmul.f32 %v5768_v59, %v5768_v59 }
 0xed3   : > { %v3550_v27 = vmul.f32 %v5770_v16, %v5770_v16 }
 0xed4   : > { %v3571_v1 = vsel %vm964_vm4, %v3554_v36, 0.0  ;;  %v3565_v10 = vsel %vm964_vm4, %v3552_v50, 0.0 }
 0xed5   : > { %3572 = vadd.xlane.f32.xlu0 %v3571_v1  ;;  %v3559_v6 = vsel %vm964_vm4, %v3550_v27, 0.0  ;;  %v5798_v20 = vpop.permute.xlu2 %3697 }
 0xed6   : > { %3566 = vadd.xlane.f32.xlu1 %v3565_v10  ;;  %3560 = vadd.xlane.f32.xlu2 %v3559_v6  ;;  %v3534_v62 = vpop.xlane.xlu0 %3533 }
 0xed7   : > { %v3541_v11 = vmul.f32 %v3534_v62, %v4873_v61 }
 0xed9   : > { %v5792_v25 = vsub.f32 %v3511_v63, %v3541_v11 }
 0xedb   : > { %v3555_v35 = vmul.f32 %v5792_v25, %v5792_v25 }
 0xedd   : > { %v3574_v12 = vsel %vm964_vm4, %v3555_v35, 0.0 }
 0xede   : > { %3569 = vadd.xlane.f32.xlu2 %v3568_v19 }
 0xee9   : > { %3702 = vperm.xlu0 %4547, %v3689_v9  }
 0xeef   : > { %3707 = vperm.xlu1 %4548, %v3690_v23  }
 0xef6   : > { %3712 = vperm.xlu2 %4546, %v3691_v48  }
 0xefe   : > { %3717 = vperm.xlu2 %4546, %v3692_v15  }
 0xf06   : > { %3727 = vperm.xlu2 %4546, %v3694_v37  }
 0xf19   : > { %3575 = vadd.xlane.f32.xlu1 %v3574_v12 }
 0xf32   : > { %3722 = vperm.xlu1 %4548, %v3693_v40   ;;  %v5825_v40 = vld [vmem:[%s5983_s18] ss:$0 sm:$0xff] }
 0xf40   : > { %v3564_v28 = vpop.xlane.xlu0 %3563 }
 0xf41   : > { %v3558_v39 = vpop.xlane.xlu1 %3557  ;;  %v3579_v31 = vmul.f32 %v3564_v28, %v4873_v61 }
 0xf42   : > { %v3577_v46 = vmul.f32 %v3558_v39, %v4873_v61 }
 0xf43   : > { %v3586_v2 = vadd.f32 1e-05, %v3579_v31 }
 0xf44   : > { %v3584_v8 = vadd.f32 1e-05, %v3577_v46 }
 0xf45   : > { %vm3617_vm1 = vweird.f32 %v3586_v2 }
 0xf46   : > { %vm3597_vm10 = vweird.f32 %v3584_v8 }
 0xf48   : > { %v3573_v26 = vpop.xlane.xlu0 %3572 }
 0xf49   : > { %v3561_v53 = vpop.xlane.xlu2 %3560  ;;  %v3567_v45 = vpop.xlane.xlu1 %3566  ;;  %v3582_v38 = vmul.f32 %v3573_v26, %v4873_v61 }
 0xf4a   : > { %v3578_v13 = vmul.f32 %v3561_v53, %v4873_v61  ;;  %v3580_v41 = vmul.f32 %v3567_v45, %v4873_v61 }
 0xf4b   : > { %v5806_v49 = vadd.f32 1e-05, %v3582_v38 }
 0xf4c   : > { %v3585_v5 = vadd.f32 1e-05, %v3578_v13  ;;  %v3587_v51 = vadd.f32 1e-05, %v3580_v41 }
 0xf4e   : > { %4551 = vrsqrt.f32 %v3585_v5  ;;  %vm3607_vm6 = vweird.f32 %v3585_v5  ;;  %vm3627_vm3 = vweird.f32 %v3587_v51 }
 0xf4f   : > { %4553 = vrsqrt.f32 %v3584_v8 }
 0xf50   : > { %4555 = vrsqrt.f32 %v3586_v2 }
 0xf51   : > { %v3570_v54 = vpop.xlane.xlu2 %3569 }
 0xf52   : > { %v3581_v60 = vmul.f32 %v3570_v54, %v4873_v61  ;;  %v5836_v54 = vld [vmem:[%s5984_s16] ss:$0 sm:$0xff] }
 0xf54   : > { %v3588_v33 = vadd.f32 1e-05, %v3581_v60  ;;  %v4552_v17 = vpop.eup %4551 }
 0xf55   : > { %v4554_v32 = vpop.eup %4553  ;;  %v3602_v22 = vmul.f32 %v4552_v17, %v3585_v5  ;;  %vm3608_vm7 = vweird.f32 %v4552_v17 }
 0xf56   : > { %4557 = vrsqrt.f32 %v3588_v33  ;;  %v3592_v63 = vmul.f32 %v4554_v32, %v3584_v8  ;;  %v4556_v18 = vpop.eup %4555  ;;  %vm5808_vm8 = vmor %vm3607_vm6, %vm3608_vm7  ;;  %vm3598_vm9 = vweird.f32 %v4554_v32  ;;  %vm3637_vm12 = vweird.f32 %v3588_v33 }
 0xf57   : > { %4559 = vrsqrt.f32 %v3587_v51  ;;  %v3603_v7 = vmul.f32 %v4552_v17, %v3602_v22  ;;  %v3612_v4 = vmul.f32 %v4556_v18, %v3586_v2  ;;  %vm3599_vm11 = vmor %vm3597_vm10, %vm3598_vm9  ;;  %vm3618_vm14 = vweird.f32 %v4556_v18 }
 0xf58   : > { %v3593_v24 = vmul.f32 %v4554_v32, %v3592_v63  ;;  %4561 = vrsqrt.f32 %v5806_v49  ;;  %vm3619_vm2 = vmor %vm3617_vm1, %vm3618_vm14  ;;  %vm3647_vm6 = vweird.f32 %v5806_v49  ;;  %vm3815_vm14 = vcmask 1043459  }
 0xf59   : > { %v3604_v42 = vmul.f32 0.5, %v3603_v7  ;;  %v3613_v56 = vmul.f32 %v4556_v18, %v3612_v4  ;;  %v3713_v41 = vpop.permute.xlu2 %3712  ;;  %vm3821_vm1 = vcmask 1046534  }
 0xf5a   : > { %v3594_v34 = vmul.f32 0.5, %v3593_v24 }
 0xf5b   : > { %v3605_v47 = vsub.f32 1.5, %v3604_v42  ;;  %v3614_v36 = vmul.f32 0.5, %v3613_v56 }
 0xf5c   : > { %v4558_v55 = vpop.eup %4557  ;;  %v3595_v52 = vsub.f32 1.5, %v3594_v34 }
 0xf5d   : > { %v4560_v3 = vpop.eup %4559  ;;  %v3632_v0 = vmul.f32 %v4558_v55, %v3588_v33  ;;  %v3606_v1 = vmul.f32 %v4552_v17, %v3605_v47  ;;  %v3615_v21 = vsub.f32 1.5, %v3614_v36  ;;  %vm3638_vm13 = vweird.f32 %v4558_v55  ;;  %v3703_v33 = vpop.permute.xlu0 %3702  ;;  %v4258_v47 = vld [vmem:[%s5987_s28 + $0x8] sm:$0xff] }
 0xf5e   : > { %v3622_v14 = vmul.f32 %v4560_v3, %v3587_v51  ;;  %v3596_v6 = vmul.f32 %v4554_v32, %v3595_v52  ;;  %v5816_v11 = vpop.eup %4561  ;;  %vm3628_vm15 = vweird.f32 %v4560_v3  ;;  %vm5818_vm0 = vmor %vm3637_vm12, %vm3638_vm13  ;;  %3845 = vmatpush.bf16.msra.mxu0 %v4258_v47  ;;  %vm3811_vm12 = vcmask 1041409  }
 0xf5f   : > { %v3633_v57 = vmul.f32 %v4558_v55, %v3632_v0  ;;  %v3610_v23 = vsel %vm5808_vm8, %v4552_v17, %v3606_v1  ;;  %v3616_v15 = vmul.f32 %v4556_v18, %v3615_v21  ;;  %vm3629_vm5 = vmor %vm3627_vm3, %vm3628_vm15  ;;  %vm3648_vm7 = vweird.f32 %v5816_v11 }
 0xf60   : > { %v3623_v44 = vmul.f32 %v4560_v3, %v3622_v14  ;;  %v3600_v48 = vsel %vm3599_vm11, %v4554_v32, %v3596_v6  ;;  %v3662_v62 = vmul.f32 %v3610_v23, %v5770_v16  ;;  %v3642_v16 = vmul.f32 %v5816_v11, %v5806_v49  ;;  %vm5858_vm8 = vmor %vm3647_vm6, %vm3648_vm7  ;;  %v4257_v6 = vld [vmem:[%s5987_s28] sm:$0xff] }
 0xf61   : > { %v3634_v50 = vmul.f32 0.5, %v3633_v57  ;;  %v3661_v53 = vmul.f32 %v3600_v48, %v5754_v58  ;;  %v3708_v39 = vpop.permute.xlu1 %3707  ;;  %v3620_v13 = vsel %vm3619_vm2, %v4556_v18, %v3616_v15  ;;  %vm3813_vm13 = vcmask 1042434  }
 0xf62   : > { %v3624_v27 = vmul.f32 0.5, %v3623_v44  ;;  %v3672_v28 = vmul.f32 %v5825_v40, %v3662_v62  ;;  %v3663_v45 = vmul.f32 %v3620_v13, %v5752_v30  ;;  %v3643_v31 = vmul.f32 %v5816_v11, %v3642_v16  ;;  %3846 = vmatpush.bf16.msra.mxu0 %v4257_v6 }
 0xf63   : > { %v3635_v19 = vsub.f32 1.5, %v3634_v50  ;;  %v3671_v58 = vmul.f32 %v5825_v40, %v3661_v53  ;;  %vm3817_vm15 = vcmask 1044484   ;;  %vm3865_vm2 = vcmask 253952  }
 0xf64   : > { %v3625_v9 = vsub.f32 1.5, %v3624_v27  ;;  %v3682_v2 = vadd.f32 %v5836_v54, %v3672_v28  ;;  %v3673_v17 = vmul.f32 %v5825_v40, %v3663_v45  ;;  %v3644_v22 = vmul.f32 0.5, %v3643_v31 }
 0xf65   : > { %v3636_v37 = vmul.f32 %v4558_v55, %v3635_v19  ;;  %v3681_v51 = vadd.f32 %v5836_v54, %v3671_v58 }
 0xf66   : > { %v3626_v35 = vmul.f32 %v4560_v3, %v3625_v9  ;;  %v3731_v30 = vmul.f32 %v3703_v33, %v3682_v2  ;;  %v3645_v24 = vsub.f32 1.5, %v3644_v22 }
 0xf67   : > { %v3640_v46 = vsel %vm5818_vm0, %v4558_v55, %v3636_v37  ;;  %v3730_v55 = vmul.f32 %v5798_v20, %v3681_v51  ;;  %vm3819_vm0 = vcmask 1045509  }
 0xf68   : > { %v3630_v5 = vsel %vm3629_vm5, %v4560_v3, %v3626_v35  ;;  %v3665_v8 = vmul.f32 %v3640_v46, %v5776_v29  ;;  %v3744_v26 = vsel %vm964_vm4, %v3731_v30, 0.0  ;;  %v3646_v34 = vmul.f32 %v5816_v11, %v3645_v24 }
 0xf69   : > { %v3664_v60 = vmul.f32 %v3630_v5, %v5768_v59  ;;  %v3683_v59 = vadd.f32 %v5836_v54, %v3673_v17  ;;  %v3737_v14 = vsel %vm964_vm4, %v3730_v55, 0.0  ;;  %v3745_v42 = vrot.slane %v3744_v26, 4 }
 0xf6a   : > { %v3675_v32 = vmul.f32 %v5825_v40, %v3665_v8  ;;  %v3738_v56 = vrot.slane %v3737_v14, 4  ;;  %v3650_v10 = vsel %vm5858_vm8, %v5816_v11, %v3646_v34 }
 0xf6b   : > { %v3674_v63 = vmul.f32 %v5825_v40, %v3664_v60  ;;  %v3732_v0 = vmul.f32 %v3708_v39, %v3683_v59  ;;  %v3746_v36 = vadd.f32 %v3745_v42, %v3744_v26  ;;  %v3666_v15 = vmul.f32 %v3650_v10, %v5766_v43 }
 0xf6c   : > { %v3685_v7 = vadd.f32 %v5836_v54, %v3675_v32  ;;  %v3739_v21 = vadd.f32 %v3738_v56, %v3737_v14 }
 0xf6d   : > { %v3684_v4 = vadd.f32 %v5836_v54, %v3674_v63  ;;  %v3751_v44 = vsel %vm964_vm4, %v3732_v0, 0.0  ;;  %v3747_v48 = vrot.slane %v3746_v36, 2  ;;  %v3676_v39 = vmul.f32 %v5825_v40, %v3666_v15 }
 0xf6e   : > { %v3752_v27 = vrot.slane %v3751_v44, 4  ;;  %v3740_v35 = vrot.slane %v3739_v21, 2 }
 0xf6f   : > { %v3733_v38 = vmul.f32 %v3713_v41, %v3684_v4  ;;  %v3748_v16 = vadd.f32 %v3747_v48, %v3746_v36  ;;  %v3686_v31 = vadd.f32 %v5836_v54, %v3676_v39 }
 0xf70   : > { %v3753_v37 = vadd.f32 %v3752_v27, %v3751_v44  ;;  %v3741_v28 = vadd.f32 %v3740_v35, %v3739_v21 }
 0xf71   : > { %v3758_v50 = vsel %vm964_vm4, %v3733_v38, 0.0  ;;  %v3749_v43 = vrot.slane %v3748_v16, 1 }
 0xf72   : > { %v3759_v23 = vrot.slane %v3758_v50, 4  ;;  %v3754_v13 = vrot.slane %v3753_v37, 2  ;;  %v3742_v2 = vrot.slane %v3741_v28, 1 }
 0xf73   : > { %v3750_v22 = vadd.f32 %v3749_v43, %v3748_v16 }
 0xf74   : > { %v3760_v11 = vadd.f32 %v3759_v23, %v3758_v50  ;;  %v3755_v60 = vadd.f32 %v3754_v13, %v3753_v37  ;;  %v3743_v59 = vadd.f32 %v3742_v2, %v3741_v28 }
 0xf75   : > { %v3787_v4 = vpack.c.bf16 %v3750_v22, %v3750_v22 }
 0xf76   : > { %v3761_v45 = vrot.slane %v3760_v11, 2 }
 0xf77   : > { %v3805_v38 = vunpack.c.l.b16 %v3787_v4 }
 0xf78   : > { %v3762_v32 = vadd.f32 %v3761_v45, %v3760_v11 }
 0xf7a   : > { %v3763_v24 = vrot.slane %v3762_v32, 1 }
 0xf7c   : > { %v3764_v34 = vadd.f32 %v3763_v24, %v3762_v32 }
 0xf7e   : > { %v3789_v50 = vpack.c.bf16 %v3764_v34, %v3764_v34 }
 0xf80   : > { %v3807_v23 = vunpack.c.l.b16 %v3789_v50 }
 0xf8c   : > { %v3576_v18 = vpop.xlane.xlu1 %3575 }
 0xf8d   : > { %v3583_v29 = vmul.f32 %v3576_v18, %v4873_v61  ;;  %v3718_v61 = vpop.permute.xlu2 %3717  ;;  %v3756_v18 = vrot.slane %v3755_v60, 1 }
 0xf8e   : > { %v3734_v20 = vmul.f32 %v3718_v61, %v3685_v7  ;;  %v3786_v61 = vpack.c.bf16 %v3743_v59, %v3743_v59 }
 0xf8f   : > { %v3590_v3 = vadd.f32 1e-05, %v3583_v29 }
 0xf90   : > { %v3765_v49 = vsel %vm964_vm4, %v3734_v20, 0.0  ;;  %v3804_v47 = vunpack.c.l.b16 %v3786_v61 }
 0xf91   : > { %4563 = vrsqrt.f32 %v3590_v3  ;;  %v3766_v19 = vrot.slane %v3765_v49, 4  ;;  %vm3657_vm10 = vweird.f32 %v3590_v3 }
 0xf92   : > { %v3812_v27 = vsel %vm3811_vm12, %v3805_v38, %v3804_v47 }
 0xf93   : > { %v3767_v12 = vadd.f32 %v3766_v19, %v3765_v49 }
 0xf95   : > { %v3768_v5 = vrot.slane %v3767_v12, 2  ;;  %v3728_v29 = vpop.permute.xlu2 %3727 }
 0xf97   : > { %v4564_v52 = vpop.eup %4563  ;;  %v3769_v17 = vadd.f32 %v3768_v5, %v3767_v12 }
 0xf98   : > { %v3652_v1 = vmul.f32 %v4564_v52, %v3590_v3  ;;  %vm3658_vm9 = vweird.f32 %v4564_v52 }
 0xf99   : > { %vm3659_vm11 = vmor %vm3657_vm10, %vm3658_vm9  ;;  %v3770_v7 = vrot.slane %v3769_v17, 1 }
 0xf9a   : > { %v3653_v9 = vmul.f32 %v4564_v52, %v3652_v1 }
 0xf9b   : > { %v3771_v20 = vadd.f32 %v3770_v7, %v3769_v17 }
 0xf9c   : > { %v3654_v62 = vmul.f32 0.5, %v3653_v9 }
 0xf9e   : > { %v3655_v53 = vsub.f32 1.5, %v3654_v62 }
 0xfa0   : > { %v3656_v46 = vmul.f32 %v4564_v52, %v3655_v53 }
 0xfa2   : > { %v3660_v58 = vsel %vm3659_vm11, %v4564_v52, %v3656_v46  ;;  %v3790_v52 = vpack.c.bf16 %v3771_v20, %v3771_v20 }
 0xfa3   : > { %v3667_v8 = vmul.f32 %v3660_v58, %v5792_v25 }
 0xfa4   : > { %v3723_v41 = vpop.permute.xlu1 %3722  ;;  %v3808_v21 = vunpack.c.l.b16 %v3790_v52 }
 0xfa5   : > { %v3677_v33 = vmul.f32 %v5825_v40, %v3667_v8  ;;  %v3735_v51 = vmul.f32 %v3723_v41, %v3686_v31  ;;  %v3757_v40 = vadd.f32 %v3756_v18, %v3755_v60 }
 0xfa7   : > { %v3687_v63 = vadd.f32 %v5836_v54, %v3677_v33  ;;  %v3772_v30 = vsel %vm964_vm4, %v3735_v51, 0.0  ;;  %v3788_v56 = vpack.c.bf16 %v3757_v40, %v3757_v40 }
 0xfa8   : > { %v3773_v55 = vrot.slane %v3772_v30, 4 }
 0xfa9   : > { %v3736_v25 = vmul.f32 %v3728_v29, %v3687_v63  ;;  %v3806_v1 = vunpack.c.l.b16 %v3788_v56 }
 0xfaa   : > { %v3774_v3 = vadd.f32 %v3773_v55, %v3772_v30 }
 0xfab   : > { %v3779_v26 = vsel %vm964_vm4, %v3736_v25, 0.0  ;;  %v3814_v9 = vsel %vm3813_vm13, %v3806_v1, %v3812_v27 }
 0xfac   : > { %v3775_v0 = vrot.slane %v3774_v3, 2  ;;  %v3780_v14 = vrot.slane %v3779_v26, 4  ;;  %v3816_v37 = vsel %vm3815_vm14, %v3807_v23, %v3814_v9 }
 0xfad   : > { %v3818_v35 = vsel %vm3817_vm15, %v3808_v21, %v3816_v37 }
 0xfae   : > { %v3776_v42 = vadd.f32 %v3775_v0, %v3774_v3  ;;  %v3781_v54 = vadd.f32 %v3780_v14, %v3779_v26 }
 0xfb0   : > { %v3777_v57 = vrot.slane %v3776_v42, 1  ;;  %v3782_v44 = vrot.slane %v3781_v54, 2 }
 0xfb2   : > { %v3778_v49 = vadd.f32 %v3777_v57, %v3776_v42  ;;  %v3783_v36 = vadd.f32 %v3782_v44, %v3781_v54 }
 0xfb4   : > { %v3791_v10 = vpack.c.bf16 %v3778_v49, %v3778_v49  ;;  %v3784_v6 = vrot.slane %v3783_v36, 1 }
 0xfb6   : > { %v3785_v19 = vadd.f32 %v3784_v6, %v3783_v36  ;;  %v3809_v48 = vunpack.c.l.b16 %v3791_v10 }
 0xfb8   : > { %v3792_v15 = vpack.c.bf16 %v3785_v19, %v3785_v19  ;;  %v3820_v12 = vsel %vm3819_vm0, %v3809_v48, %v3818_v35 }
 0xfba   : > { %v3810_v62 = vunpack.c.l.b16 %v3792_v15 }
 0xfbc   : > { %v3822_v53 = vsel %vm3821_vm1, %v3810_v62, %v3820_v12 }
 0xfbd   : > { %v3823_v11 = vpack.c.b16 %v3822_v53, %v3822_v53 }
 0xfbf   : > { %4236 = vmatmul.msk.bf16.vlgmr.msra.gmra.mxu0 %vm964_vm4, %v3823_v11 }
0x103c   : > { %v3848_v16 = vpop.f32.mrf.mxu0 }
0x103d   : > { %v3853_v39 = vrot.slane %v3848_v16, 1  ;;  %v3854_v13 = vrot.slane %v3848_v16, 2  ;;  %v3855_v46 = vrot.slane %v3848_v16, 3  ;;  %3866 = vst.msk [vmem:[%s4829_s22] sm:$0x1] %vm3865_vm2, %v3848_v16  ;;  %v3856_v28 = vrot.slane %v3848_v16, 4 }
0x103e   : > { %v3857_v5 = vrot.slane %v3848_v16, 5  ;;  %v3858_v58 = vrot.slane %v3848_v16, 6 }
0x103f   : > { %3867 = vst.msk [vmem:[%s4829_s22 + $0x1] sm:$0x1] %vm3865_vm2, %v3853_v39 }
0x1040   : > { %3868 = vst.msk [vmem:[%s4829_s22 + $0x2] sm:$0x1] %vm3865_vm2, %v3854_v13 }
0x1041   : > { %3869 = vst.msk [vmem:[%s4829_s22 + $0x3] sm:$0x1] %vm3865_vm2, %v3855_v46 }
0x1042   : > { %3870 = vst.msk [vmem:[%s4829_s22 + $0x4] sm:$0x1] %vm3865_vm2, %v3856_v28 }
0x1043   : > { %3871 = vst.msk [vmem:[%s4829_s22 + $0x5] sm:$0x1] %vm3865_vm2, %v3857_v5 }
0x1044   : > { %3872 = vst.msk [vmem:[%s4829_s22 + $0x6] sm:$0x1] %vm3865_vm2, %v3858_v58  ;;  %v3850_v45 = vpop.f32.mrf.mxu0 }
0x1045 PF: > { %s5988_s3 = sld [smem:[#allocation6_spill]] }
0x1046   : > { %s5989_s0 = sld [smem:[#allocation4_spill]] }
0x1047   : > { %s5990_s30 = sld [smem:[#allocation5_spill]] }
0x1048   : > { %s5991_s20 = sld [smem:[#allocation7_spill]] }
0x1049   : > { %s5992_s21 = sld [smem:[#allocation8_spill]] }
0x104b   : > { %s29_s1 = sadd.s32 1, %s5988_s3  }
0x104c   : > { %p26_p12 = scmp.ge.s32.totalorder %s29_s1, 6  }
0x104e   :  { %28 = sbr.rel (!%p26_p12) target bundleno = 17 (0x11), region = 180 }

</bundles_post_ra>
